<compile_context>
chip_gen: v5e
topology: v5e:2x2
jax: 0.10.0
libtpu: 0.0.40
codegen_flags: <defaults>
</compile_context>

<pallas_src>
import math
import numpy as np
import jax
import jax.numpy as jnp
from jax import lax
from jax.experimental import pallas as pl
from jax.experimental.pallas import tpu as pltpu


# ---------------------------------------------------------------------------
# Clenshaw-Curtis quadrature weights / abscissae (port of UMNN's
# compute_cc_weights used by ParallelNeuralIntegral.forward).
# ---------------------------------------------------------------------------
def compute_cc_weights(nb_steps):
    lam = np.arange(0, nb_steps + 1, 1).reshape(-1, 1)
    lam = np.cos((lam @ lam.T) * math.pi / nb_steps)
    lam[:, 0] = 0.5
    lam[:, -1] = 0.5 * lam[:, -1]
    lam = lam * 2.0 / nb_steps
    W = np.arange(0, nb_steps + 1, 1).reshape(-1, 1)
    W[np.arange(1, nb_steps + 1, 2)] = 0
    W = 2.0 / (1 - W ** 2)
    W[0] = 1
    W[np.arange(1, nb_steps + 1, 2)] = 0
    cc_weights = (lam.T @ W).astype(np.float32).reshape(-1)                    # (T,)
    steps = np.cos(np.arange(0, nb_steps + 1, 1) * math.pi / nb_steps)         # (T,)
    return cc_weights, steps.astype(np.float32)


# ---------------------------------------------------------------------------
# Pallas kernel.  One grid step handles TB batch rows.
#
# Packed inputs (built once in the wrapper):
#   xh   (TB, D)        f32  : [x | h]
#   quad (T_pad, 2)     f32  : col 0 = (steps+1)/2, col 1 = CC weights (0 on padding)
#   w1p  (D+2, 2H1)     f32  : rows 0..D-1 = [0 ; w1[1:,:] | v1] (x-row zeroed),
#                              row D = [w1[0,:] | 0], row D+1 = [b1 | c1]
#   w2p  (2H1+1, 2H2)   mm   : rows 0..2H1-1 = blockdiag(w2, v2), last row = [b2 | c2]
#   w3p  (2H2+1, 3)     mm   : col 0 = [w3 ; 0], cols 1:3 = [0 ; v3], last row = [b3|c3]
# Scratch: a1 (CT*TB, 2H1) mm, a2 (CT*TB, 2H2) mm  (staged ReLU activations).
# ---------------------------------------------------------------------------
def _monotonic_kernel(xh_ref, quad_ref, w1p_ref, w2p_ref, w3p_ref,
                      o_ref, a1_ref, a2_ref):
    f32 = jnp.float32
    TB, D = xh_ref.shape
    T_pad = quad_ref.shape[0]
    CT = a1_ref.shape[0] // TB          # quadrature points per chunk
    NC = T_pad // CT                    # number of chunks
    n2h1 = w1p_ref.shape[1]             # 2 * H1
    n2h2 = w2p_ref.shape[1]             # 2 * H2
    mm = a1_ref.dtype                   # matmul operand dtype (bf16 or f32)

    # --- unpack fused weights (static ref slices: no runtime cost) -------------
    w1xh = w1p_ref[0:D, :]                          # (D, 2H1)  f32, x-row zeroed
    w1t = w1p_ref[D:D + 1, :]                       # (1, 2H1)  f32, t-row of w1
    b1f = w1p_ref[D + 1:D + 2, :]                   # (1, 2H1)  f32, [b1 | c1]
    w2f = w2p_ref[0:n2h1, :]                        # (2H1, 2H2) mm, blockdiag(w2, v2)
    b2f = w2p_ref[n2h1:n2h1 + 1, :].astype(f32)     # (1, 2H2)
    w3f = w3p_ref[0:n2h2, :]                        # (2H2, 3)  mm
    b3f = w3p_ref[n2h2:n2h2 + 1, :].astype(f32)     # (1, 3)
    w3i, w3c = w3f[:, 0:1], w3f[:, 1:3]             # integrand / conditioner heads
    b3i, b3c = b3f[:, 0:1], b3f[:, 1:3]

    xh = xh_ref[...]                                # (TB, D) f32; col 0 = x
    x_col = xh[:, 0:1]

    # Layer-1 h-contribution (+ fused conditioner layer-1 pre-activation):
    # ONE small matmul per batch tile (x column contributes 0 via the zeroed row).
    hw = jnp.dot(xh, w1xh, preferred_element_type=f32) + b1f        # (TB, 2H1)

    def chunk_body(c, acc):
        # Stage ReLU(layer 1) for CT quadrature points, t-major (VPU only).
        for j in range(CT):
            t = c * CT + j
            sp1h_t = quad_ref[pl.ds(t, 1), 0:1]                     # (1, 1)
            pre1 = (x_col * sp1h_t) * w1t + hw                      # (TB, 2H1)
            a1_ref[j * TB:(j + 1) * TB, :] = jnp.maximum(pre1, 0.0).astype(mm)

        # Chunk-wide layer-2 / layer-3 matmuls: M = CT*TB rows per MXU issue.
        pre2 = jnp.dot(a1_ref[...], w2f, preferred_element_type=f32) + b2f
        a2_ref[...] = jnp.maximum(pre2, 0.0).astype(mm)
        z = jnp.dot(a2_ref[...], w3i, preferred_element_type=f32) + b3i   # (CT*TB, 1)
        fint = jnp.where(z > 0.0, z, jnp.exp(z) - 1.0) + 1.0              # ELU(z) + 1

        # Clenshaw-Curtis partial sums for this chunk (padded points have ccw = 0).
        for j in range(CT):
            t = c * CT + j
            ccw_t = quad_ref[pl.ds(t, 1), 1:2]                      # (1, 1)
            acc = acc + ccw_t * fint[j * TB:(j + 1) * TB, :]
        return acc

    z_est = lax.fori_loop(0, NC, chunk_body, jnp.zeros((TB, 1), f32))
    integral = z_est * x_col * 0.5                  # * (x - x0) / 2, x0 = 0

    # Conditioner head (t-independent): offset and log-scaling, TB rows only.
    a1c = jnp.maximum(hw, 0.0).astype(mm)                           # (TB, 2H1)
    a2c = jnp.maximum(
        jnp.dot(a1c, w2f, preferred_element_type=f32) + b2f, 0.0).astype(mm)
    cond = jnp.dot(a2c, w3c, preferred_element_type=f32) + b3c      # (TB, 2)
    offset = cond[:, 0:1]
    scaling = jnp.exp(cond[:, 1:2])

    # Single vectorized store per grid step.
    o_ref[...] = (scaling * integral + offset).astype(o_ref.dtype)


# ---------------------------------------------------------------------------
# Wrapper: weight packing (once), batch padding/tiling, BlockSpecs.
# ---------------------------------------------------------------------------
def monotonic_nn_forward(x, h, params, nb_steps=50, block_b=128, quad_chunk=8,
                         matmul_dtype=jnp.bfloat16):
    (w1, b1, w2, b2, w3, b3, v1, c1, v2, c2, v3, c3) = params
    f32 = jnp.float32
    B = x.shape[0]
    dm1 = h.shape[1]
    D = dm1 + 1
    H1 = w1.shape[1]
    H2 = w2.shape[1]
    T = nb_steps + 1

    # --- quadrature constants, padded to a multiple of the chunk size ----------
    CT = max(1, int(quad_chunk))
    T_pad = ((T + CT - 1) // CT) * CT
    ccw_np, steps_np = compute_cc_weights(nb_steps)
    sp1h_np = np.zeros((T_pad,), np.float32)
    sp1h_np[:T] = (steps_np + 1.0) * 0.5
    ccwp_np = np.zeros((T_pad,), np.float32)        # zero weight on padded points
    ccwp_np[:T] = ccw_np
    quad = jnp.asarray(np.stack([sp1h_np, ccwp_np], axis=1))        # (T_pad, 2)

    # --- packed fused weights (host side, once) --------------------------------
    w1p = jnp.concatenate([
        jnp.zeros((1, 2 * H1), f32),                                # x-row zeroed
        jnp.concatenate([w1[1:, :], v1], axis=1),                   # h rows | cond v1
        jnp.concatenate([w1[0:1, :], jnp.zeros((1, H1), f32)], axis=1),   # t-row
        jnp.concatenate([b1, c1], axis=1),                          # biases
    ], axis=0).astype(f32)                                          # (D+2, 2H1)

    w2f = jnp.concatenate([
        jnp.concatenate([w2, jnp.zeros((H1, H2), f32)], axis=1),
        jnp.concatenate([jnp.zeros((H1, H2), f32), v2], axis=1)], axis=0)
    w2p = jnp.concatenate([w2f, jnp.concatenate([b2, c2], axis=1)],
                          axis=0).astype(matmul_dtype)              # (2H1+1, 2H2)

    w3f = jnp.concatenate([
        jnp.concatenate([w3, jnp.zeros((H2, 2), f32)], axis=1),
        jnp.concatenate([jnp.zeros((H2, 1), f32), v3], axis=1)], axis=0)
    w3p = jnp.concatenate([w3f, jnp.concatenate([b3, c3], axis=1)],
                          axis=0).astype(matmul_dtype)              # (2H2+1, 3)

    # --- batch tiling: fixed tile, pad B up (never fall back to tb = B) --------
    tb = max(8, (int(block_b) // 8) * 8)
    b_pad = ((B + tb - 1) // tb) * tb
    xh = jnp.concatenate([x.astype(f32), h.astype(f32)], axis=1)    # (B, D)
    if b_pad != B:
        xh = jnp.concatenate([xh, jnp.zeros((b_pad - B, D), f32)], axis=0)
    grid = (b_pad // tb,)

    cost = pl.CostEstimate(
        flops=int(b_pad * (T_pad * (2 * (2 * H1) * (2 * H2) + 2 * (2 * H2))
                           + 2 * D * (2 * H1) + 2 * (2 * H2) * 3)),
        transcendentals=int(b_pad * (T_pad + 1)),
        bytes_accessed=int(xh.size * 4 + quad.size * 4
                           + w1p.size * w1p.dtype.itemsize
                           + w2p.size * w2p.dtype.itemsize
                           + w3p.size * w3p.dtype.itemsize
                           + b_pad * 4))

    out = pl.pallas_call(
        _monotonic_kernel,
        out_shape=jax.ShapeDtypeStruct((b_pad, 1), f32),
        grid=grid,
        in_specs=[
            pl.BlockSpec((tb, D), lambda i: (i, 0)),                # xh (batch tiled)
            pl.BlockSpec((T_pad, 2), lambda i: (0, 0)),             # quadrature consts
            pl.BlockSpec(w1p.shape, lambda i: (0, 0)),              # layer-1 pack (f32)
            pl.BlockSpec(w2p.shape, lambda i: (0, 0)),              # layer-2 pack
            pl.BlockSpec(w3p.shape, lambda i: (0, 0)),              # layer-3 pack
        ],
        out_specs=pl.BlockSpec((tb, 1), lambda i: (i, 0)),
        scratch_shapes=[
            pltpu.VMEM((CT * tb, 2 * H1), matmul_dtype),            # staged ReLU(l1)
            pltpu.VMEM((CT * tb, 2 * H2), matmul_dtype),            # staged ReLU(l2)
        ],
        compiler_params=pltpu.CompilerParams(
            dimension_semantics=("parallel",),
            vmem_limit_bytes=32 * 1024 * 1024),
        cost_estimate=cost,
    )(xh, quad, w1p, w2p, w3p)
    return out[:B]


# ---------------------------------------------------------------------------
# Deterministic parameter init (mirrors nn.Linear's U(-1/sqrt(fan_in), ...);
# weights stored as (fan_in, fan_out), i.e. the transpose of torch's layout).
# ---------------------------------------------------------------------------
def init_params(key, in_d, hidden):
    def linear(k, fi, fo):
        kw, kb = jax.random.split(k)
        bound = 1.0 / math.sqrt(fi)
        w = jax.random.uniform(kw, (fi, fo), jnp.float32, -bound, bound)
        b = jax.random.uniform(kb, (1, fo), jnp.float32, -bound, bound)
        return w, b

    ks = jax.random.split(key, 6)
    h1, h2 = hidden
    w1, b1 = linear(ks[0], in_d, h1)        # integrand: in_d -> h1
    w2, b2 = linear(ks[1], h1, h2)          # integrand: h1 -> h2
    w3, b3 = linear(ks[2], h2, 1)           # integrand: h2 -> 1
    v1, c1 = linear(ks[3], in_d - 1, h1)    # conditioner: (in_d-1) -> h1
    v2, c2 = linear(ks[4], h1, h2)          # conditioner: h1 -> h2
    v3, c3 = linear(ks[5], h2, 2)           # conditioner: h2 -> 2
    return (w1, b1, w2, b2, w3, b3, v1, c1, v2, c2, v3, c3)


# ---------------------------------------------------------------------------
# Pure-JAX reference of the same forward pass (for the correctness check).
# ---------------------------------------------------------------------------
def reference_forward(x, h, params, nb_steps=50):
    (w1, b1, w2, b2, w3, b3, v1, c1, v2, c2, v3, c3) = params
    B = x.shape[0]
    T = nb_steps + 1
    ccw_np, steps_np = compute_cc_weights(nb_steps)
    ccw = jnp.asarray(ccw_np)
    steps = jnp.asarray(steps_np)

    x_steps = x[:, None, :] * (steps[None, :, None] + 1.0) * 0.5               # (B, T, 1)
    h_rep = jnp.broadcast_to(h[:, None, :], (B, T, h.shape[1]))                # (B, T, D-1)
    xin = jnp.concatenate([x_steps, h_rep], axis=2).reshape(B * T, -1)         # (B*T, D)

    a1 = jax.nn.relu(xin @ w1 + b1)
    a2 = jax.nn.relu(a1 @ w2 + b2)
    z3 = a2 @ w3 + b3
    f = jnp.where(z3 > 0.0, z3, jnp.exp(z3) - 1.0) + 1.0                       # ELU + 1
    f = f.reshape(B, T)
    z_est = jnp.sum(f * ccw[None, :], axis=1, keepdims=True)
    integral = z_est * x * 0.5

    g1 = jax.nn.relu(h @ v1 + c1)
    g2 = jax.nn.relu(g1 @ v2 + c2)
    out2 = g2 @ v3 + c3
    return jnp.exp(out2[:, 1:2]) * integral + out2[:, 0:1]


if __name__ == "__main__":
    key = jax.random.PRNGKey(0)
    in_d = 4            # x is the 1-D integration variable, h carries in_d - 1 features
    hidden = [32, 32]   # hidden_layers
    nb_steps = 50       # module default
    # B is deliberately NOT a multiple of the batch tile: exercises the B-padding
    # path and a 2-step "parallel" grid while staying a tiny problem size.
    B = 200

    kx, kh, kp = jax.random.split(key, 3)
    x = jax.random.normal(kx, (B, 1), jnp.float32)
    h = jax.random.normal(kh, (B, in_d - 1), jnp.float32)
    params = init_params(kp, in_d, hidden)

    ref = reference_forward(x, h, params, nb_steps)

    # Exact-parity path (f32 MXU operands).
    out_f32 = jax.block_until_ready(
        monotonic_nn_forward(x, h, params, nb_steps, block_b=128,
                             matmul_dtype=jnp.float32))
    if not np.allclose(np.asarray(out_f32), np.asarray(ref), rtol=2e-3, atol=2e-3):
        raise AssertionError("f32 Pallas kernel does not match the pure-JAX reference")

    # Fast path (bf16 MXU operands, f32 accumulation and f32 elementwise math).
    out_bf16 = jax.block_until_ready(
        monotonic_nn_forward(x, h, params, nb_steps, block_b=128,
                             matmul_dtype=jnp.bfloat16))
    if not np.allclose(np.asarray(out_bf16), np.asarray(ref), rtol=2e-2, atol=2e-2):
        raise AssertionError("bf16 Pallas kernel deviates too much from the reference")

    print("KERNEL_OK")
</pallas_src>

<mosaic_0001>
module attributes {stable_mosaic.version = 11 : i64} {
  func.func @_monotonic_kernel(%arg0: i32, %arg1: memref<128x4xf32, #tpu.memory_space<vmem>>, %arg2: memref<56x2xf32, #tpu.memory_space<vmem>>, %arg3: memref<6x64xf32, #tpu.memory_space<vmem>>, %arg4: memref<65x64xf32, #tpu.memory_space<vmem>>, %arg5: memref<65x3xf32, #tpu.memory_space<vmem>>, %arg6: memref<128x1xf32, #tpu.memory_space<vmem>>, %arg7: memref<1024x64xf32, #tpu.memory_space<vmem>>, %arg8: memref<1024x64xf32, #tpu.memory_space<vmem>>) attributes {dimension_semantics = [#tpu.dimension_semantics<parallel>], iteration_bounds = array<i64: 2>, scalar_prefetch = 0 : i64, scratch_operands = 2 : i64, tpu.core_type = #tpu.core_type<tc>, window_params = [{transform_indices = @transform_0, window_bounds = array<i64: 128, 4>}, {pipeline_mode = #tpu.pipeline_mode<synchronous>, transform_indices = @transform_1, window_bounds = array<i64: 56, 2>}, {pipeline_mode = #tpu.pipeline_mode<synchronous>, transform_indices = @transform_2, window_bounds = array<i64: 6, 64>}, {pipeline_mode = #tpu.pipeline_mode<synchronous>, transform_indices = @transform_3, window_bounds = array<i64: 65, 64>}, {pipeline_mode = #tpu.pipeline_mode<synchronous>, transform_indices = @transform_4, window_bounds = array<i64: 65, 3>}, {transform_indices = @transform_5, window_bounds = array<i64: 128, 1>}]} {
    %c0 = arith.constant 0 : index
    %c0_0 = arith.constant 0 : index
    %0 = vector.load %arg3[%c0, %c0_0] : memref<6x64xf32, #tpu.memory_space<vmem>>, vector<4x64xf32>
    %c4 = arith.constant 4 : index
    %c0_1 = arith.constant 0 : index
    %1 = vector.load %arg3[%c4, %c0_1] : memref<6x64xf32, #tpu.memory_space<vmem>>, vector<1x64xf32>
    %c5 = arith.constant 5 : index
    %c0_2 = arith.constant 0 : index
    %2 = vector.load %arg3[%c5, %c0_2] : memref<6x64xf32, #tpu.memory_space<vmem>>, vector<1x64xf32>
    %c0_3 = arith.constant 0 : index
    %c0_4 = arith.constant 0 : index
    %3 = vector.load %arg4[%c0_3, %c0_4] : memref<65x64xf32, #tpu.memory_space<vmem>>, vector<64x64xf32>
    %c64 = arith.constant 64 : index
    %c0_5 = arith.constant 0 : index
    %4 = vector.load %arg4[%c64, %c0_5] : memref<65x64xf32, #tpu.memory_space<vmem>>, vector<1x64xf32>
    %c0_6 = arith.constant 0 : index
    %c0_7 = arith.constant 0 : index
    %5 = vector.load %arg5[%c0_6, %c0_7] : memref<65x3xf32, #tpu.memory_space<vmem>>, vector<64x3xf32>
    %c64_8 = arith.constant 64 : index
    %c0_9 = arith.constant 0 : index
    %6 = vector.load %arg5[%c64_8, %c0_9] : memref<65x3xf32, #tpu.memory_space<vmem>>, vector<1x3xf32>
    %7 = vector.extract_strided_slice %5 {offsets = [0, 0], sizes = [64, 1], strides = [1, 1]} : vector<64x3xf32> to vector<64x1xf32>
    %8 = vector.extract_strided_slice %5 {offsets = [0, 1], sizes = [64, 2], strides = [1, 1]} : vector<64x3xf32> to vector<64x2xf32>
    %9 = vector.extract_strided_slice %6 {offsets = [0, 0], sizes = [1, 1], strides = [1, 1]} : vector<1x3xf32> to vector<1x1xf32>
    %10 = vector.extract_strided_slice %6 {offsets = [0, 1], sizes = [1, 2], strides = [1, 1]} : vector<1x3xf32> to vector<1x2xf32>
    %c0_10 = arith.constant 0 : index
    %c0_11 = arith.constant 0 : index
    %11 = vector.load %arg1[%c0_10, %c0_11] : memref<128x4xf32, #tpu.memory_space<vmem>>, vector<128x4xf32>
    %12 = vector.extract_strided_slice %11 {offsets = [0, 0], sizes = [128, 1], strides = [1, 1]} : vector<128x4xf32> to vector<128x1xf32>
    %cst = arith.constant dense<0.000000e+00> : vector<128x64xf32>
    %13 = tpu.matmul %11, %0, %cst {dimension_numbers = #tpu.dot_dimension_numbers<[1], [0], [0], [1], [0, 0, 1, 1], [], []>} : vector<128x4xf32>, vector<4x64xf32>, vector<128x64xf32> -> vector<128x64xf32>
    %14 = vector.broadcast %2 : vector<1x64xf32> to vector<128x64xf32>
    %15 = arith.addf %13, %14 : vector<128x64xf32>
    %cst_12 = arith.constant 0.000000e+00 : f32
    %16 = vector.broadcast %cst_12 : f32 to vector<128x1xf32>
    %c0_i32 = arith.constant 0 : i32
    %c7_i32 = arith.constant 7 : i32
    %17 = arith.addi %c0_i32, %c7_i32 : i32
    %c1_i32 = arith.constant 1 : i32
    %18 = scf.for %arg9 = %c0_i32 to %17 step %c1_i32 iter_args(%arg10 = %16) -> (vector<128x1xf32>)  : i32 {
      %c8_i32 = arith.constant 8 : i32
      %38 = arith.muli %arg9, %c8_i32 : i32
      %c0_i32_21 = arith.constant 0 : i32
      %39 = arith.addi %38, %c0_i32_21 : i32
      %40 = arith.index_cast %39 : i32 to index
      %c0_22 = arith.constant 0 : index
      %41 = vector.load %arg2[%40, %c0_22] : memref<56x2xf32, #tpu.memory_space<vmem>>, vector<1x1xf32>
      %42 = vector.broadcast %41 : vector<1x1xf32> to vector<128x1xf32>
      %43 = arith.mulf %12, %42 : vector<128x1xf32>
      %44 = vector.broadcast %43 : vector<128x1xf32> to vector<128x64xf32>
      %45 = vector.broadcast %1 : vector<1x64xf32> to vector<128x64xf32>
      %46 = arith.mulf %44, %45 : vector<128x64xf32>
      %47 = arith.addf %46, %15 : vector<128x64xf32>
      %cst_23 = arith.constant 0.000000e+00 : f32
      %48 = vector.broadcast %cst_23 : f32 to vector<128x64xf32>
      %49 = arith.maximumf %47, %48 : vector<128x64xf32>
      %c0_24 = arith.constant 0 : index
      %c0_25 = arith.constant 0 : index
      %50 = vector.load %arg7[%c0_24, %c0_25] : memref<1024x64xf32, #tpu.memory_space<vmem>>, vector<128x64xf32>
      tpu.vector_store %arg7[%c0_24, %c0_25], %49 {strides = array<i32>} : memref<1024x64xf32, #tpu.memory_space<vmem>>, vector<128x64xf32>,
      %c8_i32_26 = arith.constant 8 : i32
      %51 = arith.muli %arg9, %c8_i32_26 : i32
      %c1_i32_27 = arith.constant 1 : i32
      %52 = arith.addi %51, %c1_i32_27 : i32
      %53 = arith.index_cast %52 : i32 to index
      %c0_28 = arith.constant 0 : index
      %54 = vector.load %arg2[%53, %c0_28] : memref<56x2xf32, #tpu.memory_space<vmem>>, vector<1x1xf32>
      %55 = vector.broadcast %54 : vector<1x1xf32> to vector<128x1xf32>
      %56 = arith.mulf %12, %55 : vector<128x1xf32>
      %57 = vector.broadcast %56 : vector<128x1xf32> to vector<128x64xf32>
      %58 = vector.broadcast %1 : vector<1x64xf32> to vector<128x64xf32>
      %59 = arith.mulf %57, %58 : vector<128x64xf32>
      %60 = arith.addf %59, %15 : vector<128x64xf32>
      %cst_29 = arith.constant 0.000000e+00 : f32
      %61 = vector.broadcast %cst_29 : f32 to vector<128x64xf32>
      %62 = arith.maximumf %60, %61 : vector<128x64xf32>
      %c128 = arith.constant 128 : index
      %c0_30 = arith.constant 0 : index
      %63 = vector.load %arg7[%c128, %c0_30] : memref<1024x64xf32, #tpu.memory_space<vmem>>, vector<128x64xf32>
      tpu.vector_store %arg7[%c128, %c0_30], %62 {strides = array<i32>} : memref<1024x64xf32, #tpu.memory_space<vmem>>, vector<128x64xf32>,
      %c8_i32_31 = arith.constant 8 : i32
      %64 = arith.muli %arg9, %c8_i32_31 : i32
      %c2_i32 = arith.constant 2 : i32
      %65 = arith.addi %64, %c2_i32 : i32
      %66 = arith.index_cast %65 : i32 to index
      %c0_32 = arith.constant 0 : index
      %67 = vector.load %arg2[%66, %c0_32] : memref<56x2xf32, #tpu.memory_space<vmem>>, vector<1x1xf32>
      %68 = vector.broadcast %67 : vector<1x1xf32> to vector<128x1xf32>
      %69 = arith.mulf %12, %68 : vector<128x1xf32>
      %70 = vector.broadcast %69 : vector<128x1xf32> to vector<128x64xf32>
      %71 = vector.broadcast %1 : vector<1x64xf32> to vector<128x64xf32>
      %72 = arith.mulf %70, %71 : vector<128x64xf32>
      %73 = arith.addf %72, %15 : vector<128x64xf32>
      %cst_33 = arith.constant 0.000000e+00 : f32
      %74 = vector.broadcast %cst_33 : f32 to vector<128x64xf32>
      %75 = arith.maximumf %73, %74 : vector<128x64xf32>
      %c256 = arith.constant 256 : index
      %c0_34 = arith.constant 0 : index
      %76 = vector.load %arg7[%c256, %c0_34] : memref<1024x64xf32, #tpu.memory_space<vmem>>, vector<128x64xf32>
      tpu.vector_store %arg7[%c256, %c0_34], %75 {strides = array<i32>} : memref<1024x64xf32, #tpu.memory_space<vmem>>, vector<128x64xf32>,
      %c8_i32_35 = arith.constant 8 : i32
      %77 = arith.muli %arg9, %c8_i32_35 : i32
      %c3_i32 = arith.constant 3 : i32
      %78 = arith.addi %77, %c3_i32 : i32
      %79 = arith.index_cast %78 : i32 to index
      %c0_36 = arith.constant 0 : index
      %80 = vector.load %arg2[%79, %c0_36] : memref<56x2xf32, #tpu.memory_space<vmem>>, vector<1x1xf32>
      %81 = vector.broadcast %80 : vector<1x1xf32> to vector<128x1xf32>
      %82 = arith.mulf %12, %81 : vector<128x1xf32>
      %83 = vector.broadcast %82 : vector<128x1xf32> to vector<128x64xf32>
      %84 = vector.broadcast %1 : vector<1x64xf32> to vector<128x64xf32>
      %85 = arith.mulf %83, %84 : vector<128x64xf32>
      %86 = arith.addf %85, %15 : vector<128x64xf32>
      %cst_37 = arith.constant 0.000000e+00 : f32
      %87 = vector.broadcast %cst_37 : f32 to vector<128x64xf32>
      %88 = arith.maximumf %86, %87 : vector<128x64xf32>
      %c384 = arith.constant 384 : index
      %c0_38 = arith.constant 0 : index
      %89 = vector.load %arg7[%c384, %c0_38] : memref<1024x64xf32, #tpu.memory_space<vmem>>, vector<128x64xf32>
      tpu.vector_store %arg7[%c384, %c0_38], %88 {strides = array<i32>} : memref<1024x64xf32, #tpu.memory_space<vmem>>, vector<128x64xf32>,
      %c8_i32_39 = arith.constant 8 : i32
      %90 = arith.muli %arg9, %c8_i32_39 : i32
      %c4_i32 = arith.constant 4 : i32
      %91 = arith.addi %90, %c4_i32 : i32
      %92 = arith.index_cast %91 : i32 to index
      %c0_40 = arith.constant 0 : index
      %93 = vector.load %arg2[%92, %c0_40] : memref<56x2xf32, #tpu.memory_space<vmem>>, vector<1x1xf32>
      %94 = vector.broadcast %93 : vector<1x1xf32> to vector<128x1xf32>
      %95 = arith.mulf %12, %94 : vector<128x1xf32>
      %96 = vector.broadcast %95 : vector<128x1xf32> to vector<128x64xf32>
      %97 = vector.broadcast %1 : vector<1x64xf32> to vector<128x64xf32>
      %98 = arith.mulf %96, %97 : vector<128x64xf32>
      %99 = arith.addf %98, %15 : vector<128x64xf32>
      %cst_41 = arith.constant 0.000000e+00 : f32
      %100 = vector.broadcast %cst_41 : f32 to vector<128x64xf32>
      %101 = arith.maximumf %99, %100 : vector<128x64xf32>
      %c512 = arith.constant 512 : index
      %c0_42 = arith.constant 0 : index
      %102 = vector.load %arg7[%c512, %c0_42] : memref<1024x64xf32, #tpu.memory_space<vmem>>, vector<128x64xf32>
      tpu.vector_store %arg7[%c512, %c0_42], %101 {strides = array<i32>} : memref<1024x64xf32, #tpu.memory_space<vmem>>, vector<128x64xf32>,
      %c8_i32_43 = arith.constant 8 : i32
      %103 = arith.muli %arg9, %c8_i32_43 : i32
      %c5_i32 = arith.constant 5 : i32
      %104 = arith.addi %103, %c5_i32 : i32
      %105 = arith.index_cast %104 : i32 to index
      %c0_44 = arith.constant 0 : index
      %106 = vector.load %arg2[%105, %c0_44] : memref<56x2xf32, #tpu.memory_space<vmem>>, vector<1x1xf32>
      %107 = vector.broadcast %106 : vector<1x1xf32> to vector<128x1xf32>
      %108 = arith.mulf %12, %107 : vector<128x1xf32>
      %109 = vector.broadcast %108 : vector<128x1xf32> to vector<128x64xf32>
      %110 = vector.broadcast %1 : vector<1x64xf32> to vector<128x64xf32>
      %111 = arith.mulf %109, %110 : vector<128x64xf32>
      %112 = arith.addf %111, %15 : vector<128x64xf32>
      %cst_45 = arith.constant 0.000000e+00 : f32
      %113 = vector.broadcast %cst_45 : f32 to vector<128x64xf32>
      %114 = arith.maximumf %112, %113 : vector<128x64xf32>
      %c640 = arith.constant 640 : index
      %c0_46 = arith.constant 0 : index
      %115 = vector.load %arg7[%c640, %c0_46] : memref<1024x64xf32, #tpu.memory_space<vmem>>, vector<128x64xf32>
      tpu.vector_store %arg7[%c640, %c0_46], %114 {strides = array<i32>} : memref<1024x64xf32, #tpu.memory_space<vmem>>, vector<128x64xf32>,
      %c8_i32_47 = arith.constant 8 : i32
      %116 = arith.muli %arg9, %c8_i32_47 : i32
      %c6_i32 = arith.constant 6 : i32
      %117 = arith.addi %116, %c6_i32 : i32
      %118 = arith.index_cast %117 : i32 to index
      %c0_48 = arith.constant 0 : index
      %119 = vector.load %arg2[%118, %c0_48] : memref<56x2xf32, #tpu.memory_space<vmem>>, vector<1x1xf32>
      %120 = vector.broadcast %119 : vector<1x1xf32> to vector<128x1xf32>
      %121 = arith.mulf %12, %120 : vector<128x1xf32>
      %122 = vector.broadcast %121 : vector<128x1xf32> to vector<128x64xf32>
      %123 = vector.broadcast %1 : vector<1x64xf32> to vector<128x64xf32>
      %124 = arith.mulf %122, %123 : vector<128x64xf32>
      %125 = arith.addf %124, %15 : vector<128x64xf32>
      %cst_49 = arith.constant 0.000000e+00 : f32
      %126 = vector.broadcast %cst_49 : f32 to vector<128x64xf32>
      %127 = arith.maximumf %125, %126 : vector<128x64xf32>
      %c768 = arith.constant 768 : index
      %c0_50 = arith.constant 0 : index
      %128 = vector.load %arg7[%c768, %c0_50] : memref<1024x64xf32, #tpu.memory_space<vmem>>, vector<128x64xf32>
      tpu.vector_store %arg7[%c768, %c0_50], %127 {strides = array<i32>} : memref<1024x64xf32, #tpu.memory_space<vmem>>, vector<128x64xf32>,
      %c8_i32_51 = arith.constant 8 : i32
      %129 = arith.muli %arg9, %c8_i32_51 : i32
      %c7_i32_52 = arith.constant 7 : i32
      %130 = arith.addi %129, %c7_i32_52 : i32
      %131 = arith.index_cast %130 : i32 to index
      %c0_53 = arith.constant 0 : index
      %132 = vector.load %arg2[%131, %c0_53] : memref<56x2xf32, #tpu.memory_space<vmem>>, vector<1x1xf32>
      %133 = vector.broadcast %132 : vector<1x1xf32> to vector<128x1xf32>
      %134 = arith.mulf %12, %133 : vector<128x1xf32>
      %135 = vector.broadcast %134 : vector<128x1xf32> to vector<128x64xf32>
      %136 = vector.broadcast %1 : vector<1x64xf32> to vector<128x64xf32>
      %137 = arith.mulf %135, %136 : vector<128x64xf32>
      %138 = arith.addf %137, %15 : vector<128x64xf32>
      %cst_54 = arith.constant 0.000000e+00 : f32
      %139 = vector.broadcast %cst_54 : f32 to vector<128x64xf32>
      %140 = arith.maximumf %138, %139 : vector<128x64xf32>
      %c896 = arith.constant 896 : index
      %c0_55 = arith.constant 0 : index
      %141 = vector.load %arg7[%c896, %c0_55] : memref<1024x64xf32, #tpu.memory_space<vmem>>, vector<128x64xf32>
      tpu.vector_store %arg7[%c896, %c0_55], %140 {strides = array<i32>} : memref<1024x64xf32, #tpu.memory_space<vmem>>, vector<128x64xf32>,
      %c0_56 = arith.constant 0 : index
      %c0_57 = arith.constant 0 : index
      %142 = vector.load %arg7[%c0_56, %c0_57] : memref<1024x64xf32, #tpu.memory_space<vmem>>, vector<1024x64xf32>
      %cst_58 = arith.constant dense<0.000000e+00> : vector<1024x64xf32>
      %143 = tpu.matmul %142, %3, %cst_58 {dimension_numbers = #tpu.dot_dimension_numbers<[1], [0], [0], [1], [0, 0, 1, 1], [], []>} : vector<1024x64xf32>, vector<64x64xf32>, vector<1024x64xf32> -> vector<1024x64xf32>
      %144 = vector.broadcast %4 : vector<1x64xf32> to vector<1024x64xf32>
      %145 = arith.addf %143, %144 : vector<1024x64xf32>
      %cst_59 = arith.constant 0.000000e+00 : f32
      %146 = vector.broadcast %cst_59 : f32 to vector<1024x64xf32>
      %147 = arith.maximumf %145, %146 : vector<1024x64xf32>
      %c0_60 = arith.constant 0 : index
      %c0_61 = arith.constant 0 : index
      %148 = vector.load %arg8[%c0_60, %c0_61] : memref<1024x64xf32, #tpu.memory_space<vmem>>, vector<1024x64xf32>
      tpu.vector_store %arg8[%c0_60, %c0_61], %147 {strides = array<i32>} : memref<1024x64xf32, #tpu.memory_space<vmem>>, vector<1024x64xf32>,
      %c0_62 = arith.constant 0 : index
      %c0_63 = arith.constant 0 : index
      %149 = vector.load %arg8[%c0_62, %c0_63] : memref<1024x64xf32, #tpu.memory_space<vmem>>, vector<1024x64xf32>
      %cst_64 = arith.constant dense<0.000000e+00> : vector<1024x1xf32>
      %150 = tpu.matmul %149, %7, %cst_64 {dimension_numbers = #tpu.dot_dimension_numbers<[1], [0], [0], [1], [0, 0, 1, 1], [], []>} : vector<1024x64xf32>, vector<64x1xf32>, vector<1024x1xf32> -> vector<1024x1xf32>
      %151 = vector.broadcast %9 : vector<1x1xf32> to vector<1024x1xf32>
      %152 = arith.addf %150, %151 : vector<1024x1xf32>
      %cst_65 = arith.constant 0.000000e+00 : f32
      %153 = vector.broadcast %cst_65 : f32 to vector<1024x1xf32>
      %154 = arith.cmpf ogt, %152, %153 : vector<1024x1xf32>
      %155 = math.exp %152 : vector<1024x1xf32>
      %cst_66 = arith.constant 1.000000e+00 : f32
      %156 = vector.broadcast %cst_66 : f32 to vector<1024x1xf32>
      %157 = arith.subf %155, %156 : vector<1024x1xf32>
      %158 = arith.select %154, %152, %157 : vector<1024x1xi1>, vector<1024x1xf32>
      %cst_67 = arith.constant 1.000000e+00 : f32
      %159 = vector.broadcast %cst_67 : f32 to vector<1024x1xf32>
      %160 = arith.addf %158, %159 : vector<1024x1xf32>
      %c8_i32_68 = arith.constant 8 : i32
      %161 = arith.muli %arg9, %c8_i32_68 : i32
      %c0_i32_69 = arith.constant 0 : i32
      %162 = arith.addi %161, %c0_i32_69 : i32
      %163 = arith.index_cast %162 : i32 to index
      %c1 = arith.constant 1 : index
      %164 = vector.load %arg2[%163, %c1] : memref<56x2xf32, #tpu.memory_space<vmem>>, vector<1x1xf32>
      %165 = vector.extract_strided_slice %160 {offsets = [0, 0], sizes = [128, 1], strides = [1, 1]} : vector<1024x1xf32> to vector<128x1xf32>
      %166 = vector.broadcast %164 : vector<1x1xf32> to vector<128x1xf32>
      %167 = arith.mulf %166, %165 : vector<128x1xf32>
      %168 = arith.addf %arg10, %167 : vector<128x1xf32>
      %c8_i32_70 = arith.constant 8 : i32
      %169 = arith.muli %arg9, %c8_i32_70 : i32
      %c1_i32_71 = arith.constant 1 : i32
      %170 = arith.addi %169, %c1_i32_71 : i32
      %171 = arith.index_cast %170 : i32 to index
      %c1_72 = arith.constant 1 : index
      %172 = vector.load %arg2[%171, %c1_72] : memref<56x2xf32, #tpu.memory_space<vmem>>, vector<1x1xf32>
      %173 = vector.extract_strided_slice %160 {offsets = [128, 0], sizes = [128, 1], strides = [1, 1]} : vector<1024x1xf32> to vector<128x1xf32>
      %174 = vector.broadcast %172 : vector<1x1xf32> to vector<128x1xf32>
      %175 = arith.mulf %174, %173 : vector<128x1xf32>
      %176 = arith.addf %168, %175 : vector<128x1xf32>
      %c8_i32_73 = arith.constant 8 : i32
      %177 = arith.muli %arg9, %c8_i32_73 : i32
      %c2_i32_74 = arith.constant 2 : i32
      %178 = arith.addi %177, %c2_i32_74 : i32
      %179 = arith.index_cast %178 : i32 to index
      %c1_75 = arith.constant 1 : index
      %180 = vector.load %arg2[%179, %c1_75] : memref<56x2xf32, #tpu.memory_space<vmem>>, vector<1x1xf32>
      %181 = vector.extract_strided_slice %160 {offsets = [256, 0], sizes = [128, 1], strides = [1, 1]} : vector<1024x1xf32> to vector<128x1xf32>
      %182 = vector.broadcast %180 : vector<1x1xf32> to vector<128x1xf32>
      %183 = arith.mulf %182, %181 : vector<128x1xf32>
      %184 = arith.addf %176, %183 : vector<128x1xf32>
      %c8_i32_76 = arith.constant 8 : i32
      %185 = arith.muli %arg9, %c8_i32_76 : i32
      %c3_i32_77 = arith.constant 3 : i32
      %186 = arith.addi %185, %c3_i32_77 : i32
      %187 = arith.index_cast %186 : i32 to index
      %c1_78 = arith.constant 1 : index
      %188 = vector.load %arg2[%187, %c1_78] : memref<56x2xf32, #tpu.memory_space<vmem>>, vector<1x1xf32>
      %189 = vector.extract_strided_slice %160 {offsets = [384, 0], sizes = [128, 1], strides = [1, 1]} : vector<1024x1xf32> to vector<128x1xf32>
      %190 = vector.broadcast %188 : vector<1x1xf32> to vector<128x1xf32>
      %191 = arith.mulf %190, %189 : vector<128x1xf32>
      %192 = arith.addf %184, %191 : vector<128x1xf32>
      %c8_i32_79 = arith.constant 8 : i32
      %193 = arith.muli %arg9, %c8_i32_79 : i32
      %c4_i32_80 = arith.constant 4 : i32
      %194 = arith.addi %193, %c4_i32_80 : i32
      %195 = arith.index_cast %194 : i32 to index
      %c1_81 = arith.constant 1 : index
      %196 = vector.load %arg2[%195, %c1_81] : memref<56x2xf32, #tpu.memory_space<vmem>>, vector<1x1xf32>
      %197 = vector.extract_strided_slice %160 {offsets = [512, 0], sizes = [128, 1], strides = [1, 1]} : vector<1024x1xf32> to vector<128x1xf32>
      %198 = vector.broadcast %196 : vector<1x1xf32> to vector<128x1xf32>
      %199 = arith.mulf %198, %197 : vector<128x1xf32>
      %200 = arith.addf %192, %199 : vector<128x1xf32>
      %c8_i32_82 = arith.constant 8 : i32
      %201 = arith.muli %arg9, %c8_i32_82 : i32
      %c5_i32_83 = arith.constant 5 : i32
      %202 = arith.addi %201, %c5_i32_83 : i32
      %203 = arith.index_cast %202 : i32 to index
      %c1_84 = arith.constant 1 : index
      %204 = vector.load %arg2[%203, %c1_84] : memref<56x2xf32, #tpu.memory_space<vmem>>, vector<1x1xf32>
      %205 = vector.extract_strided_slice %160 {offsets = [640, 0], sizes = [128, 1], strides = [1, 1]} : vector<1024x1xf32> to vector<128x1xf32>
      %206 = vector.broadcast %204 : vector<1x1xf32> to vector<128x1xf32>
      %207 = arith.mulf %206, %205 : vector<128x1xf32>
      %208 = arith.addf %200, %207 : vector<128x1xf32>
      %c8_i32_85 = arith.constant 8 : i32
      %209 = arith.muli %arg9, %c8_i32_85 : i32
      %c6_i32_86 = arith.constant 6 : i32
      %210 = arith.addi %209, %c6_i32_86 : i32
      %211 = arith.index_cast %210 : i32 to index
      %c1_87 = arith.constant 1 : index
      %212 = vector.load %arg2[%211, %c1_87] : memref<56x2xf32, #tpu.memory_space<vmem>>, vector<1x1xf32>
      %213 = vector.extract_strided_slice %160 {offsets = [768, 0], sizes = [128, 1], strides = [1, 1]} : vector<1024x1xf32> to vector<128x1xf32>
      %214 = vector.broadcast %212 : vector<1x1xf32> to vector<128x1xf32>
      %215 = arith.mulf %214, %213 : vector<128x1xf32>
      %216 = arith.addf %208, %215 : vector<128x1xf32>
      %c8_i32_88 = arith.constant 8 : i32
      %217 = arith.muli %arg9, %c8_i32_88 : i32
      %c7_i32_89 = arith.constant 7 : i32
      %218 = arith.addi %217, %c7_i32_89 : i32
      %219 = arith.index_cast %218 : i32 to index
      %c1_90 = arith.constant 1 : index
      %220 = vector.load %arg2[%219, %c1_90] : memref<56x2xf32, #tpu.memory_space<vmem>>, vector<1x1xf32>
      %221 = vector.extract_strided_slice %160 {offsets = [896, 0], sizes = [128, 1], strides = [1, 1]} : vector<1024x1xf32> to vector<128x1xf32>
      %222 = vector.broadcast %220 : vector<1x1xf32> to vector<128x1xf32>
      %223 = arith.mulf %222, %221 : vector<128x1xf32>
      %224 = arith.addf %216, %223 : vector<128x1xf32>
      scf.yield %224 : vector<128x1xf32>
    }
    %c7_i32_13 = arith.constant 7 : i32
    %19 = arith.mulf %18, %12 : vector<128x1xf32>
    %cst_14 = arith.constant 5.000000e-01 : f32
    %20 = vector.broadcast %cst_14 : f32 to vector<128x1xf32>
    %21 = arith.mulf %19, %20 : vector<128x1xf32>
    %cst_15 = arith.constant 0.000000e+00 : f32
    %22 = vector.broadcast %cst_15 : f32 to vector<128x64xf32>
    %23 = arith.maximumf %15, %22 : vector<128x64xf32>
    %cst_16 = arith.constant dense<0.000000e+00> : vector<128x64xf32>
    %24 = tpu.matmul %23, %3, %cst_16 {dimension_numbers = #tpu.dot_dimension_numbers<[1], [0], [0], [1], [0, 0, 1, 1], [], []>} : vector<128x64xf32>, vector<64x64xf32>, vector<128x64xf32> -> vector<128x64xf32>
    %25 = vector.broadcast %4 : vector<1x64xf32> to vector<128x64xf32>
    %26 = arith.addf %24, %25 : vector<128x64xf32>
    %cst_17 = arith.constant 0.000000e+00 : f32
    %27 = vector.broadcast %cst_17 : f32 to vector<128x64xf32>
    %28 = arith.maximumf %26, %27 : vector<128x64xf32>
    %cst_18 = arith.constant dense<0.000000e+00> : vector<128x2xf32>
    %29 = tpu.matmul %28, %8, %cst_18 {dimension_numbers = #tpu.dot_dimension_numbers<[1], [0], [0], [1], [0, 0, 1, 1], [], []>} : vector<128x64xf32>, vector<64x2xf32>, vector<128x2xf32> -> vector<128x2xf32>
    %30 = vector.broadcast %10 : vector<1x2xf32> to vector<128x2xf32>
    %31 = arith.addf %29, %30 : vector<128x2xf32>
    %32 = vector.extract_strided_slice %31 {offsets = [0, 0], sizes = [128, 1], strides = [1, 1]} : vector<128x2xf32> to vector<128x1xf32>
    %33 = vector.extract_strided_slice %31 {offsets = [0, 1], sizes = [128, 1], strides = [1, 1]} : vector<128x2xf32> to vector<128x1xf32>
    %34 = math.exp %33 : vector<128x1xf32>
    %35 = arith.mulf %34, %21 : vector<128x1xf32>
    %36 = arith.addf %35, %32 : vector<128x1xf32>
    %c0_19 = arith.constant 0 : index
    %c0_20 = arith.constant 0 : index
    %37 = vector.load %arg6[%c0_19, %c0_20] : memref<128x1xf32, #tpu.memory_space<vmem>>, vector<128x1xf32>
    tpu.vector_store %arg6[%c0_19, %c0_20], %36 {strides = array<i32>} : memref<128x1xf32, #tpu.memory_space<vmem>>, vector<128x1xf32>,
    return
  }
  func.func @transform_0(%arg0: i32) -> (i32, i32) {
    %c0_i32 = arith.constant 0 : i32
    %c0_i32_0 = arith.constant 0 : i32
    return %arg0, %c0_i32 : i32, i32
  }
  func.func @transform_1(%arg0: i32) -> (i32, i32) {
    %c0_i32 = arith.constant 0 : i32
    %c0_i32_0 = arith.constant 0 : i32
    %c0_i32_1 = arith.constant 0 : i32
    return %c0_i32, %c0_i32_0 : i32, i32
  }
  func.func @transform_2(%arg0: i32) -> (i32, i32) {
    %c0_i32 = arith.constant 0 : i32
    %c0_i32_0 = arith.constant 0 : i32
    %c0_i32_1 = arith.constant 0 : i32
    return %c0_i32, %c0_i32_0 : i32, i32
  }
  func.func @transform_3(%arg0: i32) -> (i32, i32) {
    %c0_i32 = arith.constant 0 : i32
    %c0_i32_0 = arith.constant 0 : i32
    %c0_i32_1 = arith.constant 0 : i32
    return %c0_i32, %c0_i32_0 : i32, i32
  }
  func.func @transform_4(%arg0: i32) -> (i32, i32) {
    %c0_i32 = arith.constant 0 : i32
    %c0_i32_0 = arith.constant 0 : i32
    %c0_i32_1 = arith.constant 0 : i32
    return %c0_i32, %c0_i32_0 : i32, i32
  }
  func.func @transform_5(%arg0: i32) -> (i32, i32) {
    %c0_i32 = arith.constant 0 : i32
    %c0_i32_0 = arith.constant 0 : i32
    return %arg0, %c0_i32 : i32, i32
  }
}

</mosaic_0001>

<bundles_post_ra>
// kernel: tpu_custom_call.1
= control target key start
LH: loop header
LB: loop body
LE: loop exit
PB: predicated region body
PF: predicated region fallthrough
CT: control target
= control target key end

     0   :  { %s7232_s18 = smov 0   ;;  %s10340_s0 = inlined_call_operand.vmem [shape: f32[256,4], index: 0, kind: input, shape index: {}]   ;;  %s10341_s1 = inlined_call_operand.vmem [shape: f32[56,2], index: 1, kind: input, shape index: {}]   ;;  %s10342_s2 = inlined_call_operand.vmem [shape: f32[6,64], index: 2, kind: input, shape index: {}]   ;;  %s10343_s3 = inlined_call_operand.vmem [shape: f32[65,64], index: 3, kind: input, shape index: {}]   ;;  %s10344_s4 = inlined_call_operand.vmem [shape: f32[65,3], index: 4, kind: input, shape index: {}]   ;;  %s10345_s5 = inlined_call_operand.vmem [shape: f32[256,1], index: 5, kind: output, shape index: {}]  }
   0x1 LB: > { %s6074_s19 = sadd.s32 4294967295, %s7128_s18   ;;  %p6078_p0 = scmp.ge.s32.totalorder %s7128_s18, 1  ;;  %s7128_s18 = sphi %s7232_s18, %s15_s18  }
   0x2   : > { %p188_p1 = scmp.lt.s32.totalorder %s7128_s18, 3 }
   0x4   : > { %p189_p2 = pnand %p6078_p0, %p188_p1 }
   0x6   : > { %192 = sbr.rel (%p189_p2) target bundleno = 1932 (0x78c), region = 40 }
   0xb   : > { %v228_v0 = vld [vmem:[%s10342_s2] sm:$0xf]  ;;  %vm315_vm0 = vcmask 1043456   ;;  %s6079_s22 = sshll.u32 %s6074_s19, 4  ;;  %v7251_v2 = vld [vmem:[%s10342_s2 + $0x4] sm:$0x1] }
   0xc   : > { %v7246_v1 = vld [vmem:[%s10343_s3] sm:$0xff]  ;;  %6541 = vmatpush.msk.msra.mxu2 %vm315_vm0, %v228_v0  ;;  %6542 = vmatpush.msk.msra.mxu3 %vm315_vm0, %v228_v0  ;;  %p217_p3 = scmp.lt.s32.totalorder %s6079_s22, 31  ;;  %10421 = vst [vmem:[#allocation5_spill] sm:$0xff] %v7251_v2  ;;  %v7256_v3 = vld [vmem:[%s10343_s3 + $0x8] sm:$0xff]  ;;  %v7261_v4 = vld [vmem:[%s10343_s3 + $0x10] sm:$0xff]  ;;  %vm266_vm1 = vcmask 31744  }
   0xd   : > { %10420 = vst [vmem:[#allocation4_spill] sm:$0xff] %v7246_v1  ;;  %v7266_v5 = vld [vmem:[%s10343_s3 + $0x18] sm:$0xff]  ;;  %v7271_v6 = vld [vmem:[%s10343_s3 + $0x20] sm:$0xff]  ;;  %v7276_v7 = vld [vmem:[%s10343_s3 + $0x28] sm:$0xff]  ;;  %6083 = vmatpush.msk.msra.mxu0 %vm315_vm0, %v228_v0  ;;  %6540 = vmatpush.msk.msra.mxu1 %vm315_vm0, %v228_v0  ;;  %s7495_s23 = smov 0  }
   0xe   : > { %10422 = vst [vmem:[#allocation6_spill] sm:$0xff] %v7256_v3  ;;  %s10659_s22 = smov (!%p217_p3, %s6079_s22), 31  ;;  %v7281_v8 = vld [vmem:[%s10343_s3 + $0x30] sm:$0xff]  ;;  %v7286_v9 = vld [vmem:[%s10343_s3 + $0x38] sm:$0xff]  ;;  %v7291_v10 = vld [vmem:[%s10343_s3 + $0x40] sm:$0x1] }
   0xf   : > { %10423 = vst [vmem:[#allocation7_spill] sm:$0xff] %v7261_v4  ;;  %v7296_v11 = vld [vmem:[%s10344_s4] sm:$0xff]  ;;  %v7301_v12 = vld [vmem:[%s10344_s4 + $0x8] sm:$0xff]  ;;  %v7306_v13 = vld [vmem:[%s10344_s4 + $0x10] sm:$0xff]  ;;  %s6080_s26 = sshll.u32 %s10659_s22, 3 }
  0x10   : > { %10424 = vst [vmem:[#allocation8_spill] sm:$0xff] %v7266_v5  ;;  %v7311_v14 = vld [vmem:[%s10344_s4 + $0x18] sm:$0xff]  ;;  %v7316_v15 = vld [vmem:[%s10344_s4 + $0x20] sm:$0xff]  ;;  %v7321_v16 = vld [vmem:[%s10344_s4 + $0x28] sm:$0xff]  ;;  %s7326_s22 = scalar_lea.vmem %s10340_s0, %s6080_s26  ;;  %s7331_s12 = scalar_lea.vmem %s10345_s5, %s6080_s26 }
  0x11   : > { %10425 = vst [vmem:[#allocation9_spill] sm:$0xff] %v7271_v6  ;;  %v7336_v17 = vld [vmem:[%s10344_s4 + $0x30] sm:$0xff]  ;;  %v7341_v18 = vld [vmem:[%s10344_s4 + $0x38] sm:$0xff]  ;;  %v7346_v19 = vld [vmem:[%s10344_s4 + $0x40] sm:$0x1] }
  0x12   : > { %10426 = vst [vmem:[#allocation10_spill] sm:$0xff] %v7276_v7  ;;  %v7349_v20 = vld [vmem:[%s7326_s22 + $0x40] sm:$0xff]  ;;  %v7369_v24 = vld [vmem:[%s7326_s22 + $0x48] sm:$0xff]  ;;  %v7389_v28 = vld [vmem:[%s7326_s22 + $0x50] sm:$0xff] }
  0x13   : > { %10427 = vst [vmem:[#allocation11_spill] sm:$0xff] %v7281_v8  ;;  %v7352_v21 = vld [vmem:[%s7326_s22 + $0x60] sm:$0xff]  ;;  %6092 = vmatmul.msk.f32.vlgmr.msra.gmra.mxu2 %vm266_vm1, %v7349_v20  ;;  %v7372_v25 = vld [vmem:[%s7326_s22 + $0x68] sm:$0xff]  ;;  %v7392_v29 = vld [vmem:[%s7326_s22 + $0x70] sm:$0xff] }
  0x14   : > { %10428 = vst [vmem:[#allocation12_spill] sm:$0xff] %v7286_v9  ;;  %v7355_v22 = vld [vmem:[%s7326_s22] sm:$0xff]  ;;  %6096 = vmatmul.msk.f32.vlgmr.msra.gmra.mxu3 %vm266_vm1, %v7352_v21  ;;  %v7375_v26 = vld [vmem:[%s7326_s22 + $0x8] sm:$0xff]  ;;  %v7395_v30 = vld [vmem:[%s7326_s22 + $0x10] sm:$0xff] }
  0x15   : > { %10429 = vst [vmem:[#allocation13_spill] sm:$0xff] %v7291_v10  ;;  %v7362_v23 = vld [vmem:[%s7326_s22 + $0x20] sm:$0xff]  ;;  %6084 = vmatmul.msk.f32.vlgmr.msra.gmra.mxu0 %vm266_vm1, %v7355_v22  ;;  %v7378_v27 = vld [vmem:[%s7326_s22 + $0x28] sm:$0xff]  ;;  %v7398_v31 = vld [vmem:[%s7326_s22 + $0x30] sm:$0xff]  ;;  %v7491_v10 = vmov 0.0  }
  0x16   : > { %10430 = vst [vmem:[#allocation14_spill] sm:$0xff] %v7296_v11  ;;  %6088 = vmatmul.msk.f32.vlgmr.msra.gmra.mxu1 %vm266_vm1, %v7362_v23  ;;  %v7409_v32 = vld [vmem:[%s7326_s22 + $0x58] sm:$0xff]  ;;  %v6723_v36 = vld [vmem:[%s10342_s2 + $0x5] ss:$0 sm:$0xff] }
  0x17   : > { %10431 = vst [vmem:[#allocation15_spill] sm:$0xff] %v7301_v12  ;;  %v7412_v33 = vld [vmem:[%s7326_s22 + $0x78] sm:$0xff] }
  0x18   : > { %10432 = vst [vmem:[#allocation16_spill] sm:$0xff] %v7306_v13  ;;  %v7415_v34 = vld [vmem:[%s7326_s22 + $0x18] sm:$0xff] }
  0x19   : > { %10433 = vst [vmem:[#allocation17_spill] sm:$0xff] %v7311_v14  ;;  %v7418_v35 = vld [vmem:[%s7326_s22 + $0x38] sm:$0xff] }
  0x1a   : > { %10434 = vst [vmem:[#allocation18_spill] sm:$0xff] %v7316_v15 }
  0x1b   : > { %10435 = vst [vmem:[#allocation19_spill] sm:$0xff] %v7321_v16  ;;  %6093 = vmatmul.msk.f32.gmra.mxu2 %vm266_vm1, %v7369_v24 }
  0x1c   : > { %10436 = vst [vmem:[#allocation20_spill] sm:$0xff] %v7336_v17  ;;  %6097 = vmatmul.msk.f32.gmra.mxu3 %vm266_vm1, %v7372_v25 }
  0x1d   : > { %10437 = vst [vmem:[#allocation21_spill] sm:$0xff] %v7341_v18  ;;  %6085 = vmatmul.msk.f32.gmra.mxu0 %vm266_vm1, %v7375_v26 }
  0x1e   : > { %10438 = vst [vmem:[#allocation22_spill] sm:$0xff] %v7346_v19  ;;  %6089 = vmatmul.msk.f32.gmra.mxu1 %vm266_vm1, %v7378_v27  ;;  %v7489_v19 = vmov 0.0  }
  0x1f   : > { %10439 = vst [vmem:[#allocation23_spill] sm:$0xff] %v7349_v20 }
  0x20   : > { %10440 = vst [vmem:[#allocation24_spill] sm:$0xff] %v7352_v21 }
  0x21   : > { %10441 = vst [vmem:[#allocation25_spill] sm:$0xff] %v7355_v22 }
  0x22   : > { %10442 = vst [vmem:[#allocation26_spill] sm:$0xff] %v7362_v23 }
  0x23   : > { %10443 = vst [vmem:[#allocation27_spill] sm:$0xff] %v7369_v24  ;;  %6094 = vmatmul.msk.f32.gmra.mxu2 %vm266_vm1, %v7389_v28 }
  0x24   : > { %10444 = vst [vmem:[#allocation28_spill] sm:$0xff] %v7372_v25  ;;  %6098 = vmatmul.msk.f32.gmra.mxu3 %vm266_vm1, %v7392_v29 }
  0x25   : > { %10445 = vst [vmem:[#allocation29_spill] sm:$0xff] %v7375_v26  ;;  %6086 = vmatmul.msk.f32.gmra.mxu0 %vm266_vm1, %v7395_v30 }
  0x26   : > { %10446 = vst [vmem:[#allocation30_spill] sm:$0xff] %v7378_v27  ;;  %6090 = vmatmul.msk.f32.gmra.mxu1 %vm266_vm1, %v7398_v31 }
  0x27   : > { %10447 = vst [vmem:[#allocation31_spill] sm:$0xff] %v7389_v28 }
  0x28   : > { %10448 = vst [vmem:[#allocation32_spill] sm:$0xff] %v7392_v29 }
  0x29   : > { %10449 = vst [vmem:[#allocation33_spill] sm:$0xff] %v7395_v30 }
  0x2a   : > { %10450 = vst [vmem:[#allocation34_spill] sm:$0xff] %v7398_v31 }
  0x2b   : > { %10451 = vst [vmem:[#allocation35_spill] sm:$0xff] %v7409_v32  ;;  %6095 = vmatmul.msk.f32.gmra.mxu2 %vm266_vm1, %v7409_v32 }
  0x2c   : > { %10452 = vst [vmem:[#allocation36_spill] sm:$0xff] %v7412_v33  ;;  %6099 = vmatmul.msk.f32.gmra.mxu3 %vm266_vm1, %v7412_v33 }
  0x2d   : > { %10453 = vst [vmem:[#allocation37_spill] sm:$0xff] %v7415_v34  ;;  %6087 = vmatmul.msk.f32.gmra.mxu0 %vm266_vm1, %v7415_v34 }
  0x2e   : > { %10454 = vst [vmem:[#allocation38_spill] sm:$0xff] %v7418_v35  ;;  %6091 = vmatmul.msk.f32.gmra.mxu1 %vm266_vm1, %v7418_v35 }
  0x92   : > { %v336_v37 = vpop.f32.mrf.mxu0 }
  0x93   : > { %v348_v38 = vpop.f32.mrf.mxu1  ;;  %v7431_v39 = vadd.f32 %v6723_v36, %v336_v37 }
  0x94   : > { %v7433_v40 = vadd.f32 %v6723_v36, %v348_v38 }
  0x95   : > { %10455 = vst [vmem:[#allocation39_spill] sm:$0xff] %v7431_v39 }
  0x96   : > { %10456 = vst [vmem:[#allocation40_spill] sm:$0xff] %v7433_v40  ;;  %v360_v41 = vpop.f32.mrf.mxu2 }
  0x97   : > { %v372_v42 = vpop.f32.mrf.mxu3  ;;  %v7435_v43 = vadd.f32 %v6723_v36, %v360_v41 }
  0x98   : > { %v7437_v44 = vadd.f32 %v6723_v36, %v372_v42 }
  0x99   : > { %10457 = vst [vmem:[#allocation41_spill] sm:$0xff] %v7435_v43 }
  0x9a   : > { %10458 = vst [vmem:[#allocation42_spill] sm:$0xff] %v7437_v44  ;;  %v339_v45 = vpop.f32.mrf.mxu0 }
  0x9b   : > { %v351_v46 = vpop.f32.mrf.mxu1  ;;  %v7439_v47 = vadd.f32 %v6723_v36, %v339_v45  ;;  %v7463_v45 = vmov 0.0  }
  0x9c   : > { %v7441_v48 = vadd.f32 %v6723_v36, %v351_v46  ;;  %v7465_v46 = vmov 0.0  }
  0x9d   : > { %10459 = vst [vmem:[#allocation43_spill] sm:$0xff] %v7439_v47 }
  0x9e   : > { %10460 = vst [vmem:[#allocation44_spill] sm:$0xff] %v7441_v48  ;;  %v363_v49 = vpop.f32.mrf.mxu2 }
  0x9f   : > { %v375_v50 = vpop.f32.mrf.mxu3  ;;  %v7443_v51 = vadd.f32 %v6723_v36, %v363_v49  ;;  %v7467_v49 = vmov 0.0  }
  0xa0   : > { %v7445_v52 = vadd.f32 %v6723_v36, %v375_v50  ;;  %v7469_v50 = vmov 0.0  }
  0xa1   : > { %10461 = vst [vmem:[#allocation45_spill] sm:$0xff] %v7443_v51 }
  0xa2   : > { %10462 = vst [vmem:[#allocation46_spill] sm:$0xff] %v7445_v52  ;;  %v342_v53 = vpop.f32.mrf.mxu0 }
  0xa3   : > { %v354_v54 = vpop.f32.mrf.mxu1  ;;  %v7447_v55 = vadd.f32 %v6723_v36, %v342_v53  ;;  %v7471_v53 = vmov 0.0  }
  0xa4   : > { %v7449_v56 = vadd.f32 %v6723_v36, %v354_v54  ;;  %v7473_v54 = vmov 0.0  }
  0xa5   : > { %10463 = vst [vmem:[#allocation47_spill] sm:$0xff] %v7447_v55 }
  0xa6   : > { %10464 = vst [vmem:[#allocation48_spill] sm:$0xff] %v7449_v56  ;;  %v366_v57 = vpop.f32.mrf.mxu2 }
  0xa7   : > { %v378_v58 = vpop.f32.mrf.mxu3  ;;  %v7451_v59 = vadd.f32 %v6723_v36, %v366_v57  ;;  %v7475_v57 = vmov 0.0  }
  0xa8   : > { %v7453_v60 = vadd.f32 %v6723_v36, %v378_v58  ;;  %v7477_v58 = vmov 0.0  }
  0xa9   : > { %10465 = vst [vmem:[#allocation49_spill] sm:$0xff] %v7451_v59 }
  0xaa   : > { %10466 = vst [vmem:[#allocation50_spill] sm:$0xff] %v7453_v60  ;;  %v345_v61 = vpop.f32.mrf.mxu0 }
  0xab   : > { %v357_v62 = vpop.f32.mrf.mxu1  ;;  %v7455_v63 = vadd.f32 %v6723_v36, %v345_v61  ;;  %v7479_v61 = vmov 0.0  }
  0xac   : > { %v7457_v0 = vadd.f32 %v6723_v36, %v357_v62  ;;  %v7483_v62 = vmov 0.0  }
  0xad   : > { %10467 = vst [vmem:[#allocation51_spill] sm:$0xff] %v7455_v63 }
  0xae   : > { %10468 = vst [vmem:[#allocation52_spill] sm:$0xff] %v7457_v0  ;;  %v369_v37 = vpop.f32.mrf.mxu2 }
  0xaf   : > { %v381_v38 = vpop.f32.mrf.mxu3  ;;  %v7459_v41 = vadd.f32 %v6723_v36, %v369_v37  ;;  %v7485_v37 = vmov 0.0  }
  0xb0   : > { %v7461_v42 = vadd.f32 %v6723_v36, %v381_v38  ;;  %v7481_v36 = vmov 0.0   ;;  %v7487_v38 = vmov 0.0  }
  0xb1   : > { %10469 = vst [vmem:[#allocation53_spill] sm:$0xff] %v7459_v41 }
  0xb2   : > { %10470 = vst [vmem:[#allocation54_spill] sm:$0xff] %v7461_v42  ;;  %v7493_v42 = vmov 0.0  }
  0xb3 LB: >> { %v10471_v39 = vld [vmem:[#allocation39_spill] sm:$0xff]  ;;  %v10472_v43 = vld [vmem:[#allocation41_spill] sm:$0xff]  ;;  %v10481_v31 = vld [vmem:[#allocation34_spill] sm:$0xff]  ;;  %10518 = vst [vmem:[#allocation55_spill] sm:$0xff] %v7132_v45  ;;  %v7198_v45 = vmov 0   ;;  %s6100_s24 = sshll.u32 %s7196_s23, 3  ;;  %v7180_v38 = vphi %v7487_v38, %v10605_v38   ;;  %v7176_v37 = vphi %v7485_v37, %v10604_v37   ;;  %v7172_v62 = vphi %v7483_v62, %v10603_v62   ;;  %v7168_v36 = vphi %v7481_v36, %v10602_v36   ;;  %v7164_v61 = vphi %v7479_v61, %v10601_v61   ;;  %v7160_v58 = vphi %v7477_v58, %v10600_v58   ;;  %v7156_v57 = vphi %v7475_v57, %v10599_v57   ;;  %v7152_v54 = vphi %v7473_v54, %v10598_v54   ;;  %v7148_v53 = vphi %v7471_v53, %v10597_v53   ;;  %v7144_v50 = vphi %v7469_v50, %v10596_v50   ;;  %v7140_v49 = vphi %v7467_v49, %v10595_v49   ;;  %v7136_v46 = vphi %v7465_v46, %v10594_v46   ;;  %v7132_v45 = vphi %v7463_v45, %v10593_v45   ;;  %s7196_s23 = sphi %s7495_s23, %s389_s23   ;;  %v7192_v42 = vphi %v7493_v42, %v10608_v42   ;;  %v7188_v10 = vphi %v7491_v10, %v10607_v10   ;;  %v7184_v19 = vphi %v7489_v19, %v10606_v19  }
  0xb4   : >> { %v10473_v22 = vld [vmem:[#allocation25_spill] sm:$0xff]  ;;  %v10474_v47 = vld [vmem:[#allocation43_spill] sm:$0xff]  ;;  %v10482_v27 = vld [vmem:[#allocation30_spill] sm:$0xff]  ;;  %10519 = vst [vmem:[#allocation56_spill] sm:$0xff] %v7180_v38  ;;  %6726 = vset.pattern.permute.xlu2 %v7198_v45  ;;  %6725 = vset.pattern.permute.xlu1 %v7198_v45  ;;  %s7555_s27 = scalar_lea.vmem %s10341_s1, %s6100_s24  ;;  %vm555_vm2 = vcmask 523264   ;;  %s7199_s28 = smov 1  }
  0xb5   : >> { %v10475_v51 = vld [vmem:[#allocation45_spill] sm:$0xff]  ;;  %v10479_v55 = vld [vmem:[#allocation47_spill] sm:$0xff]  ;;  %v10483_v23 = vld [vmem:[#allocation26_spill] sm:$0xff]  ;;  %10520 = vst [vmem:[#allocation57_spill] sm:$0xff] %v7184_v19  ;;  %6724 = vset.pattern.permute.xlu0 %v7198_v45  ;;  %s389_s23 = sadd.s32 1, %s7196_s23  }
  0xb6   : >> { %v10476_v34 = vld [vmem:[#allocation37_spill] sm:$0xff]  ;;  %v10484_v63 = vld [vmem:[#allocation51_spill] sm:$0xff]  ;;  %v10487_v35 = vld [vmem:[#allocation38_spill] sm:$0xff]  ;;  %10521 = vst [vmem:[#allocation58_spill] sm:$0xff] %v7188_v10  ;;  %p9976_p4 = scmp.ge.s32.totalorder %s389_s23, 7  }
  0xb7   : >> { %v10477_v30 = vld [vmem:[#allocation33_spill] sm:$0xff]  ;;  %v10486_v20 = vld [vmem:[#allocation23_spill] sm:$0xff]  ;;  %v10488_v40 = vld [vmem:[#allocation40_spill] sm:$0xff]  ;;  %s7200_s30 = smov (%p9976_p4), 127   ;;  %s7201_s6 = smov (%p9976_p4), 1  }
  0xb8   : >> { %v10478_v26 = vld [vmem:[#allocation29_spill] sm:$0xff]  ;;  %v10489_v44 = vld [vmem:[#allocation42_spill] sm:$0xff]  ;;  %v10490_v28 = vld [vmem:[#allocation31_spill] sm:$0xff] }
  0xb9   : >> { %v10480_v59 = vld [vmem:[#allocation49_spill] sm:$0xff]  ;;  %v10491_v32 = vld [vmem:[#allocation35_spill] sm:$0xff]  ;;  %v10493_v48 = vld [vmem:[#allocation44_spill] sm:$0xff] }
  0xba   : >> { %v10485_v41 = vld [vmem:[#allocation53_spill] sm:$0xff]  ;;  %v10492_v24 = vld [vmem:[#allocation27_spill] sm:$0xff]  ;;  %v10494_v52 = vld [vmem:[#allocation46_spill] sm:$0xff] }
  0xbb   : >> { %v10495_v25 = vld [vmem:[#allocation28_spill] sm:$0xff]  ;;  %v10497_v60 = vld [vmem:[#allocation50_spill] sm:$0xff]  ;;  %v10502_v18 = vld [vmem:[#allocation21_spill] sm:$0xff] }
  0xbc   : >> { %v10496_v29 = vld [vmem:[#allocation32_spill] sm:$0xff]  ;;  %v10504_v14 = vld [vmem:[#allocation17_spill] sm:$0xff]  ;;  %v10507_v16 = vld [vmem:[#allocation19_spill] sm:$0xff]  ;;  %3411 = vmatpush.msra.mxu1 %v10502_v18  ;;  %6551 = vmatpush.msra.mxu3 %v10502_v18 }
  0xbd   : >> { %v10498_v0 = vld [vmem:[#allocation52_spill] sm:$0xff]  ;;  %v10506_v6 = vld [vmem:[#allocation9_spill] sm:$0xff]  ;;  %v10508_v15 = vld [vmem:[#allocation18_spill] sm:$0xff] }
  0xbe   : >> { %v10499_v21 = vld [vmem:[#allocation24_spill] sm:$0xff]  ;;  %v10509_v12 = vld [vmem:[#allocation15_spill] sm:$0xff]  ;;  %v10510_v11 = vld [vmem:[#allocation14_spill] sm:$0xff] }
  0xbf   : >> { %v10500_v56 = vld [vmem:[#allocation48_spill] sm:$0xff]  ;;  %v10512_v4 = vld [vmem:[#allocation7_spill] sm:$0xff]  ;;  %v10514_v3 = vld [vmem:[#allocation6_spill] sm:$0xff] }
  0xc0   : >> { %v10501_v33 = vld [vmem:[#allocation36_spill] sm:$0xff]  ;;  %v10515_v8 = vld [vmem:[#allocation11_spill] sm:$0xff]  ;;  %v10516_v7 = vld [vmem:[#allocation10_spill] sm:$0xff] }
  0xc1   : >> { %v10503_v17 = vld [vmem:[#allocation20_spill] sm:$0xff]  ;;  %v10522_v2 = vld [vmem:[#allocation5_spill] sm:$0xff] }
  0xc2   : >> { %v10505_v13 = vld [vmem:[#allocation16_spill] sm:$0xff]  ;;  %3412 = vmatpush.msra.mxu1 %v10503_v17  ;;  %6552 = vmatpush.msra.mxu3 %v10503_v17 }
  0xc3   : >> { %v10511_v5 = vld [vmem:[#allocation8_spill] sm:$0xff] }
  0xc4   : >> { %v10513_v1 = vld [vmem:[#allocation4_spill] sm:$0xff]  ;;  %3413 = vmatpush.msra.mxu1 %v10507_v16  ;;  %6553 = vmatpush.msra.mxu3 %v10507_v16 }
  0xc5   : >> { %v10517_v9 = vld [vmem:[#allocation12_spill] sm:$0xff] }
  0xc6   : >> { %2241 = vmatpush.msra.mxu0 %v10517_v9  ;;  %6543 = vmatpush.msra.mxu2 %v10517_v9  ;;  %v6727_v38 = vld [vmem:[%s7555_s27] ss:$0 sm:$0xff] }
  0xc7   : >> { %v414_v45 = vmul.f32 %v6727_v38, %v10483_v23  ;;  %v412_v9 = vmul.f32 %v6727_v38, %v10477_v30  ;;  %v410_v19 = vmul.f32 %v6727_v38, %v10473_v22  ;;  %3414 = vmatpush.msra.mxu1 %v10508_v15  ;;  %6554 = vmatpush.msra.mxu3 %v10508_v15 }
  0xc8   : >> { %2242 = vmatpush.msra.mxu0 %v10515_v8  ;;  %6544 = vmatpush.msra.mxu2 %v10515_v8  ;;  %v413_v8 = vmul.f32 %v6727_v38, %v10476_v34 }
  0xc9   : >> { %448 = vperm.xlu2 %6726, %v414_v45   ;;  %438 = vperm.xlu1 %6725, %v412_v9   ;;  %v411_v45 = vmul.f32 %v6727_v38, %v10478_v26  ;;  %v418_v9 = vmul.f32 %v6727_v38, %v10486_v20 }
  0xca   : >> { %2243 = vmatpush.msra.mxu0 %v10516_v7  ;;  %6545 = vmatpush.msra.mxu2 %v10516_v7  ;;  %v415_v7 = vmul.f32 %v6727_v38, %v10482_v27 }
  0xcb   : >> { %428 = vperm.xlu0 %6724, %v410_v19   ;;  %3415 = vmatpush.msra.mxu1 %v10504_v14  ;;  %v417_v19 = vmul.f32 %v6727_v38, %v10487_v35 }
  0xcc   : >> { %2244 = vmatpush.msra.mxu0 %v10506_v6  ;;  %6546 = vmatpush.msra.mxu2 %v10506_v6 }
  0xcd   : >> { %3416 = vmatpush.msra.mxu1 %v10505_v13  ;;  %6555 = vmatpush.msra.mxu3 %v10504_v14 }
  0xce   : >> { %2245 = vmatpush.msra.mxu0 %v10511_v5  ;;  %6547 = vmatpush.msra.mxu2 %v10511_v5  ;;  %v422_v5 = vmul.f32 %v6727_v38, %v10499_v21 }
  0xcf   : >> { %3417 = vmatpush.msra.mxu1 %v10509_v12  ;;  %6556 = vmatpush.msra.mxu3 %v10505_v13 }
  0xd0   : >> { %2246 = vmatpush.msra.mxu0 %v10512_v4  ;;  %6548 = vmatpush.msra.mxu2 %v10512_v4  ;;  %v423_v4 = vmul.f32 %v6727_v38, %v10495_v25 }
  0xd1   : >> { %453 = vperm.xlu2 %6726, %v415_v7   ;;  %443 = vperm.xlu1 %6725, %v413_v8   ;;  %v421_v7 = vmul.f32 %v6727_v38, %v10491_v32  ;;  %v420_v8 = vmul.f32 %v6727_v38, %v10490_v28 }
  0xd2   : >> { %2247 = vmatpush.msra.mxu0 %v10514_v3  ;;  %6549 = vmatpush.msra.mxu2 %v10514_v3  ;;  %v416_v3 = vmul.f32 %v6727_v38, %v10481_v31 }
  0xd3   : >> { %433 = vperm.xlu0 %6724, %v411_v45   ;;  %3418 = vmatpush.msra.mxu1 %v10510_v11  ;;  %v419_v45 = vmul.f32 %v6727_v38, %v10492_v24 }
  0xd4   : >> { %2248 = vmatpush.msra.mxu0 %v10513_v1  ;;  %6550 = vmatpush.msra.mxu2 %v10513_v1  ;;  %v424_v1 = vmul.f32 %v6727_v38, %v10496_v29 }
  0xd5   : >> { %6557 = vmatpush.msra.mxu3 %v10509_v12 }
  0xd7   : >> { %6558 = vmatpush.msra.mxu3 %v10510_v11  ;;  %v425_v11 = vmul.f32 %v6727_v38, %v10501_v33 }
  0xd9   : >> { %468 = vperm.xlu2 %6726, %v418_v9   ;;  %463 = vperm.xlu1 %6725, %v417_v19  }
  0xdb   : >> { %458 = vperm.xlu0 %6724, %v416_v3   ;;  %v6728_v3 = vld [vmem:[%s7555_s27 + $0x1] ss:$0 sm:$0xff] }
  0xdc   : >> { %v577_v9 = vmul.f32 %v6728_v3, %v10478_v26  ;;  %v576_v19 = vmul.f32 %v6728_v3, %v10473_v22  ;;  %v585_v38 = vmul.f32 %v6728_v3, %v10492_v24 }
  0xe1   : >> { %483 = vperm.xlu2 %6726, %v421_v7   ;;  %478 = vperm.xlu1 %6725, %v420_v8   ;;  %v580_v7 = vmul.f32 %v6728_v3, %v10483_v23  ;;  %v579_v8 = vmul.f32 %v6728_v3, %v10476_v34 }
  0xe3   : >> { %473 = vperm.xlu0 %6724, %v419_v45   ;;  %v578_v45 = vmul.f32 %v6728_v3, %v10477_v30 }
  0xe9   : >> { %498 = vperm.xlu2 %6726, %v424_v1   ;;  %493 = vperm.xlu1 %6725, %v423_v4   ;;  %v583_v1 = vmul.f32 %v6728_v3, %v10487_v35  ;;  %v582_v4 = vmul.f32 %v6728_v3, %v10481_v31 }
  0xeb   : >> { %488 = vperm.xlu0 %6724, %v422_v5   ;;  %v581_v5 = vmul.f32 %v6728_v3, %v10482_v27 }
  0xf1   : >> { %599 = vperm.xlu2 %6726, %v577_v9   ;;  %594 = vperm.xlu1 %6725, %v576_v19   ;;  %v584_v9 = vmul.f32 %v6728_v3, %v10486_v20  ;;  %v589_v19 = vmul.f32 %v6728_v3, %v10495_v25 }
  0xf3   : >> { %503 = vperm.xlu0 %6724, %v425_v11   ;;  %v586_v11 = vmul.f32 %v6728_v3, %v10490_v28 }
  0xf9   : >> { %614 = vperm.xlu2 %6726, %v580_v7   ;;  %609 = vperm.xlu1 %6725, %v579_v8   ;;  %v588_v7 = vmul.f32 %v6728_v3, %v10499_v21  ;;  %v587_v8 = vmul.f32 %v6728_v3, %v10491_v32 }
  0xfb   : >> { %604 = vperm.xlu0 %6724, %v578_v45   ;;  %v7619_v45 = vld [vmem:[%s7555_s27 + $0x2] ss:$0 sm:$0xff] }
  0xfc   : >> { %v747_v12 = vmul.f32 %v7619_v45, %v10487_v35 }
 0x101   : >> { %629 = vperm.xlu2 %6726, %v583_v1   ;;  %624 = vperm.xlu1 %6725, %v582_v4   ;;  %v740_v1 = vmul.f32 %v7619_v45, %v10473_v22  ;;  %v591_v4 = vmul.f32 %v6728_v3, %v10501_v33 }
 0x103   : >> { %619 = vperm.xlu0 %6724, %v581_v5   ;;  %v590_v5 = vmul.f32 %v6728_v3, %v10496_v29 }
 0x109   : >> { %644 = vperm.xlu2 %6726, %v586_v11   ;;  %639 = vperm.xlu1 %6725, %v585_v38   ;;  %v743_v11 = vmul.f32 %v7619_v45, %v10476_v34  ;;  %v742_v38 = vmul.f32 %v7619_v45, %v10477_v30 }
 0x10b   : >> { %634 = vperm.xlu0 %6724, %v584_v9   ;;  %v741_v9 = vmul.f32 %v7619_v45, %v10478_v26 }
 0x111   : >> { %659 = vperm.xlu2 %6726, %v589_v19   ;;  %654 = vperm.xlu1 %6725, %v588_v7   ;;  %v7632_v19 = vperm.slane %v10522_v2, 0 }
 0x113   : >> { %649 = vperm.xlu0 %6724, %v587_v8   ;;  %v746_v8 = vmul.f32 %v7619_v45, %v10481_v31 }
 0x119   : >> { %758 = vperm.xlu2 %6726, %v740_v1   ;;  %669 = vperm.xlu1 %6725, %v591_v4   ;;  %v745_v1 = vmul.f32 %v7619_v45, %v10482_v27 }
 0x11b   : >> { %664 = vperm.xlu0 %6724, %v590_v5   ;;  %v744_v5 = vmul.f32 %v7619_v45, %v10483_v23 }
 0x121   : >> { %773 = vperm.xlu2 %6726, %v743_v11   ;;  %768 = vperm.xlu1 %6725, %v742_v38  }
 0x123   : >> { %763 = vperm.xlu0 %6724, %v741_v9   ;;  %v449_v7 = vpop.permute.xlu2 %448  ;;  %v749_v9 = vmul.f32 %v7619_v45, %v10492_v24 }
 0x124   : >> { %v511_v3 = vmul.f32 %v7632_v19, %v449_v7  ;;  %v748_v7 = vmul.f32 %v7619_v45, %v10486_v20 }
 0x126   : >> { %v527_v4 = vadd.f32 %v511_v3, %v10488_v40 }
 0x128   : >> { %v543_v2 = vmax.f32 %v527_v4, 0.0 }
 0x129   : >> { %788 = vperm.xlu2 %6726, %v746_v8   ;;  %783 = vperm.xlu1 %6725, %v745_v1   ;;  %v7652_v8 = vld [vmem:[%s7555_s27 + $0x4] ss:$0 sm:$0xff] }
 0x12a   : >> { %560 = vst.msk [vmem:[#allocation2 + $0x20] sm:$0xff] %vm555_vm2, %v543_v2 }
 0x12b   : >> { %778 = vperm.xlu0 %6724, %v744_v5   ;;  %v454_v11 = vpop.permute.xlu2 %453  ;;  %v1068_v5 = vmul.f32 %v7652_v8, %v10473_v22 }
 0x12c   : >> { %v512_v38 = vmul.f32 %v7632_v19, %v454_v11  ;;  %v751_v11 = vmul.f32 %v7619_v45, %v10491_v32 }
 0x12e   : >> { %v528_v3 = vadd.f32 %v512_v38, %v10493_v48 }
 0x130   : >> { %v544_v4 = vmax.f32 %v528_v3, 0.0 }
 0x131   : >> { %803 = vperm.xlu2 %6726, %v749_v9   ;;  %798 = vperm.xlu1 %6725, %v748_v7   ;;  %v750_v9 = vmul.f32 %v7619_v45, %v10490_v28 }
 0x132   : >> { %561 = vst.msk [vmem:[#allocation2 + $0x28] sm:$0xff] %vm555_vm2, %v544_v4 }
 0x133   : >> { %793 = vperm.xlu0 %6724, %v747_v12   ;;  %v469_v2 = vpop.permute.xlu2 %468 }
 0x134   : >> { %v515_v1 = vmul.f32 %v7632_v19, %v469_v2 }
 0x136   : >> { %v531_v38 = vadd.f32 %v515_v1, %v10472_v43  ;;  %v1070_v1 = vmul.f32 %v7652_v8, %v10477_v30 }
 0x138   : >> { %v547_v7 = vmax.f32 %v531_v38, 0.0  ;;  %v752_v38 = vmul.f32 %v7619_v45, %v10499_v21 }
 0x139   : >> { %1086 = vperm.xlu2 %6726, %v1068_v5   ;;  %813 = vperm.xlu1 %6725, %v751_v11  }
 0x13a   : >> { %564 = vst.msk [vmem:[#allocation2 + $0x40] sm:$0xff] %vm555_vm2, %v547_v7 }
 0x13b   : >> { %808 = vperm.xlu0 %6724, %v750_v9   ;;  %v484_v12 = vpop.permute.xlu2 %483  ;;  %v439_v3 = vpop.permute.xlu1 %438  ;;  %v1069_v9 = vmul.f32 %v7652_v8, %v10478_v26 }
 0x13c   : >> { %v518_v4 = vmul.f32 %v7632_v19, %v484_v12  ;;  %v509_v2 = vmul.f32 %v7632_v19, %v439_v3 }
 0x13d   : >> { %v429_v15 = vpop.permute.xlu0 %428 }
 0x13e   : >> { %v507_v16 = vmul.f32 %v7632_v19, %v429_v15  ;;  %v534_v5 = vadd.f32 %v518_v4, %v10485_v41  ;;  %v525_v11 = vadd.f32 %v509_v2, %v10479_v55 }
 0x140   : >> { %v523_v7 = vadd.f32 %v507_v16, %v10471_v39  ;;  %v550_v12 = vmax.f32 %v534_v5, 0.0  ;;  %v541_v3 = vmax.f32 %v525_v11, 0.0 }
 0x141   : >> { %1096 = vperm.xlu2 %6726, %v1070_v1   ;;  %818 = vperm.xlu1 %6725, %v752_v38   ;;  %v753_v1 = vmul.f32 %v7619_v45, %v10495_v25  ;;  %v1072_v38 = vmul.f32 %v7652_v8, %v10483_v23 }
 0x142   : >> { %v539_v6 = vmax.f32 %v523_v7, 0.0  ;;  %567 = vst.msk [vmem:[#allocation2 + $0x58] sm:$0xff] %vm555_vm2, %v550_v12 }
 0x143   : >> { %1091 = vperm.xlu0 %6724, %v1069_v9   ;;  %558 = vst.msk [vmem:[#allocation2 + $0x10] sm:$0xff] %vm555_vm2, %v541_v3  ;;  %v499_v15 = vpop.permute.xlu2 %498  ;;  %v444_v13 = vpop.permute.xlu1 %443 }
 0x144   : >> { %556 = vst.msk [vmem:[#allocation2] sm:$0xff] %vm555_vm2, %v539_v6  ;;  %v521_v4 = vmul.f32 %v7632_v19, %v499_v15  ;;  %v510_v2 = vmul.f32 %v7632_v19, %v444_v13  ;;  %v1071_v6 = vmul.f32 %v7652_v8, %v10476_v34 }
 0x145   : >> { %v434_v14 = vpop.permute.xlu0 %433 }
 0x146   : >> { %v508_v16 = vmul.f32 %v7632_v19, %v434_v14  ;;  %v537_v5 = vadd.f32 %v521_v4, %v10497_v60  ;;  %v526_v11 = vadd.f32 %v510_v2, %v10484_v63 }
 0x148   : >> { %v524_v9 = vadd.f32 %v508_v16, %v10474_v47  ;;  %v553_v7 = vmax.f32 %v537_v5, 0.0  ;;  %v542_v13 = vmax.f32 %v526_v11, 0.0  ;;  %v1074_v5 = vmul.f32 %v7652_v8, %v10481_v31 }
 0x149   : >> { %823 = vperm.xlu2 %6726, %v753_v1   ;;  %1106 = vperm.xlu1 %6725, %v1072_v38   ;;  %v1075_v38 = vmul.f32 %v7652_v8, %v10487_v35 }
 0x14a   : >> { %v540_v12 = vmax.f32 %v524_v9, 0.0  ;;  %570 = vst.msk [vmem:[#allocation2 + $0x70] sm:$0xff] %vm555_vm2, %v553_v7  ;;  %v1073_v9 = vmul.f32 %v7652_v8, %v10482_v27 }
 0x14b   : >> { %1101 = vperm.xlu0 %6724, %v1071_v6   ;;  %559 = vst.msk [vmem:[#allocation2 + $0x18] sm:$0xff] %vm555_vm2, %v542_v13  ;;  %v1720_v14 = vld [vmem:[#allocation2] sm:$0xff]  ;;  %v600_v3 = vpop.permute.xlu2 %599  ;;  %v464_v15 = vpop.permute.xlu1 %463 }
 0x14c   : >> { %557 = vst.msk [vmem:[#allocation2 + $0x8] sm:$0xff] %vm555_vm2, %v540_v12  ;;  %6115 = vmatmul.msk.f32.vlgmr.msra.gmra.mxu0 %vm555_vm2, %v1720_v14  ;;  %v673_v4 = vmul.f32 %v600_v3, %v7632_v19  ;;  %v514_v2 = vmul.f32 %v7632_v19, %v464_v15 }
 0x14d   : >> { %v459_v16 = vpop.permute.xlu0 %458 }
 0x14e   : >> { %v513_v1 = vmul.f32 %v7632_v19, %v459_v16  ;;  %v689_v11 = vadd.f32 %v673_v4, %v10474_v47  ;;  %v530_v6 = vadd.f32 %v514_v2, %v10498_v0 }
 0x150   : >> { %v529_v7 = vadd.f32 %v513_v1, %v10500_v56  ;;  %v705_v13 = vmax.f32 %v689_v11, 0.0  ;;  %v546_v12 = vmax.f32 %v530_v6, 0.0  ;;  %v1076_v11 = vmul.f32 %v7652_v8, %v10486_v20 }
 0x151   : >> { %1121 = vperm.xlu2 %6726, %v1075_v38   ;;  %1116 = vperm.xlu1 %6725, %v1074_v5   ;;  %v1077_v5 = vmul.f32 %v7652_v8, %v10492_v24 }
 0x152   : >> { %v545_v14 = vmax.f32 %v529_v7, 0.0  ;;  %721 = vst.msk [vmem:[#allocation2 + $0x88] sm:$0xff] %vm555_vm2, %v705_v13  ;;  %v754_v7 = vmul.f32 %v7619_v45, %v10496_v29 }
 0x153   : >> { %1111 = vperm.xlu0 %6724, %v1073_v9   ;;  %563 = vst.msk [vmem:[#allocation2 + $0x38] sm:$0xff] %vm555_vm2, %v546_v12  ;;  %v1721_v3 = vld [vmem:[#allocation2 + $0x8] sm:$0xff]  ;;  %v615_v15 = vpop.permute.xlu2 %614  ;;  %v479_v4 = vpop.permute.xlu1 %478 }
 0x154   : >> { %562 = vst.msk [vmem:[#allocation2 + $0x30] sm:$0xff] %vm555_vm2, %v545_v14  ;;  %6116 = vmatmul.msk.f32.gmra.mxu0 %vm555_vm2, %v1721_v3  ;;  %v676_v2 = vmul.f32 %v615_v15, %v7632_v19  ;;  %v517_v16 = vmul.f32 %v7632_v19, %v479_v4  ;;  %v1722_v15 = vld [vmem:[#allocation2 + $0x10] sm:$0xff] }
 0x155   : >> { %v474_v1 = vpop.permute.xlu0 %473 }
 0x156   : >> { %v516_v38 = vmul.f32 %v7632_v19, %v474_v1  ;;  %v692_v6 = vadd.f32 %v676_v2, %v10488_v40  ;;  %v533_v9 = vadd.f32 %v517_v16, %v10480_v59 }
 0x158   : >> { %v532_v13 = vadd.f32 %v516_v38, %v10475_v51  ;;  %v708_v12 = vmax.f32 %v692_v6, 0.0  ;;  %v549_v14 = vmax.f32 %v533_v9, 0.0  ;;  %v755_v6 = vmul.f32 %v7619_v45, %v10501_v33  ;;  %v1723_v45 = vld [vmem:[#allocation2 + $0x18] sm:$0xff] }
 0x159   : >> { %1131 = vperm.xlu2 %6726, %v1077_v5   ;;  %1126 = vperm.xlu1 %6725, %v1076_v11   ;;  %v1079_v11 = vmul.f32 %v7652_v8, %v10491_v32 }
 0x15a   : >> { %v548_v3 = vmax.f32 %v532_v13, 0.0  ;;  %724 = vst.msk [vmem:[#allocation2 + $0xa0] sm:$0xff] %vm555_vm2, %v708_v12  ;;  %v1078_v13 = vmul.f32 %v7652_v8, %v10490_v28 }
 0x15b   : >> { %828 = vperm.xlu0 %6724, %v754_v7   ;;  %566 = vst.msk [vmem:[#allocation2 + $0x50] sm:$0xff] %vm555_vm2, %v549_v14  ;;  %v630_v4 = vpop.permute.xlu2 %629  ;;  %v494_v2 = vpop.permute.xlu1 %493 }
 0x15c   : >> { %565 = vst.msk [vmem:[#allocation2 + $0x48] sm:$0xff] %vm555_vm2, %v548_v3  ;;  %6117 = vmatmul.msk.f32.gmra.mxu0 %vm555_vm2, %v1722_v15  ;;  %v679_v16 = vmul.f32 %v630_v4, %v7632_v19  ;;  %v520_v1 = vmul.f32 %v7632_v19, %v494_v2  ;;  %v7740_v4 = vld [vmem:[%s7555_s27 + $0x3] ss:$0 sm:$0xff] }
 0x15d   : >> { %v489_v38 = vpop.permute.xlu0 %488 }
 0x15e   : >> { %v519_v5 = vmul.f32 %v7632_v19, %v489_v38  ;;  %v695_v9 = vadd.f32 %v679_v16, %v10498_v0  ;;  %v536_v7 = vadd.f32 %v520_v1, %v10494_v52 }
 0x160   : >> { %v535_v12 = vadd.f32 %v519_v5, %v10489_v44  ;;  %v711_v14 = vmax.f32 %v695_v9, 0.0  ;;  %v552_v3 = vmax.f32 %v536_v7, 0.0  ;;  %v1081_v9 = vmul.f32 %v7652_v8, %v10495_v25 }
 0x161   : >> { %1141 = vperm.xlu2 %6726, %v1079_v11   ;;  %833 = vperm.xlu1 %6725, %v755_v6   ;;  %v904_v6 = vmul.f32 %v7740_v4, %v10473_v22 }
 0x162   : >> { %v551_v15 = vmax.f32 %v535_v12, 0.0  ;;  %727 = vst.msk [vmem:[#allocation2 + $0xb8] sm:$0xff] %vm555_vm2, %v711_v14  ;;  %v1080_v12 = vmul.f32 %v7652_v8, %v10499_v21  ;;  %v10523_v14 = vld [vmem:[#allocation54_spill] sm:$0xff] }
 0x163   : >> { %1136 = vperm.xlu0 %6724, %v1078_v13   ;;  %569 = vst.msk [vmem:[#allocation2 + $0x68] sm:$0xff] %vm555_vm2, %v552_v3  ;;  %v645_v2 = vpop.permute.xlu2 %644  ;;  %v595_v16 = vpop.permute.xlu1 %594 }
 0x164   : >> { %568 = vst.msk [vmem:[#allocation2 + $0x60] sm:$0xff] %vm555_vm2, %v551_v15  ;;  %6118 = vmatmul.msk.f32.gmra.mxu0 %vm555_vm2, %v1723_v45  ;;  %v682_v1 = vmul.f32 %v645_v2, %v7632_v19  ;;  %v672_v38 = vmul.f32 %v595_v16, %v7632_v19  ;;  %v7759_v16 = vld [vmem:[%s7555_s27 + $0x5] ss:$0 sm:$0xff] }
 0x165   : >> { %v504_v5 = vpop.permute.xlu0 %503 }
 0x166   : >> { %v522_v11 = vmul.f32 %v7632_v19, %v504_v5  ;;  %v698_v7 = vadd.f32 %v682_v1, %v10480_v59  ;;  %v688_v13 = vadd.f32 %v672_v38, %v10471_v39  ;;  %v1724_v1 = vld [vmem:[#allocation2 + $0x20] sm:$0xff] }
 0x168   : >> { %v538_v3 = vadd.f32 %v522_v11, %v10523_v14  ;;  %v714_v15 = vmax.f32 %v698_v7, 0.0  ;;  %v704_v45 = vmax.f32 %v688_v13, 0.0  ;;  %v1232_v13 = vmul.f32 %v7759_v16, %v10473_v22 }
 0x169   : >> { %922 = vperm.xlu2 %6726, %v904_v6   ;;  %1151 = vperm.xlu1 %6725, %v1081_v9  }
 0x16a   : >> { %v554_v2 = vmax.f32 %v538_v3, 0.0  ;;  %730 = vst.msk [vmem:[#allocation2 + $0xd0] sm:$0xff] %vm555_vm2, %v714_v15 }
 0x16b   : >> { %1146 = vperm.xlu0 %6724, %v1080_v12   ;;  %720 = vst.msk [vmem:[#allocation2 + $0x80] sm:$0xff] %vm555_vm2, %v704_v45  ;;  %v660_v5 = vpop.permute.xlu2 %659  ;;  %v610_v38 = vpop.permute.xlu1 %609  ;;  %v1083_v12 = vmul.f32 %v7652_v8, %v10501_v33  ;;  %v1082_v45 = vmul.f32 %v7652_v8, %v10496_v29 }
 0x16c   : >> { %571 = vst.msk [vmem:[#allocation2 + $0x78] sm:$0xff] %vm555_vm2, %v554_v2  ;;  %6119 = vmatmul.msk.f32.gmra.mxu0 %vm555_vm2, %v1724_v1  ;;  %v685_v11 = vmul.f32 %v660_v5, %v7632_v19  ;;  %v675_v7 = vmul.f32 %v610_v38, %v7632_v19 }
 0x16d   : >> { %v605_v6 = vpop.permute.xlu0 %604 }
 0x16e   : >> { %v674_v9 = vmul.f32 %v605_v6, %v7632_v19  ;;  %v701_v3 = vadd.f32 %v685_v11, %v10494_v52  ;;  %v691_v15 = vadd.f32 %v675_v7, %v10484_v63  ;;  %v1725_v6 = vld [vmem:[#allocation2 + $0x28] sm:$0xff] }
 0x170   : >> { %v690_v2 = vadd.f32 %v674_v9, %v10479_v55  ;;  %v717_v1 = vmax.f32 %v701_v3, 0.0  ;;  %v707_v5 = vmax.f32 %v691_v15, 0.0  ;;  %v1233_v3 = vmul.f32 %v7759_v16, %v10478_v26 }
 0x171   : >> { %1250 = vperm.xlu2 %6726, %v1232_v13   ;;  %1161 = vperm.xlu1 %6725, %v1083_v12   ;;  %v1234_v12 = vmul.f32 %v7759_v16, %v10477_v30 }
 0x172   : >> { %v706_v38 = vmax.f32 %v690_v2, 0.0  ;;  %733 = vst.msk [vmem:[#allocation2 + $0xe8] sm:$0xff] %vm555_vm2, %v717_v1  ;;  %v905_v2 = vmul.f32 %v7740_v4, %v10478_v26 }
 0x173   : >> { %1156 = vperm.xlu0 %6724, %v1082_v45   ;;  %723 = vst.msk [vmem:[#allocation2 + $0x98] sm:$0xff] %vm555_vm2, %v707_v5  ;;  %v759_v17 = vpop.permute.xlu2 %758  ;;  %v625_v11 = vpop.permute.xlu1 %624 }
 0x174   : >> { %722 = vst.msk [vmem:[#allocation2 + $0x90] sm:$0xff] %vm555_vm2, %v706_v38  ;;  %6120 = vmatmul.msk.f32.gmra.mxu0 %vm555_vm2, %v1725_v6  ;;  %v836_v8 = vmul.f32 %v759_v17, %v7632_v19  ;;  %v678_v7 = vmul.f32 %v625_v11, %v7632_v19  ;;  %v1726_v6 = vld [vmem:[#allocation2 + $0x30] sm:$0xff] }
 0x175   : >> { %v620_v9 = vpop.permute.xlu0 %619 }
 0x176   : >> { %v677_v13 = vmul.f32 %v620_v9, %v7632_v19  ;;  %v852_v15 = vadd.f32 %v836_v8, %v10471_v39  ;;  %v694_v45 = vadd.f32 %v678_v7, %v10500_v56 }
 0x178   : >> { %v693_v17 = vadd.f32 %v677_v13, %v10493_v48  ;;  %v868_v1 = vmax.f32 %v852_v15, 0.0  ;;  %v710_v5 = vmax.f32 %v694_v45, 0.0  ;;  %v906_v15 = vmul.f32 %v7740_v4, %v10477_v30 }
 0x179   : >> { %1260 = vperm.xlu2 %6726, %v1234_v12   ;;  %1255 = vperm.xlu1 %6725, %v1233_v3   ;;  %v1236_v3 = vmul.f32 %v7759_v16, %v10483_v23 }
 0x17a   : >> { %v709_v38 = vmax.f32 %v693_v17, 0.0  ;;  %884 = vst.msk [vmem:[#allocation2 + $0x100] sm:$0xff] %vm555_vm2, %v868_v1  ;;  %v1235_v17 = vmul.f32 %v7759_v16, %v10476_v34 }
 0x17b   : >> { %927 = vperm.xlu0 %6724, %v905_v2   ;;  %726 = vst.msk [vmem:[#allocation2 + $0xb0] sm:$0xff] %vm555_vm2, %v710_v5  ;;  %v774_v11 = vpop.permute.xlu2 %773  ;;  %v640_v8 = vpop.permute.xlu1 %639 }
 0x17c   : >> { %725 = vst.msk [vmem:[#allocation2 + $0xa8] sm:$0xff] %vm555_vm2, %v709_v38  ;;  %6121 = vmatmul.msk.f32.gmra.mxu0 %vm555_vm2, %v1726_v6  ;;  %v839_v7 = vmul.f32 %v774_v11, %v7632_v19  ;;  %v681_v9 = vmul.f32 %v640_v8, %v7632_v19  ;;  %v1727_v11 = vld [vmem:[#allocation2 + $0x38] sm:$0xff] }
 0x17d   : >> { %v635_v13 = vpop.permute.xlu0 %634 }
 0x17e   : >> { %v680_v12 = vmul.f32 %v635_v13, %v7632_v19  ;;  %v855_v45 = vadd.f32 %v839_v7, %v10484_v63  ;;  %v697_v2 = vadd.f32 %v681_v9, %v10475_v51 }
 0x180   : >> { %v696_v1 = vadd.f32 %v680_v12, %v10472_v43  ;;  %v871_v5 = vmax.f32 %v855_v45, 0.0  ;;  %v713_v38 = vmax.f32 %v697_v2, 0.0  ;;  %v1238_v45 = vmul.f32 %v7759_v16, %v10481_v31 }
 0x181   : >> { %1270 = vperm.xlu2 %6726, %v1236_v3   ;;  %932 = vperm.xlu1 %6725, %v906_v15   ;;  %v907_v15 = vmul.f32 %v7740_v4, %v10476_v34 }
 0x182   : >> { %v712_v6 = vmax.f32 %v696_v1, 0.0  ;;  %887 = vst.msk [vmem:[#allocation2 + $0x118] sm:$0xff] %vm555_vm2, %v871_v5  ;;  %v1237_v1 = vmul.f32 %v7759_v16, %v10482_v27 }
 0x183   : >> { %1265 = vperm.xlu0 %6724, %v1235_v17   ;;  %729 = vst.msk [vmem:[#allocation2 + $0xc8] sm:$0xff] %vm555_vm2, %v713_v38  ;;  %v789_v8 = vpop.permute.xlu2 %788  ;;  %v655_v7 = vpop.permute.xlu1 %654 }
 0x184   : >> { %728 = vst.msk [vmem:[#allocation2 + $0xc0] sm:$0xff] %vm555_vm2, %v712_v6  ;;  %6122 = vmatmul.msk.f32.gmra.mxu0 %vm555_vm2, %v1727_v11  ;;  %v842_v9 = vmul.f32 %v789_v8, %v7632_v19  ;;  %v684_v13 = vmul.f32 %v655_v7, %v7632_v19  ;;  %v1728_v8 = vld [vmem:[#allocation2 + $0x40] sm:$0xff] }
 0x185   : >> { %v650_v12 = vpop.permute.xlu0 %649 }
 0x186   : >> { %v683_v3 = vmul.f32 %v650_v12, %v7632_v19  ;;  %v858_v2 = vadd.f32 %v842_v9, %v10500_v56  ;;  %v700_v17 = vadd.f32 %v684_v13, %v10489_v44 }
 0x188   : >> { %v699_v5 = vadd.f32 %v683_v3, %v10485_v41  ;;  %v874_v38 = vmax.f32 %v858_v2, 0.0  ;;  %v716_v6 = vmax.f32 %v700_v17, 0.0  ;;  %v1240_v2 = vmul.f32 %v7759_v16, %v10486_v20 }
 0x189   : >> { %937 = vperm.xlu2 %6726, %v907_v15   ;;  %1280 = vperm.xlu1 %6725, %v1238_v45   ;;  %v1241_v45 = vmul.f32 %v7759_v16, %v10492_v24 }
 0x18a   : >> { %v715_v11 = vmax.f32 %v699_v5, 0.0  ;;  %890 = vst.msk [vmem:[#allocation2 + $0x130] sm:$0xff] %vm555_vm2, %v874_v38  ;;  %v1239_v5 = vmul.f32 %v7759_v16, %v10487_v35 }
 0x18b   : >> { %1275 = vperm.xlu0 %6724, %v1237_v1   ;;  %732 = vst.msk [vmem:[#allocation2 + $0xe0] sm:$0xff] %vm555_vm2, %v716_v6  ;;  %v804_v7 = vpop.permute.xlu2 %803  ;;  %v670_v9 = vpop.permute.xlu1 %669 }
 0x18c   : >> { %731 = vst.msk [vmem:[#allocation2 + $0xd8] sm:$0xff] %vm555_vm2, %v715_v11  ;;  %6123 = vmatmul.msk.f32.gmra.mxu0 %vm555_vm2, %v1728_v8  ;;  %v845_v13 = vmul.f32 %v804_v7, %v7632_v19  ;;  %v687_v12 = vmul.f32 %v670_v9, %v7632_v19  ;;  %v1729_v7 = vld [vmem:[#allocation2 + $0x48] sm:$0xff] }
 0x18d   : >> { %v665_v3 = vpop.permute.xlu0 %664 }
 0x18e   : >> { %v686_v15 = vmul.f32 %v665_v3, %v7632_v19  ;;  %v861_v17 = vadd.f32 %v845_v13, %v10475_v51  ;;  %v703_v1 = vadd.f32 %v687_v12, %v10523_v14 }
 0x190   : >> { %v702_v38 = vadd.f32 %v686_v15, %v10497_v60  ;;  %v877_v6 = vmax.f32 %v861_v17, 0.0  ;;  %v719_v11 = vmax.f32 %v703_v1, 0.0  ;;  %v1242_v17 = vmul.f32 %v7759_v16, %v10490_v28 }
 0x191   : >> { %1295 = vperm.xlu2 %6726, %v1241_v45   ;;  %1290 = vperm.xlu1 %6725, %v1240_v2   ;;  %v1243_v2 = vmul.f32 %v7759_v16, %v10491_v32 }
 0x192   : >> { %v718_v8 = vmax.f32 %v702_v38, 0.0  ;;  %893 = vst.msk [vmem:[#allocation2 + $0x148] sm:$0xff] %vm555_vm2, %v877_v6  ;;  %v908_v38 = vmul.f32 %v7740_v4, %v10483_v23 }
 0x193   : >> { %1285 = vperm.xlu0 %6724, %v1239_v5   ;;  %735 = vst.msk [vmem:[#allocation2 + $0xf8] sm:$0xff] %vm555_vm2, %v719_v11  ;;  %v1087_v9 = vpop.permute.xlu2 %1086  ;;  %v769_v13 = vpop.permute.xlu1 %768 }
 0x194   : >> { %734 = vst.msk [vmem:[#allocation2 + $0xf0] sm:$0xff] %vm555_vm2, %v718_v8  ;;  %6124 = vmatmul.msk.f32.gmra.mxu0 %vm555_vm2, %v1729_v7  ;;  %v1164_v12 = vmul.f32 %v1087_v9, %v7632_v19  ;;  %v838_v3 = vmul.f32 %v769_v13, %v7632_v19  ;;  %v1730_v9 = vld [vmem:[#allocation2 + $0x50] sm:$0xff] }
 0x195   : >> { %v764_v15 = vpop.permute.xlu0 %763 }
 0x196   : >> { %v837_v45 = vmul.f32 %v764_v15, %v7632_v19  ;;  %v1180_v1 = vadd.f32 %v1164_v12, %v10471_v39  ;;  %v854_v5 = vadd.f32 %v838_v3, %v10479_v55 }
 0x198   : >> { %v853_v6 = vadd.f32 %v837_v45, %v10474_v47  ;;  %v1196_v11 = vmax.f32 %v1180_v1, 0.0  ;;  %v870_v8 = vmax.f32 %v854_v5, 0.0  ;;  %v909_v1 = vmul.f32 %v7740_v4, %v10482_v27 }
 0x199   : >> { %1305 = vperm.xlu2 %6726, %v1243_v2   ;;  %1300 = vperm.xlu1 %6725, %v1242_v17   ;;  %v1245_v17 = vmul.f32 %v7759_v16, %v10495_v25 }
 0x19a   : >> { %v869_v7 = vmax.f32 %v853_v6, 0.0  ;;  %1212 = vst.msk [vmem:[#allocation2 + $0x200] sm:$0xff] %vm555_vm2, %v1196_v11  ;;  %v1244_v6 = vmul.f32 %v7759_v16, %v10499_v21 }
 0x19b   : >> { %942 = vperm.xlu0 %6724, %v908_v38   ;;  %886 = vst.msk [vmem:[#allocation2 + $0x110] sm:$0xff] %vm555_vm2, %v870_v8  ;;  %v1097_v13 = vpop.permute.xlu2 %1096  ;;  %v784_v12 = vpop.permute.xlu1 %783 }
 0x19c   : >> { %885 = vst.msk [vmem:[#allocation2 + $0x108] sm:$0xff] %vm555_vm2, %v869_v7  ;;  %6125 = vmatmul.msk.f32.gmra.mxu0 %vm555_vm2, %v1730_v9  ;;  %v1166_v3 = vmul.f32 %v1097_v13, %v7632_v19  ;;  %v841_v15 = vmul.f32 %v784_v12, %v7632_v19  ;;  %v1731_v12 = vld [vmem:[#allocation2 + $0x58] sm:$0xff] }
 0x19d   : >> { %v779_v45 = vpop.permute.xlu0 %778 }
 0x19e   : >> { %v840_v2 = vmul.f32 %v779_v45, %v7632_v19  ;;  %v1182_v5 = vadd.f32 %v1166_v3, %v10479_v55  ;;  %v857_v38 = vadd.f32 %v841_v15, %v10493_v48 }
 0x1a0   : >> { %v856_v11 = vadd.f32 %v840_v2, %v10488_v40  ;;  %v1198_v8 = vmax.f32 %v1182_v5, 0.0  ;;  %v873_v7 = vmax.f32 %v857_v38, 0.0  ;;  %v910_v5 = vmul.f32 %v7740_v4, %v10481_v31 }
 0x1a1   : >> { %1315 = vperm.xlu2 %6726, %v1245_v17   ;;  %947 = vperm.xlu1 %6725, %v909_v1   ;;  %v1784_v13 = vld [vmem:[#allocation2 + $0x200] sm:$0xff]  ;;  %v1247_v38 = vmul.f32 %v7759_v16, %v10501_v33 }
 0x1a2   : >> { %v872_v9 = vmax.f32 %v856_v11, 0.0  ;;  %1214 = vst.msk [vmem:[#allocation2 + $0x210] sm:$0xff] %vm555_vm2, %v1198_v8  ;;  %6179 = vmatmul.msk.f32.vlgmr.msra.gmra.mxu2 %vm555_vm2, %v1784_v13  ;;  %v1246_v8 = vmul.f32 %v7759_v16, %v10496_v29 }
 0x1a3   : >> { %1310 = vperm.xlu0 %6724, %v1244_v6   ;;  %889 = vst.msk [vmem:[#allocation2 + $0x128] sm:$0xff] %vm555_vm2, %v873_v7  ;;  %v824_v3 = vpop.permute.xlu2 %823  ;;  %v799_v15 = vpop.permute.xlu1 %798 }
 0x1a4   : >> { %888 = vst.msk [vmem:[#allocation2 + $0x120] sm:$0xff] %vm555_vm2, %v872_v9  ;;  %6126 = vmatmul.msk.f32.gmra.mxu0 %vm555_vm2, %v1731_v12  ;;  %v849_v45 = vmul.f32 %v824_v3, %v7632_v19  ;;  %v844_v2 = vmul.f32 %v799_v15, %v7632_v19  ;;  %v7891_v3 = vld [vmem:[%s7555_s27 + $0x6] ss:$0 sm:$0xff] }
 0x1a5   : >> { %v794_v17 = vpop.permute.xlu0 %793  ;;  %v1732_v15 = vld [vmem:[#allocation2 + $0x60] sm:$0xff] }
 0x1a6   : >> { %v843_v1 = vmul.f32 %v794_v17, %v7632_v19  ;;  %v865_v6 = vadd.f32 %v849_v45, %v10494_v52  ;;  %v860_v11 = vadd.f32 %v844_v2, %v10472_v43 }
 0x1a8   : >> { %v859_v7 = vadd.f32 %v843_v1, %v10498_v0  ;;  %v881_v9 = vmax.f32 %v865_v6, 0.0  ;;  %v876_v13 = vmax.f32 %v860_v11, 0.0  ;;  %v1397_v6 = vmul.f32 %v7891_v3, %v10478_v26 }
 0x1a9   : >> { %952 = vperm.xlu2 %6726, %v910_v5   ;;  %1325 = vperm.xlu1 %6725, %v1247_v38   ;;  %v1398_v38 = vmul.f32 %v7891_v3, %v10477_v30 }
 0x1aa   : >> { %v875_v12 = vmax.f32 %v859_v7, 0.0  ;;  %897 = vst.msk [vmem:[#allocation2 + $0x168] sm:$0xff] %vm555_vm2, %v881_v9  ;;  %v1396_v7 = vmul.f32 %v7891_v3, %v10473_v22 }
 0x1ab   : >> { %1320 = vperm.xlu0 %6724, %v1246_v8   ;;  %892 = vst.msk [vmem:[#allocation2 + $0x140] sm:$0xff] %vm555_vm2, %v876_v13  ;;  %v1122_v45 = vpop.permute.xlu2 %1121  ;;  %v814_v2 = vpop.permute.xlu1 %813 }
 0x1ac   : >> { %891 = vst.msk [vmem:[#allocation2 + $0x138] sm:$0xff] %vm555_vm2, %v875_v12  ;;  %6127 = vmatmul.msk.f32.gmra.mxu0 %vm555_vm2, %v1732_v15  ;;  %v1171_v16 = vmul.f32 %v1122_v45, %v7632_v19  ;;  %v847_v17 = vmul.f32 %v814_v2, %v7632_v19  ;;  %v1733_v45 = vld [vmem:[#allocation2 + $0x68] sm:$0xff] }
 0x1ad   : >> { %v809_v1 = vpop.permute.xlu0 %808 }
 0x1ae   : >> { %v846_v5 = vmul.f32 %v809_v1, %v7632_v19  ;;  %v1187_v11 = vadd.f32 %v1171_v16, %v10498_v0  ;;  %v863_v8 = vadd.f32 %v847_v17, %v10485_v41 }
 0x1b0   : >> { %v862_v9 = vadd.f32 %v846_v5, %v10480_v59  ;;  %v1203_v13 = vmax.f32 %v1187_v11, 0.0  ;;  %v879_v12 = vmax.f32 %v863_v8, 0.0  ;;  %v1399_v11 = vmul.f32 %v7891_v3, %v10476_v34 }
 0x1b1   : >> { %1424 = vperm.xlu2 %6726, %v1398_v38   ;;  %1419 = vperm.xlu1 %6725, %v1397_v6   ;;  %v1400_v6 = vmul.f32 %v7891_v3, %v10483_v23 }
 0x1b2   : >> { %v878_v15 = vmax.f32 %v862_v9, 0.0  ;;  %1219 = vst.msk [vmem:[#allocation2 + $0x238] sm:$0xff] %vm555_vm2, %v1203_v13  ;;  %v911_v9 = vmul.f32 %v7740_v4, %v10487_v35 }
 0x1b3   : >> { %1414 = vperm.xlu0 %6724, %v1396_v7   ;;  %895 = vst.msk [vmem:[#allocation2 + $0x158] sm:$0xff] %vm555_vm2, %v879_v12  ;;  %v1132_v2 = vpop.permute.xlu2 %1131  ;;  %v819_v16 = vpop.permute.xlu1 %818 }
 0x1b4   : >> { %894 = vst.msk [vmem:[#allocation2 + $0x150] sm:$0xff] %vm555_vm2, %v878_v15  ;;  %6128 = vmatmul.msk.f32.gmra.mxu0 %vm555_vm2, %v1733_v45  ;;  %v1173_v17 = vmul.f32 %v1132_v2, %v7632_v19  ;;  %v848_v1 = vmul.f32 %v819_v16, %v7632_v19  ;;  %v1734_v2 = vld [vmem:[#allocation2 + $0x70] sm:$0xff] }
 0x1b5   : >> { %v1092_v5 = vpop.permute.xlu0 %1091 }
 0x1b6   : >> { %v1165_v38 = vmul.f32 %v1092_v5, %v7632_v19  ;;  %v1189_v8 = vadd.f32 %v1173_v17, %v10475_v51  ;;  %v864_v7 = vadd.f32 %v848_v1, %v10489_v44 }
 0x1b8   : >> { %v1181_v13 = vadd.f32 %v1165_v38, %v10474_v47  ;;  %v1205_v12 = vmax.f32 %v1189_v8, 0.0  ;;  %v880_v15 = vmax.f32 %v864_v7, 0.0  ;;  %v912_v8 = vmul.f32 %v7740_v4, %v10486_v20 }
 0x1b9   : >> { %1434 = vperm.xlu2 %6726, %v1400_v6   ;;  %1429 = vperm.xlu1 %6725, %v1399_v11   ;;  %v1402_v11 = vmul.f32 %v7891_v3, %v10481_v31 }
 0x1ba   : >> { %v1197_v45 = vmax.f32 %v1181_v13, 0.0  ;;  %1221 = vst.msk [vmem:[#allocation2 + $0x248] sm:$0xff] %vm555_vm2, %v1205_v12  ;;  %v1401_v13 = vmul.f32 %v7891_v3, %v10482_v27 }
 0x1bb   : >> { %957 = vperm.xlu0 %6724, %v911_v9   ;;  %896 = vst.msk [vmem:[#allocation2 + $0x160] sm:$0xff] %vm555_vm2, %v880_v15  ;;  %v1142_v16 = vpop.permute.xlu2 %1141  ;;  %v1107_v17 = vpop.permute.xlu1 %1106 }
 0x1bc   : >> { %1213 = vst.msk [vmem:[#allocation2 + $0x208] sm:$0xff] %vm555_vm2, %v1197_v45  ;;  %6129 = vmatmul.msk.f32.gmra.mxu0 %vm555_vm2, %v1734_v2  ;;  %v1175_v1 = vmul.f32 %v1142_v16, %v7632_v19  ;;  %v1168_v5 = vmul.f32 %v1107_v17, %v7632_v19  ;;  %v1735_v16 = vld [vmem:[#allocation2 + $0x78] sm:$0xff] }
 0x1bd   : >> { %v1102_v38 = vpop.permute.xlu0 %1101 }
 0x1be   : >> { %v1167_v6 = vmul.f32 %v1102_v38, %v7632_v19  ;;  %v1191_v7 = vadd.f32 %v1175_v1, %v10485_v41  ;;  %v1184_v9 = vadd.f32 %v1168_v5, %v10488_v40 }
 0x1c0   : >> { %v1183_v12 = vadd.f32 %v1167_v6, %v10484_v63  ;;  %v1207_v15 = vmax.f32 %v1191_v7, 0.0  ;;  %v1200_v45 = vmax.f32 %v1184_v9, 0.0  ;;  %v913_v7 = vmul.f32 %v7740_v4, %v10492_v24 }
 0x1c1   : >> { %1444 = vperm.xlu2 %6726, %v1402_v11   ;;  %962 = vperm.xlu1 %6725, %v912_v8   ;;  %v1404_v9 = vmul.f32 %v7891_v3, %v10486_v20 }
 0x1c2   : >> { %v1199_v2 = vmax.f32 %v1183_v12, 0.0  ;;  %1223 = vst.msk [vmem:[#allocation2 + $0x258] sm:$0xff] %vm555_vm2, %v1207_v15  ;;  %v10524_v15 = vld [vmem:[#allocation13_spill] sm:$0xff] }
 0x1c3   : >> { %1439 = vperm.xlu0 %6724, %v1401_v13   ;;  %1216 = vst.msk [vmem:[#allocation2 + $0x220] sm:$0xff] %vm555_vm2, %v1200_v45  ;;  %v1785_v17 = vld [vmem:[#allocation2 + $0x208] sm:$0xff]  ;;  %v923_v1 = vpop.permute.xlu2 %922  ;;  %v1117_v38 = vpop.permute.xlu1 %1116  ;;  %v7956_v45 = vperm.slane %v10524_v15, 0  ;;  %v1786_v15 = vld [vmem:[#allocation2 + $0x210] sm:$0xff] }
 0x1c4   : >> { %1215 = vst.msk [vmem:[#allocation2 + $0x218] sm:$0xff] %vm555_vm2, %v1199_v2  ;;  %6130 = vmatmul.msk.f32.gmra.mxu0 %vm555_vm2, %v1735_v16  ;;  %6180 = vmatmul.msk.f32.gmra.mxu2 %vm555_vm2, %v1785_v17  ;;  %v1000_v5 = vmul.f32 %v923_v1, %v7632_v19  ;;  %v1170_v6 = vmul.f32 %v1117_v38, %v7632_v19 }
 0x1c5   : >> { %v1112_v11 = vpop.permute.xlu0 %1111  ;;  %10525 = vst [vmem:[#allocation59_spill] sm:$0xff] %v7956_v45  ;;  %v10526_v2 = vmov %v7956_v45  ;;  %v1403_v16 = vmul.f32 %v7891_v3, %v10487_v35 }
 0x1c6   : >> { %v1169_v8 = vmul.f32 %v1112_v11, %v7632_v19  ;;  %v1016_v13 = vadd.f32 %v1000_v5, %v10471_v39  ;;  %v1186_v12 = vadd.f32 %v1170_v6, %v10500_v56  ;;  %v1736_v6 = vld [vmem:[#allocation2 + $0x80] sm:$0xff] }
 0x1c8   : >> { %v1185_v17 = vadd.f32 %v1169_v8, %v10493_v48  ;;  %v1032_v1 = vmax.f32 %v1016_v13, 0.0  ;;  %v1202_v38 = vmax.f32 %v1186_v12, 0.0  ;;  %v1407_v12 = vmul.f32 %v7891_v3, %v10491_v32 }
 0x1c9   : >> { %v2250_v18 = vpop.f32.mrf.mxu0  ;;  %967 = vperm.xlu2 %6726, %v913_v7   ;;  %1454 = vperm.xlu1 %6725, %v1404_v9  }
 0x1ca   : >> { %v1201_v11 = vmax.f32 %v1185_v17, 0.0  ;;  %1048 = vst.msk [vmem:[#allocation2 + $0x180] sm:$0xff] %vm555_vm2, %v1032_v1  ;;  %v2251_v5 = vadd.f32 %v2250_v18, %v10526_v2 }
 0x1cb   : >> { %1449 = vperm.xlu0 %6724, %v1403_v16   ;;  %1218 = vst.msk [vmem:[#allocation2 + $0x230] sm:$0xff] %vm555_vm2, %v1202_v38  ;;  %v1251_v45 = vpop.permute.xlu2 %1250  ;;  %v1127_v10 = vpop.permute.xlu1 %1126  ;;  %v1406_v16 = vmul.f32 %v7891_v3, %v10490_v28  ;;  %v1405_v38 = vmul.f32 %v7891_v3, %v10492_v24 }
 0x1cc   : >> { %1217 = vst.msk [vmem:[#allocation2 + $0x228] sm:$0xff] %vm555_vm2, %v1201_v11  ;;  %v2634_v8 = vmax.f32 %v2251_v5, 0.0  ;;  %6131 = vmatmul.msk.f32.gmra.mxu0 %vm555_vm2, %v1736_v6  ;;  %6181 = vmatmul.msk.f32.gmra.mxu2 %vm555_vm2, %v1786_v15  ;;  %v1328_v7 = vmul.f32 %v1251_v45, %v7632_v19  ;;  %v1172_v9 = vmul.f32 %v1127_v10, %v7632_v19 }
 0x1cd   : >> { %v829_v13 = vpop.permute.xlu0 %828 }
 0x1ce   : >> { %v850_v18 = vmul.f32 %v829_v13, %v7632_v19  ;;  %2762 = vst.msk [vmem:[#allocation3] sm:$0xff] %vm555_vm2, %v2634_v8  ;;  %v1344_v17 = vadd.f32 %v1328_v7, %v10471_v39  ;;  %v1188_v1 = vadd.f32 %v1172_v9, %v10472_v43  ;;  %v1737_v8 = vld [vmem:[#allocation2 + $0x88] sm:$0xff]  ;;  %v1787_v7 = vld [vmem:[#allocation2 + $0x218] sm:$0xff] }
 0x1d0   : >> { %v866_v10 = vadd.f32 %v850_v18, %v10497_v60  ;;  %v1360_v11 = vmax.f32 %v1344_v17, 0.0  ;;  %v1204_v5 = vmax.f32 %v1188_v1, 0.0 }
 0x1d1   : >> { %v2253_v15 = vpop.f32.mrf.mxu0  ;;  %1469 = vperm.xlu2 %6726, %v1407_v12   ;;  %1464 = vperm.xlu1 %6725, %v1406_v16  }
 0x1d2   : >> { %v882_v6 = vmax.f32 %v866_v10, 0.0  ;;  %1376 = vst.msk [vmem:[#allocation2 + $0x280] sm:$0xff] %vm555_vm2, %v1360_v11  ;;  %v2254_v45 = vadd.f32 %v2253_v15, %v10526_v2  ;;  %v1409_v10 = vmul.f32 %v7891_v3, %v10495_v25  ;;  %v1408_v11 = vmul.f32 %v7891_v3, %v10499_v21 }
 0x1d3   : >> { %1459 = vperm.xlu0 %6724, %v1405_v38   ;;  %1220 = vst.msk [vmem:[#allocation2 + $0x240] sm:$0xff] %vm555_vm2, %v1204_v5  ;;  %v1261_v9 = vpop.permute.xlu2 %1260  ;;  %v834_v13 = vpop.permute.xlu1 %833  ;;  %v914_v15 = vmul.f32 %v7740_v4, %v10490_v28 }
 0x1d4   : >> { %898 = vst.msk [vmem:[#allocation2 + $0x170] sm:$0xff] %vm555_vm2, %v882_v6  ;;  %v2635_v18 = vmax.f32 %v2254_v45, 0.0  ;;  %6132 = vmatmul.msk.f32.gmra.mxu0 %vm555_vm2, %v1737_v8  ;;  %6182 = vmatmul.msk.f32.gmra.mxu2 %vm555_vm2, %v1787_v7  ;;  %v1330_v12 = vmul.f32 %v1261_v9, %v7632_v19  ;;  %v851_v16 = vmul.f32 %v834_v13, %v7632_v19 }
 0x1d5   : >> { %v1137_v17 = vpop.permute.xlu0 %1136  ;;  %v2890_v38 = vld [vmem:[#allocation3] sm:$0xff] }
 0x1d6   : >> { %v1174_v1 = vmul.f32 %v1137_v17, %v7632_v19  ;;  %2763 = vst.msk [vmem:[#allocation3 + $0x8] sm:$0xff] %vm555_vm2, %v2635_v18  ;;  %v1346_v5 = vadd.f32 %v1330_v12, %v10479_v55  ;;  %v867_v6 = vadd.f32 %v851_v16, %v10523_v14  ;;  %6243 = vmatmul.msk.f32.vlgmr.msra.gmra.mxu1 %vm555_vm2, %v2890_v38  ;;  %v1738_v12 = vld [vmem:[#allocation2 + $0x90] sm:$0xff]  ;;  %v1788_v16 = vld [vmem:[#allocation2 + $0x220] sm:$0xff] }
 0x1d8   : >> { %v1190_v45 = vadd.f32 %v1174_v1, %v10480_v59  ;;  %v1362_v8 = vmax.f32 %v1346_v5, 0.0  ;;  %v883_v7 = vmax.f32 %v867_v6, 0.0 }
 0x1d9   : >> { %v2256_v13 = vpop.f32.mrf.mxu0  ;;  %1479 = vperm.xlu2 %6726, %v1409_v10   ;;  %1474 = vperm.xlu1 %6725, %v1408_v11  }
 0x1da   : >> { %v1206_v9 = vmax.f32 %v1190_v45, 0.0  ;;  %1378 = vst.msk [vmem:[#allocation2 + $0x290] sm:$0xff] %vm555_vm2, %v1362_v8  ;;  %v2257_v18 = vadd.f32 %v2256_v13, %v10526_v2  ;;  %v1411_v45 = vmul.f32 %v7891_v3, %v10501_v33  ;;  %v915_v8 = vmul.f32 %v7740_v4, %v10491_v32 }
 0x1db   : >> { %972 = vperm.xlu0 %6724, %v914_v15   ;;  %899 = vst.msk [vmem:[#allocation2 + $0x178] sm:$0xff] %vm555_vm2, %v883_v7  ;;  %v1271_v17 = vpop.permute.xlu2 %1270  ;;  %v1152_v38 = vpop.permute.xlu1 %1151  ;;  %v1410_v13 = vmul.f32 %v7891_v3, %v10496_v29 }
 0x1dc   : >> { %1222 = vst.msk [vmem:[#allocation2 + $0x250] sm:$0xff] %vm555_vm2, %v1206_v9  ;;  %v2636_v1 = vmax.f32 %v2257_v18, 0.0  ;;  %6133 = vmatmul.msk.f32.gmra.mxu0 %vm555_vm2, %v1738_v12  ;;  %6183 = vmatmul.msk.f32.gmra.mxu2 %vm555_vm2, %v1788_v16  ;;  %v1332_v10 = vmul.f32 %v1271_v17, %v7632_v19  ;;  %v1177_v11 = vmul.f32 %v1152_v38, %v7632_v19 }
 0x1dd   : >> { %v1147_v5 = vpop.permute.xlu0 %1146  ;;  %v2891_v15 = vld [vmem:[#allocation3 + $0x8] sm:$0xff] }
 0x1de   : >> { %v1176_v6 = vmul.f32 %v1147_v5, %v7632_v19  ;;  %2764 = vst.msk [vmem:[#allocation3 + $0x10] sm:$0xff] %vm555_vm2, %v2636_v1  ;;  %v1348_v7 = vadd.f32 %v1332_v10, %v10488_v40  ;;  %v1193_v9 = vadd.f32 %v1177_v11, %v10494_v52  ;;  %6244 = vmatmul.msk.f32.gmra.mxu1 %vm555_vm2, %v2891_v15  ;;  %v8021_v5 = vld [vmem:[%s7555_s27 + $0x7] ss:$0 sm:$0xff]  ;;  %v1739_v10 = vld [vmem:[#allocation2 + $0x98] sm:$0xff]  ;;  %v1789_v11 = vld [vmem:[#allocation2 + $0x228] sm:$0xff] }
 0x1e0   : >> { %v1192_v18 = vadd.f32 %v1176_v6, %v10489_v44  ;;  %v1364_v12 = vmax.f32 %v1348_v7, 0.0  ;;  %v1209_v16 = vmax.f32 %v1193_v9, 0.0 }
 0x1e1   : >> { %v2259_v38 = vpop.f32.mrf.mxu0  ;;  %1489 = vperm.xlu2 %6726, %v1411_v45   ;;  %977 = vperm.xlu1 %6725, %v915_v8  }
 0x1e2   : >> { %v1208_v17 = vmax.f32 %v1192_v18, 0.0  ;;  %1380 = vst.msk [vmem:[#allocation2 + $0x2a0] sm:$0xff] %vm555_vm2, %v1364_v12  ;;  %v2260_v1 = vadd.f32 %v2259_v38, %v10526_v2  ;;  %v916_v18 = vmul.f32 %v7740_v4, %v10499_v21  ;;  %v1561_v12 = vmul.f32 %v8021_v5, %v10478_v26 }
 0x1e3   : >> { %1484 = vperm.xlu0 %6724, %v1410_v13   ;;  %1225 = vst.msk [vmem:[#allocation2 + $0x268] sm:$0xff] %vm555_vm2, %v1209_v16  ;;  %v938_v3 = vpop.permute.xlu2 %937  ;;  %v1162_v15 = vpop.permute.xlu1 %1161  ;;  %v1560_v38 = vmul.f32 %v8021_v5, %v10473_v22 }
 0x1e4   : >> { %1224 = vst.msk [vmem:[#allocation2 + $0x260] sm:$0xff] %vm555_vm2, %v1208_v17  ;;  %v2637_v6 = vmax.f32 %v2260_v1, 0.0  ;;  %6134 = vmatmul.msk.f32.gmra.mxu0 %vm555_vm2, %v1739_v10  ;;  %6184 = vmatmul.msk.f32.gmra.mxu2 %vm555_vm2, %v1789_v11  ;;  %v1003_v45 = vmul.f32 %v938_v3, %v7632_v19  ;;  %v1179_v8 = vmul.f32 %v1162_v15, %v7632_v19 }
 0x1e5   : >> { %v1157_v7 = vpop.permute.xlu0 %1156  ;;  %v2892_v13 = vld [vmem:[#allocation3 + $0x10] sm:$0xff] }
 0x1e6   : >> { %v1178_v9 = vmul.f32 %v1157_v7, %v7632_v19  ;;  %2765 = vst.msk [vmem:[#allocation3 + $0x18] sm:$0xff] %vm555_vm2, %v2637_v6  ;;  %v1019_v16 = vadd.f32 %v1003_v45, %v10484_v63  ;;  %v1195_v17 = vadd.f32 %v1179_v8, %v10523_v14  ;;  %6245 = vmatmul.msk.f32.gmra.mxu1 %vm555_vm2, %v2892_v13  ;;  %v1740_v45 = vld [vmem:[#allocation2 + $0xa0] sm:$0xff]  ;;  %v1790_v8 = vld [vmem:[#allocation2 + $0x230] sm:$0xff] }
 0x1e8   : >> { %v1194_v1 = vadd.f32 %v1178_v9, %v10497_v60  ;;  %v1035_v10 = vmax.f32 %v1019_v16, 0.0  ;;  %v1211_v11 = vmax.f32 %v1195_v17, 0.0 }
 0x1e9   : >> { %v2262_v15 = vpop.f32.mrf.mxu0  ;;  %982 = vperm.xlu2 %6726, %v916_v18   ;;  %1583 = vperm.xlu1 %6725, %v1561_v12  }
 0x1ea   : >> { %v1210_v3 = vmax.f32 %v1194_v1, 0.0  ;;  %1051 = vst.msk [vmem:[#allocation2 + $0x198] sm:$0xff] %vm555_vm2, %v1035_v10  ;;  %v2263_v6 = vadd.f32 %v2262_v15, %v10526_v2  ;;  %v1564_v1 = vmul.f32 %v8021_v5, %v10483_v23  ;;  %v1563_v10 = vmul.f32 %v8021_v5, %v10476_v34 }
 0x1eb   : >> { %1578 = vperm.xlu0 %6724, %v1560_v38   ;;  %1227 = vst.msk [vmem:[#allocation2 + $0x278] sm:$0xff] %vm555_vm2, %v1211_v11  ;;  %v1296_v7 = vpop.permute.xlu2 %1295  ;;  %v1256_v13 = vpop.permute.xlu1 %1255  ;;  %v1562_v15 = vmul.f32 %v8021_v5, %v10477_v30 }
 0x1ec   : >> { %1226 = vst.msk [vmem:[#allocation2 + $0x270] sm:$0xff] %vm555_vm2, %v1210_v3  ;;  %v2638_v9 = vmax.f32 %v2263_v6, 0.0  ;;  %6135 = vmatmul.msk.f32.gmra.mxu0 %vm555_vm2, %v1740_v45  ;;  %6185 = vmatmul.msk.f32.gmra.mxu2 %vm555_vm2, %v1790_v8  ;;  %v1337_v18 = vmul.f32 %v1296_v7, %v7632_v19  ;;  %v1329_v12 = vmul.f32 %v1256_v13, %v7632_v19 }
 0x1ed   : >> { %v928_v16 = vpop.permute.xlu0 %927  ;;  %v2893_v38 = vld [vmem:[#allocation3 + $0x18] sm:$0xff] }
 0x1ee   : >> { %v1001_v17 = vmul.f32 %v928_v16, %v7632_v19  ;;  %2766 = vst.msk [vmem:[#allocation3 + $0x20] sm:$0xff] %vm555_vm2, %v2638_v9  ;;  %v1353_v11 = vadd.f32 %v1337_v18, %v10475_v51  ;;  %v1345_v3 = vadd.f32 %v1329_v12, %v10474_v47  ;;  %6246 = vmatmul.msk.f32.gmra.mxu1 %vm555_vm2, %v2893_v38  ;;  %v1741_v18 = vld [vmem:[#allocation2 + $0xa8] sm:$0xff]  ;;  %v1791_v12 = vld [vmem:[#allocation2 + $0x238] sm:$0xff] }
 0x1f0   : >> { %v1017_v6 = vadd.f32 %v1001_v17, %v10474_v47  ;;  %v1369_v45 = vmax.f32 %v1353_v11, 0.0  ;;  %v1361_v8 = vmax.f32 %v1345_v3, 0.0 }
 0x1f1   : >> { %v2265_v13 = vpop.f32.mrf.mxu0  ;;  %1598 = vperm.xlu2 %6726, %v1564_v1   ;;  %1593 = vperm.xlu1 %6725, %v1563_v10  }
 0x1f2   : >> { %v1033_v7 = vmax.f32 %v1017_v6, 0.0  ;;  %1385 = vst.msk [vmem:[#allocation2 + $0x2c8] sm:$0xff] %vm555_vm2, %v1369_v45  ;;  %v2266_v9 = vadd.f32 %v2265_v13, %v10526_v2  ;;  %v1566_v6 = vmul.f32 %v8021_v5, %v10481_v31  ;;  %v1565_v45 = vmul.f32 %v8021_v5, %v10482_v27 }
 0x1f3   : >> { %1588 = vperm.xlu0 %6724, %v1562_v15   ;;  %1377 = vst.msk [vmem:[#allocation2 + $0x288] sm:$0xff] %vm555_vm2, %v1361_v8  ;;  %v1306_v16 = vpop.permute.xlu2 %1305  ;;  %v933_v38 = vpop.permute.xlu1 %932  ;;  %v917_v13 = vmul.f32 %v7740_v4, %v10495_v25 }
 0x1f4   : >> { %1049 = vst.msk [vmem:[#allocation2 + $0x188] sm:$0xff] %vm555_vm2, %v1033_v7  ;;  %v2639_v17 = vmax.f32 %v2266_v9, 0.0  ;;  %6136 = vmatmul.msk.f32.gmra.mxu0 %vm555_vm2, %v1741_v18  ;;  %6186 = vmatmul.msk.f32.gmra.mxu2 %vm555_vm2, %v1791_v12  ;;  %v1339_v1 = vmul.f32 %v1306_v16, %v7632_v19  ;;  %v1002_v10 = vmul.f32 %v933_v38, %v7632_v19 }
 0x1f5   : >> { %v1266_v11 = vpop.permute.xlu0 %1265  ;;  %v2894_v15 = vld [vmem:[#allocation3 + $0x20] sm:$0xff] }
 0x1f6   : >> { %v1331_v3 = vmul.f32 %v1266_v11, %v7632_v19  ;;  %2767 = vst.msk [vmem:[#allocation3 + $0x28] sm:$0xff] %vm555_vm2, %v2639_v17  ;;  %v1355_v8 = vadd.f32 %v1339_v1, %v10485_v41  ;;  %v1018_v7 = vadd.f32 %v1002_v10, %v10479_v55  ;;  %6247 = vmatmul.msk.f32.gmra.mxu1 %vm555_vm2, %v2894_v15  ;;  %v1742_v1 = vld [vmem:[#allocation2 + $0xb0] sm:$0xff]  ;;  %v1792_v10 = vld [vmem:[#allocation2 + $0x240] sm:$0xff] }
 0x1f8   : >> { %v1347_v9 = vadd.f32 %v1331_v3, %v10484_v63  ;;  %v1371_v18 = vmax.f32 %v1355_v8, 0.0  ;;  %v1034_v12 = vmax.f32 %v1018_v7, 0.0 }
 0x1f9   : >> { %v2268_v38 = vpop.f32.mrf.mxu0  ;;  %1608 = vperm.xlu2 %6726, %v1566_v6   ;;  %1603 = vperm.xlu1 %6725, %v1565_v45  }
 0x1fa   : >> { %v1363_v16 = vmax.f32 %v1347_v9, 0.0  ;;  %1387 = vst.msk [vmem:[#allocation2 + $0x2d8] sm:$0xff] %vm555_vm2, %v1371_v18  ;;  %v2269_v17 = vadd.f32 %v2268_v38, %v10526_v2  ;;  %v1568_v9 = vmul.f32 %v8021_v5, %v10486_v20  ;;  %v918_v18 = vmul.f32 %v7740_v4, %v10496_v29 }
 0x1fb   : >> { %987 = vperm.xlu0 %6724, %v917_v13   ;;  %1050 = vst.msk [vmem:[#allocation2 + $0x190] sm:$0xff] %vm555_vm2, %v1034_v12  ;;  %v1316_v11 = vpop.permute.xlu2 %1315  ;;  %v1281_v15 = vpop.permute.xlu1 %1280  ;;  %v1567_v38 = vmul.f32 %v8021_v5, %v10487_v35 }
 0x1fc   : >> { %1379 = vst.msk [vmem:[#allocation2 + $0x298] sm:$0xff] %vm555_vm2, %v1363_v16  ;;  %v2640_v3 = vmax.f32 %v2269_v17, 0.0  ;;  %6137 = vmatmul.msk.f32.gmra.mxu0 %vm555_vm2, %v1742_v1  ;;  %6187 = vmatmul.msk.f32.gmra.mxu2 %vm555_vm2, %v1792_v10  ;;  %v1341_v6 = vmul.f32 %v1316_v11, %v7632_v19  ;;  %v1334_v45 = vmul.f32 %v1281_v15, %v7632_v19 }
 0x1fd   : >> { %v1276_v8 = vpop.permute.xlu0 %1275  ;;  %v2895_v13 = vld [vmem:[#allocation3 + $0x28] sm:$0xff] }
 0x1fe   : >> { %v1333_v7 = vmul.f32 %v1276_v8, %v7632_v19  ;;  %2768 = vst.msk [vmem:[#allocation3 + $0x30] sm:$0xff] %vm555_vm2, %v2640_v3  ;;  %v1357_v12 = vadd.f32 %v1341_v6, %v10494_v52  ;;  %v1350_v16 = vadd.f32 %v1334_v45, %v10500_v56  ;;  %6248 = vmatmul.msk.f32.gmra.mxu1 %vm555_vm2, %v2895_v13  ;;  %v1743_v3 = vld [vmem:[#allocation2 + $0xb8] sm:$0xff]  ;;  %v1793_v6 = vld [vmem:[#allocation2 + $0x248] sm:$0xff] }
 0x200   : >> { %v1349_v17 = vadd.f32 %v1333_v7, %v10493_v48  ;;  %v1373_v1 = vmax.f32 %v1357_v12, 0.0  ;;  %v1366_v10 = vmax.f32 %v1350_v16, 0.0 }
 0x201   : >> { %v2271_v15 = vpop.f32.mrf.mxu0  ;;  %1618 = vperm.xlu2 %6726, %v1568_v9   ;;  %992 = vperm.xlu1 %6725, %v918_v18  }
 0x202   : >> { %v1365_v11 = vmax.f32 %v1349_v17, 0.0  ;;  %1389 = vst.msk [vmem:[#allocation2 + $0x2e8] sm:$0xff] %vm555_vm2, %v1373_v1  ;;  %v2272_v4 = vadd.f32 %v2271_v15, %v10526_v2  ;;  %v1570_v1 = vmul.f32 %v8021_v5, %v10490_v28  ;;  %v1569_v15 = vmul.f32 %v8021_v5, %v10492_v24 }
 0x203   : >> { %1613 = vperm.xlu0 %6724, %v1567_v38   ;;  %1382 = vst.msk [vmem:[#allocation2 + $0x2b0] sm:$0xff] %vm555_vm2, %v1366_v10  ;;  %v953_v45 = vpop.permute.xlu2 %952  ;;  %v1291_v8 = vpop.permute.xlu1 %1290  ;;  %v6999_v38 = vld [vmem:[%s7555_s27 + $0x3] ss:$0 sm:$0xff] }
 0x204   : >> { %1381 = vst.msk [vmem:[#allocation2 + $0x2a8] sm:$0xff] %vm555_vm2, %v1365_v11  ;;  %v2641_v7 = vmax.f32 %v2272_v4, 0.0  ;;  %6138 = vmatmul.msk.f32.gmra.mxu0 %vm555_vm2, %v1743_v3  ;;  %6188 = vmatmul.msk.f32.gmra.mxu2 %vm555_vm2, %v1793_v6  ;;  %v1006_v13 = vmul.f32 %v953_v45, %v7632_v19  ;;  %v1336_v9 = vmul.f32 %v1291_v8, %v7632_v19 }
 0x205   : >> { %v1286_v18 = vpop.permute.xlu0 %1285  ;;  %v2896_v16 = vld [vmem:[#allocation3 + $0x30] sm:$0xff]  ;;  %v919_v17 = vmul.f32 %v6999_v38, %v10501_v33 }
 0x206   : >> { %v1335_v12 = vmul.f32 %v1286_v18, %v7632_v19  ;;  %2769 = vst.msk [vmem:[#allocation3 + $0x38] sm:$0xff] %vm555_vm2, %v2641_v7  ;;  %v1022_v10 = vadd.f32 %v1006_v13, %v10500_v56  ;;  %v1352_v11 = vadd.f32 %v1336_v9, %v10472_v43  ;;  %6249 = vmatmul.msk.f32.gmra.mxu1 %vm555_vm2, %v2896_v16  ;;  %v1744_v13 = vld [vmem:[#allocation2 + $0xc0] sm:$0xff]  ;;  %v1794_v9 = vld [vmem:[#allocation2 + $0x250] sm:$0xff] }
 0x208   : >> { %v1351_v4 = vadd.f32 %v1335_v12, %v10498_v0  ;;  %v1038_v3 = vmax.f32 %v1022_v10, 0.0  ;;  %v1368_v6 = vmax.f32 %v1352_v11, 0.0 }
 0x209   : >> { %v2274_v8 = vpop.f32.mrf.mxu0  ;;  %997 = vperm.xlu2 %6726, %v919_v17   ;;  %1628 = vperm.xlu1 %6725, %v1570_v1  }
 0x20a   : >> { %v1367_v45 = vmax.f32 %v1351_v4, 0.0  ;;  %1054 = vst.msk [vmem:[#allocation2 + $0x1b0] sm:$0xff] %vm555_vm2, %v1038_v3  ;;  %v2275_v7 = vadd.f32 %v2274_v8, %v10526_v2  ;;  %v1572_v4 = vmul.f32 %v8021_v5, %v10499_v21 }
 0x20b   : >> { %1623 = vperm.xlu0 %6724, %v1569_v15   ;;  %1384 = vst.msk [vmem:[#allocation2 + $0x2c0] sm:$0xff] %vm555_vm2, %v1368_v6  ;;  %v1425_v18 = vpop.permute.xlu2 %1424  ;;  %v1301_v16 = vpop.permute.xlu1 %1300  ;;  %v1573_v15 = vmul.f32 %v8021_v5, %v10495_v25 }
 0x20c   : >> { %1383 = vst.msk [vmem:[#allocation2 + $0x2b8] sm:$0xff] %vm555_vm2, %v1367_v45  ;;  %v2642_v12 = vmax.f32 %v2275_v7, 0.0  ;;  %6139 = vmatmul.msk.f32.gmra.mxu0 %vm555_vm2, %v1744_v13  ;;  %6189 = vmatmul.msk.f32.gmra.mxu2 %vm555_vm2, %v1794_v9  ;;  %v1494_v38 = vmul.f32 %v1425_v18, %v7632_v19  ;;  %v1338_v17 = vmul.f32 %v1301_v16, %v7632_v19 }
 0x20d   : >> { %v943_v1 = vpop.permute.xlu0 %942  ;;  %v2897_v11 = vld [vmem:[#allocation3 + $0x38] sm:$0xff]  ;;  %v1571_v45 = vmul.f32 %v8021_v5, %v10491_v32 }
 0x20e   : >> { %v1004_v10 = vmul.f32 %v943_v1, %v7632_v19  ;;  %2770 = vst.msk [vmem:[#allocation3 + $0x40] sm:$0xff] %vm555_vm2, %v2642_v12  ;;  %v1510_v3 = vadd.f32 %v1494_v38, %v10479_v55  ;;  %v1354_v6 = vadd.f32 %v1338_v17, %v10480_v59  ;;  %6250 = vmatmul.msk.f32.gmra.mxu1 %vm555_vm2, %v2897_v11  ;;  %v1745_v12 = vld [vmem:[#allocation2 + $0xc8] sm:$0xff]  ;;  %v1795_v38 = vld [vmem:[#allocation2 + $0x258] sm:$0xff] }
 0x210   : >> { %v1020_v8 = vadd.f32 %v1004_v10, %v10488_v40  ;;  %v1526_v7 = vmax.f32 %v1510_v3, 0.0  ;;  %v1370_v13 = vmax.f32 %v1354_v6, 0.0 }
 0x211   : >> { %v2277_v18 = vpop.f32.mrf.mxu0  ;;  %1643 = vperm.xlu2 %6726, %v1573_v15   ;;  %1638 = vperm.xlu1 %6725, %v1572_v4  }
 0x212   : >> { %v1036_v9 = vmax.f32 %v1020_v8, 0.0  ;;  %1542 = vst.msk [vmem:[#allocation2 + $0x310] sm:$0xff] %vm555_vm2, %v1526_v7  ;;  %v2278_v16 = vadd.f32 %v2277_v18, %v10526_v2 }
 0x213   : >> { %1633 = vperm.xlu0 %6724, %v1571_v45   ;;  %1386 = vst.msk [vmem:[#allocation2 + $0x2d0] sm:$0xff] %vm555_vm2, %v1370_v13  ;;  %v1435_v17 = vpop.permute.xlu2 %1434  ;;  %v948_v1 = vpop.permute.xlu1 %947  ;;  %v1575_v45 = vmul.f32 %v8021_v5, %v10501_v33  ;;  %v1574_v13 = vmul.f32 %v8021_v5, %v10496_v29 }
 0x214   : >> { %1052 = vst.msk [vmem:[#allocation2 + $0x1a0] sm:$0xff] %vm555_vm2, %v1036_v9  ;;  %v2643_v10 = vmax.f32 %v2278_v16, 0.0  ;;  %6140 = vmatmul.msk.f32.gmra.mxu0 %vm555_vm2, %v1745_v12  ;;  %6190 = vmatmul.msk.f32.gmra.mxu2 %vm555_vm2, %v1795_v38  ;;  %v1496_v11 = vmul.f32 %v1435_v17, %v7632_v19  ;;  %v1005_v15 = vmul.f32 %v948_v1, %v7632_v19  ;;  %v1746_v1 = vld [vmem:[#allocation2 + $0xd0] sm:$0xff] }
 0x215   : >> { %v1311_v4 = vpop.permute.xlu0 %1310  ;;  %v2898_v6 = vld [vmem:[#allocation3 + $0x40] sm:$0xff] }
 0x216   : >> { %v1340_v3 = vmul.f32 %v1311_v4, %v7632_v19  ;;  %2771 = vst.msk [vmem:[#allocation3 + $0x48] sm:$0xff] %vm555_vm2, %v2643_v10  ;;  %v1512_v8 = vadd.f32 %v1496_v11, %v10488_v40  ;;  %v1021_v7 = vadd.f32 %v1005_v15, %v10493_v48  ;;  %6251 = vmatmul.msk.f32.gmra.mxu1 %vm555_vm2, %v2898_v6  ;;  %v1796_v10 = vld [vmem:[#allocation2 + $0x260] sm:$0xff] }
 0x218   : >> { %v1356_v9 = vadd.f32 %v1340_v3, %v10489_v44  ;;  %v1528_v18 = vmax.f32 %v1512_v8, 0.0  ;;  %v1037_v16 = vmax.f32 %v1021_v7, 0.0 }
 0x219   : >> { %v2280_v38 = vpop.f32.mrf.mxu0  ;;  %1653 = vperm.xlu1 %6725, %v1575_v45  }
 0x21a   : >> { %v1372_v12 = vmax.f32 %v1356_v9, 0.0  ;;  %1544 = vst.msk [vmem:[#allocation2 + $0x320] sm:$0xff] %vm555_vm2, %v1528_v18  ;;  %v2281_v17 = vadd.f32 %v2280_v38, %v10526_v2 }
 0x21b   : >> { %1648 = vperm.xlu0 %6724, %v1574_v13   ;;  %1053 = vst.msk [vmem:[#allocation2 + $0x1a8] sm:$0xff] %vm555_vm2, %v1037_v16  ;;  %v1445_v11 = vpop.permute.xlu2 %1444  ;;  %v1326_v15 = vpop.permute.xlu1 %1325 }
 0x21c   : >> { %1388 = vst.msk [vmem:[#allocation2 + $0x2e0] sm:$0xff] %vm555_vm2, %v1372_v12  ;;  %v2644_v5 = vmax.f32 %v2281_v17, 0.0  ;;  %6141 = vmatmul.msk.f32.gmra.mxu0 %vm555_vm2, %v1746_v1  ;;  %6191 = vmatmul.msk.f32.gmra.mxu2 %vm555_vm2, %v1796_v10  ;;  %v1498_v4 = vmul.f32 %v1445_v11, %v7632_v19  ;;  %v1343_v3 = vmul.f32 %v1326_v15, %v7632_v19  ;;  %v1747_v1 = vld [vmem:[#allocation2 + $0xd8] sm:$0xff]  ;;  %v1797_v10 = vld [vmem:[#allocation2 + $0x268] sm:$0xff] }
 0x21d   : >> { %v1321_v6 = vpop.permute.xlu0 %1320  ;;  %v2899_v8 = vld [vmem:[#allocation3 + $0x48] sm:$0xff] }
 0x21e   : >> { %v1342_v45 = vmul.f32 %v1321_v6, %v7632_v19  ;;  %2772 = vst.msk [vmem:[#allocation3 + $0x50] sm:$0xff] %vm555_vm2, %v2644_v5  ;;  %v1514_v7 = vadd.f32 %v1498_v4, %v10500_v56  ;;  %v1359_v13 = vadd.f32 %v1343_v3, %v10523_v14  ;;  %6252 = vmatmul.msk.f32.gmra.mxu1 %vm555_vm2, %v2899_v8 }
 0x220   : >> { %v1358_v9 = vadd.f32 %v1342_v45, %v10497_v60  ;;  %v1530_v18 = vmax.f32 %v1514_v7, 0.0  ;;  %v1375_v16 = vmax.f32 %v1359_v13, 0.0 }
 0x221   : >> { %v2283_v38 = vpop.f32.mrf.mxu0 }
 0x222   : >> { %v1374_v12 = vmax.f32 %v1358_v9, 0.0  ;;  %1546 = vst.msk [vmem:[#allocation2 + $0x330] sm:$0xff] %vm555_vm2, %v1530_v18  ;;  %v2284_v17 = vadd.f32 %v2283_v38, %v10526_v2 }
 0x223   : >> { %1391 = vst.msk [vmem:[#allocation2 + $0x2f8] sm:$0xff] %vm555_vm2, %v1375_v16  ;;  %v968_v11 = vpop.permute.xlu2 %967  ;;  %v1420_v15 = vpop.permute.xlu1 %1419 }
 0x224   : >> { %1390 = vst.msk [vmem:[#allocation2 + $0x2f0] sm:$0xff] %vm555_vm2, %v1374_v12  ;;  %v2645_v5 = vmax.f32 %v2284_v17, 0.0  ;;  %6142 = vmatmul.msk.f32.gmra.mxu0 %vm555_vm2, %v1747_v1  ;;  %6192 = vmatmul.msk.f32.gmra.mxu2 %vm555_vm2, %v1797_v10  ;;  %v1009_v4 = vmul.f32 %v968_v11, %v7632_v19  ;;  %v1493_v3 = vmul.f32 %v1420_v15, %v7632_v19  ;;  %v1748_v15 = vld [vmem:[#allocation2 + $0xe0] sm:$0xff] }
 0x225   : >> { %v1415_v6 = vpop.permute.xlu0 %1414  ;;  %v2900_v8 = vld [vmem:[#allocation3 + $0x50] sm:$0xff]  ;;  %v2442_v7 = vpop.f32.mrf.mxu2 }
 0x226   : >> { %v1492_v45 = vmul.f32 %v1415_v6, %v7632_v19  ;;  %2773 = vst.msk [vmem:[#allocation3 + $0x58] sm:$0xff] %vm555_vm2, %v2645_v5  ;;  %v1025_v13 = vadd.f32 %v1009_v4, %v10475_v51  ;;  %v1509_v9 = vadd.f32 %v1493_v3, %v10474_v47  ;;  %6253 = vmatmul.msk.f32.gmra.mxu1 %vm555_vm2, %v2900_v8  ;;  %v1798_v5 = vld [vmem:[#allocation2 + $0x270] sm:$0xff] }
 0x227   : >> { %v2443_v18 = vadd.f32 %v2442_v7, %v10526_v2 }
 0x228   : >> { %v1508_v16 = vadd.f32 %v1492_v45, %v10471_v39  ;;  %v1041_v12 = vmax.f32 %v1025_v13, 0.0  ;;  %v1525_v38 = vmax.f32 %v1509_v9, 0.0 }
 0x229   : >> { %v2698_v1 = vmax.f32 %v2443_v18, 0.0  ;;  %v2286_v10 = vpop.f32.mrf.mxu0 }
 0x22a   : >> { %v1524_v17 = vmax.f32 %v1508_v16, 0.0  ;;  %1057 = vst.msk [vmem:[#allocation2 + $0x1c8] sm:$0xff] %vm555_vm2, %v1041_v12  ;;  %v2287_v11 = vadd.f32 %v2286_v10, %v10526_v2 }
 0x22b   : >> { %1541 = vst.msk [vmem:[#allocation2 + $0x308] sm:$0xff] %vm555_vm2, %v1525_v38  ;;  %v1470_v4 = vpop.permute.xlu2 %1469  ;;  %v1430_v3 = vpop.permute.xlu1 %1429 }
 0x22c   : >> { %1540 = vst.msk [vmem:[#allocation2 + $0x300] sm:$0xff] %vm555_vm2, %v1524_v17  ;;  %v2646_v6 = vmax.f32 %v2287_v11, 0.0  ;;  %6143 = vmatmul.msk.f32.gmra.mxu0 %vm555_vm2, %v1748_v15  ;;  %6193 = vmatmul.msk.f32.gmra.mxu2 %vm555_vm2, %v1798_v5  ;;  %v1503_v45 = vmul.f32 %v1470_v4, %v7632_v19  ;;  %v1495_v8 = vmul.f32 %v1430_v3, %v7632_v19  ;;  %v1749_v15 = vld [vmem:[#allocation2 + $0xe8] sm:$0xff]  ;;  %v1799_v5 = vld [vmem:[#allocation2 + $0x278] sm:$0xff] }
 0x22d   : >> { %v958_v7 = vpop.permute.xlu0 %957  ;;  %2826 = vst.msk [vmem:[#allocation3 + $0x200] sm:$0xff] %vm555_vm2, %v2698_v1  ;;  %v2901_v9 = vld [vmem:[#allocation3 + $0x58] sm:$0xff] }
 0x22e   : >> { %v1007_v13 = vmul.f32 %v958_v7, %v7632_v19  ;;  %2774 = vst.msk [vmem:[#allocation3 + $0x60] sm:$0xff] %vm555_vm2, %v2646_v6  ;;  %v1519_v18 = vadd.f32 %v1503_v45, %v10485_v41  ;;  %v1511_v16 = vadd.f32 %v1495_v8, %v10484_v63  ;;  %6254 = vmatmul.msk.f32.gmra.mxu1 %vm555_vm2, %v2901_v9 }
 0x230   : >> { %v1023_v12 = vadd.f32 %v1007_v13, %v10498_v0  ;;  %v1535_v38 = vmax.f32 %v1519_v18, 0.0  ;;  %v1527_v17 = vmax.f32 %v1511_v16, 0.0 }
 0x231   : >> { %v2289_v11 = vpop.f32.mrf.mxu0 }
 0x232   : >> { %v1039_v10 = vmax.f32 %v1023_v12, 0.0  ;;  %1551 = vst.msk [vmem:[#allocation2 + $0x358] sm:$0xff] %vm555_vm2, %v1535_v38  ;;  %v2290_v1 = vadd.f32 %v2289_v11, %v10526_v2 }
 0x233   : >> { %1543 = vst.msk [vmem:[#allocation2 + $0x318] sm:$0xff] %vm555_vm2, %v1527_v17  ;;  %v1480_v4 = vpop.permute.xlu2 %1479  ;;  %v963_v3 = vpop.permute.xlu1 %962 }
 0x234   : >> { %1055 = vst.msk [vmem:[#allocation2 + $0x1b8] sm:$0xff] %vm555_vm2, %v1039_v10  ;;  %v2647_v6 = vmax.f32 %v2290_v1, 0.0  ;;  %6144 = vmatmul.msk.f32.gmra.mxu0 %vm555_vm2, %v1749_v15  ;;  %6194 = vmatmul.msk.f32.gmra.mxu2 %vm555_vm2, %v1799_v5  ;;  %v2954_v45 = vld [vmem:[#allocation3 + $0x200] sm:$0xff]  ;;  %v1505_v8 = vmul.f32 %v1480_v4, %v7632_v19  ;;  %v1008_v7 = vmul.f32 %v963_v3, %v7632_v19  ;;  %v1750_v5 = vld [vmem:[#allocation2 + $0xf0] sm:$0xff] }
 0x235   : >> { %v1440_v13 = vpop.permute.xlu0 %1439  ;;  %6307 = vmatmul.msk.f32.vlgmr.msra.gmra.mxu3 %vm555_vm2, %v2954_v45  ;;  %v2902_v18 = vld [vmem:[#allocation3 + $0x60] sm:$0xff] }
 0x236   : >> { %v1497_v9 = vmul.f32 %v1440_v13, %v7632_v19  ;;  %2775 = vst.msk [vmem:[#allocation3 + $0x68] sm:$0xff] %vm555_vm2, %v2647_v6  ;;  %v1521_v16 = vadd.f32 %v1505_v8, %v10494_v52  ;;  %v1024_v12 = vadd.f32 %v1008_v7, %v10472_v43  ;;  %6255 = vmatmul.msk.f32.gmra.mxu1 %vm555_vm2, %v2902_v18  ;;  %v1800_v4 = vld [vmem:[#allocation2 + $0x280] sm:$0xff] }
 0x238   : >> { %v1513_v38 = vadd.f32 %v1497_v9, %v10493_v48  ;;  %v1537_v17 = vmax.f32 %v1521_v16, 0.0  ;;  %v1040_v10 = vmax.f32 %v1024_v12, 0.0 }
 0x239   : >> { %v2292_v1 = vpop.f32.mrf.mxu0 }
 0x23a   : >> { %v1529_v11 = vmax.f32 %v1513_v38, 0.0  ;;  %1553 = vst.msk [vmem:[#allocation2 + $0x368] sm:$0xff] %vm555_vm2, %v1537_v17  ;;  %v2293_v15 = vadd.f32 %v2292_v1, %v10526_v2 }
 0x23b   : >> { %1056 = vst.msk [vmem:[#allocation2 + $0x1c0] sm:$0xff] %vm555_vm2, %v1040_v10  ;;  %v1490_v3 = vpop.permute.xlu2 %1489  ;;  %v1455_v6 = vpop.permute.xlu1 %1454 }
 0x23c   : >> { %1545 = vst.msk [vmem:[#allocation2 + $0x328] sm:$0xff] %vm555_vm2, %v1529_v11  ;;  %v2648_v45 = vmax.f32 %v2293_v15, 0.0  ;;  %6145 = vmatmul.msk.f32.gmra.mxu0 %vm555_vm2, %v1750_v5  ;;  %6195 = vmatmul.msk.f32.gmra.mxu2 %vm555_vm2, %v1800_v4  ;;  %v1507_v8 = vmul.f32 %v1490_v3, %v7632_v19  ;;  %v1500_v7 = vmul.f32 %v1455_v6, %v7632_v19  ;;  %v1751_v5 = vld [vmem:[#allocation2 + $0xf8] sm:$0xff]  ;;  %v1801_v4 = vld [vmem:[#allocation2 + $0x288] sm:$0xff] }
 0x23d   : >> { %v1450_v13 = vpop.permute.xlu0 %1449  ;;  %v2903_v18 = vld [vmem:[#allocation3 + $0x68] sm:$0xff] }
 0x23e   : >> { %v1499_v9 = vmul.f32 %v1450_v13, %v7632_v19  ;;  %2776 = vst.msk [vmem:[#allocation3 + $0x70] sm:$0xff] %vm555_vm2, %v2648_v45  ;;  %v1523_v16 = vadd.f32 %v1507_v8, %v10523_v14  ;;  %v1516_v12 = vadd.f32 %v1500_v7, %v10472_v43  ;;  %6256 = vmatmul.msk.f32.gmra.mxu1 %vm555_vm2, %v2903_v18 }
 0x240   : >> { %v1515_v38 = vadd.f32 %v1499_v9, %v10498_v0  ;;  %v1539_v17 = vmax.f32 %v1523_v16, 0.0  ;;  %v1532_v10 = vmax.f32 %v1516_v12, 0.0 }
 0x241   : >> { %v2295_v1 = vpop.f32.mrf.mxu0 }
 0x242   : >> { %v1531_v11 = vmax.f32 %v1515_v38, 0.0  ;;  %1555 = vst.msk [vmem:[#allocation2 + $0x378] sm:$0xff] %vm555_vm2, %v1539_v17  ;;  %v2296_v15 = vadd.f32 %v2295_v1, %v10526_v2 }
 0x243   : >> { %1548 = vst.msk [vmem:[#allocation2 + $0x340] sm:$0xff] %vm555_vm2, %v1532_v10  ;;  %v983_v3 = vpop.permute.xlu2 %982  ;;  %v1465_v6 = vpop.permute.xlu1 %1464 }
 0x244   : >> { %1547 = vst.msk [vmem:[#allocation2 + $0x338] sm:$0xff] %vm555_vm2, %v1531_v11  ;;  %v2649_v45 = vmax.f32 %v2296_v15, 0.0  ;;  %6146 = vmatmul.msk.f32.gmra.mxu0 %vm555_vm2, %v1751_v5  ;;  %6196 = vmatmul.msk.f32.gmra.mxu2 %vm555_vm2, %v1801_v4  ;;  %v1012_v8 = vmul.f32 %v983_v3, %v7632_v19  ;;  %v1502_v7 = vmul.f32 %v1465_v6, %v7632_v19  ;;  %v1752_v6 = vld [vmem:[#allocation2 + $0x100] sm:$0xff] }
 0x245   : >> { %v1460_v13 = vpop.permute.xlu0 %1459  ;;  %v2904_v18 = vld [vmem:[#allocation3 + $0x70] sm:$0xff] }
 0x246   : >> { %v1501_v9 = vmul.f32 %v1460_v13, %v7632_v19  ;;  %2777 = vst.msk [vmem:[#allocation3 + $0x78] sm:$0xff] %vm555_vm2, %v2649_v45  ;;  %v1028_v16 = vadd.f32 %v1012_v8, %v10489_v44  ;;  %v1518_v12 = vadd.f32 %v1502_v7, %v10480_v59  ;;  %6257 = vmatmul.msk.f32.gmra.mxu1 %vm555_vm2, %v2904_v18  ;;  %v1802_v45 = vld [vmem:[#allocation2 + $0x290] sm:$0xff] }
 0x247   : >> { %v2445_v17 = vpop.f32.mrf.mxu2 }
 0x248   : >> { %v1517_v38 = vadd.f32 %v1501_v9, %v10475_v51  ;;  %v1044_v10 = vmax.f32 %v1028_v16, 0.0  ;;  %v1534_v11 = vmax.f32 %v1518_v12, 0.0  ;;  %v2446_v1 = vadd.f32 %v2445_v17, %v10526_v2 }
 0x249   : >> { %v2298_v5 = vpop.f32.mrf.mxu0 }
 0x24a   : >> { %v1533_v15 = vmax.f32 %v1517_v38, 0.0  ;;  %1060 = vst.msk [vmem:[#allocation2 + $0x1e0] sm:$0xff] %vm555_vm2, %v1044_v10  ;;  %v2699_v4 = vmax.f32 %v2446_v1, 0.0  ;;  %v2299_v3 = vadd.f32 %v2298_v5, %v10526_v2 }
 0x24b   : >> { %1550 = vst.msk [vmem:[#allocation2 + $0x350] sm:$0xff] %vm555_vm2, %v1534_v11  ;;  %v1599_v8 = vpop.permute.xlu2 %1598  ;;  %v1475_v7 = vpop.permute.xlu1 %1474 }
 0x24c   : >> { %1549 = vst.msk [vmem:[#allocation2 + $0x348] sm:$0xff] %vm555_vm2, %v1533_v15  ;;  %v2650_v13 = vmax.f32 %v2299_v3, 0.0  ;;  %6147 = vmatmul.msk.f32.gmra.mxu0 %vm555_vm2, %v1752_v6  ;;  %6197 = vmatmul.msk.f32.gmra.mxu2 %vm555_vm2, %v1802_v45  ;;  %v1660_v9 = vmul.f32 %v1599_v8, %v7632_v19  ;;  %v1504_v18 = vmul.f32 %v1475_v7, %v7632_v19  ;;  %v10527_v6 = vld [vmem:[#allocation22_spill] sm:$0xff] }
 0x24d   : >> { %v973_v16 = vpop.permute.xlu0 %972  ;;  %2827 = vst.msk [vmem:[#allocation3 + $0x208] sm:$0xff] %vm555_vm2, %v2699_v4  ;;  %v2905_v38 = vld [vmem:[#allocation3 + $0x78] sm:$0xff]  ;;  %v8266_v4 = vperm.slane %v10527_v6, 0 }
 0x24e   : >> { %v1010_v12 = vmul.f32 %v973_v16, %v7632_v19  ;;  %2778 = vst.msk [vmem:[#allocation3 + $0x80] sm:$0xff] %vm555_vm2, %v2650_v13  ;;  %v1676_v17 = vadd.f32 %v1660_v9, %v10488_v40  ;;  %v1520_v10 = vadd.f32 %v1504_v18, %v10489_v44  ;;  %6258 = vmatmul.msk.f32.gmra.mxu1 %vm555_vm2, %v2905_v38  ;;  %v1753_v18 = vld [vmem:[#allocation2 + $0x108] sm:$0xff]  ;;  %v1803_v16 = vld [vmem:[#allocation2 + $0x298] sm:$0xff] }
 0x24f   : >> { %v2448_v1 = vpop.f32.mrf.mxu2 }
 0x250   : >> { %v1026_v11 = vadd.f32 %v1010_v12, %v10480_v59  ;;  %v1692_v15 = vmax.f32 %v1676_v17, 0.0  ;;  %v1536_v5 = vmax.f32 %v1520_v10, 0.0  ;;  %v2449_v3 = vadd.f32 %v2448_v1, %v10526_v2 }
 0x251   : >> { %v2301_v8 = vpop.f32.mrf.mxu0 }
 0x252   : >> { %v1042_v45 = vmax.f32 %v1026_v11, 0.0  ;;  %1708 = vst.msk [vmem:[#allocation2 + $0x3a0] sm:$0xff] %vm555_vm2, %v1692_v15  ;;  %v2700_v7 = vmax.f32 %v2449_v3, 0.0  ;;  %v2302_v13 = vadd.f32 %v2301_v8, %v10526_v2 }
 0x253   : >> { %1552 = vst.msk [vmem:[#allocation2 + $0x360] sm:$0xff] %vm555_vm2, %v1536_v5  ;;  %v3420_v9 = vpop.f32.mrf.mxu1  ;;  %v1609_v12 = vpop.permute.xlu2 %1608 }
 0x254   : >> { %1058 = vst.msk [vmem:[#allocation2 + $0x1d0] sm:$0xff] %vm555_vm2, %v1042_v45  ;;  %v2651_v38 = vmax.f32 %v2302_v13, 0.0  ;;  %v8273_v17 = vadd.f32 %v3420_v9, %v8266_v4  ;;  %6148 = vmatmul.msk.f32.gmra.mxu0 %vm555_vm2, %v1753_v18  ;;  %6198 = vmatmul.msk.f32.gmra.mxu2 %vm555_vm2, %v1803_v16  ;;  %v2955_v10 = vld [vmem:[#allocation3 + $0x208] sm:$0xff]  ;;  %v1662_v11 = vmul.f32 %v1609_v12, %v7632_v19  ;;  %v978_v1 = vpop.permute.xlu1 %977 }
 0x255   : >> { %v1485_v15 = vpop.permute.xlu0 %1484  ;;  %2828 = vst.msk [vmem:[#allocation3 + $0x210] sm:$0xff] %vm555_vm2, %v2700_v7  ;;  %6308 = vmatmul.msk.f32.gmra.mxu3 %vm555_vm2, %v2955_v10  ;;  %v1011_v5 = vmul.f32 %v978_v1, %v7632_v19  ;;  %v2906_v6 = vld [vmem:[#allocation3 + $0x80] sm:$0xff] }
 0x256   : >> { %v1506_v3 = vmul.f32 %v1485_v15, %v7632_v19  ;;  %2779 = vst.msk [vmem:[#allocation3 + $0x88] sm:$0xff] %vm555_vm2, %v2651_v38  ;;  %v3932_v45 = vmul.f32 1.442695, %v8273_v17  ;;  %v1678_v8 = vadd.f32 %v1662_v11, %v10500_v56  ;;  %6259 = vmatmul.msk.f32.gmra.mxu1 %vm555_vm2, %v2906_v6  ;;  %v1754_v6 = vld [vmem:[#allocation2 + $0x110] sm:$0xff]  ;;  %vm3804_vm3 = vcmp.gt.f32.partialorder %v8273_v17, 0.0 }
 0x257   : >> { %v1027_v13 = vadd.f32 %v1011_v5, %v10485_v41  ;;  %v2451_v7 = vpop.f32.mrf.mxu2  ;;  %v1804_v5 = vld [vmem:[#allocation2 + $0x2a0] sm:$0xff] }
 0x258   : >> { %v1522_v9 = vadd.f32 %v1506_v3, %v10497_v60  ;;  %6743 = vpow2.f32 %v3932_v45  ;;  %v1694_v18 = vmax.f32 %v1678_v8, 0.0  ;;  %v2452_v16 = vadd.f32 %v2451_v7, %v10526_v2 }
 0x259   : >> { %v1043_v12 = vmax.f32 %v1027_v13, 0.0  ;;  %v2304_v1 = vpop.f32.mrf.mxu0 }
 0x25a   : >> { %v1538_v10 = vmax.f32 %v1522_v9, 0.0  ;;  %1710 = vst.msk [vmem:[#allocation2 + $0x3b0] sm:$0xff] %vm555_vm2, %v1694_v18  ;;  %v2701_v38 = vmax.f32 %v2452_v16, 0.0  ;;  %v2305_v15 = vadd.f32 %v2304_v1, %v10526_v2 }
 0x25b   : >> { %1059 = vst.msk [vmem:[#allocation2 + $0x1d8] sm:$0xff] %vm555_vm2, %v1043_v12  ;;  %v3423_v11 = vpop.f32.mrf.mxu1  ;;  %v1619_v33 = vpop.permute.xlu2 %1618 }
 0x25c   : >> { %1554 = vst.msk [vmem:[#allocation2 + $0x370] sm:$0xff] %vm555_vm2, %v1538_v10  ;;  %v2652_v3 = vmax.f32 %v2305_v15, 0.0  ;;  %v8294_v45 = vadd.f32 %v3423_v11, %v8266_v4  ;;  %6149 = vmatmul.msk.f32.gmra.mxu0 %vm555_vm2, %v1754_v6  ;;  %6199 = vmatmul.msk.f32.gmra.mxu2 %vm555_vm2, %v1804_v5  ;;  %v2956_v8 = vld [vmem:[#allocation3 + $0x210] sm:$0xff]  ;;  %v1664_v13 = vmul.f32 %v1619_v33, %v7632_v19  ;;  %v1584_v9 = vpop.permute.xlu1 %1583 }
 0x25d   : >> { %v1579_v7 = vpop.permute.xlu0 %1578  ;;  %2829 = vst.msk [vmem:[#allocation3 + $0x218] sm:$0xff] %vm555_vm2, %v2701_v38  ;;  %6309 = vmatmul.msk.f32.gmra.mxu3 %vm555_vm2, %v2956_v8  ;;  %v1657_v18 = vmul.f32 %v1584_v9, %v7632_v19  ;;  %v2907_v12 = vld [vmem:[#allocation3 + $0x88] sm:$0xff] }
 0x25e   : >> { %v1656_v16 = vmul.f32 %v1579_v7, %v7632_v19  ;;  %v6744_v10 = vpop.eup %6743  ;;  %2780 = vst.msk [vmem:[#allocation3 + $0x90] sm:$0xff] %vm555_vm2, %v2652_v3  ;;  %v3934_v1 = vmul.f32 1.442695, %v8294_v45  ;;  %v1680_v15 = vadd.f32 %v1664_v13, %v10472_v43  ;;  %6260 = vmatmul.msk.f32.gmra.mxu1 %vm555_vm2, %v2907_v12  ;;  %vm3805_vm4 = vcmp.gt.f32.partialorder %v8294_v45, 0.0 }
 0x25f   : >> { %v6371_v33 = vadd.f32 -1.0, %v6744_v10  ;;  %v1673_v11 = vadd.f32 %v1657_v18, %v10474_v47  ;;  %v2454_v6 = vpop.f32.mrf.mxu2  ;;  %v1755_v10 = vld [vmem:[#allocation2 + $0x118] sm:$0xff] }
 0x260   : >> { %v1672_v38 = vadd.f32 %v1656_v16, %v10471_v39  ;;  %6745 = vpow2.f32 %v3934_v1  ;;  %v1696_v5 = vmax.f32 %v1680_v15, 0.0  ;;  %v2455_v8 = vadd.f32 %v2454_v6, %v10526_v2 }
 0x261   : >> { %v1689_v9 = vmax.f32 %v1673_v11, 0.0  ;;  %v2307_v7 = vpop.f32.mrf.mxu0  ;;  %v4316_v56 = vsel %vm3804_vm3, %v8273_v17, %v6371_v33  ;;  %v1805_v17 = vld [vmem:[#allocation2 + $0x2a8] sm:$0xff] }
 0x262   : >> { %v1688_v3 = vmax.f32 %v1672_v38, 0.0  ;;  %1712 = vst.msk [vmem:[#allocation2 + $0x3c0] sm:$0xff] %vm555_vm2, %v1696_v5  ;;  %v2702_v13 = vmax.f32 %v2455_v8, 0.0  ;;  %v2308_v12 = vadd.f32 %v2307_v7, %v10526_v2  ;;  %v4444_v18 = vadd.f32 1.0, %v4316_v56 }
 0x263   : >> { %1705 = vst.msk [vmem:[#allocation2 + $0x388] sm:$0xff] %vm555_vm2, %v1689_v9  ;;  %v3426_v16 = vpop.f32.mrf.mxu1  ;;  %v998_v21 = vpop.permute.xlu2 %997 }
 0x264   : >> { %1704 = vst.msk [vmem:[#allocation2 + $0x380] sm:$0xff] %vm555_vm2, %v1688_v3  ;;  %v2653_v1 = vmax.f32 %v2308_v12, 0.0  ;;  %v8317_v15 = vadd.f32 %v3426_v16, %v8266_v4  ;;  %4590 = vrot.lane.b32.xlu2 %v4444_v18, %s7199_s28  ;;  %6150 = vmatmul.msk.f32.gmra.mxu0 %vm555_vm2, %v1755_v10  ;;  %v2957_v33 = vld [vmem:[#allocation3 + $0x218] sm:$0xff]  ;;  %v1015_v56 = vmul.f32 %v998_v21, %v7632_v19  ;;  %v1594_v11 = vpop.permute.xlu1 %1593 }
 0x265   : >> { %v1589_v38 = vpop.permute.xlu0 %1588  ;;  %2830 = vst.msk [vmem:[#allocation3 + $0x220] sm:$0xff] %vm555_vm2, %v2702_v13  ;;  %6200 = vmatmul.msk.f32.gmra.mxu2 %vm555_vm2, %v1805_v17  ;;  %6310 = vmatmul.msk.f32.gmra.mxu3 %vm555_vm2, %v2957_v33  ;;  %v1659_v6 = vmul.f32 %v1594_v11, %v7632_v19  ;;  %v2908_v8 = vld [vmem:[#allocation3 + $0x90] sm:$0xff] }
 0x266   : >> { %v1658_v5 = vmul.f32 %v1589_v38, %v7632_v19  ;;  %v6746_v9 = vpop.eup %6745  ;;  %2781 = vst.msk [vmem:[#allocation3 + $0x98] sm:$0xff] %vm555_vm2, %v2653_v1  ;;  %v3936_v3 = vmul.f32 1.442695, %v8317_v15  ;;  %v1031_v21 = vadd.f32 %v1015_v56, %v10523_v14  ;;  %6261 = vmatmul.msk.f32.gmra.mxu1 %vm555_vm2, %v2908_v8  ;;  %v1756_v8 = vld [vmem:[#allocation2 + $0x120] sm:$0xff]  ;;  %vm3806_vm5 = vcmp.gt.f32.partialorder %v8317_v15, 0.0 }
 0x267   : >> { %v6372_v7 = vadd.f32 -1.0, %v6746_v9  ;;  %v1675_v13 = vadd.f32 %v1659_v6, %v10484_v63  ;;  %v2457_v18 = vpop.f32.mrf.mxu2 }
 0x268   : >> { %v1674_v12 = vadd.f32 %v1658_v5, %v10479_v55  ;;  %6747 = vpow2.f32 %v3936_v3  ;;  %v1047_v16 = vmax.f32 %v1031_v21, 0.0  ;;  %v2458_v10 = vadd.f32 %v2457_v18, %v10526_v2 }
 0x269   : >> { %v1691_v17 = vmax.f32 %v1675_v13, 0.0  ;;  %v2310_v33 = vpop.f32.mrf.mxu0  ;;  %v4317_v11 = vsel %vm3805_vm4, %v8294_v45, %v6372_v7  ;;  %v1806_v45 = vld [vmem:[#allocation2 + $0x2b0] sm:$0xff]  ;;  %v1840_v23 = vld [vmem:[#allocation2 + $0x3c0] sm:$0xff] }
 0x26a   : >> { %v1690_v1 = vmax.f32 %v1674_v12, 0.0  ;;  %1063 = vst.msk [vmem:[#allocation2 + $0x1f8] sm:$0xff] %vm555_vm2, %v1047_v16  ;;  %v2703_v56 = vmax.f32 %v2458_v10, 0.0  ;;  %v2311_v38 = vadd.f32 %v2310_v33, %v10526_v2  ;;  %v4445_v6 = vadd.f32 1.0, %v4317_v11 }
 0x26b   : >> { %1707 = vst.msk [vmem:[#allocation2 + $0x398] sm:$0xff] %vm555_vm2, %v1691_v17  ;;  %v3429_v5 = vpop.f32.mrf.mxu1  ;;  %v1644_v9 = vpop.permute.xlu2 %1643 }
 0x26c   : >> { %1706 = vst.msk [vmem:[#allocation2 + $0x390] sm:$0xff] %vm555_vm2, %v1690_v1  ;;  %v2654_v3 = vmax.f32 %v2311_v38, 0.0  ;;  %v8341_v21 = vadd.f32 %v3429_v5, %v8266_v4  ;;  %4592 = vrot.lane.b32.xlu0 %v4445_v6, %s7199_s28  ;;  %6151 = vmatmul.msk.f32.gmra.mxu0 %vm555_vm2, %v1756_v8  ;;  %v2958_v7 = vld [vmem:[#allocation3 + $0x220] sm:$0xff]  ;;  %v1669_v13 = vmul.f32 %v1644_v9, %v7632_v19  ;;  %v1604_v12 = vpop.permute.xlu1 %1603 }
 0x26d   : >> { %v988_v18 = vpop.permute.xlu0 %987  ;;  %2831 = vst.msk [vmem:[#allocation3 + $0x228] sm:$0xff] %vm555_vm2, %v2703_v56  ;;  %6201 = vmatmul.msk.f32.gmra.mxu2 %vm555_vm2, %v1806_v45  ;;  %6311 = vmatmul.msk.f32.gmra.mxu3 %vm555_vm2, %v2958_v7  ;;  %v1661_v16 = vmul.f32 %v1604_v12, %v7632_v19  ;;  %v2909_v17 = vld [vmem:[#allocation3 + $0x98] sm:$0xff] }
 0x26e   : >> { %v1013_v10 = vmul.f32 %v988_v18, %v7632_v19  ;;  %v6748_v1 = vpop.eup %6747  ;;  %2782 = vst.msk [vmem:[#allocation3 + $0xa0] sm:$0xff] %vm555_vm2, %v2654_v3  ;;  %v3938_v33 = vmul.f32 1.442695, %v8341_v21  ;;  %v1685_v11 = vadd.f32 %v1669_v13, %v10494_v52  ;;  %6262 = vmatmul.msk.f32.gmra.mxu1 %vm555_vm2, %v2909_v17  ;;  %v1757_v17 = vld [vmem:[#allocation2 + $0x128] sm:$0xff]  ;;  %vm3807_vm6 = vcmp.gt.f32.partialorder %v8341_v21, 0.0 }
 0x26f   : >> { %v6373_v38 = vadd.f32 -1.0, %v6748_v1  ;;  %v1677_v56 = vadd.f32 %v1661_v16, %v10493_v48  ;;  %v2460_v5 = vpop.f32.mrf.mxu2 }
 0x270   : >> { %v1029_v6 = vadd.f32 %v1013_v10, %v10494_v52  ;;  %6749 = vpow2.f32 %v3938_v33  ;;  %v1701_v8 = vmax.f32 %v1685_v11, 0.0  ;;  %v2461_v9 = vadd.f32 %v2460_v5, %v10526_v2  ;;  %v1807_v33 = vld [vmem:[#allocation2 + $0x2b8] sm:$0xff] }
 0x271   : >> { %v1693_v45 = vmax.f32 %v1677_v56, 0.0  ;;  %v2313_v7 = vpop.f32.mrf.mxu0  ;;  %v4318_v12 = vsel %vm3806_vm5, %v8317_v15, %v6373_v38 }
 0x272   : >> { %v1045_v3 = vmax.f32 %v1029_v6, 0.0  ;;  %1717 = vst.msk [vmem:[#allocation2 + $0x3e8] sm:$0xff] %vm555_vm2, %v1701_v8  ;;  %v2704_v13 = vmax.f32 %v2461_v9, 0.0  ;;  %v2314_v18 = vadd.f32 %v2313_v7, %v10526_v2  ;;  %v4446_v16 = vadd.f32 1.0, %v4318_v12 }
 0x273   : >> { %1709 = vst.msk [vmem:[#allocation2 + $0x3a8] sm:$0xff] %vm555_vm2, %v1693_v45  ;;  %v8363_v10 = vpop.f32.mrf.mxu1 }
 0x274   : >> { %1061 = vst.msk [vmem:[#allocation2 + $0x1e8] sm:$0xff] %vm555_vm2, %v1045_v3  ;;  %v2655_v1 = vmax.f32 %v2314_v18, 0.0  ;;  %4594 = vrot.lane.b32.xlu1 %v4446_v16, %s7199_s28  ;;  %6152 = vmatmul.msk.f32.gmra.mxu0 %vm555_vm2, %v1757_v17  ;;  %v2959_v15 = vld [vmem:[#allocation3 + $0x228] sm:$0xff]  ;;  %v993_v11 = vpop.permute.xlu1 %992 }
 0x275   : >> { %v1614_v38 = vpop.permute.xlu0 %1613  ;;  %2832 = vst.msk [vmem:[#allocation3 + $0x230] sm:$0xff] %vm555_vm2, %v2704_v13  ;;  %6202 = vmatmul.msk.f32.gmra.mxu2 %vm555_vm2, %v1807_v33  ;;  %6312 = vmatmul.msk.f32.gmra.mxu3 %vm555_vm2, %v2959_v15  ;;  %v1014_v56 = vmul.f32 %v993_v11, %v7632_v19  ;;  %v2910_v5 = vld [vmem:[#allocation3 + $0xa0] sm:$0xff] }
 0x276   : >> { %v1663_v6 = vmul.f32 %v1614_v38, %v7632_v19  ;;  %v6750_v8 = vpop.eup %6749  ;;  %2783 = vst.msk [vmem:[#allocation3 + $0xa8] sm:$0xff] %vm555_vm2, %v2655_v1  ;;  %6263 = vmatmul.msk.f32.gmra.mxu1 %vm555_vm2, %v2910_v5  ;;  %v1758_v38 = vld [vmem:[#allocation2 + $0x130] sm:$0xff] }
 0x277   : >> { %v6374_v9 = vadd.f32 -1.0, %v6750_v8  ;;  %v1030_v45 = vadd.f32 %v1014_v56, %v10497_v60  ;;  %v2463_v7 = vpop.f32.mrf.mxu2 }
 0x278   : >> { %v1679_v3 = vadd.f32 %v1663_v6, %v10498_v0  ;;  %v2464_v12 = vadd.f32 %v2463_v7, %v10526_v2  ;;  %v1808_v6 = vld [vmem:[#allocation2 + $0x2c0] sm:$0xff] }
 0x279   : >> { %v1046_v13 = vmax.f32 %v1030_v45, 0.0  ;;  %v2316_v16 = vpop.f32.mrf.mxu0  ;;  %v4319_v17 = vsel %vm3807_vm6, %v8341_v21, %v6374_v9  ;;  %v1845_v39 = vld [vmem:[#allocation2 + $0x3e8] sm:$0xff] }
 0x27a   : >> { %v1695_v18 = vmax.f32 %v1679_v3, 0.0  ;;  %v2705_v33 = vmax.f32 %v2464_v12, 0.0  ;;  %v2317_v1 = vadd.f32 %v2316_v16, %v10526_v2  ;;  %v4447_v15 = vadd.f32 1.0, %v4319_v17 }
 0x27b   : >> { %1062 = vst.msk [vmem:[#allocation2 + $0x1f0] sm:$0xff] %vm555_vm2, %v1046_v13  ;;  %v8382_v11 = vpop.f32.mrf.mxu1 }
 0x27c   : >> { %1711 = vst.msk [vmem:[#allocation2 + $0x3b8] sm:$0xff] %vm555_vm2, %v1695_v18  ;;  %v2656_v56 = vmax.f32 %v2317_v1, 0.0  ;;  %4596 = vrot.lane.b32.xlu2 %v4447_v15, %s7199_s28  ;;  %6153 = vmatmul.msk.f32.gmra.mxu0 %vm555_vm2, %v1758_v38  ;;  %v2960_v5 = vld [vmem:[#allocation3 + $0x230] sm:$0xff]  ;;  %v1629_v8 = vpop.permute.xlu1 %1628 }
 0x27d   : >> { %v1624_v21 = vpop.permute.xlu0 %1623  ;;  %2833 = vst.msk [vmem:[#allocation3 + $0x238] sm:$0xff] %vm555_vm2, %v2705_v33  ;;  %6203 = vmatmul.msk.f32.gmra.mxu2 %vm555_vm2, %v1808_v6  ;;  %6313 = vmatmul.msk.f32.gmra.mxu3 %vm555_vm2, %v2960_v5  ;;  %v1666_v9 = vmul.f32 %v1629_v8, %v7632_v19  ;;  %v2911_v3 = vld [vmem:[#allocation3 + $0xa8] sm:$0xff] }
 0x27e   : >> { %v1665_v45 = vmul.f32 %v1624_v21, %v7632_v19  ;;  %2784 = vst.msk [vmem:[#allocation3 + $0xb0] sm:$0xff] %vm555_vm2, %v2656_v56  ;;  %6264 = vmatmul.msk.f32.gmra.mxu1 %vm555_vm2, %v2911_v3  ;;  %v1759_v56 = vld [vmem:[#allocation2 + $0x138] sm:$0xff]  ;;  %v1809_v5 = vld [vmem:[#allocation2 + $0x2c8] sm:$0xff] }
 0x27f   : >> { %v1682_v7 = vadd.f32 %v1666_v9, %v10480_v59  ;;  %v2466_v13 = vpop.f32.mrf.mxu2 }
 0x280   : >> { %v1681_v12 = vadd.f32 %v1665_v45, %v10475_v51  ;;  %v2467_v18 = vadd.f32 %v2466_v13, %v10526_v2 }
 0x281   : >> { %v1698_v16 = vmax.f32 %v1682_v7, 0.0  ;;  %v2319_v33 = vpop.f32.mrf.mxu0 }
 0x282   : >> { %v1697_v17 = vmax.f32 %v1681_v12, 0.0  ;;  %v2706_v1 = vmax.f32 %v2467_v18, 0.0  ;;  %v2320_v15 = vadd.f32 %v2319_v33, %v10526_v2 }
 0x283   : >> { %1714 = vst.msk [vmem:[#allocation2 + $0x3d0] sm:$0xff] %vm555_vm2, %v1698_v16  ;;  %v8399_v38 = vpop.f32.mrf.mxu1  ;;  %v1839_v20 = vld [vmem:[#allocation2 + $0x3b8] sm:$0xff] }
 0x284   : >> { %1713 = vst.msk [vmem:[#allocation2 + $0x3c8] sm:$0xff] %vm555_vm2, %v1697_v17  ;;  %v2657_v6 = vmax.f32 %v2320_v15, 0.0  ;;  %6154 = vmatmul.msk.f32.gmra.mxu0 %vm555_vm2, %v1759_v56  ;;  %v2961_v8 = vld [vmem:[#allocation3 + $0x238] sm:$0xff]  ;;  %v1639_v21 = vpop.permute.xlu1 %1638 }
 0x285   : >> { %v1634_v9 = vpop.permute.xlu0 %1633  ;;  %2834 = vst.msk [vmem:[#allocation3 + $0x240] sm:$0xff] %vm555_vm2, %v2706_v1  ;;  %6204 = vmatmul.msk.f32.gmra.mxu2 %vm555_vm2, %v1809_v5  ;;  %6314 = vmatmul.msk.f32.gmra.mxu3 %vm555_vm2, %v2961_v8  ;;  %v1668_v45 = vmul.f32 %v1639_v21, %v7632_v19  ;;  %v2912_v7 = vld [vmem:[#allocation3 + $0xb0] sm:$0xff] }
 0x286   : >> { %v1667_v3 = vmul.f32 %v1634_v9, %v7632_v19  ;;  %2785 = vst.msk [vmem:[#allocation3 + $0xb8] sm:$0xff] %vm555_vm2, %v2657_v6  ;;  %6265 = vmatmul.msk.f32.gmra.mxu1 %vm555_vm2, %v2912_v7  ;;  %v1760_v6 = vld [vmem:[#allocation2 + $0x140] sm:$0xff]  ;;  %v1810_v21 = vld [vmem:[#allocation2 + $0x2d0] sm:$0xff] }
 0x287   : >> { %v1684_v12 = vadd.f32 %v1668_v45, %v10489_v44  ;;  %v2469_v18 = vpop.f32.mrf.mxu2 }
 0x288   : >> { %v1683_v13 = vadd.f32 %v1667_v3, %v10485_v41  ;;  %v2470_v16 = vadd.f32 %v2469_v18, %v10526_v2 }
 0x289   : >> { %v1700_v17 = vmax.f32 %v1684_v12, 0.0  ;;  %v2322_v1 = vpop.f32.mrf.mxu0 }
 0x28a   : >> { %v1699_v33 = vmax.f32 %v1683_v13, 0.0  ;;  %v2707_v15 = vmax.f32 %v2470_v16, 0.0  ;;  %v2323_v56 = vadd.f32 %v2322_v1, %v10526_v2  ;;  %v1842_v55 = vld [vmem:[#allocation2 + $0x3d0] sm:$0xff] }
 0x28b   : >> { %1716 = vst.msk [vmem:[#allocation2 + $0x3e0] sm:$0xff] %vm555_vm2, %v1700_v17  ;;  %v8415_v5 = vpop.f32.mrf.mxu1 }
 0x28c   : >> { %1715 = vst.msk [vmem:[#allocation2 + $0x3d8] sm:$0xff] %vm555_vm2, %v1699_v33  ;;  %v2658_v8 = vmax.f32 %v2323_v56, 0.0  ;;  %6155 = vmatmul.msk.f32.gmra.mxu0 %vm555_vm2, %v1760_v6  ;;  %v2962_v9 = vld [vmem:[#allocation3 + $0x240] sm:$0xff]  ;;  %v1654_v45 = vpop.permute.xlu1 %1653 }
 0x28d   : >> { %v1649_v3 = vpop.permute.xlu0 %1648  ;;  %2835 = vst.msk [vmem:[#allocation3 + $0x248] sm:$0xff] %vm555_vm2, %v2707_v15  ;;  %6205 = vmatmul.msk.f32.gmra.mxu2 %vm555_vm2, %v1810_v21  ;;  %6315 = vmatmul.msk.f32.gmra.mxu3 %vm555_vm2, %v2962_v9  ;;  %v1671_v7 = vmul.f32 %v1654_v45, %v7632_v19  ;;  %v2913_v13 = vld [vmem:[#allocation3 + $0xb8] sm:$0xff] }
 0x28e   : >> { %v1670_v12 = vmul.f32 %v1649_v3, %v7632_v19  ;;  %2786 = vst.msk [vmem:[#allocation3 + $0xc0] sm:$0xff] %vm555_vm2, %v2658_v8  ;;  %6266 = vmatmul.msk.f32.gmra.mxu1 %vm555_vm2, %v2913_v13  ;;  %v1761_v8 = vld [vmem:[#allocation2 + $0x148] sm:$0xff] }
 0x28f   : >> { %v1687_v18 = vadd.f32 %v1671_v7, %v10523_v14  ;;  %v2472_v17 = vpop.f32.mrf.mxu2  ;;  %v1811_v14 = vld [vmem:[#allocation2 + $0x2d8] sm:$0xff] }
 0x290   : >> { %v1686_v16 = vadd.f32 %v1670_v12, %v10497_v60  ;;  %v2473_v33 = vadd.f32 %v2472_v17, %v10526_v2 }
 0x291   : >> { %v1703_v1 = vmax.f32 %v1687_v18, 0.0  ;;  %v2325_v56 = vpop.f32.mrf.mxu0 }
 0x292   : >> { %v1702_v15 = vmax.f32 %v1686_v16, 0.0  ;;  %v2708_v6 = vmax.f32 %v2473_v33, 0.0  ;;  %v2326_v21 = vadd.f32 %v2325_v56, %v10526_v2  ;;  %v1762_v33 = vld [vmem:[#allocation2 + $0x150] sm:$0xff]  ;;  %v1844_v22 = vld [vmem:[#allocation2 + $0x3e0] sm:$0xff] }
 0x293   : >> { %1719 = vst.msk [vmem:[#allocation2 + $0x3f8] sm:$0xff] %vm555_vm2, %v1703_v1  ;;  %v8431_v19 = vpop.f32.mrf.mxu1  ;;  %v1843_v34 = vld [vmem:[#allocation2 + $0x3d8] sm:$0xff] }
 0x294   : >> { %1718 = vst.msk [vmem:[#allocation2 + $0x3f0] sm:$0xff] %vm555_vm2, %v1702_v15  ;;  %v2659_v9 = vmax.f32 %v2326_v21, 0.0  ;;  %6156 = vmatmul.msk.f32.gmra.mxu0 %vm555_vm2, %v1761_v8  ;;  %v2963_v45 = vld [vmem:[#allocation3 + $0x248] sm:$0xff]  ;;  %v1812_v15 = vld [vmem:[#allocation2 + $0x2e0] sm:$0xff] }
 0x295   : >> { %2836 = vst.msk [vmem:[#allocation3 + $0x250] sm:$0xff] %vm555_vm2, %v2708_v6  ;;  %6206 = vmatmul.msk.f32.gmra.mxu2 %vm555_vm2, %v1811_v14  ;;  %6316 = vmatmul.msk.f32.gmra.mxu3 %vm555_vm2, %v2963_v45  ;;  %v2914_v3 = vld [vmem:[#allocation3 + $0xc0] sm:$0xff] }
 0x296   : >> { %2787 = vst.msk [vmem:[#allocation3 + $0xc8] sm:$0xff] %vm555_vm2, %v2659_v9  ;;  %6267 = vmatmul.msk.f32.gmra.mxu1 %vm555_vm2, %v2914_v3 }
 0x297   : >> { %v2475_v7 = vpop.f32.mrf.mxu2 }
 0x298   : >> { %v2476_v12 = vadd.f32 %v2475_v7, %v10526_v2  ;;  %v1763_v7 = vld [vmem:[#allocation2 + $0x158] sm:$0xff] }
 0x299   : >> { %v2328_v13 = vpop.f32.mrf.mxu0 }
 0x29a   : >> { %v2709_v18 = vmax.f32 %v2476_v12, 0.0  ;;  %v2329_v16 = vadd.f32 %v2328_v13, %v10526_v2 }
 0x29b   : >> { %v8442_v17 = vpop.f32.mrf.mxu1 }
 0x29c   : >> { %2837 = vst.msk [vmem:[#allocation3 + $0x258] sm:$0xff] %vm555_vm2, %v2709_v18  ;;  %v2660_v1 = vmax.f32 %v2329_v16, 0.0  ;;  %6157 = vmatmul.msk.f32.gmra.mxu0 %vm555_vm2, %v1762_v33  ;;  %v2964_v56 = vld [vmem:[#allocation3 + $0x250] sm:$0xff]  ;;  %v1813_v18 = vld [vmem:[#allocation2 + $0x2e8] sm:$0xff] }
 0x29d   : >> { %6207 = vmatmul.msk.f32.gmra.mxu2 %vm555_vm2, %v1812_v15  ;;  %6317 = vmatmul.msk.f32.gmra.mxu3 %vm555_vm2, %v2964_v56  ;;  %v2915_v6 = vld [vmem:[#allocation3 + $0xc8] sm:$0xff] }
 0x29e   : >> { %2788 = vst.msk [vmem:[#allocation3 + $0xd0] sm:$0xff] %vm555_vm2, %v2660_v1  ;;  %6268 = vmatmul.msk.f32.gmra.mxu1 %vm555_vm2, %v2915_v6 }
 0x29f   : >> { %v2478_v21 = vpop.f32.mrf.mxu2 }
 0x2a0   : >> { %v2479_v8 = vadd.f32 %v2478_v21, %v10526_v2 }
 0x2a1   : >> { %v2331_v9 = vpop.f32.mrf.mxu0 }
 0x2a2   : >> { %v2710_v14 = vmax.f32 %v2479_v8, 0.0  ;;  %v2332_v45 = vadd.f32 %v2331_v9, %v10526_v2  ;;  %v1764_v8 = vld [vmem:[#allocation2 + $0x160] sm:$0xff] }
 0x2a3   : >> { %v8452_v3 = vpop.f32.mrf.mxu1  ;;  %v2965_v12 = vld [vmem:[#allocation3 + $0x258] sm:$0xff] }
 0x2a4   : >> { %2838 = vst.msk [vmem:[#allocation3 + $0x260] sm:$0xff] %vm555_vm2, %v2710_v14  ;;  %v2661_v13 = vmax.f32 %v2332_v45, 0.0  ;;  %6158 = vmatmul.msk.f32.gmra.mxu0 %vm555_vm2, %v1763_v7  ;;  %v1814_v45 = vld [vmem:[#allocation2 + $0x2f0] sm:$0xff] }
 0x2a5   : >> { %6208 = vmatmul.msk.f32.gmra.mxu2 %vm555_vm2, %v1813_v18  ;;  %6318 = vmatmul.msk.f32.gmra.mxu3 %vm555_vm2, %v2965_v12  ;;  %v2916_v16 = vld [vmem:[#allocation3 + $0xd0] sm:$0xff] }
 0x2a6   : >> { %2789 = vst.msk [vmem:[#allocation3 + $0xd8] sm:$0xff] %vm555_vm2, %v2661_v13  ;;  %6269 = vmatmul.msk.f32.gmra.mxu1 %vm555_vm2, %v2916_v16 }
 0x2a7   : >> { %v2481_v33 = vpop.f32.mrf.mxu2 }
 0x2a8   : >> { %v2482_v1 = vadd.f32 %v2481_v33, %v10526_v2 }
 0x2a9   : >> { %v2334_v15 = vpop.f32.mrf.mxu0 }
 0x2aa   : >> { %v2711_v56 = vmax.f32 %v2482_v1, 0.0  ;;  %v2335_v6 = vadd.f32 %v2334_v15, %v10526_v2  ;;  %v1765_v15 = vld [vmem:[#allocation2 + $0x168] sm:$0xff] }
 0x2ab   : >> { %v8462_v21 = vpop.f32.mrf.mxu1  ;;  %v2966_v9 = vld [vmem:[#allocation3 + $0x260] sm:$0xff] }
 0x2ac   : >> { %2839 = vst.msk [vmem:[#allocation3 + $0x268] sm:$0xff] %vm555_vm2, %v2711_v56  ;;  %v2662_v14 = vmax.f32 %v2335_v6, 0.0  ;;  %6159 = vmatmul.msk.f32.gmra.mxu0 %vm555_vm2, %v1764_v8  ;;  %v1815_v8 = vld [vmem:[#allocation2 + $0x2f8] sm:$0xff] }
 0x2ad   : >> { %6209 = vmatmul.msk.f32.gmra.mxu2 %vm555_vm2, %v1814_v45  ;;  %6319 = vmatmul.msk.f32.gmra.mxu3 %vm555_vm2, %v2966_v9  ;;  %v2917_v7 = vld [vmem:[#allocation3 + $0xd8] sm:$0xff] }
 0x2ae   : >> { %2790 = vst.msk [vmem:[#allocation3 + $0xe0] sm:$0xff] %vm555_vm2, %v2662_v14  ;;  %6270 = vmatmul.msk.f32.gmra.mxu1 %vm555_vm2, %v2917_v7  ;;  %v8482_v14 = vadd.f32 %v8363_v10, %v8266_v4 }
 0x2af   : >> { %v2484_v12 = vpop.f32.mrf.mxu2 }
 0x2b0   : >> { %v2485_v13 = vadd.f32 %v2484_v12, %v10526_v2  ;;  %vm3808_vm8 = vcmp.gt.f32.partialorder %v8482_v14, 0.0 }
 0x2b1   : >> { %v2337_v18 = vpop.f32.mrf.mxu0 }
 0x2b2   : >> { %v2712_v16 = vmax.f32 %v2485_v13, 0.0  ;;  %v2338_v33 = vadd.f32 %v2337_v18, %v10526_v2 }
 0x2b3   : >> { %v8472_v1 = vpop.f32.mrf.mxu1  ;;  %v2967_v56 = vld [vmem:[#allocation3 + $0x268] sm:$0xff] }
 0x2b4   : >> { %2840 = vst.msk [vmem:[#allocation3 + $0x270] sm:$0xff] %vm555_vm2, %v2712_v16  ;;  %v2663_v6 = vmax.f32 %v2338_v33, 0.0  ;;  %6160 = vmatmul.msk.f32.gmra.mxu0 %vm555_vm2, %v1765_v15  ;;  %v3940_v15 = vmul.f32 1.442695, %v8482_v14 }
 0x2b5   : >> { %6210 = vmatmul.msk.f32.gmra.mxu2 %vm555_vm2, %v1815_v8  ;;  %6320 = vmatmul.msk.f32.gmra.mxu3 %vm555_vm2, %v2967_v56  ;;  %v2918_v9 = vld [vmem:[#allocation3 + $0xe0] sm:$0xff]  ;;  %v1766_v8 = vld [vmem:[#allocation2 + $0x170] sm:$0xff] }
 0x2b6   : >> { %2791 = vst.msk [vmem:[#allocation3 + $0xe8] sm:$0xff] %vm555_vm2, %v2663_v6  ;;  %6271 = vmatmul.msk.f32.gmra.mxu1 %vm555_vm2, %v2918_v9 }
 0x2b7   : >> { %v2487_v45 = vpop.f32.mrf.mxu2 }
 0x2b8   : >> { %v2488_v7 = vadd.f32 %v2487_v45, %v10526_v2  ;;  %v3612_v12 = vpop.f32.mrf.mxu3  ;;  %v1816_v45 = vld [vmem:[#allocation2 + $0x300] sm:$0xff] }
 0x2b9   : >> { %v3613_v13 = vadd.f32 %v3612_v12, %v8266_v4  ;;  %v2340_v18 = vpop.f32.mrf.mxu0 }
 0x2ba   : >> { %v2713_v16 = vmax.f32 %v2488_v7, 0.0  ;;  %v2341_v33 = vadd.f32 %v2340_v18, %v10526_v2 }
 0x2bb   : >> { %v4060_v56 = vmul.f32 1.442695, %v3613_v13  ;;  %v8488_v6 = vpop.f32.mrf.mxu1  ;;  %v2968_v9 = vld [vmem:[#allocation3 + $0x270] sm:$0xff]  ;;  %vm3868_vm7 = vcmp.gt.f32.partialorder %v3613_v13, 0.0 }
 0x2bc   : >> { %2841 = vst.msk [vmem:[#allocation3 + $0x278] sm:$0xff] %vm555_vm2, %v2713_v16  ;;  %v2664_v10 = vmax.f32 %v2341_v33, 0.0  ;;  %6161 = vmatmul.msk.f32.gmra.mxu0 %vm555_vm2, %v1766_v8 }
 0x2bd   : >> { %6751 = vpow2.f32 %v4060_v56  ;;  %6211 = vmatmul.msk.f32.gmra.mxu2 %vm555_vm2, %v1816_v45  ;;  %6321 = vmatmul.msk.f32.gmra.mxu3 %vm555_vm2, %v2968_v9  ;;  %v2919_v7 = vld [vmem:[#allocation3 + $0xe8] sm:$0xff]  ;;  %v1767_v56 = vld [vmem:[#allocation2 + $0x178] sm:$0xff] }
 0x2be   : >> { %2792 = vst.msk [vmem:[#allocation3 + $0xf0] sm:$0xff] %vm555_vm2, %v2664_v10  ;;  %6272 = vmatmul.msk.f32.gmra.mxu1 %vm555_vm2, %v2919_v7  ;;  %6753 = vpow2.f32 %v3940_v15  ;;  %v1817_v10 = vld [vmem:[#allocation2 + $0x308] sm:$0xff] }
 0x2bf   : >> { %v2490_v12 = vpop.f32.mrf.mxu2 }
 0x2c0   : >> { %v2491_v18 = vadd.f32 %v2490_v12, %v10526_v2 }
 0x2c1   : >> { %v2343_v0 = vpop.f32.mrf.mxu0 }
 0x2c2   : >> { %v2714_v16 = vmax.f32 %v2491_v18, 0.0  ;;  %v2344_v33 = vadd.f32 %v2343_v0, %v10526_v2 }
 0x2c3   : >> { %v6752_v8 = vpop.eup %6751  ;;  %v8498_v60 = vpop.f32.mrf.mxu1  ;;  %v2969_v45 = vld [vmem:[#allocation3 + $0x278] sm:$0xff] }
 0x2c4   : >> { %v6435_v29 = vadd.f32 -1.0, %v6752_v8  ;;  %2842 = vst.msk [vmem:[#allocation3 + $0x280] sm:$0xff] %vm555_vm2, %v2714_v16  ;;  %v2665_v9 = vmax.f32 %v2344_v33, 0.0  ;;  %6162 = vmatmul.msk.f32.gmra.mxu0 %vm555_vm2, %v1767_v56  ;;  %v6754_v15 = vpop.eup %6753 }
 0x2c5   : >> { %6212 = vmatmul.msk.f32.gmra.mxu2 %vm555_vm2, %v1817_v10  ;;  %6322 = vmatmul.msk.f32.gmra.mxu3 %vm555_vm2, %v2969_v45  ;;  %v2920_v7 = vld [vmem:[#allocation3 + $0xf0] sm:$0xff]  ;;  %v6375_v8 = vadd.f32 -1.0, %v6754_v15  ;;  %v1768_v10 = vld [vmem:[#allocation2 + $0x180] sm:$0xff] }
 0x2c6   : >> { %2793 = vst.msk [vmem:[#allocation3 + $0xf8] sm:$0xff] %vm555_vm2, %v2665_v9  ;;  %6273 = vmatmul.msk.f32.gmra.mxu1 %vm555_vm2, %v2920_v7  ;;  %v4380_v0 = vsel %vm3868_vm7, %v3613_v13, %v6435_v29  ;;  %v1818_v13 = vld [vmem:[#allocation2 + $0x310] sm:$0xff] }
 0x2c7   : >> { %v2493_v12 = vpop.f32.mrf.mxu2  ;;  %v4508_v18 = vadd.f32 1.0, %v4380_v0  ;;  %v4320_v15 = vsel %vm3808_vm8, %v8482_v14, %v6375_v8  ;;  %v1769_v8 = vld [vmem:[#allocation2 + $0x188] sm:$0xff] }
 0x2c8   : >> { %v2494_v16 = vadd.f32 %v2493_v12, %v10526_v2  ;;  %v4448_v12 = vadd.f32 1.0, %v4320_v15 }
 0x2c9   : >> { %4982 = vrot.lane.b32.xlu0 %v4508_v18, %s7199_s28  ;;  %v2346_v33 = vpop.f32.mrf.mxu0 }
 0x2ca   : >> { %v2715_v56 = vmax.f32 %v2494_v16, 0.0  ;;  %v2347_v25 = vadd.f32 %v2346_v33, %v10526_v2 }
 0x2cb   : >> { %v8510_v45 = vpop.f32.mrf.mxu1  ;;  %v2970_v9 = vld [vmem:[#allocation3 + $0x280] sm:$0xff] }
 0x2cc   : >> { %2843 = vst.msk [vmem:[#allocation3 + $0x288] sm:$0xff] %vm555_vm2, %v2715_v56  ;;  %v2666_v29 = vmax.f32 %v2347_v25, 0.0  ;;  %6163 = vmatmul.msk.f32.gmra.mxu0 %vm555_vm2, %v1768_v10 }
 0x2cd   : >> { %6213 = vmatmul.msk.f32.gmra.mxu2 %vm555_vm2, %v1818_v13  ;;  %6323 = vmatmul.msk.f32.gmra.mxu3 %vm555_vm2, %v2970_v9  ;;  %v2921_v7 = vld [vmem:[#allocation3 + $0xf8] sm:$0xff]  ;;  %v8532_v13 = vadd.f32 %v8382_v11, %v8266_v4 }
 0x2ce   : >> { %2794 = vst.msk [vmem:[#allocation3 + $0x100] sm:$0xff] %vm555_vm2, %v2666_v29  ;;  %6274 = vmatmul.msk.f32.gmra.mxu1 %vm555_vm2, %v2921_v7  ;;  %v1819_v9 = vld [vmem:[#allocation2 + $0x318] sm:$0xff] }
 0x2cf   : >> { %v2496_v0 = vpop.f32.mrf.mxu2  ;;  %vm3809_vm10 = vcmp.gt.f32.partialorder %v8532_v13, 0.0 }
 0x2d0   : >> { %v2497_v18 = vadd.f32 %v2496_v0, %v10526_v2 }
 0x2d1   : >> { %4598 = vrot.lane.b32.xlu0 %v4448_v12, %s7199_s28  ;;  %v2349_v25 = vpop.f32.mrf.mxu0 }
 0x2d2   : >> { %v2716_v16 = vmax.f32 %v2497_v18, 0.0  ;;  %v2350_v33 = vadd.f32 %v2349_v25, %v10526_v2 }
 0x2d3   : >> { %v8522_v14 = vpop.f32.mrf.mxu1  ;;  %v2971_v56 = vld [vmem:[#allocation3 + $0x288] sm:$0xff] }
 0x2d4   : >> { %2844 = vst.msk [vmem:[#allocation3 + $0x290] sm:$0xff] %vm555_vm2, %v2716_v16  ;;  %v2667_v10 = vmax.f32 %v2350_v33, 0.0  ;;  %6164 = vmatmul.msk.f32.gmra.mxu0 %vm555_vm2, %v1769_v8  ;;  %v3942_v33 = vmul.f32 1.442695, %v8532_v13 }
 0x2d5   : >> { %6214 = vmatmul.msk.f32.gmra.mxu2 %vm555_vm2, %v1819_v9  ;;  %6324 = vmatmul.msk.f32.gmra.mxu3 %vm555_vm2, %v2971_v56  ;;  %v2922_v29 = vld [vmem:[#allocation3 + $0x100] sm:$0xff] }
 0x2d6   : >> { %2795 = vst.msk [vmem:[#allocation3 + $0x108] sm:$0xff] %vm555_vm2, %v2667_v10  ;;  %6275 = vmatmul.msk.f32.gmra.mxu1 %vm555_vm2, %v2922_v29  ;;  %v1770_v10 = vld [vmem:[#allocation2 + $0x190] sm:$0xff]  ;;  %v1820_v29 = vld [vmem:[#allocation2 + $0x320] sm:$0xff] }
 0x2d7   : >> { %v2499_v15 = vpop.f32.mrf.mxu2 }
 0x2d8   : >> { %v2500_v7 = vadd.f32 %v2499_v15, %v10526_v2  ;;  %v3615_v0 = vpop.f32.mrf.mxu3 }
 0x2d9   : >> { %v3616_v12 = vadd.f32 %v3615_v0, %v8266_v4  ;;  %v2352_v18 = vpop.f32.mrf.mxu0 }
 0x2da   : >> { %v2717_v25 = vmax.f32 %v2500_v7, 0.0  ;;  %v2353_v16 = vadd.f32 %v2352_v18, %v10526_v2  ;;  %v8548_v7 = vadd.f32 %v8399_v38, %v8266_v4 }
 0x2db   : >> { %v4062_v8 = vmul.f32 1.442695, %v3616_v12  ;;  %v8538_v56 = vpop.f32.mrf.mxu1  ;;  %v2972_v9 = vld [vmem:[#allocation3 + $0x290] sm:$0xff]  ;;  %vm3869_vm9 = vcmp.gt.f32.partialorder %v3616_v12, 0.0 }
 0x2dc   : >> { %2845 = vst.msk [vmem:[#allocation3 + $0x298] sm:$0xff] %vm555_vm2, %v2717_v25  ;;  %v2668_v11 = vmax.f32 %v2353_v16, 0.0  ;;  %6165 = vmatmul.msk.f32.gmra.mxu0 %vm555_vm2, %v1770_v10  ;;  %vm3810_vm12 = vcmp.gt.f32.partialorder %v8548_v7, 0.0 }
 0x2dd   : >> { %6755 = vpow2.f32 %v4062_v8  ;;  %6215 = vmatmul.msk.f32.gmra.mxu2 %vm555_vm2, %v1820_v29  ;;  %6325 = vmatmul.msk.f32.gmra.mxu3 %vm555_vm2, %v2972_v9  ;;  %v2923_v15 = vld [vmem:[#allocation3 + $0x108] sm:$0xff] }
 0x2de   : >> { %2796 = vst.msk [vmem:[#allocation3 + $0x110] sm:$0xff] %vm555_vm2, %v2668_v11  ;;  %6276 = vmatmul.msk.f32.gmra.mxu1 %vm555_vm2, %v2923_v15  ;;  %6757 = vpow2.f32 %v3942_v33  ;;  %v3944_v11 = vmul.f32 1.442695, %v8548_v7  ;;  %v1771_v33 = vld [vmem:[#allocation2 + $0x198] sm:$0xff] }
 0x2df   : >> { %v2502_v0 = vpop.f32.mrf.mxu2 }
 0x2e0   : >> { %v2503_v18 = vadd.f32 %v2502_v0, %v10526_v2  ;;  %v3618_v25 = vpop.f32.mrf.mxu3  ;;  %v1821_v0 = vld [vmem:[#allocation2 + $0x328] sm:$0xff] }
 0x2e1   : >> { %v3619_v16 = vadd.f32 %v3618_v25, %v8266_v4  ;;  %v2355_v8 = vpop.f32.mrf.mxu0 }
 0x2e2   : >> { %v2718_v10 = vmax.f32 %v2503_v18, 0.0  ;;  %v2356_v9 = vadd.f32 %v2355_v8, %v10526_v2 }
 0x2e3   : >> { %v6756_v29 = vpop.eup %6755  ;;  %v4064_v52 = vmul.f32 1.442695, %v3619_v16  ;;  %v8554_v15 = vpop.f32.mrf.mxu1  ;;  %v2973_v48 = vld [vmem:[#allocation3 + $0x298] sm:$0xff]  ;;  %vm3870_vm11 = vcmp.gt.f32.partialorder %v3619_v16, 0.0 }
 0x2e4   : >> { %v6436_v38 = vadd.f32 -1.0, %v6756_v29  ;;  %2846 = vst.msk [vmem:[#allocation3 + $0x2a0] sm:$0xff] %vm555_vm2, %v2718_v10  ;;  %v2669_v24 = vmax.f32 %v2356_v9, 0.0  ;;  %6166 = vmatmul.msk.f32.gmra.mxu0 %vm555_vm2, %v1771_v33  ;;  %v6758_v25 = vpop.eup %6757  ;;  %v8564_v10 = vadd.f32 %v8415_v5, %v8266_v4 }
 0x2e5   : >> { %6759 = vpow2.f32 %v4064_v52  ;;  %6216 = vmatmul.msk.f32.gmra.mxu2 %vm555_vm2, %v1821_v0  ;;  %6326 = vmatmul.msk.f32.gmra.mxu3 %vm555_vm2, %v2973_v48  ;;  %v2924_v18 = vld [vmem:[#allocation3 + $0x110] sm:$0xff]  ;;  %v6376_v29 = vadd.f32 -1.0, %v6758_v25 }
 0x2e6   : >> { %2797 = vst.msk [vmem:[#allocation3 + $0x118] sm:$0xff] %vm555_vm2, %v2669_v24  ;;  %6277 = vmatmul.msk.f32.gmra.mxu1 %vm555_vm2, %v2924_v18  ;;  %v4381_v8 = vsel %vm3869_vm9, %v3616_v12, %v6436_v38  ;;  %6761 = vpow2.f32 %v3944_v11  ;;  %v1772_v12 = vld [vmem:[#allocation2 + $0x1a0] sm:$0xff]  ;;  %v3946_v5 = vmul.f32 1.442695, %v8564_v10  ;;  %vm3811_vm14 = vcmp.gt.f32.partialorder %v8564_v10, 0.0 }
 0x2e7   : >> { %v4509_v9 = vadd.f32 1.0, %v4381_v8  ;;  %v4321_v28 = vsel %vm3809_vm10, %v8532_v13, %v6376_v29 }
 0x2e8   : >> { %v2505_v33 = vpop.f32.mrf.mxu2  ;;  %v3621_v32 = vpop.f32.mrf.mxu3  ;;  %v4449_v29 = vadd.f32 1.0, %v4321_v28 }
 0x2e9   : >> { %v2506_v52 = vadd.f32 %v2505_v33, %v10526_v2  ;;  %v8568_v0 = vadd.f32 %v3621_v32, %v8266_v4  ;;  %4984 = vrot.lane.b32.xlu1 %v4509_v9, %s7199_s28  ;;  %v2358_v24 = vpop.f32.mrf.mxu0  ;;  %v1822_v9 = vld [vmem:[#allocation2 + $0x330] sm:$0xff] }
 0x2ea   : >> { %v2359_v48 = vadd.f32 %v2358_v24, %v10526_v2 }
 0x2eb   : >> { %v6760_v11 = vpop.eup %6759  ;;  %v2719_v38 = vmax.f32 %v2506_v52, 0.0  ;;  %v4066_v25 = vmul.f32 1.442695, %v8568_v0  ;;  %v8575_v18 = vpop.f32.mrf.mxu1  ;;  %v2974_v8 = vld [vmem:[#allocation3 + $0x2a0] sm:$0xff]  ;;  %vm3871_vm13 = vcmp.gt.f32.partialorder %v8568_v0, 0.0 }
 0x2ec   : >> { %v6437_v33 = vadd.f32 -1.0, %v6760_v11  ;;  %v2670_v32 = vmax.f32 %v2359_v48, 0.0  ;;  %6167 = vmatmul.msk.f32.gmra.mxu0 %vm555_vm2, %v1772_v12  ;;  %v6762_v44 = vpop.eup %6761  ;;  %v8586_v48 = vadd.f32 %v8431_v19, %v8266_v4 }
 0x2ed   : >> { %2847 = vst.msk [vmem:[#allocation3 + $0x2a8] sm:$0xff] %vm555_vm2, %v2719_v38  ;;  %6763 = vpow2.f32 %v4066_v25  ;;  %6217 = vmatmul.msk.f32.gmra.mxu2 %vm555_vm2, %v1822_v9  ;;  %6327 = vmatmul.msk.f32.gmra.mxu3 %vm555_vm2, %v2974_v8  ;;  %v2925_v52 = vld [vmem:[#allocation3 + $0x118] sm:$0xff]  ;;  %v6377_v12 = vadd.f32 -1.0, %v6762_v44 }
 0x2ee   : >> { %2798 = vst.msk [vmem:[#allocation3 + $0x120] sm:$0xff] %vm555_vm2, %v2670_v32  ;;  %6278 = vmatmul.msk.f32.gmra.mxu1 %vm555_vm2, %v2925_v52  ;;  %v4382_v24 = vsel %vm3870_vm11, %v3619_v16, %v6437_v33  ;;  %6765 = vpow2.f32 %v3946_v5  ;;  %v1773_v33 = vld [vmem:[#allocation2 + $0x1a8] sm:$0xff]  ;;  %v3948_v28 = vmul.f32 1.442695, %v8586_v48  ;;  %vm3812_vm0 = vcmp.gt.f32.partialorder %v8586_v48, 0.0 }
 0x2ef   : >> { %v4510_v13 = vadd.f32 1.0, %v4382_v24 }
 0x2f0   : >> { %v2508_v11 = vpop.f32.mrf.mxu2  ;;  %v3624_v38 = vpop.f32.mrf.mxu3 }
 0x2f1   : >> { %v2509_v25 = vadd.f32 %v2508_v11, %v10526_v2  ;;  %v8590_v8 = vadd.f32 %v3624_v38, %v8266_v4  ;;  %4986 = vrot.lane.b32.xlu2 %v4510_v13, %s7199_s28  ;;  %4600 = vrot.lane.b32.xlu1 %v4449_v29, %s7199_s28  ;;  %v2361_v16 = vpop.f32.mrf.mxu0  ;;  %v1823_v13 = vld [vmem:[#allocation2 + $0x338] sm:$0xff]  ;;  %v4322_v11 = vsel %vm3810_vm12, %v8548_v7, %v6377_v12 }
 0x2f2   : >> { %v2362_v5 = vadd.f32 %v2361_v16, %v10526_v2  ;;  %v8611_v7 = vadd.f32 %v8442_v17, %v8266_v4  ;;  %v4450_v12 = vadd.f32 1.0, %v4322_v11 }
 0x2f3   : >> { %v6764_v19 = vpop.eup %6763  ;;  %v2720_v44 = vmax.f32 %v2509_v25, 0.0  ;;  %v4068_v32 = vmul.f32 1.442695, %v8590_v8  ;;  %v8598_v9 = vpop.f32.mrf.mxu1  ;;  %vm3872_vm15 = vcmp.gt.f32.partialorder %v8590_v8, 0.0 }
 0x2f4   : >> { %v6438_v52 = vadd.f32 -1.0, %v6764_v19  ;;  %v2671_v24 = vmax.f32 %v2362_v5, 0.0  ;;  %6168 = vmatmul.msk.f32.gmra.mxu0 %vm555_vm2, %v1773_v33  ;;  %v2975_v29 = vld [vmem:[#allocation3 + $0x2a8] sm:$0xff]  ;;  %v6766_v38 = vpop.eup %6765  ;;  %vm3813_vm3 = vcmp.gt.f32.partialorder %v8611_v7, 0.0 }
 0x2f5   : >> { %2848 = vst.msk [vmem:[#allocation3 + $0x2b0] sm:$0xff] %vm555_vm2, %v2720_v44  ;;  %6767 = vpow2.f32 %v4068_v32  ;;  %6218 = vmatmul.msk.f32.gmra.mxu2 %vm555_vm2, %v1823_v13  ;;  %6328 = vmatmul.msk.f32.gmra.mxu3 %vm555_vm2, %v2975_v29  ;;  %v2926_v25 = vld [vmem:[#allocation3 + $0x120] sm:$0xff]  ;;  %v6378_v33 = vadd.f32 -1.0, %v6766_v38 }
 0x2f6   : >> { %2799 = vst.msk [vmem:[#allocation3 + $0x128] sm:$0xff] %vm555_vm2, %v2671_v24  ;;  %6279 = vmatmul.msk.f32.gmra.mxu1 %vm555_vm2, %v2926_v25  ;;  %v4383_v16 = vsel %vm3871_vm13, %v8568_v0, %v6438_v52  ;;  %6769 = vpow2.f32 %v3948_v28  ;;  %v1774_v52 = vld [vmem:[#allocation2 + $0x1b0] sm:$0xff]  ;;  %v3950_v24 = vmul.f32 1.442695, %v8611_v7 }
 0x2f7   : >> { %v4511_v5 = vadd.f32 1.0, %v4383_v16 }
 0x2f8   : >> { %v2511_v19 = vpop.f32.mrf.mxu2  ;;  %v3627_v44 = vpop.f32.mrf.mxu3 }
 0x2f9   : >> { %v2512_v32 = vadd.f32 %v2511_v19, %v10526_v2  ;;  %v8615_v13 = vadd.f32 %v3627_v44, %v8266_v4  ;;  %4602 = vrot.lane.b32.xlu2 %v4450_v12, %s7199_s28  ;;  %4988 = vrot.lane.b32.xlu0 %v4511_v5, %s7199_s28  ;;  %v2364_v0 = vpop.f32.mrf.mxu0  ;;  %v1824_v12 = vld [vmem:[#allocation2 + $0x340] sm:$0xff]  ;;  %v4323_v19 = vsel %vm3811_vm14, %v8564_v10, %v6378_v33 }
 0x2fa   : >> { %v2365_v28 = vadd.f32 %v2364_v0, %v10526_v2  ;;  %v8636_v10 = vadd.f32 %v8452_v3, %v8266_v4 }
 0x2fb   : >> { %v6768_v17 = vpop.eup %6767  ;;  %v2721_v29 = vmax.f32 %v2512_v32, 0.0  ;;  %v4070_v11 = vmul.f32 1.442695, %v8615_v13  ;;  %v8623_v38 = vpop.f32.mrf.mxu1  ;;  %vm3873_vm1 = vcmp.gt.f32.partialorder %v8615_v13, 0.0 }
 0x2fc   : >> { %v6439_v25 = vadd.f32 -1.0, %v6768_v17  ;;  %v2672_v16 = vmax.f32 %v2365_v28, 0.0  ;;  %6169 = vmatmul.msk.f32.gmra.mxu0 %vm555_vm2, %v1774_v52  ;;  %v2976_v5 = vld [vmem:[#allocation3 + $0x2b0] sm:$0xff]  ;;  %v6770_v44 = vpop.eup %6769  ;;  %v4451_v28 = vadd.f32 1.0, %v4323_v19  ;;  %vm3814_vm5 = vcmp.gt.f32.partialorder %v8636_v10, 0.0 }
 0x2fd   : >> { %2849 = vst.msk [vmem:[#allocation3 + $0x2b8] sm:$0xff] %vm555_vm2, %v2721_v29  ;;  %6771 = vpow2.f32 %v4070_v11  ;;  %6219 = vmatmul.msk.f32.gmra.mxu2 %vm555_vm2, %v1824_v12  ;;  %6329 = vmatmul.msk.f32.gmra.mxu3 %vm555_vm2, %v2976_v5  ;;  %v2927_v32 = vld [vmem:[#allocation3 + $0x128] sm:$0xff]  ;;  %v6379_v52 = vadd.f32 -1.0, %v6770_v44 }
 0x2fe   : >> { %2800 = vst.msk [vmem:[#allocation3 + $0x130] sm:$0xff] %vm555_vm2, %v2672_v16  ;;  %6280 = vmatmul.msk.f32.gmra.mxu1 %vm555_vm2, %v2927_v32  ;;  %v4384_v0 = vsel %vm3872_vm15, %v8590_v8, %v6439_v25  ;;  %6773 = vpow2.f32 %v3950_v24  ;;  %v1775_v25 = vld [vmem:[#allocation2 + $0x1b8] sm:$0xff]  ;;  %v3952_v16 = vmul.f32 1.442695, %v8636_v10 }
 0x2ff   : >> { %v4512_v33 = vadd.f32 1.0, %v4384_v0 }
 0x300   : >> { %v2514_v17 = vpop.f32.mrf.mxu2  ;;  %v3630_v29 = vpop.f32.mrf.mxu3 }
 0x301   : >> { %v2515_v11 = vadd.f32 %v2514_v17, %v10526_v2  ;;  %v8640_v12 = vadd.f32 %v3630_v29, %v8266_v4  ;;  %4990 = vrot.lane.b32.xlu1 %v4512_v33, %s7199_s28  ;;  %4604 = vrot.lane.b32.xlu0 %v4451_v28, %s7199_s28  ;;  %v2367_v8 = vpop.f32.mrf.mxu0  ;;  %v1825_v33 = vld [vmem:[#allocation2 + $0x348] sm:$0xff]  ;;  %v4324_v17 = vsel %vm3812_vm0, %v8586_v48, %v6379_v52 }
 0x302   : >> { %v2368_v24 = vadd.f32 %v2367_v8, %v10526_v2  ;;  %v8661_v48 = vadd.f32 %v8462_v21, %v8266_v4  ;;  %v4452_v52 = vadd.f32 1.0, %v4324_v17 }
 0x303   : >> { %v6772_v3 = vpop.eup %6771  ;;  %v2722_v5 = vmax.f32 %v2515_v11, 0.0  ;;  %v4072_v19 = vmul.f32 1.442695, %v8640_v12  ;;  %v8648_v44 = vpop.f32.mrf.mxu1  ;;  %vm3874_vm4 = vcmp.gt.f32.partialorder %v8640_v12, 0.0 }
 0x304   : >> { %v6440_v32 = vadd.f32 -1.0, %v6772_v3  ;;  %v2673_v0 = vmax.f32 %v2368_v24, 0.0  ;;  %6170 = vmatmul.msk.f32.gmra.mxu0 %vm555_vm2, %v1775_v25  ;;  %v2977_v28 = vld [vmem:[#allocation3 + $0x2b8] sm:$0xff]  ;;  %v6774_v29 = vpop.eup %6773  ;;  %vm3815_vm7 = vcmp.gt.f32.partialorder %v8661_v48, 0.0 }
 0x305   : >> { %2850 = vst.msk [vmem:[#allocation3 + $0x2c0] sm:$0xff] %vm555_vm2, %v2722_v5  ;;  %6775 = vpow2.f32 %v4072_v19  ;;  %6220 = vmatmul.msk.f32.gmra.mxu2 %vm555_vm2, %v1825_v33  ;;  %6330 = vmatmul.msk.f32.gmra.mxu3 %vm555_vm2, %v2977_v28  ;;  %v2928_v11 = vld [vmem:[#allocation3 + $0x130] sm:$0xff]  ;;  %v6380_v25 = vadd.f32 -1.0, %v6774_v29 }
 0x306   : >> { %2801 = vst.msk [vmem:[#allocation3 + $0x138] sm:$0xff] %vm555_vm2, %v2673_v0  ;;  %6281 = vmatmul.msk.f32.gmra.mxu1 %vm555_vm2, %v2928_v11  ;;  %v4385_v8 = vsel %vm3873_vm1, %v8615_v13, %v6440_v32  ;;  %6777 = vpow2.f32 %v3952_v16  ;;  %v1776_v32 = vld [vmem:[#allocation2 + $0x1c0] sm:$0xff]  ;;  %v3954_v0 = vmul.f32 1.442695, %v8661_v48 }
 0x307   : >> { %v4513_v24 = vadd.f32 1.0, %v4385_v8 }
 0x308   : >> { %v2517_v3 = vpop.f32.mrf.mxu2  ;;  %v3633_v5 = vpop.f32.mrf.mxu3 }
 0x309   : >> { %v2518_v19 = vadd.f32 %v2517_v3, %v10526_v2  ;;  %v8665_v33 = vadd.f32 %v3633_v5, %v8266_v4  ;;  %4606 = vrot.lane.b32.xlu1 %v4452_v52, %s7199_s28  ;;  %4992 = vrot.lane.b32.xlu2 %v4513_v24, %s7199_s28  ;;  %v2370_v13 = vpop.f32.mrf.mxu0  ;;  %v1826_v52 = vld [vmem:[#allocation2 + $0x350] sm:$0xff]  ;;  %v4325_v3 = vsel %vm3813_vm3, %v8611_v7, %v6380_v25 }
 0x30a   : >> { %v2371_v16 = vadd.f32 %v2370_v13, %v10526_v2  ;;  %v8686_v7 = vadd.f32 %v8472_v1, %v8266_v4 }
 0x30b   : >> { %v6776_v21 = vpop.eup %6775  ;;  %v2723_v28 = vmax.f32 %v2518_v19, 0.0  ;;  %v4074_v17 = vmul.f32 1.442695, %v8665_v33  ;;  %v8673_v29 = vpop.f32.mrf.mxu1  ;;  %vm3875_vm6 = vcmp.gt.f32.partialorder %v8665_v33, 0.0 }
 0x30c   : >> { %v6441_v11 = vadd.f32 -1.0, %v6776_v21  ;;  %v2674_v8 = vmax.f32 %v2371_v16, 0.0  ;;  %6171 = vmatmul.msk.f32.gmra.mxu0 %vm555_vm2, %v1776_v32  ;;  %v2978_v24 = vld [vmem:[#allocation3 + $0x2c0] sm:$0xff]  ;;  %v6778_v5 = vpop.eup %6777  ;;  %v4453_v16 = vadd.f32 1.0, %v4325_v3  ;;  %vm3816_vm9 = vcmp.gt.f32.partialorder %v8686_v7, 0.0 }
 0x30d   : >> { %2851 = vst.msk [vmem:[#allocation3 + $0x2c8] sm:$0xff] %vm555_vm2, %v2723_v28  ;;  %6779 = vpow2.f32 %v4074_v17  ;;  %6221 = vmatmul.msk.f32.gmra.mxu2 %vm555_vm2, %v1826_v52  ;;  %6331 = vmatmul.msk.f32.gmra.mxu3 %vm555_vm2, %v2978_v24  ;;  %v2929_v19 = vld [vmem:[#allocation3 + $0x138] sm:$0xff]  ;;  %v6381_v32 = vadd.f32 -1.0, %v6778_v5 }
 0x30e   : >> { %2802 = vst.msk [vmem:[#allocation3 + $0x140] sm:$0xff] %vm555_vm2, %v2674_v8  ;;  %6282 = vmatmul.msk.f32.gmra.mxu1 %vm555_vm2, %v2929_v19  ;;  %v4386_v13 = vsel %vm3874_vm4, %v8640_v12, %v6441_v11  ;;  %6781 = vpow2.f32 %v3954_v0  ;;  %v1777_v11 = vld [vmem:[#allocation2 + $0x1c8] sm:$0xff]  ;;  %v3956_v8 = vmul.f32 1.442695, %v8686_v7 }
 0x30f   : >> { %v4514_v25 = vadd.f32 1.0, %v4386_v13  ;;  %v4326_v5 = vsel %vm3814_vm5, %v8636_v10, %v6381_v32 }
 0x310   : >> { %v2520_v21 = vpop.f32.mrf.mxu2  ;;  %v3636_v28 = vpop.f32.mrf.mxu3  ;;  %v4454_v32 = vadd.f32 1.0, %v4326_v5 }
 0x311   : >> { %v2521_v17 = vadd.f32 %v2520_v21, %v10526_v2  ;;  %v8690_v52 = vadd.f32 %v3636_v28, %v8266_v4  ;;  %4994 = vrot.lane.b32.xlu0 %v4514_v25, %s7199_s28  ;;  %4608 = vrot.lane.b32.xlu2 %v4453_v16, %s7199_s28  ;;  %v2373_v12 = vpop.f32.mrf.mxu0  ;;  %v1827_v25 = vld [vmem:[#allocation2 + $0x358] sm:$0xff] }
 0x312   : >> { %v2374_v0 = vadd.f32 %v2373_v12, %v10526_v2  ;;  %v8711_v12 = vadd.f32 %v8488_v6, %v8266_v4 }
 0x313   : >> { %v6780_v1 = vpop.eup %6779  ;;  %v2724_v24 = vmax.f32 %v2521_v17, 0.0  ;;  %v4076_v3 = vmul.f32 1.442695, %v8690_v52  ;;  %v8702_v28 = vpop.f32.mrf.mxu1  ;;  %vm3876_vm8 = vcmp.gt.f32.partialorder %v8690_v52, 0.0 }
 0x314   : >> { %v6442_v19 = vadd.f32 -1.0, %v6780_v1  ;;  %v2675_v13 = vmax.f32 %v2374_v0, 0.0  ;;  %6172 = vmatmul.msk.f32.gmra.mxu0 %vm555_vm2, %v1777_v11  ;;  %v2979_v16 = vld [vmem:[#allocation3 + $0x2c8] sm:$0xff]  ;;  %v6782_v21 = vpop.eup %6781  ;;  %v3958_v6 = vmul.f32 1.442695, %v8711_v12  ;;  %vm3817_vm11 = vcmp.gt.f32.partialorder %v8711_v12, 0.0 }
 0x315   : >> { %2852 = vst.msk [vmem:[#allocation3 + $0x2d0] sm:$0xff] %vm555_vm2, %v2724_v24  ;;  %6783 = vpow2.f32 %v4076_v3  ;;  %6222 = vmatmul.msk.f32.gmra.mxu2 %vm555_vm2, %v1827_v25  ;;  %6332 = vmatmul.msk.f32.gmra.mxu3 %vm555_vm2, %v2979_v16  ;;  %v2930_v17 = vld [vmem:[#allocation3 + $0x140] sm:$0xff]  ;;  %v6382_v11 = vadd.f32 -1.0, %v6782_v21 }
 0x316   : >> { %2803 = vst.msk [vmem:[#allocation3 + $0x148] sm:$0xff] %vm555_vm2, %v2675_v13  ;;  %6283 = vmatmul.msk.f32.gmra.mxu1 %vm555_vm2, %v2930_v17  ;;  %v4387_v10 = vsel %vm3875_vm6, %v8665_v33, %v6442_v19  ;;  %6785 = vpow2.f32 %v3956_v8  ;;  %v1778_v8 = vld [vmem:[#allocation2 + $0x1d0] sm:$0xff] }
 0x317   : >> { %v4515_v0 = vadd.f32 1.0, %v4387_v10  ;;  %v4327_v21 = vsel %vm3815_vm7, %v8661_v48, %v6382_v11 }
 0x318   : >> { %v2523_v1 = vpop.f32.mrf.mxu2  ;;  %v3639_v24 = vpop.f32.mrf.mxu3  ;;  %v4455_v11 = vadd.f32 1.0, %v4327_v21  ;;  %v1779_v21 = vld [vmem:[#allocation2 + $0x1d8] sm:$0xff] }
 0x319   : >> { %v2524_v3 = vadd.f32 %v2523_v1, %v10526_v2  ;;  %v3640_v25 = vadd.f32 %v3639_v24, %v8266_v4  ;;  %4996 = vrot.lane.b32.xlu1 %v4515_v0, %s7199_s28  ;;  %4610 = vrot.lane.b32.xlu0 %v4454_v32, %s7199_s28  ;;  %v2376_v13 = vpop.f32.mrf.mxu0  ;;  %v1828_v0 = vld [vmem:[#allocation2 + $0x360] sm:$0xff] }
 0x31a   : >> { %v2377_v33 = vadd.f32 %v2376_v13, %v10526_v2 }
 0x31b   : >> { %v6784_v5 = vpop.eup %6783  ;;  %v2725_v19 = vmax.f32 %v2524_v3, 0.0  ;;  %v4078_v16 = vmul.f32 1.442695, %v3640_v25  ;;  %v8731_v3 = vadd.f32 %v8498_v60, %v8266_v4  ;;  %v8733_v13 = vpop.f32.mrf.mxu1  ;;  %vm3877_vm10 = vcmp.gt.f32.partialorder %v3640_v25, 0.0 }
 0x31c   : >> { %v6443_v17 = vadd.f32 -1.0, %v6784_v5  ;;  %v2676_v10 = vmax.f32 %v2377_v33, 0.0  ;;  %6173 = vmatmul.msk.f32.gmra.mxu0 %vm555_vm2, %v1778_v8  ;;  %v2980_v1 = vld [vmem:[#allocation3 + $0x2d0] sm:$0xff]  ;;  %v6786_v32 = vpop.eup %6785 }
 0x31d   : >> { %2853 = vst.msk [vmem:[#allocation3 + $0x2d8] sm:$0xff] %vm555_vm2, %v2725_v19  ;;  %6787 = vpow2.f32 %v4078_v16  ;;  %6223 = vmatmul.msk.f32.gmra.mxu2 %vm555_vm2, %v1828_v0  ;;  %6333 = vmatmul.msk.f32.gmra.mxu3 %vm555_vm2, %v2980_v1  ;;  %v2931_v24 = vld [vmem:[#allocation3 + $0x148] sm:$0xff]  ;;  %v6383_v8 = vadd.f32 -1.0, %v6786_v32  ;;  %vm3818_vm13 = vcmp.gt.f32.partialorder %v8731_v3, 0.0 }
 0x31e   : >> { %2804 = vst.msk [vmem:[#allocation3 + $0x150] sm:$0xff] %vm555_vm2, %v2676_v10  ;;  %6284 = vmatmul.msk.f32.gmra.mxu1 %vm555_vm2, %v2931_v24  ;;  %v4388_v48 = vsel %vm3876_vm8, %v8690_v52, %v6443_v17  ;;  %6789 = vpow2.f32 %v3958_v6  ;;  %v3960_v17 = vmul.f32 1.442695, %v8731_v3 }
 0x31f   : >> { %v4516_v33 = vadd.f32 1.0, %v4388_v48  ;;  %v4328_v32 = vsel %vm3816_vm9, %v8686_v7, %v6383_v8  ;;  %v8751_v8 = vadd.f32 %v8510_v45, %v8266_v4 }
 0x320   : >> { %v2526_v5 = vpop.f32.mrf.mxu2  ;;  %v3642_v19 = vpop.f32.mrf.mxu3  ;;  %v4456_v7 = vadd.f32 1.0, %v4328_v32 }
 0x321   : >> { %v2527_v16 = vadd.f32 %v2526_v5, %v10526_v2  ;;  %v3643_v10 = vadd.f32 %v3642_v19, %v8266_v4  ;;  %4612 = vrot.lane.b32.xlu1 %v4455_v11, %s7199_s28  ;;  %4998 = vrot.lane.b32.xlu2 %v4516_v33, %s7199_s28  ;;  %v2379_v52 = vpop.f32.mrf.mxu0  ;;  %v1829_v11 = vld [vmem:[#allocation2 + $0x368] sm:$0xff]  ;;  %vm3819_vm15 = vcmp.gt.f32.partialorder %v8751_v8, 0.0 }
 0x322   : >> { %v2380_v6 = vadd.f32 %v2379_v52, %v10526_v2 }
 0x323   : >> { %v6788_v60 = vpop.eup %6787  ;;  %v2726_v0 = vmax.f32 %v2527_v16, 0.0  ;;  %v4080_v1 = vmul.f32 1.442695, %v3643_v10  ;;  %vm3878_vm12 = vcmp.gt.f32.partialorder %v3643_v10, 0.0 }
 0x324   : >> { %v6444_v24 = vadd.f32 -1.0, %v6788_v60  ;;  %v2677_v48 = vmax.f32 %v2380_v6, 0.0  ;;  %6174 = vmatmul.msk.f32.gmra.mxu0 %vm555_vm2, %v1779_v21  ;;  %v2981_v5 = vld [vmem:[#allocation3 + $0x2d8] sm:$0xff]  ;;  %v6790_v33 = vpop.eup %6789 }
 0x325   : >> { %2854 = vst.msk [vmem:[#allocation3 + $0x2e0] sm:$0xff] %vm555_vm2, %v2726_v0  ;;  %6791 = vpow2.f32 %v4080_v1  ;;  %6224 = vmatmul.msk.f32.gmra.mxu2 %vm555_vm2, %v1829_v11  ;;  %6334 = vmatmul.msk.f32.gmra.mxu3 %vm555_vm2, %v2981_v5  ;;  %v2932_v19 = vld [vmem:[#allocation3 + $0x150] sm:$0xff]  ;;  %v6384_v6 = vadd.f32 -1.0, %v6790_v33  ;;  %v8753_v0 = vpop.f32.mrf.mxu1 }
 0x326   : >> { %v4389_v16 = vsel %vm3877_vm10, %v3640_v25, %v6444_v24  ;;  %2805 = vst.msk [vmem:[#allocation3 + $0x158] sm:$0xff] %vm555_vm2, %v2677_v48  ;;  %6285 = vmatmul.msk.f32.gmra.mxu1 %vm555_vm2, %v2932_v19  ;;  %6793 = vpow2.f32 %v3960_v17  ;;  %v1780_v24 = vld [vmem:[#allocation2 + $0x1e0] sm:$0xff]  ;;  %v3962_v48 = vmul.f32 1.442695, %v8751_v8 }
 0x327   : >> { %v4517_v52 = vadd.f32 1.0, %v4389_v16  ;;  %v4329_v33 = vsel %vm3817_vm11, %v8711_v12, %v6384_v6  ;;  %v8771_v6 = vadd.f32 %v8522_v14, %v8266_v4 }
 0x328   : >> { %v2529_v21 = vpop.f32.mrf.mxu2  ;;  %v3645_v60 = vpop.f32.mrf.mxu3  ;;  %v4457_v12 = vadd.f32 1.0, %v4329_v33 }
 0x329   : >> { %v2530_v1 = vadd.f32 %v2529_v21, %v10526_v2  ;;  %v3646_v25 = vadd.f32 %v3645_v60, %v8266_v4  ;;  %5000 = vrot.lane.b32.xlu0 %v4517_v52, %s7199_s28  ;;  %4614 = vrot.lane.b32.xlu2 %v4456_v7, %s7199_s28  ;;  %v2382_v32 = vpop.f32.mrf.mxu0  ;;  %v1830_v52 = vld [vmem:[#allocation2 + $0x370] sm:$0xff]  ;;  %v3964_v14 = vmul.f32 1.442695, %v8771_v6  ;;  %vm3820_vm1 = vcmp.gt.f32.partialorder %v8771_v6, 0.0 }
 0x32a   : >> { %v2383_v17 = vadd.f32 %v2382_v32, %v10526_v2 }
 0x32b   : >> { %v6792_v45 = vpop.eup %6791  ;;  %v2727_v11 = vmax.f32 %v2530_v1, 0.0  ;;  %v4082_v5 = vmul.f32 1.442695, %v3646_v25  ;;  %vm3879_vm14 = vcmp.gt.f32.partialorder %v3646_v25, 0.0 }
 0x32c   : >> { %v6445_v19 = vadd.f32 -1.0, %v6792_v45  ;;  %v2678_v16 = vmax.f32 %v2383_v17, 0.0  ;;  %6175 = vmatmul.msk.f32.gmra.mxu0 %vm555_vm2, %v1780_v24  ;;  %v2982_v21 = vld [vmem:[#allocation3 + $0x2e0] sm:$0xff]  ;;  %v6794_v7 = vpop.eup %6793 }
 0x32d   : >> { %2855 = vst.msk [vmem:[#allocation3 + $0x2e8] sm:$0xff] %vm555_vm2, %v2727_v11  ;;  %6795 = vpow2.f32 %v4082_v5  ;;  %6225 = vmatmul.msk.f32.gmra.mxu2 %vm555_vm2, %v1830_v52  ;;  %6335 = vmatmul.msk.f32.gmra.mxu3 %vm555_vm2, %v2982_v21  ;;  %v2933_v60 = vld [vmem:[#allocation3 + $0x158] sm:$0xff]  ;;  %v6385_v17 = vadd.f32 -1.0, %v6794_v7 }
 0x32e   : >> { %v4390_v1 = vsel %vm3878_vm12, %v3643_v10, %v6445_v19  ;;  %2806 = vst.msk [vmem:[#allocation3 + $0x160] sm:$0xff] %vm555_vm2, %v2678_v16  ;;  %6286 = vmatmul.msk.f32.gmra.mxu1 %vm555_vm2, %v2933_v60  ;;  %6797 = vpow2.f32 %v3962_v48  ;;  %v1781_v48 = vld [vmem:[#allocation2 + $0x1e8] sm:$0xff]  ;;  %v8780_v16 = vpop.f32.mrf.mxu1 }
 0x32f   : >> { %v4518_v32 = vadd.f32 1.0, %v4390_v1  ;;  %v4330_v7 = vsel %vm3818_vm13, %v8731_v3, %v6385_v17  ;;  %v8791_v17 = vadd.f32 %v8538_v56, %v8266_v4 }
 0x330   : >> { %v2532_v24 = vpop.f32.mrf.mxu2  ;;  %v3648_v45 = vpop.f32.mrf.mxu3  ;;  %v4458_v3 = vadd.f32 1.0, %v4330_v7 }
 0x331   : >> { %v2533_v11 = vadd.f32 %v2532_v24, %v10526_v2  ;;  %v3649_v5 = vadd.f32 %v3648_v45, %v8266_v4  ;;  %4616 = vrot.lane.b32.xlu0 %v4457_v12, %s7199_s28  ;;  %5002 = vrot.lane.b32.xlu1 %v4518_v32, %s7199_s28  ;;  %v2385_v10 = vpop.f32.mrf.mxu0  ;;  %v1831_v12 = vld [vmem:[#allocation2 + $0x378] sm:$0xff]  ;;  %v3966_v56 = vmul.f32 1.442695, %v8791_v17  ;;  %vm3821_vm4 = vcmp.gt.f32.partialorder %v8791_v17, 0.0 }
 0x332   : >> { %v2386_v33 = vadd.f32 %v2385_v10, %v10526_v2 }
 0x333   : >> { %v6796_v19 = vpop.eup %6795  ;;  %v2728_v52 = vmax.f32 %v2533_v11, 0.0  ;;  %v4084_v21 = vmul.f32 1.442695, %v3649_v5  ;;  %vm3880_vm0 = vcmp.gt.f32.partialorder %v3649_v5, 0.0 }
 0x334   : >> { %v6446_v60 = vadd.f32 -1.0, %v6796_v19  ;;  %v2679_v1 = vmax.f32 %v2386_v33, 0.0  ;;  %6176 = vmatmul.msk.f32.gmra.mxu0 %vm555_vm2, %v1781_v48  ;;  %v2983_v32 = vld [vmem:[#allocation3 + $0x2e8] sm:$0xff]  ;;  %v6798_v24 = vpop.eup %6797 }
 0x335   : >> { %2856 = vst.msk [vmem:[#allocation3 + $0x2f0] sm:$0xff] %vm555_vm2, %v2728_v52  ;;  %6799 = vpow2.f32 %v4084_v21  ;;  %6226 = vmatmul.msk.f32.gmra.mxu2 %vm555_vm2, %v1831_v12  ;;  %6336 = vmatmul.msk.f32.gmra.mxu3 %vm555_vm2, %v2983_v32  ;;  %v2934_v45 = vld [vmem:[#allocation3 + $0x160] sm:$0xff]  ;;  %v6386_v33 = vadd.f32 -1.0, %v6798_v24 }
 0x336   : >> { %v4391_v11 = vsel %vm3879_vm14, %v3646_v25, %v6446_v60  ;;  %2807 = vst.msk [vmem:[#allocation3 + $0x168] sm:$0xff] %vm555_vm2, %v2679_v1  ;;  %6287 = vmatmul.msk.f32.gmra.mxu1 %vm555_vm2, %v2934_v45  ;;  %6801 = vpow2.f32 %v3964_v14  ;;  %v1782_v14 = vld [vmem:[#allocation2 + $0x1f0] sm:$0xff] }
 0x337   : >> { %v4519_v10 = vadd.f32 1.0, %v4391_v11  ;;  %v4331_v32 = vsel %vm3819_vm15, %v8751_v8, %v6386_v33  ;;  %v1832_v11 = vld [vmem:[#allocation2 + $0x380] sm:$0xff]  ;;  %v8811_v33 = vadd.f32 %v8554_v15, %v8266_v4 }
 0x338   : >> { %v2535_v48 = vpop.f32.mrf.mxu2  ;;  %v3651_v19 = vpop.f32.mrf.mxu3  ;;  %v4459_v8 = vadd.f32 1.0, %v4331_v32 }
 0x339   : >> { %v2536_v52 = vadd.f32 %v2535_v48, %v10526_v2  ;;  %v3652_v21 = vadd.f32 %v3651_v19, %v8266_v4  ;;  %5004 = vrot.lane.b32.xlu2 %v4519_v10, %s7199_s28  ;;  %4618 = vrot.lane.b32.xlu1 %v4458_v3, %s7199_s28  ;;  %v2388_v25 = vpop.f32.mrf.mxu0  ;;  %v8802_v48 = vpop.f32.mrf.mxu1  ;;  %v3968_v15 = vmul.f32 1.442695, %v8811_v33  ;;  %vm3822_vm6 = vcmp.gt.f32.partialorder %v8811_v33, 0.0 }
 0x33a   : >> { %v2389_v7 = vadd.f32 %v2388_v25, %v10526_v2 }
 0x33b   : >> { %v6800_v60 = vpop.eup %6799  ;;  %v2729_v1 = vmax.f32 %v2536_v52, 0.0  ;;  %v4086_v12 = vmul.f32 1.442695, %v3652_v21  ;;  %vm3881_vm3 = vcmp.gt.f32.partialorder %v3652_v21, 0.0 }
 0x33c   : >> { %v6447_v24 = vadd.f32 -1.0, %v6800_v60  ;;  %v2680_v45 = vmax.f32 %v2389_v7, 0.0  ;;  %6177 = vmatmul.msk.f32.gmra.mxu0 %vm555_vm2, %v1782_v14  ;;  %v2984_v10 = vld [vmem:[#allocation3 + $0x2f0] sm:$0xff]  ;;  %v6802_v3 = vpop.eup %6801 }
 0x33d   : >> { %2857 = vst.msk [vmem:[#allocation3 + $0x2f8] sm:$0xff] %vm555_vm2, %v2729_v1  ;;  %6803 = vpow2.f32 %v4086_v12  ;;  %6227 = vmatmul.msk.f32.gmra.mxu2 %vm555_vm2, %v1832_v11  ;;  %6337 = vmatmul.msk.f32.gmra.mxu3 %vm555_vm2, %v2984_v10  ;;  %v2935_v19 = vld [vmem:[#allocation3 + $0x168] sm:$0xff]  ;;  %v6387_v7 = vadd.f32 -1.0, %v6802_v3 }
 0x33e   : >> { %v4392_v52 = vsel %vm3880_vm0, %v3649_v5, %v6447_v24  ;;  %2808 = vst.msk [vmem:[#allocation3 + $0x170] sm:$0xff] %vm555_vm2, %v2680_v45  ;;  %6288 = vmatmul.msk.f32.gmra.mxu1 %vm555_vm2, %v2935_v19  ;;  %6805 = vpow2.f32 %v3966_v56  ;;  %v1783_v56 = vld [vmem:[#allocation2 + $0x1f8] sm:$0xff] }
 0x33f   : >> { %v4520_v25 = vadd.f32 1.0, %v4392_v52  ;;  %v4332_v10 = vsel %vm3820_vm1, %v8771_v6, %v6387_v7  ;;  %v1833_v52 = vld [vmem:[#allocation2 + $0x388] sm:$0xff]  ;;  %v8829_v7 = vadd.f32 %v8575_v18, %v8266_v4 }
 0x340   : >> { %v2538_v14 = vpop.f32.mrf.mxu2  ;;  %v3654_v60 = vpop.f32.mrf.mxu3  ;;  %v4460_v6 = vadd.f32 1.0, %v4332_v10 }
 0x341   : >> { %v2539_v1 = vadd.f32 %v2538_v14, %v10526_v2  ;;  %v3655_v12 = vadd.f32 %v3654_v60, %v8266_v4  ;;  %4620 = vrot.lane.b32.xlu2 %v4459_v8, %s7199_s28  ;;  %5006 = vrot.lane.b32.xlu0 %v4520_v25, %s7199_s28  ;;  %v2391_v5 = vpop.f32.mrf.mxu0  ;;  %v3970_v18 = vmul.f32 1.442695, %v8829_v7  ;;  %vm3823_vm8 = vcmp.gt.f32.partialorder %v8829_v7, 0.0 }
 0x342   : >> { %v2392_v32 = vadd.f32 %v2391_v5, %v10526_v2  ;;  %v8831_v5 = vpop.f32.mrf.mxu1 }
 0x343   : >> { %v6804_v24 = vpop.eup %6803  ;;  %v2730_v45 = vmax.f32 %v2539_v1, 0.0  ;;  %v4088_v11 = vmul.f32 1.442695, %v3655_v12  ;;  %vm3882_vm5 = vcmp.gt.f32.partialorder %v3655_v12, 0.0 }
 0x344   : >> { %v6448_v3 = vadd.f32 -1.0, %v6804_v24  ;;  %v2681_v19 = vmax.f32 %v2392_v32, 0.0  ;;  %6178 = vmatmul.msk.f32.gmra.mxu0 %vm555_vm2, %v1783_v56  ;;  %v2985_v8 = vld [vmem:[#allocation3 + $0x2f8] sm:$0xff]  ;;  %v6806_v25 = vpop.eup %6805 }
 0x345   : >> { %2858 = vst.msk [vmem:[#allocation3 + $0x300] sm:$0xff] %vm555_vm2, %v2730_v45  ;;  %6807 = vpow2.f32 %v4088_v11  ;;  %6228 = vmatmul.msk.f32.gmra.mxu2 %vm555_vm2, %v1833_v52  ;;  %6338 = vmatmul.msk.f32.gmra.mxu3 %vm555_vm2, %v2985_v8  ;;  %v2936_v14 = vld [vmem:[#allocation3 + $0x170] sm:$0xff]  ;;  %v6388_v32 = vadd.f32 -1.0, %v6806_v25 }
 0x346   : >> { %v4393_v60 = vsel %vm3881_vm3, %v3652_v21, %v6448_v3  ;;  %2809 = vst.msk [vmem:[#allocation3 + $0x178] sm:$0xff] %vm555_vm2, %v2681_v19  ;;  %6289 = vmatmul.msk.f32.gmra.mxu1 %vm555_vm2, %v2936_v14  ;;  %6809 = vpow2.f32 %v3968_v15  ;;  %v1834_v14 = vld [vmem:[#allocation2 + $0x390] sm:$0xff] }
 0x347   : >> { %v4521_v1 = vadd.f32 1.0, %v4393_v60  ;;  %v4333_v52 = vsel %vm3821_vm4, %v8791_v17, %v6388_v32  ;;  %v8848_v32 = vadd.f32 %v8598_v9, %v8266_v4 }
 0x348   : >> { %v2541_v56 = vpop.f32.mrf.mxu2  ;;  %v3657_v24 = vpop.f32.mrf.mxu3  ;;  %v4461_v17 = vadd.f32 1.0, %v4333_v52 }
 0x349   : >> { %v2542_v45 = vadd.f32 %v2541_v56, %v10526_v2  ;;  %v3658_v21 = vadd.f32 %v3657_v24, %v8266_v4  ;;  %5008 = vrot.lane.b32.xlu1 %v4521_v1, %s7199_s28  ;;  %4688 = vrot.lane.b32.xlu0 %v4460_v6, %s7199_s28  ;;  %v2394_v11 = vpop.f32.mrf.mxu0  ;;  %v3972_v9 = vmul.f32 1.442695, %v8848_v32  ;;  %vm3824_vm10 = vcmp.gt.f32.partialorder %v8848_v32, 0.0 }
 0x34a   : >> { %v2395_v15 = vadd.f32 %v2394_v11, %v10526_v2 }
 0x34b   : >> { %v6808_v10 = vpop.eup %6807  ;;  %v2731_v3 = vmax.f32 %v2542_v45, 0.0  ;;  %v4090_v19 = vmul.f32 1.442695, %v3658_v21  ;;  %vm3883_vm7 = vcmp.gt.f32.partialorder %v3658_v21, 0.0 }
 0x34c   : >> { %v6449_v8 = vadd.f32 -1.0, %v6808_v10  ;;  %v2682_v25 = vmax.f32 %v2395_v15, 0.0  ;;  %v2986_v60 = vld [vmem:[#allocation3 + $0x300] sm:$0xff]  ;;  %v6810_v56 = vpop.eup %6809  ;;  %v8850_v10 = vpop.f32.mrf.mxu1 }
 0x34d   : >> { %2859 = vst.msk [vmem:[#allocation3 + $0x308] sm:$0xff] %vm555_vm2, %v2731_v3  ;;  %6811 = vpow2.f32 %v4090_v19  ;;  %6229 = vmatmul.msk.f32.gmra.mxu2 %vm555_vm2, %v1834_v14  ;;  %6339 = vmatmul.msk.f32.gmra.mxu3 %vm555_vm2, %v2986_v60  ;;  %v2937_v6 = vld [vmem:[#allocation3 + $0x178] sm:$0xff]  ;;  %v6389_v45 = vadd.f32 -1.0, %v6810_v56 }
 0x34e   : >> { %v4394_v1 = vsel %vm3882_vm5, %v3655_v12, %v6449_v8  ;;  %2810 = vst.msk [vmem:[#allocation3 + $0x180] sm:$0xff] %vm555_vm2, %v2682_v25  ;;  %6290 = vmatmul.msk.f32.gmra.mxu1 %vm555_vm2, %v2937_v6  ;;  %6813 = vpow2.f32 %v3970_v18  ;;  %v1835_v6 = vld [vmem:[#allocation2 + $0x398] sm:$0xff] }
 0x34f   : >> { %v4522_v24 = vadd.f32 1.0, %v4394_v1  ;;  %v4334_v14 = vsel %vm3822_vm6, %v8811_v33, %v6389_v45  ;;  %v8867_v45 = vadd.f32 %v8623_v38, %v8266_v4 }
 0x350   : >> { %v2544_v11 = vpop.f32.mrf.mxu2  ;;  %v3660_v15 = vpop.f32.mrf.mxu3  ;;  %v4462_v33 = vadd.f32 1.0, %v4334_v14 }
 0x351   : >> { %v2545_v3 = vadd.f32 %v2544_v11, %v10526_v2  ;;  %v3661_v12 = vadd.f32 %v3660_v15, %v8266_v4  ;;  %4690 = vrot.lane.b32.xlu1 %v4461_v17, %s7199_s28  ;;  %5010 = vrot.lane.b32.xlu2 %v4522_v24, %s7199_s28  ;;  %v2397_v19 = vpop.f32.mrf.mxu0  ;;  %v3974_v38 = vmul.f32 1.442695, %v8867_v45  ;;  %vm3825_vm12 = vcmp.gt.f32.partialorder %v8867_v45, 0.0 }
 0x352   : >> { %v2398_v18 = vadd.f32 %v2397_v19, %v10526_v2 }
 0x353   : >> { %v6812_v52 = vpop.eup %6811  ;;  %v2732_v8 = vmax.f32 %v2545_v3, 0.0  ;;  %v4092_v25 = vmul.f32 1.442695, %v3661_v12  ;;  %vm3884_vm9 = vcmp.gt.f32.partialorder %v3661_v12, 0.0 }
 0x354   : >> { %v6450_v60 = vadd.f32 -1.0, %v6812_v52  ;;  %v2683_v56 = vmax.f32 %v2398_v18, 0.0  ;;  %v2987_v1 = vld [vmem:[#allocation3 + $0x308] sm:$0xff]  ;;  %v6814_v11 = vpop.eup %6813  ;;  %v8869_v52 = vpop.permute.xlu2 %4590 }
 0x355   : >> { %2860 = vst.msk [vmem:[#allocation3 + $0x310] sm:$0xff] %vm555_vm2, %v2732_v8  ;;  %6815 = vpow2.f32 %v4092_v25  ;;  %6230 = vmatmul.msk.f32.gmra.mxu2 %vm555_vm2, %v1835_v6  ;;  %6340 = vmatmul.msk.f32.gmra.mxu3 %vm555_vm2, %v2987_v1  ;;  %v2938_v17 = vld [vmem:[#allocation3 + $0x180] sm:$0xff]  ;;  %v6390_v3 = vadd.f32 -1.0, %v6814_v11 }
 0x356   : >> { %v4395_v24 = vsel %vm3883_vm7, %v3658_v21, %v6450_v60  ;;  %2811 = vst.msk [vmem:[#allocation3 + $0x188] sm:$0xff] %vm555_vm2, %v2683_v56  ;;  %6291 = vmatmul.msk.f32.gmra.mxu1 %vm555_vm2, %v2938_v17  ;;  %6817 = vpow2.f32 %v3972_v9  ;;  %v8878_v60 = vpop.f32.mrf.mxu1 }
 0x357   : >> { %v4523_v15 = vadd.f32 1.0, %v4395_v24  ;;  %v4335_v1 = vsel %vm3823_vm8, %v8829_v7, %v6390_v3  ;;  %v1836_v24 = vld [vmem:[#allocation2 + $0x3a0] sm:$0xff]  ;;  %v8888_v3 = vadd.f32 %v8648_v44, %v8266_v4  ;;  %v8897_v44 = vpop.permute.xlu0 %4592 }
 0x358   : >> { %v2547_v19 = vpop.f32.mrf.mxu2  ;;  %v3663_v18 = vpop.f32.mrf.mxu3  ;;  %v4463_v7 = vadd.f32 1.0, %v4335_v1 }
 0x359   : >> { %v2548_v8 = vadd.f32 %v2547_v19, %v10526_v2  ;;  %v3664_v21 = vadd.f32 %v3663_v18, %v8266_v4  ;;  %5012 = vrot.lane.b32.xlu0 %v4523_v15, %s7199_s28  ;;  %4692 = vrot.lane.b32.xlu2 %v4462_v33, %s7199_s28  ;;  %v2400_v25 = vpop.f32.mrf.mxu0  ;;  %vm3826_vm14 = vcmp.gt.f32.partialorder %v8888_v3, 0.0 }
 0x35a   : >> { %v2401_v9 = vadd.f32 %v2400_v25, %v10526_v2 }
 0x35b   : >> { %v6816_v14 = vpop.eup %6815  ;;  %v2733_v56 = vmax.f32 %v2548_v8, 0.0  ;;  %v4094_v6 = vmul.f32 1.442695, %v3664_v21  ;;  %vm3885_vm11 = vcmp.gt.f32.partialorder %v3664_v21, 0.0 }
 0x35c   : >> { %v6451_v11 = vadd.f32 -1.0, %v6816_v14  ;;  %v2684_v17 = vmax.f32 %v2401_v9, 0.0  ;;  %v2988_v15 = vld [vmem:[#allocation3 + $0x310] sm:$0xff]  ;;  %v6818_v19 = vpop.eup %6817 }
 0x35d   : >> { %2861 = vst.msk [vmem:[#allocation3 + $0x318] sm:$0xff] %vm555_vm2, %v2733_v56  ;;  %6819 = vpow2.f32 %v4094_v6  ;;  %6231 = vmatmul.msk.f32.gmra.mxu2 %vm555_vm2, %v1836_v24  ;;  %6341 = vmatmul.msk.f32.gmra.mxu3 %vm555_vm2, %v2988_v15  ;;  %v2939_v33 = vld [vmem:[#allocation3 + $0x188] sm:$0xff]  ;;  %v6391_v25 = vadd.f32 -1.0, %v6818_v19  ;;  %v8890_v56 = vpop.permute.xlu2 %4596 }
 0x35e   : >> { %v4396_v18 = vsel %vm3884_vm9, %v3661_v12, %v6451_v11  ;;  %2812 = vst.msk [vmem:[#allocation3 + $0x190] sm:$0xff] %vm555_vm2, %v2684_v17  ;;  %6292 = vmatmul.msk.f32.gmra.mxu1 %vm555_vm2, %v2939_v33  ;;  %6821 = vpow2.f32 %v3974_v38  ;;  %v3976_v17 = vmul.f32 1.442695, %v8888_v3 }
 0x35f   : >> { %v4524_v8 = vadd.f32 1.0, %v4396_v18  ;;  %v4336_v19 = vsel %vm3824_vm10, %v8848_v32, %v6391_v25  ;;  %v8911_v25 = vadd.f32 %v8673_v29, %v8266_v4 }
 0x360   : >> { %v2550_v9 = vpop.f32.mrf.mxu2  ;;  %v3666_v14 = vpop.f32.mrf.mxu3  ;;  %v4464_v32 = vadd.f32 1.0, %v4336_v19 }
 0x361   : >> { %v2551_v6 = vadd.f32 %v2550_v9, %v10526_v2  ;;  %v3667_v12 = vadd.f32 %v3666_v14, %v8266_v4  ;;  %5080 = vrot.lane.b32.xlu1 %v4524_v8, %s7199_s28  ;;  %4694 = vrot.lane.b32.xlu0 %v4463_v7, %s7199_s28  ;;  %v2403_v1 = vpop.f32.mrf.mxu0  ;;  %v1837_v9 = vld [vmem:[#allocation2 + $0x3a8] sm:$0xff]  ;;  %v8902_v7 = vpop.f32.mrf.mxu1  ;;  %v3978_v29 = vmul.f32 1.442695, %v8911_v25  ;;  %vm3827_vm0 = vcmp.gt.f32.partialorder %v8911_v25, 0.0 }
 0x362   : >> { %v2404_v38 = vadd.f32 %v2403_v1, %v10526_v2 }
 0x363   : >> { %v6820_v11 = vpop.eup %6819  ;;  %v2734_v24 = vmax.f32 %v2551_v6, 0.0  ;;  %v4096_v15 = vmul.f32 1.442695, %v3667_v12  ;;  %vm3886_vm13 = vcmp.gt.f32.partialorder %v3667_v12, 0.0 }
 0x364   : >> { %v6452_v33 = vadd.f32 -1.0, %v6820_v11  ;;  %v2685_v18 = vmax.f32 %v2404_v38, 0.0  ;;  %v2989_v8 = vld [vmem:[#allocation3 + $0x318] sm:$0xff]  ;;  %v6822_v14 = vpop.eup %6821 }
 0x365   : >> { %2862 = vst.msk [vmem:[#allocation3 + $0x320] sm:$0xff] %vm555_vm2, %v2734_v24  ;;  %6823 = vpow2.f32 %v4096_v15  ;;  %6232 = vmatmul.msk.f32.gmra.mxu2 %vm555_vm2, %v1837_v9  ;;  %6342 = vmatmul.msk.f32.gmra.mxu3 %vm555_vm2, %v2989_v8  ;;  %v2940_v1 = vld [vmem:[#allocation3 + $0x190] sm:$0xff]  ;;  %v6392_v11 = vadd.f32 -1.0, %v6822_v14  ;;  %v8913_v40 = vpop.permute.xlu2 %4986 }
 0x366   : >> { %v4397_v6 = vsel %vm3885_vm11, %v3664_v21, %v6452_v33  ;;  %2813 = vst.msk [vmem:[#allocation3 + $0x198] sm:$0xff] %vm555_vm2, %v2685_v18  ;;  %6293 = vmatmul.msk.f32.gmra.mxu1 %vm555_vm2, %v2940_v1  ;;  %6825 = vpow2.f32 %v3976_v17  ;;  %v8922_v18 = vpop.permute.xlu0 %4982 }
 0x367   : >> { %v4525_v38 = vadd.f32 1.0, %v4397_v6  ;;  %10528 = vst [vmem:[#allocation60_spill] sm:$0xff] %v8913_v40  ;;  %v4337_v1 = vsel %vm3825_vm12, %v8867_v45, %v6392_v11  ;;  %v8930_v45 = vpop.permute.xlu1 %4594 }
 0x368   : >> { %v2553_v24 = vpop.f32.mrf.mxu2  ;;  %v3669_v15 = vpop.f32.mrf.mxu3  ;;  %v4465_v11 = vadd.f32 1.0, %v4337_v1 }
 0x369   : >> { %v2554_v9 = vadd.f32 %v2553_v24, %v10526_v2  ;;  %v3670_v21 = vadd.f32 %v3669_v15, %v8266_v4  ;;  %4696 = vrot.lane.b32.xlu1 %v4464_v32, %s7199_s28  ;;  %5082 = vrot.lane.b32.xlu2 %v4525_v38, %s7199_s28  ;;  %v2406_v19 = vpop.f32.mrf.mxu0  ;;  %v1838_v15 = vld [vmem:[#allocation2 + $0x3b0] sm:$0xff] }
 0x36a   : >> { %v2407_v17 = vadd.f32 %v2406_v19, %v10526_v2 }
 0x36b   : >> { %v6824_v33 = vpop.eup %6823  ;;  %v2735_v8 = vmax.f32 %v2554_v9, 0.0  ;;  %v4098_v14 = vmul.f32 1.442695, %v3670_v21  ;;  %v8934_v9 = vadd.f32 %v8702_v28, %v8266_v4  ;;  %vm3887_vm15 = vcmp.gt.f32.partialorder %v3670_v21, 0.0 }
 0x36c   : >> { %v6453_v6 = vadd.f32 -1.0, %v6824_v33  ;;  %v2686_v24 = vmax.f32 %v2407_v17, 0.0  ;;  %v2990_v32 = vld [vmem:[#allocation3 + $0x320] sm:$0xff]  ;;  %v6826_v35 = vpop.eup %6825  ;;  %v8936_v17 = vpop.f32.mrf.mxu1 }
 0x36d   : >> { %2863 = vst.msk [vmem:[#allocation3 + $0x328] sm:$0xff] %vm555_vm2, %v2735_v8  ;;  %6827 = vpow2.f32 %v4098_v14  ;;  %6233 = vmatmul.msk.f32.gmra.mxu2 %vm555_vm2, %v1838_v15  ;;  %6343 = vmatmul.msk.f32.gmra.mxu3 %vm555_vm2, %v2990_v32  ;;  %v2941_v38 = vld [vmem:[#allocation3 + $0x198] sm:$0xff]  ;;  %v6393_v8 = vadd.f32 -1.0, %v6826_v35  ;;  %v3980_v28 = vmul.f32 1.442695, %v8934_v9  ;;  %v8945_v32 = vpop.permute.xlu2 %4602  ;;  %vm3828_vm3 = vcmp.gt.f32.partialorder %v8934_v9, 0.0 }
 0x36e   : >> { %v4398_v19 = vsel %vm3886_vm13, %v3667_v12, %v6453_v6  ;;  %2814 = vst.msk [vmem:[#allocation3 + $0x1a0] sm:$0xff] %vm555_vm2, %v2686_v24  ;;  %6294 = vmatmul.msk.f32.gmra.mxu1 %vm555_vm2, %v2941_v38  ;;  %6829 = vpow2.f32 %v3978_v29 }
 0x36f   : >> { %v4526_v33 = vadd.f32 1.0, %v4398_v19  ;;  %v4338_v19 = vsel %vm3826_vm14, %v8888_v3, %v6393_v8  ;;  %v8957_v8 = vadd.f32 %v8733_v13, %v8266_v4 }
 0x370   : >> { %v2556_v14 = vpop.f32.mrf.mxu2  ;;  %v3672_v15 = vpop.f32.mrf.mxu3  ;;  %v4466_v3 = vadd.f32 1.0, %v4338_v19 }
 0x371   : >> { %v2557_v12 = vadd.f32 %v2556_v14, %v10526_v2  ;;  %v3673_v6 = vadd.f32 %v3672_v15, %v8266_v4  ;;  %5084 = vrot.lane.b32.xlu0 %v4526_v33, %s7199_s28  ;;  %4698 = vrot.lane.b32.xlu2 %v4465_v11, %s7199_s28  ;;  %v2409_v1 = vpop.f32.mrf.mxu0  ;;  %v8948_v11 = vpop.permute.xlu0 %4598  ;;  %vm3829_vm5 = vcmp.gt.f32.partialorder %v8957_v8, 0.0 }
 0x372   : >> { %v2410_v29 = vadd.f32 %v2409_v1, %v10526_v2 }
 0x373   : >> { %v6828_v24 = vpop.eup %6827  ;;  %v2736_v35 = vmax.f32 %v2557_v12, 0.0  ;;  %v4100_v38 = vmul.f32 1.442695, %v3673_v6  ;;  %vm3888_vm1 = vcmp.gt.f32.partialorder %v3673_v6, 0.0 }
 0x374   : >> { %v6454_v14 = vadd.f32 -1.0, %v6828_v24  ;;  %v2687_v15 = vmax.f32 %v2410_v29, 0.0  ;;  %v2991_v33 = vld [vmem:[#allocation3 + $0x328] sm:$0xff]  ;;  %v6830_v41 = vpop.eup %6829  ;;  %v8959_v29 = vpop.permute.xlu1 %4984 }
 0x375   : >> { %2864 = vst.msk [vmem:[#allocation3 + $0x330] sm:$0xff] %vm555_vm2, %v2736_v35  ;;  %6831 = vpow2.f32 %v4100_v38  ;;  %6234 = vmatmul.msk.f32.gmra.mxu2 %vm555_vm2, %v1839_v20  ;;  %6344 = vmatmul.msk.f32.gmra.mxu3 %vm555_vm2, %v2991_v33  ;;  %v2942_v1 = vld [vmem:[#allocation3 + $0x1a0] sm:$0xff]  ;;  %v6394_v35 = vadd.f32 -1.0, %v6830_v41  ;;  %v8961_v63 = vpop.f32.mrf.mxu1  ;;  %v3982_v41 = vmul.f32 1.442695, %v8957_v8 }
 0x376   : >> { %v4399_v12 = vsel %vm3887_vm15, %v3670_v21, %v6454_v14  ;;  %2815 = vst.msk [vmem:[#allocation3 + $0x1a8] sm:$0xff] %vm555_vm2, %v2687_v15  ;;  %6295 = vmatmul.msk.f32.gmra.mxu1 %vm555_vm2, %v2942_v1  ;;  %6833 = vpow2.f32 %v3980_v28  ;;  %v8970_v15 = vpop.permute.xlu2 %4992 }
 0x377   : >> { %v4527_v24 = vadd.f32 1.0, %v4399_v12  ;;  %10529 = vst [vmem:[#allocation61_spill] sm:$0xff] %v8970_v15  ;;  %v4339_v12 = vsel %vm3827_vm0, %v8911_v25, %v6394_v35  ;;  %v8982_v35 = vadd.f32 %v8753_v0, %v8266_v4 }
 0x378   : >> { %v2559_v38 = vpop.f32.mrf.mxu2  ;;  %v3675_v20 = vpop.f32.mrf.mxu3  ;;  %v4467_v25 = vadd.f32 1.0, %v4339_v12 }
 0x379   : >> { %v2560_v21 = vadd.f32 %v2559_v38, %v10526_v2  ;;  %v3676_v14 = vadd.f32 %v3675_v20, %v8266_v4  ;;  %4700 = vrot.lane.b32.xlu0 %v4466_v3, %s7199_s28  ;;  %5086 = vrot.lane.b32.xlu1 %v4527_v24, %s7199_s28  ;;  %v2412_v28 = vpop.f32.mrf.mxu0  ;;  %v8973_v24 = vpop.permute.xlu0 %4988  ;;  %v3984_v0 = vmul.f32 1.442695, %v8982_v35  ;;  %vm3830_vm7 = vcmp.gt.f32.partialorder %v8982_v35, 0.0 }
 0x37a   : >> { %v2413_v13 = vadd.f32 %v2412_v28, %v10526_v2 }
 0x37b   : >> { %v6832_v19 = vpop.eup %6831  ;;  %v2737_v33 = vmax.f32 %v2560_v21, 0.0  ;;  %v4102_v1 = vmul.f32 1.442695, %v3676_v14  ;;  %vm3889_vm4 = vcmp.gt.f32.partialorder %v3676_v14, 0.0 }
 0x37c   : >> { %v6455_v38 = vadd.f32 -1.0, %v6832_v19  ;;  %v2688_v20 = vmax.f32 %v2413_v13, 0.0  ;;  %v2992_v3 = vld [vmem:[#allocation3 + $0x330] sm:$0xff]  ;;  %v6834_v27 = vpop.eup %6833 }
 0x37d   : >> { %2865 = vst.msk [vmem:[#allocation3 + $0x338] sm:$0xff] %vm555_vm2, %v2737_v33  ;;  %6835 = vpow2.f32 %v4102_v1  ;;  %6235 = vmatmul.msk.f32.gmra.mxu2 %vm555_vm2, %v1840_v23  ;;  %6345 = vmatmul.msk.f32.gmra.mxu3 %vm555_vm2, %v2992_v3  ;;  %v2943_v28 = vld [vmem:[#allocation3 + $0x1a8] sm:$0xff]  ;;  %v6395_v19 = vadd.f32 -1.0, %v6834_v27  ;;  %v8993_v27 = vpop.permute.xlu1 %4600 }
 0x37e   : >> { %v4400_v21 = vsel %vm3888_vm1, %v3673_v6, %v6455_v38  ;;  %2816 = vst.msk [vmem:[#allocation3 + $0x1b0] sm:$0xff] %vm555_vm2, %v2688_v20  ;;  %6296 = vmatmul.msk.f32.gmra.mxu1 %vm555_vm2, %v2943_v28  ;;  %6837 = vpow2.f32 %v3982_v41  ;;  %v8995_v38 = vpop.f32.mrf.mxu1 }
 0x37f   : >> { %v4528_v13 = vadd.f32 1.0, %v4400_v21  ;;  %v4340_v21 = vsel %vm3828_vm3, %v8934_v9, %v6395_v19  ;;  %v9008_v19 = vadd.f32 %v8780_v16, %v8266_v4 }
 0x380   : >> { %v2562_v33 = vpop.f32.mrf.mxu2  ;;  %v3678_v1 = vpop.f32.mrf.mxu3  ;;  %v4468_v9 = vadd.f32 1.0, %v4340_v21 }
 0x381   : >> { %v2563_v23 = vadd.f32 %v2562_v33, %v10526_v2  ;;  %v8986_v3 = vadd.f32 %v3678_v1, %v8266_v4  ;;  %5088 = vrot.lane.b32.xlu2 %v4528_v13, %s7199_s28  ;;  %4702 = vrot.lane.b32.xlu1 %v4467_v25, %s7199_s28  ;;  %v2415_v6 = vpop.f32.mrf.mxu0  ;;  %v1841_v25 = vld [vmem:[#allocation2 + $0x3c8] sm:$0xff]  ;;  %v3986_v16 = vmul.f32 1.442695, %v9008_v19  ;;  %vm3831_vm9 = vcmp.gt.f32.partialorder %v9008_v19, 0.0 }
 0x382   : >> { %v2416_v41 = vadd.f32 %v2415_v6, %v10526_v2  ;;  %v8999_v6 = vpop.permute.xlu2 %4608 }
 0x383   : >> { %v6836_v12 = vpop.eup %6835  ;;  %v2738_v20 = vmax.f32 %v2563_v23, 0.0  ;;  %v4104_v28 = vmul.f32 1.442695, %v8986_v3  ;;  %vm3890_vm6 = vcmp.gt.f32.partialorder %v8986_v3, 0.0 }
 0x384   : >> { %v6456_v13 = vadd.f32 -1.0, %v6836_v12  ;;  %v2689_v33 = vmax.f32 %v2416_v41, 0.0  ;;  %v2993_v1 = vld [vmem:[#allocation3 + $0x338] sm:$0xff]  ;;  %v6838_v31 = vpop.eup %6837  ;;  %v9010_v41 = vpop.permute.xlu0 %4604 }
 0x385   : >> { %2866 = vst.msk [vmem:[#allocation3 + $0x340] sm:$0xff] %vm555_vm2, %v2738_v20  ;;  %6839 = vpow2.f32 %v4104_v28  ;;  %6236 = vmatmul.msk.f32.gmra.mxu2 %vm555_vm2, %v1841_v25  ;;  %6346 = vmatmul.msk.f32.gmra.mxu3 %vm555_vm2, %v2993_v1  ;;  %v2944_v23 = vld [vmem:[#allocation3 + $0x1b0] sm:$0xff]  ;;  %v6396_v20 = vadd.f32 -1.0, %v6838_v31 }
 0x386   : >> { %v4401_v59 = vsel %vm3889_vm4, %v3676_v14, %v6456_v13  ;;  %2817 = vst.msk [vmem:[#allocation3 + $0x1b8] sm:$0xff] %vm555_vm2, %v2689_v33  ;;  %6297 = vmatmul.msk.f32.gmra.mxu1 %vm555_vm2, %v2944_v23  ;;  %6841 = vpow2.f32 %v3984_v0 }
 0x387   : >> { %v4529_v12 = vadd.f32 1.0, %v4401_v59  ;;  %v9019_v59 = vpop.permute.xlu1 %4990  ;;  %v4341_v23 = vsel %vm3829_vm5, %v8957_v8, %v6396_v20 }
 0x388   : >> { %v2565_v28 = vpop.f32.mrf.mxu2  ;;  %v3681_v25 = vpop.f32.mrf.mxu3  ;;  %10530 = vst [vmem:[#allocation62_spill] sm:$0xff] %v9019_v59  ;;  %v4469_v20 = vadd.f32 1.0, %v4341_v23 }
 0x389   : >> { %v2566_v1 = vadd.f32 %v2565_v28, %v10526_v2  ;;  %v3682_v14 = vadd.f32 %v3681_v25, %v8266_v4  ;;  %4704 = vrot.lane.b32.xlu2 %v4468_v9, %s7199_s28  ;;  %5090 = vrot.lane.b32.xlu0 %v4529_v12, %s7199_s28  ;;  %v2418_v21 = vpop.f32.mrf.mxu0  ;;  %v9022_v12 = vpop.f32.mrf.mxu1 }
 0x38a   : >> { %v2419_v0 = vadd.f32 %v2418_v21, %v10526_v2  ;;  %v9024_v30 = vpop.permute.xlu2 %4998  ;;  %v9035_v21 = vadd.f32 %v8802_v48, %v8266_v4 }
 0x38b   : >> { %v6840_v13 = vpop.eup %6839  ;;  %v2739_v31 = vmax.f32 %v2566_v1, 0.0  ;;  %v4106_v33 = vmul.f32 1.442695, %v3682_v14  ;;  %10531 = vst [vmem:[#allocation63_spill] sm:$0xff] %v9024_v30  ;;  %vm3891_vm8 = vcmp.gt.f32.partialorder %v3682_v14, 0.0 }
 0x38c   : >> { %v6457_v28 = vadd.f32 -1.0, %v6840_v13  ;;  %v2690_v25 = vmax.f32 %v2419_v0, 0.0  ;;  %v2994_v9 = vld [vmem:[#allocation3 + $0x340] sm:$0xff]  ;;  %v6842_v26 = vpop.eup %6841  ;;  %v9037_v13 = vpop.permute.xlu0 %4994  ;;  %v3988_v48 = vmul.f32 1.442695, %v9035_v21  ;;  %vm3832_vm11 = vcmp.gt.f32.partialorder %v9035_v21, 0.0 }
 0x38d   : >> { %2867 = vst.msk [vmem:[#allocation3 + $0x348] sm:$0xff] %vm555_vm2, %v2739_v31  ;;  %6843 = vpow2.f32 %v4106_v33  ;;  %6237 = vmatmul.msk.f32.gmra.mxu2 %vm555_vm2, %v1842_v55  ;;  %6347 = vmatmul.msk.f32.gmra.mxu3 %vm555_vm2, %v2994_v9  ;;  %v2945_v1 = vld [vmem:[#allocation3 + $0x1b8] sm:$0xff]  ;;  %v6397_v31 = vadd.f32 -1.0, %v6842_v26 }
 0x38e   : >> { %v4402_v8 = vsel %vm3890_vm6, %v8986_v3, %v6457_v28  ;;  %2818 = vst.msk [vmem:[#allocation3 + $0x1c0] sm:$0xff] %vm555_vm2, %v2690_v25  ;;  %6298 = vmatmul.msk.f32.gmra.mxu1 %vm555_vm2, %v2945_v1  ;;  %6845 = vpow2.f32 %v3986_v16 }
 0x38f   : >> { %v4530_v0 = vadd.f32 1.0, %v4402_v8  ;;  %10532 = vst [vmem:[#allocation64_spill] sm:$0xff] %v9037_v13  ;;  %v4342_v1 = vsel %vm3830_vm7, %v8982_v35, %v6397_v31  ;;  %v9056_v31 = vadd.f32 %v8831_v5, %v8266_v4 }
 0x390   : >> { %v2568_v55 = vpop.f32.mrf.mxu2  ;;  %v3684_v33 = vpop.f32.mrf.mxu3  ;;  %v4470_v35 = vadd.f32 1.0, %v4342_v1 }
 0x391   : >> { %v2569_v9 = vadd.f32 %v2568_v55, %v10526_v2  ;;  %v3685_v3 = vadd.f32 %v3684_v33, %v8266_v4  ;;  %5092 = vrot.lane.b32.xlu1 %v4530_v0, %s7199_s28  ;;  %4706 = vrot.lane.b32.xlu0 %v4469_v20, %s7199_s28  ;;  %v2421_v23 = vpop.f32.mrf.mxu0  ;;  %v9047_v0 = vpop.permute.xlu1 %4606  ;;  %vm3833_vm13 = vcmp.gt.f32.partialorder %v9056_v31, 0.0 }
 0x392   : >> { %v2422_v16 = vadd.f32 %v2421_v23, %v10526_v2  ;;  %v9058_v23 = vpop.f32.mrf.mxu1 }
 0x393   : >> { %v6844_v28 = vpop.eup %6843  ;;  %v2740_v25 = vmax.f32 %v2569_v9, 0.0  ;;  %v4108_v26 = vmul.f32 1.442695, %v3685_v3  ;;  %vm3892_vm10 = vcmp.gt.f32.partialorder %v3685_v3, 0.0 }
 0x394   : >> { %v6458_v8 = vadd.f32 -1.0, %v6844_v28  ;;  %v2691_v55 = vmax.f32 %v2422_v16, 0.0  ;;  %v2995_v33 = vld [vmem:[#allocation3 + $0x348] sm:$0xff]  ;;  %v6846_v51 = vpop.eup %6845  ;;  %v9060_v16 = vpop.permute.xlu2 %4614 }
 0x395   : >> { %2868 = vst.msk [vmem:[#allocation3 + $0x350] sm:$0xff] %vm555_vm2, %v2740_v25  ;;  %6847 = vpow2.f32 %v4108_v26  ;;  %6238 = vmatmul.msk.f32.gmra.mxu2 %vm555_vm2, %v1843_v34  ;;  %6348 = vmatmul.msk.f32.gmra.mxu3 %vm555_vm2, %v2995_v33  ;;  %v2946_v20 = vld [vmem:[#allocation3 + $0x1c0] sm:$0xff]  ;;  %v6398_v34 = vadd.f32 -1.0, %v6846_v51  ;;  %v9062_v33 = vpop.permute.xlu0 %4610  ;;  %v3990_v51 = vmul.f32 1.442695, %v9056_v31 }
 0x396   : >> { %v4403_v9 = vsel %vm3891_vm8, %v3682_v14, %v6458_v8  ;;  %2819 = vst.msk [vmem:[#allocation3 + $0x1c8] sm:$0xff] %vm555_vm2, %v2691_v55  ;;  %6299 = vmatmul.msk.f32.gmra.mxu1 %vm555_vm2, %v2946_v20  ;;  %6849 = vpow2.f32 %v3988_v48 }
 0x397   : >> { %v4531_v28 = vadd.f32 1.0, %v4403_v9  ;;  %v4343_v9 = vsel %vm3831_vm9, %v9008_v19, %v6398_v34  ;;  %v9081_v34 = vadd.f32 %v8850_v10, %v8266_v4 }
 0x398   : >> { %v2571_v25 = vpop.f32.mrf.mxu2  ;;  %v3687_v26 = vpop.f32.mrf.mxu3  ;;  %v4471_v19 = vadd.f32 1.0, %v4343_v9 }
 0x399   : >> { %v2572_v14 = vadd.f32 %v2571_v25, %v10526_v2  ;;  %v3688_v8 = vadd.f32 %v3687_v26, %v8266_v4  ;;  %4708 = vrot.lane.b32.xlu1 %v4470_v35, %s7199_s28  ;;  %5094 = vrot.lane.b32.xlu2 %v4531_v28, %s7199_s28  ;;  %v2424_v5 = vpop.f32.mrf.mxu0  ;;  %v9072_v35 = vpop.permute.xlu1 %4996  ;;  %vm3834_vm15 = vcmp.gt.f32.partialorder %v9081_v34, 0.0 }
 0x39a   : >> { %v2425_v48 = vadd.f32 %v2424_v5, %v10526_v2  ;;  %10533 = vst [vmem:[#allocation65_spill] sm:$0xff] %v9072_v35 }
 0x39b   : >> { %v6848_v1 = vpop.eup %6847  ;;  %v2741_v55 = vmax.f32 %v2572_v14, 0.0  ;;  %v4110_v20 = vmul.f32 1.442695, %v3688_v8  ;;  %vm3893_vm12 = vcmp.gt.f32.partialorder %v3688_v8, 0.0 }
 0x39c   : >> { %v6459_v47 = vadd.f32 -1.0, %v6848_v1  ;;  %v2692_v25 = vmax.f32 %v2425_v48, 0.0  ;;  %v2996_v26 = vld [vmem:[#allocation3 + $0x350] sm:$0xff]  ;;  %v6850_v43 = vpop.eup %6849  ;;  %v9083_v48 = vpop.permute.xlu2 %5004 }
 0x39d   : >> { %2869 = vst.msk [vmem:[#allocation3 + $0x358] sm:$0xff] %vm555_vm2, %v2741_v55  ;;  %6851 = vpow2.f32 %v4110_v20  ;;  %6239 = vmatmul.msk.f32.gmra.mxu2 %vm555_vm2, %v1844_v22  ;;  %6349 = vmatmul.msk.f32.gmra.mxu3 %vm555_vm2, %v2996_v26  ;;  %v2947_v28 = vld [vmem:[#allocation3 + $0x1c8] sm:$0xff]  ;;  %v6399_v1 = vadd.f32 -1.0, %v6850_v43  ;;  %v9085_v20 = vpop.permute.xlu0 %5000  ;;  %v3992_v43 = vmul.f32 1.442695, %v9081_v34 }
 0x39e   : >> { %v4404_v14 = vsel %vm3892_vm10, %v3685_v3, %v6459_v47  ;;  %2820 = vst.msk [vmem:[#allocation3 + $0x1d0] sm:$0xff] %vm555_vm2, %v2692_v25  ;;  %6300 = vmatmul.msk.f32.gmra.mxu1 %vm555_vm2, %v2947_v28  ;;  %6853 = vpow2.f32 %v3990_v51  ;;  %v9094_v25 = vpop.f32.mrf.mxu1 }
 0x39f   : >> { %v4532_v5 = vadd.f32 1.0, %v4404_v14  ;;  %10534 = vst [vmem:[#allocation66_spill] sm:$0xff] %v9083_v48  ;;  %v4344_v14 = vsel %vm3832_vm11, %v9035_v21, %v6399_v1  ;;  %v9104_v1 = vadd.f32 %v8878_v60, %v8266_v4 }
 0x3a0   : >> { %v2574_v55 = vpop.f32.mrf.mxu2  ;;  %v3690_v22 = vpop.f32.mrf.mxu3  ;;  %10535 = vst [vmem:[#allocation67_spill] sm:$0xff] %v9085_v20  ;;  %v4472_v21 = vadd.f32 1.0, %v4344_v14 }
 0x3a1   : >> { %v2575_v47 = vadd.f32 %v2574_v55, %v10526_v2  ;;  %v3691_v3 = vadd.f32 %v3690_v22, %v8266_v4  ;;  %5096 = vrot.lane.b32.xlu0 %v4532_v5, %s7199_s28  ;;  %4710 = vrot.lane.b32.xlu2 %v4471_v19, %s7199_s28  ;;  %v2427_v51 = vpop.f32.mrf.mxu0  ;;  %vm3835_vm1 = vcmp.gt.f32.partialorder %v9104_v1, 0.0 }
 0x3a2   : >> { %v2428_v10 = vadd.f32 %v2427_v51, %v10526_v2 }
 0x3a3   : >> { %v6852_v9 = vpop.eup %6851  ;;  %v2742_v26 = vmax.f32 %v2575_v47, 0.0  ;;  %v4112_v28 = vmul.f32 1.442695, %v3691_v3  ;;  %v9106_v47 = vpop.permute.xlu1 %4612  ;;  %vm3894_vm14 = vcmp.gt.f32.partialorder %v3691_v3, 0.0 }
 0x3a4   : >> { %v6460_v55 = vadd.f32 -1.0, %v6852_v9  ;;  %v2693_v22 = vmax.f32 %v2428_v10, 0.0  ;;  %v2997_v5 = vld [vmem:[#allocation3 + $0x358] sm:$0xff]  ;;  %v6854_v48 = vpop.eup %6853 }
 0x3a5   : >> { %2870 = vst.msk [vmem:[#allocation3 + $0x360] sm:$0xff] %vm555_vm2, %v2742_v26  ;;  %6855 = vpow2.f32 %v4112_v28  ;;  %6240 = vmatmul.msk.f32.gmra.mxu2 %vm555_vm2, %v1845_v39  ;;  %6350 = vmatmul.msk.f32.gmra.mxu3 %vm555_vm2, %v2997_v5  ;;  %v2948_v19 = vld [vmem:[#allocation3 + $0x1d0] sm:$0xff]  ;;  %v6400_v9 = vadd.f32 -1.0, %v6854_v48  ;;  %v9108_v28 = vpop.permute.xlu2 %4620  ;;  %v3994_v48 = vmul.f32 1.442695, %v9104_v1 }
 0x3a6   : >> { %v4405_v51 = vsel %vm3893_vm12, %v3688_v8, %v6460_v55  ;;  %2821 = vst.msk [vmem:[#allocation3 + $0x1d8] sm:$0xff] %vm555_vm2, %v2693_v22  ;;  %6301 = vmatmul.msk.f32.gmra.mxu1 %vm555_vm2, %v2948_v19  ;;  %6857 = vpow2.f32 %v3992_v43  ;;  %v9119_v22 = vpop.permute.xlu0 %4616  ;;  %v9123_v35 = vpop.f32.mrf.mxu1 }
 0x3a7   : >> { %v4533_v10 = vadd.f32 1.0, %v4405_v51  ;;  %v4345_v51 = vsel %vm3833_vm13, %v9056_v31, %v6400_v9  ;;  %v9132_v9 = vadd.f32 %v8902_v7, %v8266_v4  ;;  %v9145_v7 = vld [vmem:[%s7555_s27] ss:$0 sm:$0xff] }
 0x3a8   : >> { %v2577_v26 = vpop.f32.mrf.mxu2  ;;  %v3693_v39 = vpop.f32.mrf.mxu3  ;;  %v4473_v31 = vadd.f32 1.0, %v4345_v51 }
 0x3a9   : >> { %v2578_v8 = vadd.f32 %v2577_v26, %v10526_v2  ;;  %v9112_v55 = vadd.f32 %v3693_v39, %v8266_v4  ;;  %5098 = vrot.lane.b32.xlu1 %v4533_v10, %s7199_s28  ;;  %4712 = vrot.lane.b32.xlu0 %v4472_v21, %s7199_s28  ;;  %v2430_v43 = vpop.f32.mrf.mxu0  ;;  %v1846_v10 = vld [vmem:[#allocation2 + $0x3f0] sm:$0xff]  ;;  %vm3836_vm4 = vcmp.gt.f32.partialorder %v9132_v9, 0.0 }
 0x3aa   : >> { %v2431_v60 = vadd.f32 %v2430_v43, %v10526_v2 }
 0x3ab   : >> { %v6856_v14 = vpop.eup %6855  ;;  %v2743_v5 = vmax.f32 %v2578_v8, 0.0  ;;  %v4114_v19 = vmul.f32 1.442695, %v9112_v55  ;;  %vm3895_vm0 = vcmp.gt.f32.partialorder %v9112_v55, 0.0 }
 0x3ac   : >> { %v6461_v26 = vadd.f32 -1.0, %v6856_v14  ;;  %v2694_v39 = vmax.f32 %v2431_v60, 0.0  ;;  %v2998_v30 = vld [vmem:[#allocation3 + $0x360] sm:$0xff]  ;;  %v6858_v21 = vpop.eup %6857  ;;  %v9134_v14 = vpop.permute.xlu1 %5002 }
 0x3ad   : >> { %2871 = vst.msk [vmem:[#allocation3 + $0x368] sm:$0xff] %vm555_vm2, %v2743_v5  ;;  %6859 = vpow2.f32 %v4114_v19  ;;  %6241 = vmatmul.msk.f32.gmra.mxu2 %vm555_vm2, %v1846_v10  ;;  %6351 = vmatmul.msk.f32.gmra.mxu3 %vm555_vm2, %v2998_v30  ;;  %v2949_v8 = vld [vmem:[#allocation3 + $0x1d8] sm:$0xff]  ;;  %v6401_v5 = vadd.f32 -1.0, %v6858_v21  ;;  %v9136_v30 = vpop.permute.xlu2 %5010  ;;  %v3996_v21 = vmul.f32 1.442695, %v9132_v9 }
 0x3ae   : >> { %v4406_v43 = vsel %vm3894_vm14, %v3691_v3, %v6461_v26  ;;  %2822 = vst.msk [vmem:[#allocation3 + $0x1e0] sm:$0xff] %vm555_vm2, %v2694_v39  ;;  %6302 = vmatmul.msk.f32.gmra.mxu1 %vm555_vm2, %v2949_v8  ;;  %6861 = vpow2.f32 %v3994_v48 }
 0x3af   : >> { %v4534_v60 = vadd.f32 1.0, %v4406_v43  ;;  %10536 = vst [vmem:[#allocation68_spill] sm:$0xff] %v9134_v14 }
 0x3b0   : >> { %v2580_v19 = vpop.f32.mrf.mxu2  ;;  %v3696_v10 = vpop.f32.mrf.mxu3  ;;  %10537 = vst [vmem:[#allocation69_spill] sm:$0xff] %v9136_v30 }
 0x3b1   : >> { %v2581_v3 = vadd.f32 %v2580_v19, %v10526_v2  ;;  %v9140_v26 = vadd.f32 %v3696_v10, %v8266_v4  ;;  %4714 = vrot.lane.b32.xlu1 %v4473_v31, %s7199_s28  ;;  %5100 = vrot.lane.b32.xlu2 %v4534_v60, %s7199_s28  ;;  %v2433_v48 = vpop.f32.mrf.mxu0  ;;  %v4346_v10 = vsel %vm3834_vm15, %v9081_v34, %v6401_v5  ;;  %v1847_v60 = vld [vmem:[#allocation2 + $0x3f8] sm:$0xff] }
 0x3b2   : >> { %v2434_v51 = vadd.f32 %v2433_v48, %v10526_v2  ;;  %v4638_v48 = vmul.f32 %v9145_v7, %v8869_v52  ;;  %v4474_v5 = vadd.f32 1.0, %v4346_v10  ;;  %v9177_v10 = vld [vmem:[%s7555_s27 + $0x1] ss:$0 sm:$0xff] }
 0x3b3   : >> { %v6860_v39 = vpop.eup %6859  ;;  %v2744_v8 = vmax.f32 %v2581_v3, 0.0  ;;  %v4116_v43 = vmul.f32 1.442695, %v9140_v26  ;;  %v9151_v19 = vpop.permute.xlu0 %5006  ;;  %vm3896_vm3 = vcmp.gt.f32.partialorder %v9140_v26, 0.0 }
 0x3b4   : >> { %10538 = vst [vmem:[#allocation70_spill] sm:$0xff] %v9151_v19  ;;  %v6462_v31 = vadd.f32 -1.0, %v6860_v39  ;;  %v2695_v30 = vmax.f32 %v2434_v51, 0.0  ;;  %v2999_v14 = vld [vmem:[#allocation3 + $0x368] sm:$0xff]  ;;  %v6862_v20 = vpop.eup %6861  ;;  %v9165_v51 = vadd.f32 %v8936_v17, %v8266_v4  ;;  %v9167_v39 = vpop.f32.mrf.mxu1  ;;  %v4654_v17 = vadd.f32 %v7192_v42, %v4638_v48 }
 0x3b5   : >> { %2872 = vst.msk [vmem:[#allocation3 + $0x370] sm:$0xff] %vm555_vm2, %v2744_v8  ;;  %6863 = vpow2.f32 %v4116_v43  ;;  %6242 = vmatmul.msk.f32.gmra.mxu2 %vm555_vm2, %v1847_v60  ;;  %6352 = vmatmul.msk.f32.gmra.mxu3 %vm555_vm2, %v2999_v14  ;;  %v2950_v3 = vld [vmem:[#allocation3 + $0x1e0] sm:$0xff]  ;;  %v6402_v8 = vadd.f32 -1.0, %v6862_v20  ;;  %v9169_v52 = vpop.permute.xlu1 %4618 }
 0x3b6   : >> { %v4407_v34 = vsel %vm3895_vm0, %v9112_v55, %v6462_v31  ;;  %2823 = vst.msk [vmem:[#allocation3 + $0x1e8] sm:$0xff] %vm555_vm2, %v2695_v30  ;;  %6303 = vmatmul.msk.f32.gmra.mxu1 %vm555_vm2, %v2950_v3  ;;  %6865 = vpow2.f32 %v3996_v21  ;;  %v3998_v3 = vmul.f32 1.442695, %v9165_v51  ;;  %vm3837_vm6 = vcmp.gt.f32.partialorder %v9165_v51, 0.0 }
 0x3b7   : >> { %v4535_v14 = vadd.f32 1.0, %v4407_v34  ;;  %v9182_v34 = vpop.permute.xlu2 %4692 }
 0x3b8   : >> { %v2583_v43 = vpop.f32.mrf.mxu2  ;;  %v3699_v60 = vpop.f32.mrf.mxu3 }
 0x3b9   : >> { %v2584_v55 = vadd.f32 %v2583_v43, %v10526_v2  ;;  %v3700_v30 = vadd.f32 %v3699_v60, %v8266_v4  ;;  %5102 = vrot.lane.b32.xlu0 %v4535_v14, %s7199_s28  ;;  %4716 = vrot.lane.b32.xlu2 %v4474_v5, %s7199_s28  ;;  %v2436_v21 = vpop.f32.mrf.mxu0  ;;  %v4347_v14 = vsel %vm3835_vm1, %v9104_v1, %v6402_v8 }
 0x3ba   : >> { %v2437_v31 = vadd.f32 %v2436_v21, %v10526_v2  ;;  %v4475_v1 = vadd.f32 1.0, %v4347_v14 }
 0x3bb   : >> { %v6864_v20 = vpop.eup %6863  ;;  %v2745_v43 = vmax.f32 %v2584_v55, 0.0  ;;  %v4118_v60 = vmul.f32 1.442695, %v3700_v30  ;;  %v4689_v19 = vpop.permute.xlu0 %4688  ;;  %vm3897_vm5 = vcmp.gt.f32.partialorder %v3700_v30, 0.0 }
 0x3bc   : >> { %v6463_v5 = vadd.f32 -1.0, %v6864_v20  ;;  %v2696_v15 = vmax.f32 %v2437_v31, 0.0  ;;  %v4736_v42 = vmul.f32 %v9177_v10, %v4689_v19  ;;  %v3000_v48 = vld [vmem:[#allocation3 + $0x370] sm:$0xff]  ;;  %v6866_v59 = vpop.eup %6865  ;;  %v9196_v19 = vadd.f32 %v8961_v63, %v8266_v4 }
 0x3bd   : >> { %2873 = vst.msk [vmem:[#allocation3 + $0x378] sm:$0xff] %vm555_vm2, %v2745_v43  ;;  %6867 = vpow2.f32 %v4118_v60  ;;  %6353 = vmatmul.msk.f32.gmra.mxu3 %vm555_vm2, %v3000_v48  ;;  %v2951_v21 = vld [vmem:[#allocation3 + $0x1e8] sm:$0xff]  ;;  %v6403_v31 = vadd.f32 -1.0, %v6866_v59  ;;  %v9198_v60 = vpop.permute.xlu1 %5008  ;;  %v9207_v59 = vpop.f32.mrf.mxu1 }
 0x3be   : >> { %v4408_v55 = vsel %vm3896_vm3, %v9140_v26, %v6463_v5  ;;  %2824 = vst.msk [vmem:[#allocation3 + $0x1f0] sm:$0xff] %vm555_vm2, %v2696_v15  ;;  %v9191_v13 = vadd.f32 %v4736_v42, %v4654_v17  ;;  %6304 = vmatmul.msk.f32.gmra.mxu1 %vm555_vm2, %v2951_v21  ;;  %6869 = vpow2.f32 %v3998_v3  ;;  %v4000_v63 = vmul.f32 1.442695, %v9196_v19 }
 0x3bf   : >> { %v4536_v8 = vadd.f32 1.0, %v4408_v55  ;;  %10539 = vst [vmem:[#allocation71_spill] sm:$0xff] %v9198_v60  ;;  %v4348_v21 = vsel %vm3836_vm4, %v9132_v9, %v6403_v31  ;;  %v9218_v9 = vadd.f32 %v8995_v38, %v8266_v4  ;;  %vm3838_vm8 = vcmp.gt.f32.partialorder %v9196_v19, 0.0 }
 0x3c0   : >> { %v2586_v20 = vpop.f32.mrf.mxu2  ;;  %v3702_v43 = vpop.f32.mrf.mxu3 }
 0x3c1   : >> { %v2587_v26 = vadd.f32 %v2586_v20, %v10526_v2  ;;  %v3703_v15 = vadd.f32 %v3702_v43, %v8266_v4  ;;  %4718 = vrot.lane.b32.xlu0 %v4475_v1, %s7199_s28  ;;  %5104 = vrot.lane.b32.xlu1 %v4536_v8, %s7199_s28  ;;  %v2439_v17 = vpop.f32.mrf.mxu0  ;;  %v4002_v38 = vmul.f32 1.442695, %v9218_v9  ;;  %vm3839_vm10 = vcmp.gt.f32.partialorder %v9218_v9, 0.0 }
 0x3c2   : >> { %v2440_v3 = vadd.f32 %v2439_v17, %v10526_v2 }
 0x3c3   : >> { %v6868_v14 = vpop.eup %6867  ;;  %v2746_v5 = vmax.f32 %v2587_v26, 0.0  ;;  %v4120_v42 = vmul.f32 1.442695, %v3703_v15  ;;  %v9209_v48 = vpop.permute.xlu2 %5082  ;;  %v4476_v26 = vadd.f32 1.0, %v4348_v21  ;;  %vm3898_vm7 = vcmp.gt.f32.partialorder %v3703_v15, 0.0 }
 0x3c4   : >> { %10540 = vst [vmem:[#allocation72_spill] sm:$0xff] %v9209_v48  ;;  %v6464_v55 = vadd.f32 -1.0, %v6868_v14  ;;  %v2697_v1 = vmax.f32 %v2440_v3, 0.0  ;;  %v3001_v20 = vld [vmem:[#allocation3 + $0x378] sm:$0xff]  ;;  %v6870_v8 = vpop.eup %6869  ;;  %v4643_v14 = vmul.f32 %v9145_v7, %v8993_v27 }
 0x3c5   : >> { %2874 = vst.msk [vmem:[#allocation3 + $0x380] sm:$0xff] %vm555_vm2, %v2746_v5  ;;  %6871 = vpow2.f32 %v4120_v42  ;;  %6354 = vmatmul.msk.f32.gmra.mxu3 %vm555_vm2, %v3001_v20  ;;  %v2952_v43 = vld [vmem:[#allocation3 + $0x1f0] sm:$0xff]  ;;  %v6404_v3 = vadd.f32 -1.0, %v6870_v8  ;;  %v9228_v21 = vpop.permute.xlu1 %4690 }
 0x3c6   : >> { %v4409_v17 = vsel %vm3897_vm5, %v3700_v30, %v6464_v55  ;;  %2825 = vst.msk [vmem:[#allocation3 + $0x1f8] sm:$0xff] %vm555_vm2, %v2697_v1  ;;  %6305 = vmatmul.msk.f32.gmra.mxu1 %vm555_vm2, %v2952_v43  ;;  %6873 = vpow2.f32 %v4000_v63  ;;  %v4659_v43 = vadd.f32 %v7172_v62, %v4643_v14 }
 0x3c7   : >> { %v4537_v31 = vadd.f32 1.0, %v4409_v17  ;;  %v4349_v8 = vsel %vm3837_vm6, %v9165_v51, %v6404_v3  ;;  %v9242_v51 = vadd.f32 %v9022_v12, %v8266_v4 }
 0x3c8   : >> { %v2589_v5 = vpop.f32.mrf.mxu2  ;;  %v3705_v42 = vpop.f32.mrf.mxu3  ;;  %v4477_v62 = vadd.f32 1.0, %v4349_v8 }
 0x3c9   : >> { %v2590_v20 = vadd.f32 %v2589_v5, %v10526_v2  ;;  %v3706_v30 = vadd.f32 %v3705_v42, %v8266_v4  ;;  %5106 = vrot.lane.b32.xlu2 %v4537_v31, %s7199_s28  ;;  %4786 = vrot.lane.b32.xlu1 %v4476_v26, %s7199_s28  ;;  %v9233_v26 = vpop.f32.mrf.mxu1  ;;  %v4004_v12 = vmul.f32 1.442695, %v9242_v51  ;;  %vm3840_vm12 = vcmp.gt.f32.partialorder %v9242_v51, 0.0 }
 0x3cb   : >> { %v6872_v63 = vpop.eup %6871  ;;  %v2747_v55 = vmax.f32 %v2590_v20, 0.0  ;;  %v4122_v1 = vmul.f32 1.442695, %v3706_v30  ;;  %v4699_v27 = vpop.permute.xlu2 %4698  ;;  %vm3899_vm9 = vcmp.gt.f32.partialorder %v3706_v30, 0.0 }
 0x3cc   : >> { %v6465_v17 = vadd.f32 -1.0, %v6872_v63  ;;  %v4741_v5 = vmul.f32 %v9177_v10, %v4699_v27  ;;  %v3002_v31 = vld [vmem:[#allocation3 + $0x380] sm:$0xff]  ;;  %v6874_v42 = vpop.eup %6873  ;;  %v9244_v14 = vpop.permute.xlu0 %5012 }
 0x3cd   : >> { %2875 = vst.msk [vmem:[#allocation3 + $0x388] sm:$0xff] %vm555_vm2, %v2747_v55  ;;  %6875 = vpow2.f32 %v4122_v1  ;;  %6355 = vmatmul.msk.f32.gmra.mxu3 %vm555_vm2, %v3002_v31  ;;  %v2953_v20 = vld [vmem:[#allocation3 + $0x1f8] sm:$0xff]  ;;  %v6405_v63 = vadd.f32 -1.0, %v6874_v42 }
 0x3ce   : >> { %v4410_v60 = vsel %vm3898_vm7, %v3703_v15, %v6465_v17  ;;  %v9237_v40 = vadd.f32 %v4741_v5, %v4659_v43  ;;  %6306 = vmatmul.msk.f32.gmra.mxu1 %vm555_vm2, %v2953_v20  ;;  %6877 = vpow2.f32 %v4002_v38  ;;  %10541 = vst [vmem:[#allocation73_spill] sm:$0xff] %v9244_v14 }
 0x3cf   : >> { %v4538_v3 = vadd.f32 1.0, %v4410_v60  ;;  %v4350_v17 = vsel %vm3838_vm8, %v9196_v19, %v6405_v63  ;;  %v4642_v19 = vmul.f32 %v9145_v7, %v8948_v11 }
 0x3d0   : >> { %v2592_v55 = vpop.f32.mrf.mxu2  ;;  %v3708_v1 = vpop.f32.mrf.mxu3 }
 0x3d1   : >> { %v2593_v27 = vadd.f32 %v2592_v55, %v10526_v2  ;;  %v3709_v15 = vadd.f32 %v3708_v1, %v8266_v4  ;;  %4788 = vrot.lane.b32.xlu2 %v4477_v62, %s7199_s28  ;;  %5108 = vrot.lane.b32.xlu0 %v4538_v3, %s7199_s28  ;;  %v4478_v62 = vadd.f32 1.0, %v4350_v17  ;;  %v9259_v3 = vadd.f32 %v9058_v23, %v8266_v4  ;;  %v9261_v55 = vpop.f32.mrf.mxu1 }
 0x3d3   : >> { %v6876_v8 = vpop.eup %6875  ;;  %v2748_v38 = vmax.f32 %v2593_v27, 0.0  ;;  %v4124_v60 = vmul.f32 1.442695, %v3709_v15  ;;  %v9252_v43 = vpop.permute.xlu1 %5080  ;;  %vm3900_vm11 = vcmp.gt.f32.partialorder %v3709_v15, 0.0  ;;  %vm3841_vm14 = vcmp.gt.f32.partialorder %v9259_v3, 0.0 }
 0x3d4   : >> { %v6466_v5 = vadd.f32 -1.0, %v6876_v8  ;;  %v3003_v31 = vld [vmem:[#allocation3 + $0x388] sm:$0xff]  ;;  %v6878_v42 = vpop.eup %6877 }
 0x3d5   : >> { %2876 = vst.msk [vmem:[#allocation3 + $0x390] sm:$0xff] %vm555_vm2, %v2748_v38  ;;  %6879 = vpow2.f32 %v4124_v60  ;;  %6356 = vmatmul.msk.f32.gmra.mxu3 %vm555_vm2, %v3003_v31  ;;  %v6406_v63 = vadd.f32 -1.0, %v6878_v42  ;;  %v4658_v42 = vadd.f32 %v7176_v37, %v4642_v19  ;;  %v9284_v37 = vadd.f32 %v9094_v25, %v8266_v4 }
 0x3d6   : >> { %v4411_v20 = vsel %vm3899_vm9, %v3706_v30, %v6466_v5  ;;  %6881 = vpow2.f32 %v4004_v12  ;;  %v9269_v30 = vpop.permute.xlu0 %4694  ;;  %v4006_v12 = vmul.f32 1.442695, %v9259_v3 }
 0x3d7   : >> { %v4539_v1 = vadd.f32 1.0, %v4411_v20  ;;  %v4351_v20 = vsel %vm3839_vm10, %v9218_v9, %v6406_v63  ;;  %v4646_v63 = vmul.f32 %v9145_v7, %v9047_v0  ;;  %v4008_v25 = vmul.f32 1.442695, %v9284_v37 }
 0x3d8   : >> { %v2595_v27 = vpop.f32.mrf.mxu2  ;;  %v3711_v8 = vpop.f32.mrf.mxu3  ;;  %v4479_v48 = vadd.f32 1.0, %v4351_v20  ;;  %vm3842_vm0 = vcmp.gt.f32.partialorder %v9284_v37, 0.0 }
 0x3d9   : >> { %v2596_v38 = vadd.f32 %v2595_v27, %v10526_v2  ;;  %v3712_v60 = vadd.f32 %v3711_v8, %v8266_v4  ;;  %5110 = vrot.lane.b32.xlu1 %v4539_v1, %s7199_s28  ;;  %4790 = vrot.lane.b32.xlu0 %v4478_v62, %s7199_s28 }
 0x3db   : >> { %v6880_v23 = vpop.eup %6879  ;;  %v2749_v17 = vmax.f32 %v2596_v38, 0.0  ;;  %v4126_v11 = vmul.f32 1.442695, %v3712_v60  ;;  %v4697_v5 = vpop.permute.xlu1 %4696  ;;  %vm3901_vm13 = vcmp.gt.f32.partialorder %v3712_v60, 0.0 }
 0x3dc   : >> { %v9273_v31 = vpop.permute.xlu2 %5088  ;;  %v6467_v27 = vadd.f32 -1.0, %v6880_v23  ;;  %v4740_v1 = vmul.f32 %v9177_v10, %v4697_v5  ;;  %v3004_v62 = vld [vmem:[#allocation3 + $0x390] sm:$0xff]  ;;  %v6882_v8 = vpop.eup %6881 }
 0x3dd   : >> { %2877 = vst.msk [vmem:[#allocation3 + $0x398] sm:$0xff] %vm555_vm2, %v2749_v17  ;;  %6883 = vpow2.f32 %v4126_v11  ;;  %6357 = vmatmul.msk.f32.gmra.mxu3 %vm555_vm2, %v3004_v62  ;;  %v6407_v19 = vadd.f32 -1.0, %v6882_v8  ;;  %v4662_v62 = vadd.f32 %v7160_v58, %v4646_v63 }
 0x3de   : >> { %v4412_v38 = vsel %vm3900_vm11, %v3709_v15, %v6467_v27  ;;  %v9280_v14 = vadd.f32 %v4740_v1, %v4658_v42  ;;  %6885 = vpow2.f32 %v4006_v12  ;;  %v9292_v15 = vpop.f32.mrf.mxu1 }
 0x3df   : >> { %v4540_v9 = vadd.f32 1.0, %v4412_v38  ;;  %v4352_v1 = vsel %vm3840_vm12, %v9242_v51, %v6407_v19  ;;  %v9307_v51 = vadd.f32 %v9123_v35, %v8266_v4  ;;  %v4644_v19 = vmul.f32 %v9145_v7, %v8945_v32 }
 0x3e0   : >> { %v2598_v23 = vpop.f32.mrf.mxu2  ;;  %v3714_v5 = vpop.f32.mrf.mxu3 }
 0x3e1   : >> { %v2599_v17 = vadd.f32 %v2598_v23, %v10526_v2  ;;  %v3715_v11 = vadd.f32 %v3714_v5, %v8266_v4  ;;  %4792 = vrot.lane.b32.xlu1 %v4479_v48, %s7199_s28  ;;  %5178 = vrot.lane.b32.xlu2 %v4540_v9, %s7199_s28  ;;  %v4010_v35 = vmul.f32 1.442695, %v9307_v51  ;;  %vm3843_vm3 = vcmp.gt.f32.partialorder %v9307_v51, 0.0 }
 0x3e3   : >> { %v6884_v12 = vpop.eup %6883  ;;  %v2750_v42 = vmax.f32 %v2599_v17, 0.0  ;;  %v4128_v20 = vmul.f32 1.442695, %v3715_v11  ;;  %v9296_v27 = vpop.permute.xlu0 %5084  ;;  %v4480_v17 = vadd.f32 1.0, %v4352_v1  ;;  %vm3902_vm15 = vcmp.gt.f32.partialorder %v3715_v11, 0.0 }
 0x3e4   : >> { %v4705_v0 = vpop.permute.xlu2 %4704  ;;  %v6468_v8 = vadd.f32 -1.0, %v6884_v12  ;;  %v3005_v38 = vld [vmem:[#allocation3 + $0x398] sm:$0xff]  ;;  %v6886_v9 = vpop.eup %6885 }
 0x3e5   : >> { %v4744_v48 = vmul.f32 %v9177_v10, %v4705_v0  ;;  %2878 = vst.msk [vmem:[#allocation3 + $0x3a0] sm:$0xff] %vm555_vm2, %v2750_v42  ;;  %6887 = vpow2.f32 %v4128_v20  ;;  %6358 = vmatmul.msk.f32.gmra.mxu3 %vm555_vm2, %v3005_v38  ;;  %v6408_v63 = vadd.f32 -1.0, %v6886_v9 }
 0x3e6   : >> { %v4413_v23 = vsel %vm3901_vm13, %v3712_v60, %v6468_v8  ;;  %6889 = vpow2.f32 %v4008_v25  ;;  %v4660_v8 = vadd.f32 %v7168_v36, %v4644_v19  ;;  %v9330_v36 = vadd.f32 %v9167_v39, %v8266_v4 }
 0x3e7   : >> { %v9303_v5 = vadd.f32 %v4744_v48, %v4662_v62  ;;  %v4541_v58 = vadd.f32 1.0, %v4413_v23  ;;  %v4353_v48 = vsel %vm3841_vm14, %v9259_v3, %v6408_v63  ;;  %v4645_v19 = vmul.f32 %v9145_v7, %v9010_v41 }
 0x3e8   : >> { %v2601_v12 = vpop.f32.mrf.mxu2  ;;  %v3717_v0 = vpop.f32.mrf.mxu3  ;;  %v4012_v39 = vmul.f32 1.442695, %v9330_v36  ;;  %vm3844_vm5 = vcmp.gt.f32.partialorder %v9330_v36, 0.0 }
 0x3e9   : >> { %v2602_v42 = vadd.f32 %v2601_v12, %v10526_v2  ;;  %v3718_v20 = vadd.f32 %v3717_v0, %v8266_v4  ;;  %5180 = vrot.lane.b32.xlu0 %v4541_v58, %s7199_s28  ;;  %4794 = vrot.lane.b32.xlu2 %v4480_v17, %s7199_s28  ;;  %v9322_v17 = vpop.f32.mrf.mxu1 }
 0x3eb   : >> { %v6888_v60 = vpop.eup %6887  ;;  %v2751_v25 = vmax.f32 %v2602_v42, 0.0  ;;  %v4130_v1 = vmul.f32 1.442695, %v3718_v20  ;;  %v9317_v62 = vpop.permute.xlu1 %5086  ;;  %v4481_v42 = vadd.f32 1.0, %v4353_v48  ;;  %vm3903_vm1 = vcmp.gt.f32.partialorder %v3718_v20, 0.0 }
 0x3ec   : >> { %v4701_v32 = vpop.permute.xlu0 %4700  ;;  %v6469_v38 = vadd.f32 -1.0, %v6888_v60  ;;  %v3006_v23 = vld [vmem:[#allocation3 + $0x3a0] sm:$0xff]  ;;  %v6890_v58 = vpop.eup %6889 }
 0x3ed   : >> { %v4742_v9 = vmul.f32 %v9177_v10, %v4701_v32  ;;  %2879 = vst.msk [vmem:[#allocation3 + $0x3a8] sm:$0xff] %vm555_vm2, %v2751_v25  ;;  %6891 = vpow2.f32 %v4130_v1  ;;  %6359 = vmatmul.msk.f32.gmra.mxu3 %vm555_vm2, %v3006_v23  ;;  %v6409_v63 = vadd.f32 -1.0, %v6890_v58 }
 0x3ee   : >> { %v4414_v12 = vsel %vm3902_vm15, %v3715_v11, %v6469_v38  ;;  %6893 = vpow2.f32 %v4010_v35  ;;  %v4661_v38 = vadd.f32 %v7164_v61, %v4645_v19  ;;  %v9351_v61 = vadd.f32 %v9207_v59, %v8266_v4 }
 0x3ef   : >> { %v9326_v0 = vadd.f32 %v4742_v9, %v4660_v8  ;;  %v4542_v3 = vadd.f32 1.0, %v4414_v12  ;;  %v4354_v9 = vsel %vm3842_vm0, %v9284_v37, %v6409_v63 }
 0x3f0   : >> { %v2604_v60 = vpop.f32.mrf.mxu2  ;;  %v3720_v32 = vpop.f32.mrf.mxu3  ;;  %v4014_v59 = vmul.f32 1.442695, %v9351_v61  ;;  %vm3845_vm7 = vcmp.gt.f32.partialorder %v9351_v61, 0.0 }
 0x3f1   : >> { %v2605_v25 = vadd.f32 %v2604_v60, %v10526_v2  ;;  %v3721_v1 = vadd.f32 %v3720_v32, %v8266_v4  ;;  %5182 = vrot.lane.b32.xlu1 %v4542_v3, %s7199_s28  ;;  %4796 = vrot.lane.b32.xlu0 %v4481_v42, %s7199_s28  ;;  %v4482_v32 = vadd.f32 1.0, %v4354_v9  ;;  %v9353_v37 = vpop.f32.mrf.mxu1 }
 0x3f3   : >> { %v6892_v11 = vpop.eup %6891  ;;  %v2752_v35 = vmax.f32 %v2605_v25, 0.0  ;;  %v4132_v8 = vmul.f32 1.442695, %v3721_v1  ;;  %v4703_v48 = vpop.permute.xlu1 %4702  ;;  %v4649_v25 = vmul.f32 %v9145_v7, %v9106_v47  ;;  %vm3904_vm4 = vcmp.gt.f32.partialorder %v3721_v1, 0.0 }
 0x3f4   : >> { %v9340_v41 = vpop.permute.xlu2 %5094  ;;  %v6470_v23 = vadd.f32 -1.0, %v6892_v11  ;;  %v4743_v58 = vmul.f32 %v9177_v10, %v4703_v48  ;;  %v3007_v12 = vld [vmem:[#allocation3 + $0x3a8] sm:$0xff]  ;;  %v6894_v3 = vpop.eup %6893 }
 0x3f5   : >> { %2880 = vst.msk [vmem:[#allocation3 + $0x3b0] sm:$0xff] %vm555_vm2, %v2752_v35  ;;  %6895 = vpow2.f32 %v4132_v8  ;;  %6360 = vmatmul.msk.f32.gmra.mxu3 %vm555_vm2, %v3007_v12  ;;  %v6410_v63 = vadd.f32 -1.0, %v6894_v3 }
 0x3f6   : >> { %v4415_v42 = vsel %vm3903_vm1, %v3718_v20, %v6470_v23  ;;  %v9347_v60 = vadd.f32 %v4743_v58, %v4661_v38  ;;  %6897 = vpow2.f32 %v4012_v39  ;;  %v4665_v58 = vadd.f32 %v7148_v53, %v4649_v25 }
 0x3f7   : >> { %v4543_v19 = vadd.f32 1.0, %v4415_v42  ;;  %v4355_v47 = vsel %vm3843_vm3, %v9307_v51, %v6410_v63  ;;  %v9374_v51 = vadd.f32 %v9233_v26, %v8266_v4  ;;  %v4647_v63 = vmul.f32 %v9145_v7, %v8999_v6 }
 0x3f8   : >> { %v2607_v11 = vpop.f32.mrf.mxu2  ;;  %v3723_v35 = vpop.f32.mrf.mxu3 }
 0x3f9   : >> { %v2608_v8 = vadd.f32 %v2607_v11, %v10526_v2  ;;  %v3724_v20 = vadd.f32 %v3723_v35, %v8266_v4  ;;  %4798 = vrot.lane.b32.xlu1 %v4482_v32, %s7199_s28  ;;  %5184 = vrot.lane.b32.xlu2 %v4543_v19, %s7199_s28  ;;  %v4483_v35 = vadd.f32 1.0, %v4355_v47  ;;  %v4016_v26 = vmul.f32 1.442695, %v9374_v51 }
 0x3fa   : >> { %vm3846_vm9 = vcmp.gt.f32.partialorder %v9374_v51, 0.0 }
 0x3fb   : >> { %v6896_v39 = vpop.eup %6895  ;;  %v2753_v48 = vmax.f32 %v2608_v8, 0.0  ;;  %v4134_v38 = vmul.f32 1.442695, %v3724_v20  ;;  %v9363_v23 = vpop.permute.xlu0 %5090  ;;  %vm3905_vm6 = vcmp.gt.f32.partialorder %v3724_v20, 0.0 }
 0x3fc   : >> { %v4711_v9 = vpop.permute.xlu2 %4710  ;;  %v6471_v12 = vadd.f32 -1.0, %v6896_v39  ;;  %v3008_v42 = vld [vmem:[#allocation3 + $0x3b0] sm:$0xff]  ;;  %v6898_v32 = vpop.eup %6897 }
 0x3fd   : >> { %v4747_v3 = vmul.f32 %v9177_v10, %v4711_v9  ;;  %2881 = vst.msk [vmem:[#allocation3 + $0x3b8] sm:$0xff] %vm555_vm2, %v2753_v48  ;;  %6899 = vpow2.f32 %v4134_v38  ;;  %6361 = vmatmul.msk.f32.gmra.mxu3 %vm555_vm2, %v3008_v42  ;;  %v6411_v25 = vadd.f32 -1.0, %v6898_v32 }
 0x3fe   : >> { %v4416_v19 = vsel %vm3904_vm4, %v3721_v1, %v6471_v12  ;;  %6901 = vpow2.f32 %v4014_v59  ;;  %v9382_v1 = vpop.f32.mrf.mxu1  ;;  %v4663_v12 = vadd.f32 %v7156_v57, %v4647_v63  ;;  %v9397_v57 = vadd.f32 %v9261_v55, %v8266_v4 }
 0x3ff   : >> { %v9370_v11 = vadd.f32 %v4747_v3, %v4665_v58  ;;  %v4544_v53 = vadd.f32 1.0, %v4416_v19  ;;  %v4356_v3 = vsel %vm3844_vm5, %v9330_v36, %v6411_v25  ;;  %v4648_v63 = vmul.f32 %v9145_v7, %v9062_v33 }
 0x400   : >> { %v2610_v8 = vpop.f32.mrf.mxu2  ;;  %v3726_v39 = vpop.f32.mrf.mxu3  ;;  %v4018_v55 = vmul.f32 1.442695, %v9397_v57  ;;  %vm3847_vm11 = vcmp.gt.f32.partialorder %v9397_v57, 0.0 }
 0x401   : >> { %v2611_v48 = vadd.f32 %v2610_v8, %v10526_v2  ;;  %v3727_v38 = vadd.f32 %v3726_v39, %v8266_v4  ;;  %5186 = vrot.lane.b32.xlu0 %v4544_v53, %s7199_s28  ;;  %4800 = vrot.lane.b32.xlu2 %v4483_v35, %s7199_s28  ;;  %v4484_v39 = vadd.f32 1.0, %v4356_v3  ;;  %v4664_v3 = vadd.f32 %v7152_v54, %v4648_v63 }
 0x402   : >> { %v9420_v54 = vadd.f32 %v9292_v15, %v8266_v4 }
 0x403   : >> { %v6900_v59 = vpop.eup %6899  ;;  %v2754_v9 = vmax.f32 %v2611_v48, 0.0  ;;  %v4136_v6 = vmul.f32 1.442695, %v3727_v38  ;;  %v9386_v47 = vpop.permute.xlu1 %5092  ;;  %vm3906_vm8 = vcmp.gt.f32.partialorder %v3727_v38, 0.0 }
 0x404   : >> { %v4707_v58 = vpop.permute.xlu0 %4706  ;;  %v6472_v42 = vadd.f32 -1.0, %v6900_v59  ;;  %v3009_v19 = vld [vmem:[#allocation3 + $0x3b8] sm:$0xff]  ;;  %v6902_v35 = vpop.eup %6901  ;;  %v4020_v15 = vmul.f32 1.442695, %v9420_v54  ;;  %vm3848_vm13 = vcmp.gt.f32.partialorder %v9420_v54, 0.0 }
 0x405   : >> { %v4745_v32 = vmul.f32 %v9177_v10, %v4707_v58  ;;  %2882 = vst.msk [vmem:[#allocation3 + $0x3c0] sm:$0xff] %vm555_vm2, %v2754_v9  ;;  %6903 = vpow2.f32 %v4136_v6  ;;  %6362 = vmatmul.msk.f32.gmra.mxu3 %vm555_vm2, %v3009_v19  ;;  %v6412_v25 = vadd.f32 -1.0, %v6902_v35 }
 0x406   : >> { %v4417_v53 = vsel %vm3905_vm6, %v3724_v20, %v6472_v42  ;;  %6905 = vpow2.f32 %v4016_v26 }
 0x407   : >> { %v9393_v8 = vadd.f32 %v4745_v32, %v4663_v12  ;;  %v4545_v36 = vadd.f32 1.0, %v4417_v53  ;;  %v4357_v42 = vsel %vm3845_vm7, %v9351_v61, %v6412_v25  ;;  %v4652_v25 = vmul.f32 %v9145_v7, %v9169_v52 }
 0x408   : >> { %v2613_v48 = vpop.f32.mrf.mxu2  ;;  %v3729_v59 = vpop.f32.mrf.mxu3 }
 0x409   : >> { %v2614_v9 = vadd.f32 %v2613_v48, %v10526_v2  ;;  %v3730_v6 = vadd.f32 %v3729_v59, %v8266_v4  ;;  %4802 = vrot.lane.b32.xlu0 %v4484_v39, %s7199_s28  ;;  %5188 = vrot.lane.b32.xlu1 %v4545_v36, %s7199_s28  ;;  %v9412_v39 = vpop.f32.mrf.mxu1  ;;  %v4485_v59 = vadd.f32 1.0, %v4357_v42 }
 0x40b   : >> { %v6904_v20 = vpop.eup %6903  ;;  %v2755_v26 = vmax.f32 %v2614_v9, 0.0  ;;  %v4138_v58 = vmul.f32 1.442695, %v3730_v6  ;;  %v4709_v12 = vpop.permute.xlu1 %4708  ;;  %vm3907_vm10 = vcmp.gt.f32.partialorder %v3730_v6, 0.0 }
 0x40c   : >> { %v9407_v33 = vpop.permute.xlu2 %5100  ;;  %v6473_v32 = vadd.f32 -1.0, %v6904_v20  ;;  %v4746_v19 = vmul.f32 %v9177_v10, %v4709_v12  ;;  %v3010_v35 = vld [vmem:[#allocation3 + $0x3c0] sm:$0xff]  ;;  %v6906_v53 = vpop.eup %6905 }
 0x40d   : >> { %10542 = vst [vmem:[#allocation74_spill] sm:$0xff] %v9407_v33  ;;  %6907 = vpow2.f32 %v4138_v58  ;;  %6363 = vmatmul.msk.f32.gmra.mxu3 %vm555_vm2, %v3010_v35  ;;  %v6413_v63 = vadd.f32 -1.0, %v6906_v53 }
 0x40e   : >> { %2883 = vst.msk [vmem:[#allocation3 + $0x3c8] sm:$0xff] %vm555_vm2, %v2755_v26  ;;  %v4418_v36 = vsel %vm3906_vm8, %v3727_v38, %v6473_v32  ;;  %v9416_v48 = vadd.f32 %v4746_v19, %v4664_v3  ;;  %6909 = vpow2.f32 %v4018_v55  ;;  %v4668_v32 = vadd.f32 %v7136_v46, %v4652_v25 }
 0x40f   : >> { %v4546_v61 = vadd.f32 1.0, %v4418_v36  ;;  %v4358_v52 = vsel %vm3846_vm9, %v9374_v51, %v6413_v63  ;;  %v9441_v51 = vadd.f32 %v9322_v17, %v8266_v4  ;;  %v4650_v25 = vmul.f32 %v9145_v7, %v9060_v16 }
 0x410   : >> { %v2616_v9 = vpop.f32.mrf.mxu2  ;;  %v3732_v20 = vpop.f32.mrf.mxu3 }
 0x411   : >> { %v2617_v26 = vadd.f32 %v2616_v9, %v10526_v2  ;;  %v3733_v58 = vadd.f32 %v3732_v20, %v8266_v4  ;;  %5190 = vrot.lane.b32.xlu2 %v4546_v61, %s7199_s28  ;;  %4804 = vrot.lane.b32.xlu1 %v4485_v59, %s7199_s28  ;;  %v4486_v9 = vadd.f32 1.0, %v4358_v52  ;;  %v9443_v46 = vpop.f32.mrf.mxu1  ;;  %v4022_v17 = vmul.f32 1.442695, %v9441_v51 }
 0x412   : >> { %vm3849_vm15 = vcmp.gt.f32.partialorder %v9441_v51, 0.0 }
 0x413   : >> { %v6908_v38 = vpop.eup %6907  ;;  %v2756_v55 = vmax.f32 %v2617_v26, 0.0  ;;  %v4140_v12 = vmul.f32 1.442695, %v3733_v58  ;;  %v9430_v42 = vpop.permute.xlu0 %5096  ;;  %vm3908_vm12 = vcmp.gt.f32.partialorder %v3733_v58, 0.0 }
 0x414   : >> { %v4717_v3 = vpop.permute.xlu2 %4716  ;;  %v6474_v19 = vadd.f32 -1.0, %v6908_v38  ;;  %v6910_v36 = vpop.eup %6909 }
 0x415   : >> { %v4750_v35 = vmul.f32 %v9177_v10, %v4717_v3  ;;  %v3011_v53 = vld [vmem:[#allocation3 + $0x3c8] sm:$0xff]  ;;  %2884 = vst.msk [vmem:[#allocation3 + $0x3d0] sm:$0xff] %vm555_vm2, %v2756_v55  ;;  %6911 = vpow2.f32 %v4140_v12  ;;  %v6414_v20 = vadd.f32 -1.0, %v6910_v36 }
 0x416   : >> { %6364 = vmatmul.msk.f32.gmra.mxu3 %vm555_vm2, %v3011_v53  ;;  %v4419_v59 = vsel %vm3907_vm10, %v3730_v6, %v6474_v19  ;;  %6913 = vpow2.f32 %v4020_v15 }
 0x417   : >> { %v9437_v61 = vadd.f32 %v4750_v35, %v4668_v32  ;;  %v4547_v63 = vadd.f32 1.0, %v4419_v59  ;;  %v4666_v32 = vadd.f32 %v7144_v50, %v4650_v25  ;;  %v4359_v19 = vsel %vm3847_vm11, %v9397_v57, %v6414_v20 }
 0x418   : >> { %v2619_v26 = vpop.f32.mrf.mxu2  ;;  %v3735_v38 = vpop.f32.mrf.mxu3  ;;  %v9464_v50 = vadd.f32 %v9353_v37, %v8266_v4  ;;  %v4651_v25 = vmul.f32 %v9145_v7, %v9119_v22 }
 0x419   : >> { %v2620_v55 = vadd.f32 %v2619_v26, %v10526_v2  ;;  %v3736_v6 = vadd.f32 %v3735_v38, %v8266_v4  ;;  %4806 = vrot.lane.b32.xlu2 %v4486_v9, %s7199_s28  ;;  %5192 = vrot.lane.b32.xlu0 %v4547_v63, %s7199_s28  ;;  %v4487_v26 = vadd.f32 1.0, %v4359_v19 }
 0x41a   : >> { %v4024_v37 = vmul.f32 1.442695, %v9464_v50  ;;  %v4667_v19 = vadd.f32 %v7140_v49, %v4651_v25  ;;  %vm3850_vm1 = vcmp.gt.f32.partialorder %v9464_v50, 0.0 }
 0x41b   : >> { %v6912_v15 = vpop.eup %6911  ;;  %v2757_v12 = vmax.f32 %v2620_v55, 0.0  ;;  %v4142_v3 = vmul.f32 1.442695, %v3736_v6  ;;  %v9453_v52 = vpop.permute.xlu1 %5098  ;;  %vm3909_vm14 = vcmp.gt.f32.partialorder %v3736_v6, 0.0 }
 0x41c   : >> { %v4713_v16 = vpop.permute.xlu0 %4712  ;;  %v6475_v35 = vadd.f32 -1.0, %v6912_v15  ;;  %v3012_v36 = vld [vmem:[#allocation3 + $0x3d0] sm:$0xff]  ;;  %v6914_v59 = vpop.eup %6913 }
 0x41d   : >> { %v4748_v53 = vmul.f32 %v9177_v10, %v4713_v16  ;;  %2885 = vst.msk [vmem:[#allocation3 + $0x3d8] sm:$0xff] %vm555_vm2, %v2757_v12  ;;  %6915 = vpow2.f32 %v4142_v3  ;;  %v6415_v20 = vadd.f32 -1.0, %v6914_v59 }
 0x41e   : >> { %6365 = vmatmul.msk.f32.gmra.mxu3 %vm555_vm2, %v3012_v36  ;;  %v4420_v9 = vsel %vm3908_vm12, %v3733_v58, %v6475_v35  ;;  %6917 = vpow2.f32 %v4022_v17  ;;  %v9472_v58 = vpop.f32.mrf.mxu1 }
 0x41f   : >> { %v9460_v63 = vadd.f32 %v4748_v53, %v4666_v32  ;;  %v4548_v57 = vadd.f32 1.0, %v4420_v9  ;;  %v4360_v35 = vsel %vm3848_vm13, %v9420_v54, %v6415_v20  ;;  %v9489_v54 = vadd.f32 %v9382_v1, %v8266_v4 }
 0x420   : >> { %v2622_v38 = vpop.f32.mrf.mxu2  ;;  %v3738_v55 = vpop.f32.mrf.mxu3  ;;  %v4488_v49 = vadd.f32 1.0, %v4360_v35 }
 0x421   : >> { %v2623_v15 = vadd.f32 %v2622_v38, %v10526_v2  ;;  %v3739_v12 = vadd.f32 %v3738_v55, %v8266_v4  ;;  %5194 = vrot.lane.b32.xlu1 %v4548_v57, %s7199_s28  ;;  %4808 = vrot.lane.b32.xlu0 %v4487_v26, %s7199_s28  ;;  %v4639_v26 = vmul.f32 %v9145_v7, %v8897_v44  ;;  %vm3851_vm4 = vcmp.gt.f32.partialorder %v9489_v54, 0.0 }
 0x422   : >> { %v4737_v55 = vmul.f32 %v9177_v10, %v9228_v21 }
 0x423   : >> { %v6916_v17 = vpop.eup %6915  ;;  %v2758_v3 = vmax.f32 %v2623_v15, 0.0  ;;  %v4144_v22 = vmul.f32 1.442695, %v3739_v12  ;;  %v4715_v16 = vpop.permute.xlu1 %4714  ;;  %vm3910_vm0 = vcmp.gt.f32.partialorder %v3739_v12, 0.0 }
 0x424   : >> { %v9476_v32 = vpop.permute.xlu2 %5106  ;;  %v6476_v53 = vadd.f32 -1.0, %v6916_v17  ;;  %v4749_v36 = vmul.f32 %v9177_v10, %v4715_v16  ;;  %v3013_v59 = vld [vmem:[#allocation3 + $0x3d8] sm:$0xff]  ;;  %v6918_v9 = vpop.eup %6917 }
 0x425   : >> { %10543 = vst [vmem:[#allocation75_spill] sm:$0xff] %v9476_v32  ;;  %6919 = vpow2.f32 %v4144_v22  ;;  %v6416_v20 = vadd.f32 -1.0, %v6918_v9  ;;  %v4026_v22 = vmul.f32 1.442695, %v9489_v54 }
 0x426   : >> { %2886 = vst.msk [vmem:[#allocation3 + $0x3e0] sm:$0xff] %vm555_vm2, %v2758_v3  ;;  %6366 = vmatmul.msk.f32.gmra.mxu3 %vm555_vm2, %v3013_v59  ;;  %v4421_v57 = vsel %vm3909_vm14, %v3736_v6, %v6476_v53  ;;  %v9485_v38 = vadd.f32 %v4749_v36, %v4667_v19  ;;  %6921 = vpow2.f32 %v4024_v37  ;;  %v9494_v3 = vld [vmem:[%s7555_s27 + $0x2] ss:$0 sm:$0xff]  ;;  %v10544_v6 = vld [vmem:[#allocation58_spill] sm:$0xff]  ;;  %v9506_v36 = vpop.f32.mrf.mxu1 }
 0x427   : >> { %v4549_v25 = vadd.f32 1.0, %v4421_v57  ;;  %v4655_v1 = vadd.f32 %v10544_v6, %v4639_v26  ;;  %v4361_v35 = vsel %vm3849_vm15, %v9441_v51, %v6416_v20  ;;  %v9515_v51 = vadd.f32 %v9412_v39, %v8266_v4 }
 0x428   : >> { %v2625_v15 = vpop.f32.mrf.mxu2  ;;  %v3741_v17 = vpop.f32.mrf.mxu3 }
 0x429   : >> { %v2626_v44 = vadd.f32 %v2625_v15, %v10526_v2  ;;  %v3742_v7 = vadd.f32 %v3741_v17, %v8266_v4  ;;  %4810 = vrot.lane.b32.xlu1 %v4488_v49, %s7199_s28  ;;  %5196 = vrot.lane.b32.xlu2 %v4549_v25, %s7199_s28  ;;  %v4753_v53 = vadd.f32 %v4737_v55, %v4655_v1  ;;  %v4489_v15 = vadd.f32 1.0, %v4361_v35  ;;  %v9518_v55 = vld [vmem:[%s7555_s27] ss:$0 sm:$0xff] }
 0x42a   : >> { %v4653_v17 = vmul.f32 %v9518_v55, %v9108_v28  ;;  %v10546_v35 = vld [vmem:[#allocation55_spill] sm:$0xff]  ;;  %vm3852_vm6 = vcmp.gt.f32.partialorder %v9515_v51, 0.0 }
 0x42b   : >> { %v6920_v37 = vpop.eup %6919  ;;  %v2759_v10 = vmax.f32 %v2626_v44, 0.0  ;;  %v4146_v21 = vmul.f32 1.442695, %v3742_v7  ;;  %v9503_v19 = vpop.permute.xlu0 %5102  ;;  %vm3911_vm3 = vcmp.gt.f32.partialorder %v3742_v7, 0.0 }
 0x42c   : >> { %v4789_v16 = vpop.permute.xlu2 %4788  ;;  %10545 = vst [vmem:[#allocation58_spill] sm:$0xff] %v9503_v19  ;;  %v6477_v59 = vadd.f32 -1.0, %v6920_v37  ;;  %v6922_v57 = vpop.eup %6921 }
 0x42d   : >> { %v4835_v9 = vmul.f32 %v9494_v3, %v4789_v16  ;;  %v3014_v26 = vld [vmem:[#allocation3 + $0x3e0] sm:$0xff]  ;;  %2887 = vst.msk [vmem:[#allocation3 + $0x3e8] sm:$0xff] %vm555_vm2, %v2759_v10  ;;  %6923 = vpow2.f32 %v4146_v21  ;;  %v6417_v44 = vadd.f32 -1.0, %v6922_v57 }
 0x42e   : >> { %6367 = vmatmul.msk.f32.gmra.mxu3 %vm555_vm2, %v3014_v26  ;;  %v4422_v49 = vsel %vm3910_vm0, %v3739_v12, %v6477_v59  ;;  %6925 = vpow2.f32 %v4026_v22  ;;  %v4028_v22 = vmul.f32 1.442695, %v9515_v51  ;;  %v9533_v26 = vld [vmem:[%s7555_s27 + $0x1] ss:$0 sm:$0xff] }
 0x42f   : >> { %v9511_v25 = vadd.f32 %v4835_v9, %v4753_v53  ;;  %v4550_v20 = vadd.f32 1.0, %v4422_v49  ;;  %v4669_v53 = vadd.f32 %v10546_v35, %v4653_v17  ;;  %v4362_v59 = vsel %vm3850_vm1, %v9464_v50, %v6417_v44 }
 0x430   : >> { %v2628_v6 = vpop.f32.mrf.mxu2  ;;  %v3744_v1 = vpop.f32.mrf.mxu3  ;;  %v4490_v17 = vadd.f32 1.0, %v4362_v59  ;;  %v9544_v50 = vadd.f32 %v9443_v46, %v8266_v4 }
 0x431   : >> { %v2629_v12 = vadd.f32 %v2628_v6, %v10526_v2  ;;  %v3745_v37 = vadd.f32 %v3744_v1, %v8266_v4  ;;  %5198 = vrot.lane.b32.xlu0 %v4550_v20, %s7199_s28  ;;  %4812 = vrot.lane.b32.xlu2 %v4489_v15, %s7199_s28  ;;  %v9538_v20 = vpop.f32.mrf.mxu1 }
 0x432   : >> { %vm3853_vm8 = vcmp.gt.f32.partialorder %v9544_v50, 0.0 }
 0x433   : >> { %v6924_v39 = vpop.eup %6923  ;;  %v2760_v10 = vmax.f32 %v2629_v12, 0.0  ;;  %v4148_v21 = vmul.f32 1.442695, %v3745_v37  ;;  %v9528_v28 = vpop.permute.xlu1 %5104  ;;  %vm3912_vm5 = vcmp.gt.f32.partialorder %v3745_v37, 0.0 }
 0x434   : >> { %v4719_v16 = vpop.permute.xlu0 %4718  ;;  %v6478_v9 = vadd.f32 -1.0, %v6924_v39  ;;  %v3015_v49 = vld [vmem:[#allocation3 + $0x3e8] sm:$0xff]  ;;  %v6926_v15 = vpop.eup %6925 }
 0x435   : >> { %v4751_v57 = vmul.f32 %v9533_v26, %v4719_v16  ;;  %2888 = vst.msk [vmem:[#allocation3 + $0x3f0] sm:$0xff] %vm555_vm2, %v2760_v10  ;;  %6927 = vpow2.f32 %v4148_v21  ;;  %v6418_v12 = vadd.f32 -1.0, %v6926_v15 }
 0x436   : >> { %6368 = vmatmul.msk.f32.gmra.mxu3 %vm555_vm2, %v3015_v49  ;;  %v4423_v6 = vsel %vm3911_vm3, %v3742_v7, %v6478_v9  ;;  %6929 = vpow2.f32 %v4028_v22  ;;  %v4030_v22 = vmul.f32 1.442695, %v9544_v50 }
 0x437   : >> { %v9540_v1 = vadd.f32 %v4751_v57, %v4669_v53  ;;  %v4551_v44 = vadd.f32 1.0, %v4423_v6  ;;  %v4363_v9 = vsel %vm3851_vm4, %v9489_v54, %v6418_v12  ;;  %v9563_v54 = vadd.f32 %v9472_v58, %v8266_v4 }
 0x438   : >> { %v2631_v39 = vpop.f32.mrf.mxu2  ;;  %v3747_v16 = vpop.f32.mrf.mxu3 }
 0x439   : >> { %v2632_v10 = vadd.f32 %v2631_v39, %v10526_v2  ;;  %v3748_v21 = vadd.f32 %v3747_v16, %v8266_v4  ;;  %5200 = vrot.lane.b32.xlu1 %v4551_v44, %s7199_s28  ;;  %4814 = vrot.lane.b32.xlu0 %v4490_v17, %s7199_s28  ;;  %v4491_v39 = vadd.f32 1.0, %v4363_v9  ;;  %v9606_v2 = vadd.f32 %v9538_v20, %v8266_v4 }
 0x43a   : >> { %vm3854_vm10 = vcmp.gt.f32.partialorder %v9563_v54, 0.0 }
 0x43b   : >> { %v6928_v7 = vpop.eup %6927  ;;  %v2761_v35 = vmax.f32 %v2632_v10, 0.0  ;;  %v4150_v46 = vmul.f32 1.442695, %v3748_v21  ;;  %v4787_v53 = vpop.permute.xlu1 %4786  ;;  %vm3913_vm7 = vcmp.gt.f32.partialorder %v3748_v21, 0.0  ;;  %v4036_v20 = vmul.f32 1.442695, %v9606_v2 }
 0x43c   : >> { %v9552_v59 = vpop.permute.xlu2 %5178  ;;  %v6479_v57 = vadd.f32 -1.0, %v6928_v7  ;;  %v4834_v49 = vmul.f32 %v9494_v3, %v4787_v53  ;;  %v3016_v15 = vld [vmem:[#allocation3 + $0x3f0] sm:$0xff]  ;;  %v6930_v6 = vpop.eup %6929  ;;  %vm3856_vm14 = vcmp.gt.f32.partialorder %v9606_v2, 0.0 }
 0x43d   : >> { %2889 = vst.msk [vmem:[#allocation3 + $0x3f8] sm:$0xff] %vm555_vm2, %v2761_v35  ;;  %6931 = vpow2.f32 %v4150_v46  ;;  %v6419_v16 = vadd.f32 -1.0, %v6930_v6  ;;  %v9565_v10 = vpop.f32.mrf.mxu1  ;;  %v4640_v6 = vmul.f32 %v9518_v55, %v8930_v45  ;;  %v10548_v45 = vld [vmem:[#allocation57_spill] sm:$0xff] }
 0x43e   : >> { %6369 = vmatmul.msk.f32.gmra.mxu3 %vm555_vm2, %v3016_v15  ;;  %v4424_v17 = vsel %vm3912_vm5, %v3745_v37, %v6479_v57  ;;  %v9559_v44 = vadd.f32 %v4834_v49, %v9191_v13  ;;  %6933 = vpow2.f32 %v4030_v22  ;;  %v4032_v13 = vmul.f32 1.442695, %v9563_v54 }
 0x43f   : >> { %v4552_v12 = vadd.f32 1.0, %v4424_v17  ;;  %v4364_v53 = vsel %vm3852_vm6, %v9515_v51, %v6419_v16  ;;  %v9584_v51 = vadd.f32 %v9506_v36, %v8266_v4 }
 0x440   : >> { %v3750_v7 = vpop.f32.mrf.mxu3 }
 0x441   : >> { %v3751_v35 = vadd.f32 %v3750_v7, %v8266_v4  ;;  %4816 = vrot.lane.b32.xlu1 %v4491_v39, %s7199_s28  ;;  %5202 = vrot.lane.b32.xlu2 %v4552_v12, %s7199_s28  ;;  %v4492_v12 = vadd.f32 1.0, %v4364_v53  ;;  %v4738_v7 = vmul.f32 %v9533_v26, %v9182_v34  ;;  %v4034_v36 = vmul.f32 1.442695, %v9584_v51 }
 0x442   : >> { %vm3855_vm12 = vcmp.gt.f32.partialorder %v9584_v51, 0.0 }
 0x443   : >> { %v6932_v37 = vpop.eup %6931  ;;  %v4152_v22 = vmul.f32 1.442695, %v3751_v35  ;;  %v9572_v58 = vpop.permute.xlu0 %5108  ;;  %vm3914_vm9 = vcmp.gt.f32.partialorder %v3751_v35, 0.0 }
 0x444   : >> { %v4795_v46 = vpop.permute.xlu2 %4794  ;;  %10547 = vst [vmem:[#allocation55_spill] sm:$0xff] %v9572_v58  ;;  %v6480_v9 = vadd.f32 -1.0, %v6932_v37  ;;  %v3017_v49 = vld [vmem:[#allocation3 + $0x3f8] sm:$0xff]  ;;  %v6934_v15 = vpop.eup %6933 }
 0x445   : >> { %v4838_v57 = vmul.f32 %v9494_v3, %v4795_v46  ;;  %6935 = vpow2.f32 %v4152_v22  ;;  %v6420_v37 = vadd.f32 -1.0, %v6934_v15 }
 0x446   : >> { %6370 = vmatmul.msk.f32.gmra.mxu3 %vm555_vm2, %v3017_v49  ;;  %v4425_v17 = vsel %vm3913_vm7, %v3748_v21, %v6480_v9  ;;  %6937 = vpow2.f32 %v4032_v13  ;;  %v9592_v21 = vpop.f32.mrf.mxu1 }
 0x447   : >> { %v9580_v39 = vadd.f32 %v4838_v57, %v9280_v14  ;;  %v4553_v16 = vadd.f32 1.0, %v4425_v17  ;;  %v4656_v14 = vadd.f32 %v10548_v45, %v4640_v6  ;;  %v4365_v49 = vsel %vm3853_vm8, %v9544_v50, %v6420_v37 }
 0x448   : >> { %v3753_v22 = vpop.f32.mrf.mxu3  ;;  %v4641_v6 = vmul.f32 %v9518_v55, %v8890_v56  ;;  %v4493_v45 = vadd.f32 1.0, %v4365_v49  ;;  %v4739_v50 = vmul.f32 %v9533_v26, %v9269_v30  ;;  %v10550_v56 = vld [vmem:[#allocation56_spill] sm:$0xff] }
 0x449   : >> { %v3754_v46 = vadd.f32 %v3753_v22, %v8266_v4  ;;  %5204 = vrot.lane.b32.xlu0 %v4553_v16, %s7199_s28  ;;  %4884 = vrot.lane.b32.xlu2 %v4492_v12, %s7199_s28  ;;  %v4754_v57 = vadd.f32 %v4738_v7, %v4656_v14 }
 0x44a   : >> { %v4657_v55 = vadd.f32 %v10550_v56, %v4641_v6 }
 0x44b   : >> { %v6936_v13 = vpop.eup %6935  ;;  %v4154_v53 = vmul.f32 1.442695, %v3754_v46  ;;  %v9596_v9 = vpop.permute.xlu1 %5110  ;;  %vm3915_vm11 = vcmp.gt.f32.partialorder %v3754_v46, 0.0 }
 0x44c   : >> { %10549 = vst [vmem:[#allocation57_spill] sm:$0xff] %v9596_v9  ;;  %v4791_v34 = vpop.permute.xlu0 %4790  ;;  %v6481_v15 = vadd.f32 -1.0, %v6936_v13  ;;  %v6938_v12 = vpop.eup %6937  ;;  %v4755_v30 = vadd.f32 %v4739_v50, %v4657_v55 }
 0x44d   : >> { %v4836_v17 = vmul.f32 %v9494_v3, %v4791_v34  ;;  %6939 = vpow2.f32 %v4154_v53  ;;  %v6421_v37 = vadd.f32 -1.0, %v6938_v12 }
 0x44e   : >> { %v4426_v16 = vsel %vm3914_vm9, %v3751_v35, %v6481_v15  ;;  %6941 = vpow2.f32 %v4034_v36 }
 0x44f   : >> { %v9602_v22 = vadd.f32 %v4836_v17, %v4754_v57  ;;  %v4554_v7 = vadd.f32 1.0, %v4426_v16  ;;  %v4366_v26 = vsel %vm3854_vm10, %v9563_v54, %v6421_v37  ;;  %v3585_v57 = vpop.f32.mrf.mxu1 }
 0x450   : >> { %v3756_v14 = vpop.f32.mrf.mxu3  ;;  %v4494_v16 = vadd.f32 1.0, %v4366_v26 }
 0x451   : >> { %v3757_v13 = vadd.f32 %v3756_v14, %v8266_v4  ;;  %4886 = vrot.lane.b32.xlu0 %v4493_v45, %s7199_s28  ;;  %5206 = vrot.lane.b32.xlu1 %v4554_v7, %s7199_s28  ;;  %v3580_v45 = vadd.f32 %v9565_v10, %v8266_v4 }
 0x453   : >> { %v6940_v35 = vpop.eup %6939  ;;  %v4156_v36 = vmul.f32 1.442695, %v3757_v13  ;;  %v4793_v53 = vpop.permute.xlu1 %4792  ;;  %vm3916_vm13 = vcmp.gt.f32.partialorder %v3757_v13, 0.0  ;;  %vm3857_vm0 = vcmp.gt.f32.partialorder %v3580_v45, 0.0 }
 0x454   : >> { %v9616_v34 = vpop.permute.xlu2 %5184  ;;  %v6482_v49 = vadd.f32 -1.0, %v6940_v35  ;;  %v4837_v15 = vmul.f32 %v9494_v3, %v4793_v53  ;;  %v6942_v17 = vpop.eup %6941 }
 0x455   : >> { %6943 = vpow2.f32 %v4156_v36  ;;  %v6422_v14 = vadd.f32 -1.0, %v6942_v17  ;;  %v3583_v17 = vadd.f32 %v9592_v21, %v8266_v4 }
 0x456   : >> { %v4427_v12 = vsel %vm3915_vm11, %v3754_v46, %v6482_v49  ;;  %v9620_v6 = vadd.f32 %v4837_v15, %v4755_v30  ;;  %6945 = vpow2.f32 %v4036_v20  ;;  %v4038_v46 = vmul.f32 1.442695, %v3580_v45 }
 0x457   : >> { %v4555_v7 = vadd.f32 1.0, %v4427_v12  ;;  %v4367_v20 = vsel %vm3855_vm12, %v9584_v51, %v6422_v14  ;;  %v3588_v30 = vpop.f32.mrf.mxu1  ;;  %vm3858_vm3 = vcmp.gt.f32.partialorder %v3583_v17, 0.0 }
 0x458   : >> { %v3759_v50 = vpop.f32.mrf.mxu3  ;;  %v4495_v15 = vadd.f32 1.0, %v4367_v20 }
 0x459   : >> { %v3760_v54 = vadd.f32 %v3759_v50, %v8266_v4  ;;  %5208 = vrot.lane.b32.xlu2 %v4555_v7, %s7199_s28  ;;  %4888 = vrot.lane.b32.xlu1 %v4494_v16, %s7199_s28 }
 0x45b   : >> { %v6944_v37 = vpop.eup %6943  ;;  %v4158_v56 = vmul.f32 1.442695, %v3760_v54  ;;  %v9628_v35 = vpop.permute.xlu0 %5180  ;;  %vm3917_vm15 = vcmp.gt.f32.partialorder %v3760_v54, 0.0 }
 0x45c   : >> { %v4801_v55 = vpop.permute.xlu2 %4800  ;;  %v6483_v10 = vadd.f32 -1.0, %v6944_v37  ;;  %v6946_v53 = vpop.eup %6945 }
 0x45d   : >> { %v4841_v36 = vmul.f32 %v9494_v3, %v4801_v55  ;;  %6947 = vpow2.f32 %v4158_v56  ;;  %v6423_v16 = vadd.f32 -1.0, %v6946_v53  ;;  %v3586_v53 = vadd.f32 %v3585_v57, %v8266_v4 }
 0x45e   : >> { %v4428_v26 = vsel %vm3916_vm13, %v3757_v13, %v6483_v10  ;;  %6949 = vpow2.f32 %v4038_v46  ;;  %v4040_v13 = vmul.f32 1.442695, %v3583_v17 }
 0x45f   : >> { %v9633_v49 = vadd.f32 %v4841_v36, %v9347_v60  ;;  %v4556_v12 = vadd.f32 1.0, %v4428_v26  ;;  %v4368_v46 = vsel %vm3856_vm14, %v9606_v2, %v6423_v16  ;;  %vm3859_vm5 = vcmp.gt.f32.partialorder %v3586_v53, 0.0 }
 0x460   : >> { %v3762_v7 = vpop.f32.mrf.mxu3  ;;  %v4496_v36 = vadd.f32 1.0, %v4368_v46 }
 0x461   : >> { %v3763_v51 = vadd.f32 %v3762_v7, %v8266_v4  ;;  %4890 = vrot.lane.b32.xlu2 %v4495_v15, %s7199_s28  ;;  %5276 = vrot.lane.b32.xlu0 %v4556_v12, %s7199_s28  ;;  %v3591_v12 = vpop.f32.mrf.mxu1 }
 0x463   : >> { %v6948_v14 = vpop.eup %6947  ;;  %v4160_v60 = vmul.f32 1.442695, %v3763_v51  ;;  %v9641_v50 = vpop.permute.xlu1 %5182  ;;  %vm3918_vm1 = vcmp.gt.f32.partialorder %v3763_v51, 0.0 }
 0x464   : >> { %v4797_v37 = vpop.permute.xlu0 %4796  ;;  %v6484_v21 = vadd.f32 -1.0, %v6948_v14  ;;  %v6950_v55 = vpop.eup %6949 }
 0x465   : >> { %v4839_v56 = vmul.f32 %v9494_v3, %v4797_v37  ;;  %6951 = vpow2.f32 %v4160_v60  ;;  %v6424_v15 = vadd.f32 -1.0, %v6950_v55 }
 0x466   : >> { %v4429_v20 = vsel %vm3917_vm15, %v3760_v54, %v6484_v21  ;;  %6953 = vpow2.f32 %v4040_v13  ;;  %v4042_v54 = vmul.f32 1.442695, %v3586_v53 }
 0x467   : >> { %v9646_v10 = vadd.f32 %v4839_v56, %v9237_v40  ;;  %v4557_v26 = vadd.f32 1.0, %v4429_v20  ;;  %v4369_v13 = vsel %vm3857_vm0, %v3580_v45, %v6424_v15  ;;  %v3589_v20 = vadd.f32 %v3588_v30, %v8266_v4 }
 0x468   : >> { %v3765_v7 = vpop.f32.mrf.mxu3  ;;  %v4497_v55 = vadd.f32 1.0, %v4369_v13 }
 0x469   : >> { %v3766_v2 = vadd.f32 %v3765_v7, %v8266_v4  ;;  %5278 = vrot.lane.b32.xlu1 %v4557_v26, %s7199_s28  ;;  %4892 = vrot.lane.b32.xlu0 %v4496_v36, %s7199_s28  ;;  %v3594_v45 = vpop.f32.mrf.mxu1  ;;  %vm3860_vm7 = vcmp.gt.f32.partialorder %v3589_v20, 0.0 }
 0x46b   : >> { %v6952_v16 = vpop.eup %6951  ;;  %v4162_v14 = vmul.f32 1.442695, %v3766_v2  ;;  %v4799_v40 = vpop.permute.xlu1 %4798  ;;  %vm3919_vm4 = vcmp.gt.f32.partialorder %v3766_v2, 0.0 }
 0x46c   : >> { %v9652_v60 = vpop.permute.xlu2 %5190  ;;  %v6485_v37 = vadd.f32 -1.0, %v6952_v16  ;;  %v4840_v57 = vmul.f32 %v9494_v3, %v4799_v40  ;;  %v6954_v46 = vpop.eup %6953 }
 0x46d   : >> { %6955 = vpow2.f32 %v4162_v14  ;;  %v6425_v26 = vadd.f32 -1.0, %v6954_v46 }
 0x46e   : >> { %v4430_v21 = vsel %vm3918_vm1, %v3763_v51, %v6485_v37  ;;  %v9656_v56 = vadd.f32 %v4840_v57, %v9326_v0  ;;  %6957 = vpow2.f32 %v4042_v54  ;;  %v4044_v51 = vmul.f32 1.442695, %v3589_v20 }
 0x46f   : >> { %v4558_v36 = vadd.f32 1.0, %v4430_v21  ;;  %v4370_v54 = vsel %vm3858_vm3, %v3583_v17, %v6425_v26  ;;  %v3592_v21 = vadd.f32 %v3591_v12, %v8266_v4 }
 0x470   : >> { %v3768_v7 = vpop.f32.mrf.mxu3  ;;  %v4498_v46 = vadd.f32 1.0, %v4370_v54 }
 0x471   : >> { %v3769_v58 = vadd.f32 %v3768_v7, %v8266_v4  ;;  %4894 = vrot.lane.b32.xlu1 %v4497_v55, %s7199_s28  ;;  %5280 = vrot.lane.b32.xlu2 %v4558_v36, %s7199_s28  ;;  %v4046_v26 = vmul.f32 1.442695, %v3592_v21  ;;  %vm3861_vm9 = vcmp.gt.f32.partialorder %v3592_v21, 0.0 }
 0x473   : >> { %v6956_v15 = vpop.eup %6955  ;;  %v4164_v16 = vmul.f32 1.442695, %v3769_v58  ;;  %v9662_v14 = vpop.permute.xlu0 %5186  ;;  %vm3920_vm6 = vcmp.gt.f32.partialorder %v3769_v58, 0.0 }
 0x474   : >> { %v4807_v0 = vpop.permute.xlu2 %4806  ;;  %v6486_v40 = vadd.f32 -1.0, %v6956_v15  ;;  %v6958_v13 = vpop.eup %6957 }
 0x475   : >> { %v4844_v30 = vmul.f32 %v9494_v3, %v4807_v0  ;;  %6959 = vpow2.f32 %v4164_v16  ;;  %v6426_v36 = vadd.f32 -1.0, %v6958_v13 }
 0x476   : >> { %v4431_v37 = vsel %vm3919_vm4, %v3766_v2, %v6486_v40  ;;  %6961 = vpow2.f32 %v4044_v51  ;;  %v3597_v51 = vpop.f32.mrf.mxu1 }
 0x477   : >> { %v9666_v57 = vadd.f32 %v4844_v30, %v9416_v48  ;;  %v4559_v55 = vadd.f32 1.0, %v4431_v37  ;;  %v4371_v16 = vsel %vm3859_vm5, %v3586_v53, %v6426_v36  ;;  %v3595_v37 = vadd.f32 %v3594_v45, %v8266_v4 }
 0x478   : >> { %v3771_v7 = vpop.f32.mrf.mxu3  ;;  %v4499_v13 = vadd.f32 1.0, %v4371_v16 }
 0x479   : >> { %v3772_v32 = vadd.f32 %v3771_v7, %v8266_v4  ;;  %5282 = vrot.lane.b32.xlu0 %v4559_v55, %s7199_s28  ;;  %4896 = vrot.lane.b32.xlu2 %v4498_v46, %s7199_s28  ;;  %vm3862_vm11 = vcmp.gt.f32.partialorder %v3595_v37, 0.0 }
 0x47b   : >> { %v6960_v17 = vpop.eup %6959  ;;  %v4166_v2 = vmul.f32 1.442695, %v3772_v32  ;;  %v9672_v15 = vpop.permute.xlu1 %5188  ;;  %vm3921_vm8 = vcmp.gt.f32.partialorder %v3772_v32, 0.0 }
 0x47c   : >> { %v4803_v48 = vpop.permute.xlu0 %4802  ;;  %v6487_v0 = vadd.f32 -1.0, %v6960_v17  ;;  %v6962_v54 = vpop.eup %6961  ;;  %v4048_v17 = vmul.f32 1.442695, %v3595_v37 }
 0x47d   : >> { %v4842_v12 = vmul.f32 %v9494_v3, %v4803_v48  ;;  %6963 = vpow2.f32 %v4166_v2  ;;  %v6427_v55 = vadd.f32 -1.0, %v6962_v54 }
 0x47e   : >> { %v4432_v40 = vsel %vm3920_vm6, %v3769_v58, %v6487_v0  ;;  %6965 = vpow2.f32 %v4046_v26  ;;  %v3600_v0 = vpop.f32.mrf.mxu1 }
 0x47f   : >> { %v9676_v30 = vadd.f32 %v4842_v12, %v9303_v5  ;;  %v4560_v46 = vadd.f32 1.0, %v4432_v40  ;;  %v4372_v48 = vsel %vm3860_vm7, %v3589_v20, %v6427_v55 }
 0x480   : >> { %v3774_v7 = vpop.f32.mrf.mxu3  ;;  %v4500_v40 = vadd.f32 1.0, %v4372_v48 }
 0x481   : >> { %v3775_v53 = vadd.f32 %v3774_v7, %v8266_v4  ;;  %5284 = vrot.lane.b32.xlu1 %v4560_v46, %s7199_s28  ;;  %4898 = vrot.lane.b32.xlu0 %v4499_v13, %s7199_s28  ;;  %v3598_v13 = vadd.f32 %v3597_v51, %v8266_v4 }
 0x483   : >> { %v6964_v36 = vpop.eup %6963  ;;  %v4168_v58 = vmul.f32 1.442695, %v3775_v53  ;;  %v4805_v2 = vpop.permute.xlu1 %4804  ;;  %vm3922_vm10 = vcmp.gt.f32.partialorder %v3775_v53, 0.0  ;;  %vm3863_vm13 = vcmp.gt.f32.partialorder %v3598_v13, 0.0 }
 0x484   : >> { %v9682_v5 = vpop.permute.xlu2 %5196  ;;  %v6488_v26 = vadd.f32 -1.0, %v6964_v36  ;;  %v4843_v45 = vmul.f32 %v9494_v3, %v4805_v2  ;;  %v6966_v16 = vpop.eup %6965  ;;  %v4050_v36 = vmul.f32 1.442695, %v3598_v13 }
 0x485   : >> { %6967 = vpow2.f32 %v4168_v58  ;;  %v6428_v7 = vadd.f32 -1.0, %v6966_v16  ;;  %v9699_v16 = vadd.f32 %v3600_v0, %v8266_v4 }
 0x486   : >> { %v4433_v12 = vsel %vm3921_vm8, %v3772_v32, %v6488_v26  ;;  %v9686_v54 = vadd.f32 %v4843_v45, %v9393_v8  ;;  %6969 = vpow2.f32 %v4048_v17 }
 0x487   : >> { %v4561_v46 = vadd.f32 1.0, %v4433_v12  ;;  %v4373_v2 = vsel %vm3861_vm9, %v3592_v21, %v6428_v7  ;;  %vm3864_vm15 = vcmp.gt.f32.partialorder %v9699_v16, 0.0 }
 0x488   : >> { %v3777_v9 = vpop.f32.mrf.mxu3  ;;  %v4501_v45 = vadd.f32 1.0, %v4373_v2 }
 0x489   : >> { %v3778_v20 = vadd.f32 %v3777_v9, %v8266_v4  ;;  %4900 = vrot.lane.b32.xlu1 %v4500_v40, %s7199_s28  ;;  %5286 = vrot.lane.b32.xlu2 %v4561_v46, %s7199_s28  ;;  %v3603_v46 = vpop.f32.mrf.mxu1 }
 0x48b   : >> { %v6968_v55 = vpop.eup %6967  ;;  %v4170_v32 = vmul.f32 1.442695, %v3778_v20  ;;  %v9692_v8 = vpop.permute.xlu0 %5192  ;;  %vm3923_vm12 = vcmp.gt.f32.partialorder %v3778_v20, 0.0 }
 0x48c   : >> { %v4813_v58 = vpop.permute.xlu2 %4812  ;;  %v6489_v17 = vadd.f32 -1.0, %v6968_v55  ;;  %v6970_v48 = vpop.eup %6969 }
 0x48d   : >> { %v4847_v51 = vmul.f32 %v9494_v3, %v4813_v58  ;;  %6971 = vpow2.f32 %v4170_v32  ;;  %v6429_v40 = vadd.f32 -1.0, %v6970_v48  ;;  %v9712_v48 = vadd.f32 %v3603_v46, %v8266_v4 }
 0x48e   : >> { %v4434_v26 = vsel %vm3922_vm10, %v3775_v53, %v6489_v17  ;;  %6973 = vpow2.f32 %v4050_v36 }
 0x48f   : >> { %v9696_v9 = vadd.f32 %v4847_v51, %v9485_v38  ;;  %v4562_v12 = vadd.f32 1.0, %v4434_v26  ;;  %v4052_v38 = vmul.f32 1.442695, %v9699_v16  ;;  %v4374_v0 = vsel %vm3862_vm11, %v3595_v37, %v6429_v40 }
 0x490   : >> { %v3780_v19 = vpop.f32.mrf.mxu3  ;;  %v4502_v51 = vadd.f32 1.0, %v4374_v0  ;;  %vm3865_vm1 = vcmp.gt.f32.partialorder %v9712_v48, 0.0 }
 0x491   : >> { %10551 = vst [vmem:[#allocation56_spill] sm:$0xff] %v9696_v9  ;;  %v3781_v21 = vadd.f32 %v3780_v19, %v8266_v4  ;;  %5288 = vrot.lane.b32.xlu0 %v4562_v12, %s7199_s28  ;;  %4902 = vrot.lane.b32.xlu2 %v4501_v45, %s7199_s28  ;;  %v3606_v40 = vpop.f32.mrf.mxu1 }
 0x493   : >> { %v6972_v7 = vpop.eup %6971  ;;  %v4172_v53 = vmul.f32 1.442695, %v3781_v21  ;;  %v9705_v55 = vpop.permute.xlu1 %5194  ;;  %vm3924_vm14 = vcmp.gt.f32.partialorder %v3781_v21, 0.0 }
 0x494   : >> { %v4809_v36 = vpop.permute.xlu0 %4808  ;;  %v6490_v32 = vadd.f32 -1.0, %v6972_v7  ;;  %v6974_v2 = vpop.eup %6973 }
 0x495   : >> { %v4845_v58 = vmul.f32 %v9494_v3, %v4809_v36  ;;  %6975 = vpow2.f32 %v4172_v53  ;;  %v6430_v45 = vadd.f32 -1.0, %v6974_v2 }
 0x496   : >> { %v4435_v19 = vsel %vm3923_vm12, %v3778_v20, %v6490_v32  ;;  %6977 = vpow2.f32 %v4052_v38 }
 0x497   : >> { %v9709_v17 = vadd.f32 %v4845_v58, %v9370_v11  ;;  %v4563_v26 = vadd.f32 1.0, %v4435_v19  ;;  %v4054_v11 = vmul.f32 1.442695, %v9712_v48  ;;  %v4375_v46 = vsel %vm3863_vm13, %v3598_v13, %v6430_v45  ;;  %v9728_v13 = vld [vmem:[%s7555_s27 + $0x3] ss:$0 sm:$0xff] }
 0x498   : >> { %v4503_v19 = vadd.f32 1.0, %v4375_v46 }
 0x499   : >> { %10552 = vst [vmem:[#allocation76_spill] sm:$0xff] %v9709_v17  ;;  %v3783_v12 = vpop.f32.mrf.mxu3  ;;  %4904 = vrot.lane.b32.xlu0 %v4502_v51, %s7199_s28  ;;  %5290 = vrot.lane.b32.xlu1 %v4563_v26, %s7199_s28  ;;  %v9725_v51 = vadd.f32 %v3606_v40, %v8266_v4 }
 0x49a   : >> { %v3784_v37 = vadd.f32 %v3783_v12, %v8266_v4 }
 0x49b   : >> { %v6976_v7 = vpop.eup %6975  ;;  %v4811_v53 = vpop.permute.xlu1 %4810  ;;  %v4056_v40 = vmul.f32 1.442695, %v9725_v51  ;;  %vm3866_vm4 = vcmp.gt.f32.partialorder %v9725_v51, 0.0 }
 0x49c   : >> { %v4174_v20 = vmul.f32 1.442695, %v3784_v37  ;;  %v9718_v38 = vpop.permute.xlu2 %5202  ;;  %v6491_v36 = vadd.f32 -1.0, %v6976_v7  ;;  %v4846_v0 = vmul.f32 %v9494_v3, %v4811_v53  ;;  %v6978_v32 = vpop.eup %6977  ;;  %vm3925_vm0 = vcmp.gt.f32.partialorder %v3784_v37, 0.0 }
 0x49d   : >> { %v6431_v12 = vadd.f32 -1.0, %v6978_v32 }
 0x49e   : >> { %6979 = vpow2.f32 %v4174_v20  ;;  %v4436_v58 = vsel %vm3924_vm14, %v3781_v21, %v6491_v36  ;;  %v9722_v2 = vadd.f32 %v4846_v0, %v9460_v63  ;;  %v9734_v21 = vld [vmem:[%s7555_s27 + $0x4] ss:$0 sm:$0xff] }
 0x49f   : >> { %6981 = vpow2.f32 %v4054_v11  ;;  %v4564_v26 = vadd.f32 1.0, %v4436_v58  ;;  %v4376_v53 = vsel %vm3864_vm15, %v9699_v16, %v6431_v12  ;;  %v5030_v32 = vmul.f32 %v9734_v21, %v8922_v18  ;;  %v9745_v58 = vld [vmem:[%s7555_s27 + $0x5] ss:$0 sm:$0xff] }
 0x4a1   : >> { %v3786_v9 = vpop.f32.mrf.mxu3  ;;  %5292 = vrot.lane.b32.xlu2 %v4564_v26, %s7199_s28  ;;  %4906 = vrot.lane.b32.xlu1 %v4503_v19, %s7199_s28  ;;  %v9748_v19 = vld [vmem:[%s7555_s27 + $0x6] ss:$0 sm:$0xff] }
 0x4a2   : >> { %v3787_v45 = vadd.f32 %v3786_v9, %v8266_v4  ;;  %v3609_v9 = vpop.f32.mrf.mxu1 }
 0x4a3   : >> { %v9738_v20 = vpop.permute.xlu0 %5198  ;;  %v3610_v16 = vadd.f32 %v3609_v9, %v8266_v4 }
 0x4a4   : >> { %v6980_v63 = vpop.eup %6979  ;;  %v4176_v7 = vmul.f32 1.442695, %v3787_v45  ;;  %v4885_v11 = vpop.permute.xlu2 %4884  ;;  %10553 = vst [vmem:[#allocation77_spill] sm:$0xff] %v9738_v20  ;;  %v4504_v20 = vadd.f32 1.0, %v4376_v53  ;;  %vm3926_vm3 = vcmp.gt.f32.partialorder %v3787_v45, 0.0 }
 0x4a5   : >> { %v6492_v46 = vadd.f32 -1.0, %v6980_v63  ;;  %v4932_v36 = vmul.f32 %v9728_v13, %v4885_v11  ;;  %v6982_v0 = vpop.eup %6981  ;;  %v5128_v63 = vmul.f32 %v9745_v58, %v9252_v43  ;;  %v4058_v53 = vmul.f32 1.442695, %v3610_v16 }
 0x4a6   : >> { %6983 = vpow2.f32 %v4176_v7  ;;  %v6432_v11 = vadd.f32 -1.0, %v6982_v0  ;;  %vm3867_vm6 = vcmp.gt.f32.partialorder %v3610_v16, 0.0 }
 0x4a7   : >> { %v4437_v26 = vsel %vm3925_vm0, %v3784_v37, %v6492_v46  ;;  %v4948_v17 = vadd.f32 %v4932_v36, %v9559_v44  ;;  %6985 = vpow2.f32 %v4056_v40  ;;  %v5226_v44 = vmul.f32 %v9748_v19, %v9552_v59 }
 0x4a8   : >> { %v4565_v12 = vadd.f32 1.0, %v4437_v26 }
 0x4a9   : >> { %v5046_v7 = vadd.f32 %v5030_v32, %v4948_v17  ;;  %v3789_v33 = vpop.f32.mrf.mxu3  ;;  %4908 = vrot.lane.b32.xlu2 %v4504_v20, %s7199_s28  ;;  %v4377_v17 = vsel %vm3865_vm1, %v9712_v48, %v6432_v11 }
 0x4aa   : >> { %v3790_v18 = vadd.f32 %v3789_v33, %v8266_v4  ;;  %5294 = vrot.lane.b32.xlu0 %v4565_v12, %s7199_s28  ;;  %v4505_v26 = vadd.f32 1.0, %v4377_v17 }
 0x4ab   : >> { %v5144_v37 = vadd.f32 %v5128_v63, %v5046_v7  ;;  %v9760_v46 = vpop.permute.xlu1 %5200  ;;  %v4815_v43 = vpop.permute.xlu0 %4814 }
 0x4ac   : >> { %v6984_v40 = vpop.eup %6983  ;;  %v4178_v9 = vmul.f32 1.442695, %v3790_v18  ;;  %10554 = vst [vmem:[#allocation78_spill] sm:$0xff] %v9760_v46  ;;  %v4848_v33 = vmul.f32 %v9494_v3, %v4815_v43  ;;  %vm3927_vm5 = vcmp.gt.f32.partialorder %v3790_v18, 0.0 }
 0x4ad   : >> { %v6493_v36 = vadd.f32 -1.0, %v6984_v40  ;;  %v9764_v20 = vadd.f32 %v5226_v44, %v5144_v37  ;;  %v6986_v0 = vpop.eup %6985 }
 0x4ae   : >> { %6987 = vpow2.f32 %v4178_v9  ;;  %v9767_v32 = vadd.f32 %v4848_v33, %v9437_v61  ;;  %v6433_v63 = vadd.f32 -1.0, %v6986_v0 }
 0x4af   : >> { %v4438_v59 = vsel %vm3926_vm3, %v3787_v45, %v6493_v36  ;;  %6989 = vpow2.f32 %v4058_v53 }
 0x4b0   : >> { %v4566_v12 = vadd.f32 1.0, %v4438_v59  ;;  %v4378_v61 = vsel %vm3866_vm4, %v9725_v51, %v6433_v63 }
 0x4b1   : >> { %v3792_v7 = vpop.f32.mrf.mxu3  ;;  %v4506_v17 = vadd.f32 1.0, %v4378_v61 }
 0x4b2   : >> { %v3793_v46 = vadd.f32 %v3792_v7, %v8266_v4  ;;  %5296 = vrot.lane.b32.xlu1 %v4566_v12, %s7199_s28  ;;  %4910 = vrot.lane.b32.xlu0 %v4505_v26, %s7199_s28  ;;  %v5033_v7 = vmul.f32 %v9734_v21, %v8973_v24 }
 0x4b3   : >> { %v4817_v44 = vpop.permute.xlu1 %4816  ;;  %v9773_v45 = vpop.permute.xlu2 %5208 }
 0x4b4   : >> { %v6988_v48 = vpop.eup %6987  ;;  %v4180_v11 = vmul.f32 1.442695, %v3793_v46  ;;  %v4849_v40 = vmul.f32 %v9494_v3, %v4817_v44  ;;  %vm3928_vm7 = vcmp.gt.f32.partialorder %v3793_v46, 0.0 }
 0x4b5   : >> { %v6494_v37 = vadd.f32 -1.0, %v6988_v48  ;;  %v6990_v53 = vpop.eup %6989 }
 0x4b6   : >> { %6991 = vpow2.f32 %v4180_v11  ;;  %v9778_v43 = vadd.f32 %v4849_v40, %v9540_v1  ;;  %v6434_v33 = vadd.f32 -1.0, %v6990_v53 }
 0x4b7   : >> { %v4439_v9 = vsel %vm3927_vm5, %v3790_v18, %v6494_v37  ;;  %v5131_v37 = vmul.f32 %v9745_v58, %v9317_v62 }
 0x4b8   : >> { %v4567_v36 = vadd.f32 1.0, %v4439_v9  ;;  %v4379_v18 = vsel %vm3867_vm6, %v3610_v16, %v6434_v33  ;;  %v5229_v9 = vmul.f32 %v9748_v19, %v9616_v34 }
 0x4b9   : >> { %v3795_v0 = vpop.f32.mrf.mxu3  ;;  %v4507_v44 = vadd.f32 1.0, %v4379_v18  ;;  %v10555_v18 = vld [vmem:[#allocation72_spill] sm:$0xff] }
 0x4ba   : >> { %v3796_v59 = vadd.f32 %v3795_v0, %v8266_v4  ;;  %4912 = vrot.lane.b32.xlu1 %v4506_v17, %s7199_s28  ;;  %5298 = vrot.lane.b32.xlu2 %v4567_v36, %s7199_s28 }
 0x4bb   : >> { %v4891_v26 = vpop.permute.xlu2 %4890  ;;  %v9783_v12 = vpop.permute.xlu0 %5204 }
 0x4bc   : >> { %v6992_v51 = vpop.eup %6991  ;;  %v4182_v3 = vmul.f32 1.442695, %v3796_v59  ;;  %v4935_v1 = vmul.f32 %v9728_v13, %v4891_v26  ;;  %vm3929_vm8 = vcmp.gt.f32.partialorder %v3796_v59, 0.0 }
 0x4bd   : >> { %v6495_v63 = vadd.f32 -1.0, %v6992_v51  ;;  %v5031_v51 = vmul.f32 %v9734_v21, %v8959_v29 }
 0x4be   : >> { %6993 = vpow2.f32 %v4182_v3  ;;  %v4951_v11 = vadd.f32 %v4935_v1, %v9620_v6 }
 0x4bf   : >> { %v4440_v48 = vsel %vm3928_vm7, %v3793_v46, %v6495_v63  ;;  %v5129_v63 = vmul.f32 %v9745_v58, %v10555_v18 }
 0x4c0   : >> { %v4568_v61 = vadd.f32 1.0, %v4440_v48  ;;  %v5049_v40 = vadd.f32 %v5033_v7, %v4951_v11  ;;  %v5227_v11 = vmul.f32 %v9748_v19, %v9628_v35  ;;  %v5130_v35 = vmul.f32 %v9745_v58, %v9296_v27 }
 0x4c1   : >> { %v3798_v53 = vpop.f32.mrf.mxu3 }
 0x4c2   : >> { %v3799_v16 = vadd.f32 %v3798_v53, %v8266_v4  ;;  %5300 = vrot.lane.b32.xlu0 %v4568_v61, %s7199_s28  ;;  %4914 = vrot.lane.b32.xlu2 %v4507_v44, %s7199_s28  ;;  %v5147_v24 = vadd.f32 %v5131_v37, %v5049_v40 }
 0x4c3   : >> { %v9796_v6 = vpop.permute.xlu1 %5206  ;;  %v4887_v36 = vpop.permute.xlu0 %4886 }
 0x4c4   : >> { %v6994_v46 = vpop.eup %6993  ;;  %v4184_v17 = vmul.f32 1.442695, %v3799_v16  ;;  %v4933_v62 = vmul.f32 %v9728_v13, %v4887_v36  ;;  %v9799_v0 = vadd.f32 %v5229_v9, %v5147_v24  ;;  %vm3930_vm9 = vcmp.gt.f32.partialorder %v3799_v16, 0.0  ;;  %v10556_v9 = vld [vmem:[#allocation60_spill] sm:$0xff] }
 0x4c5   : >> { %v6496_v33 = vadd.f32 -1.0, %v6994_v46  ;;  %v5032_v24 = vmul.f32 %v9734_v21, %v10556_v9  ;;  %v5232_v9 = vmul.f32 %v9748_v19, %v9652_v60 }
 0x4c6   : >> { %6995 = vpow2.f32 %v4184_v17  ;;  %v4949_v26 = vadd.f32 %v4933_v62, %v9511_v25 }
 0x4c7   : >> { %v4441_v3 = vsel %vm3929_vm8, %v3796_v59, %v6496_v33  ;;  %v9815_v33 = vld [vmem:[%s7555_s27 + $0x7] ss:$0 sm:$0xff] }
 0x4c8   : >> { %v4569_v34 = vadd.f32 1.0, %v4441_v3  ;;  %v5047_v1 = vadd.f32 %v5031_v51, %v4949_v26  ;;  %v5228_v51 = vmul.f32 %v9748_v19, %v9641_v50 }
 0x4c9   : >> { %v3801_v7 = vpop.f32.mrf.mxu3 }
 0x4ca   : >> { %v3802_v48 = vadd.f32 %v3801_v7, %v8266_v4  ;;  %5302 = vrot.lane.b32.xlu1 %v4569_v34, %s7199_s28  ;;  %v5145_v44 = vadd.f32 %v5129_v63, %v5047_v1 }
 0x4cb   : >> { %v4889_v59 = vpop.permute.xlu1 %4888  ;;  %v5281_v37 = vpop.permute.xlu2 %5280 }
 0x4cc   : >> { %v6996_v61 = vpop.eup %6995  ;;  %v4186_v29 = vmul.f32 1.442695, %v3802_v48  ;;  %v4934_v40 = vmul.f32 %v9728_v13, %v4889_v59  ;;  %v5243_v53 = vadd.f32 %v5227_v11, %v5145_v44  ;;  %v5326_v34 = vmul.f32 %v9815_v33, %v5281_v37  ;;  %v10557_v11 = vld [vmem:[#allocation64_spill] sm:$0xff] }
 0x4cd   : >> { %v6497_v25 = vadd.f32 -1.0, %v6996_v61  ;;  %v5036_v27 = vmul.f32 %v9734_v21, %v10557_v11  ;;  %vm3931_vm10 = vcmp.gt.f32.partialorder %v3802_v48, 0.0 }
 0x4ce   : >> { %6997 = vpow2.f32 %v4186_v29  ;;  %v4950_v17 = vadd.f32 %v4934_v40, %v9602_v22 }
 0x4cf   : >> { %v4442_v46 = vsel %vm3930_vm9, %v3799_v16, %v6497_v25  ;;  %v5134_v25 = vmul.f32 %v9745_v58, %v9386_v47 }
 0x4d0   : >> { %v4570_v36 = vadd.f32 1.0, %v4442_v46  ;;  %v5048_v62 = vadd.f32 %v5032_v24, %v4950_v17 }
 0x4d2   : >> { %5304 = vrot.lane.b32.xlu2 %v4570_v36, %s7199_s28  ;;  %v5146_v3 = vadd.f32 %v5130_v35, %v5048_v62 }
 0x4d3   : >> { %v4897_v18 = vpop.permute.xlu2 %4896  ;;  %v5277_v16 = vpop.permute.xlu0 %5276 }
 0x4d4   : >> { %v6998_v26 = vpop.eup %6997  ;;  %v5244_v22 = vadd.f32 %v5228_v51, %v5146_v3  ;;  %v4938_v1 = vmul.f32 %v9728_v13, %v4897_v18  ;;  %v5324_v7 = vmul.f32 %v9815_v33, %v5277_v16  ;;  %v5132_v3 = vmul.f32 %v9745_v58, %v9273_v31 }
 0x4d5   : >> { %v6498_v63 = vadd.f32 -1.0, %v6998_v26  ;;  %v5230_v26 = vmul.f32 %v9748_v19, %v9662_v14  ;;  %v5231_v31 = vmul.f32 %v9748_v19, %v9672_v15  ;;  %v5137_v15 = vmul.f32 %v9745_v58, %v9453_v52 }
 0x4d6   : >> { %v9827_v61 = vadd.f32 %v5326_v34, %v5244_v22   ;;  %v4954_v50 = vadd.f32 %v4938_v1, %v9656_v56  ;;  %v9831_v59 = vadd.f32 %v5324_v7, %v9764_v20   ;;  %v10559_v20 = vld [vmem:[#allocation62_spill] sm:$0xff]  ;;  %v10561_v1 = vld [vmem:[#allocation61_spill] sm:$0xff] }
 0x4d7   : >> { %v4443_v44 = vsel %vm3931_vm10, %v3802_v48, %v6498_v63  ;;  %v5034_v35 = vmul.f32 %v9734_v21, %v10559_v20  ;;  %v5035_v7 = vmul.f32 %v9734_v21, %v10561_v1 }
 0x4d8   : >> { %v10558_v29 = vmov %v9827_v61  ;;  %v4571_v37 = vadd.f32 1.0, %v4443_v44  ;;  %v5052_v40 = vadd.f32 %v5036_v27, %v4954_v50 }
 0x4da   : >> { %5306 = vrot.lane.b32.xlu0 %v4571_v37, %s7199_s28  ;;  %v5150_v24 = vadd.f32 %v5134_v25, %v5052_v40  ;;  %v10562_v40 = vld [vmem:[#allocation67_spill] sm:$0xff] }
 0x4db   : >> { %v5279_v46 = vpop.permute.xlu1 %5278  ;;  %v4893_v48 = vpop.permute.xlu0 %4892 }
 0x4dc   : >> { %v5325_v17 = vmul.f32 %v9815_v33, %v5279_v46  ;;  %v4936_v56 = vmul.f32 %v9728_v13, %v4893_v48  ;;  %v9840_v36 = vadd.f32 %v5232_v9, %v5150_v24  ;;  %v5235_v48 = vmul.f32 %v9748_v19, %v9682_v5 }
 0x4de   : >> { %v9844_v62 = vadd.f32 %v5325_v17, %v5243_v53   ;;  %v4952_v51 = vadd.f32 %v4936_v56, %v9580_v39  ;;  %v5133_v39 = vmul.f32 %v9745_v58, %v9363_v23 }
 0x4e0   : >> { %v10560_v47 = vmov %v9844_v62  ;;  %v5050_v60 = vadd.f32 %v5034_v35, %v4952_v51 }
 0x4e2   : >> { %v5148_v34 = vadd.f32 %v5132_v3, %v5050_v60  ;;  %v5135_v60 = vmul.f32 %v9745_v58, %v9340_v41  ;;  %v5234_v41 = vmul.f32 %v9748_v19, %v9705_v55 }
 0x4e3   : >> { %v4895_v18 = vpop.permute.xlu1 %4894  ;;  %v5287_v16 = vpop.permute.xlu2 %5286 }
 0x4e4   : >> { %v4937_v63 = vmul.f32 %v9728_v13, %v4895_v18  ;;  %v5246_v22 = vadd.f32 %v5230_v26, %v5148_v34  ;;  %v5329_v50 = vmul.f32 %v9815_v33, %v5287_v16  ;;  %v5233_v26 = vmul.f32 %v9748_v19, %v9692_v8 }
 0x4e6   : >> { %v4953_v53 = vadd.f32 %v4937_v63, %v9646_v10  ;;  %v5039_v10 = vmul.f32 %v9734_v21, %v10562_v40  ;;  %v5140_v40 = vmul.f32 %v9745_v58, %v9528_v28  ;;  %v10572_v28 = vld [vmem:[#allocation74_spill] sm:$0xff] }
 0x4e8   : >> { %v5051_v11 = vadd.f32 %v5035_v7, %v4953_v53  ;;  %v10566_v7 = vld [vmem:[#allocation63_spill] sm:$0xff] }
 0x4e9   : >> { %v5038_v53 = vmul.f32 %v9734_v21, %v10566_v7 }
 0x4ea   : >> { %v5149_v27 = vadd.f32 %v5133_v39, %v5051_v11 }
 0x4eb   : >> { %v4903_v14 = vpop.permute.xlu2 %4902  ;;  %v5283_v44 = vpop.permute.xlu0 %5282 }
 0x4ec   : >> { %v5247_v61 = vadd.f32 %v5231_v31, %v5149_v27  ;;  %v4941_v37 = vmul.f32 %v9728_v13, %v4903_v14  ;;  %v5327_v25 = vmul.f32 %v9815_v33, %v5283_v44 }
 0x4ee   : >> { %v9864_v62 = vadd.f32 %v5329_v50, %v5247_v61   ;;  %v4957_v23 = vadd.f32 %v4941_v37, %v9686_v54  ;;  %v9868_v24 = vadd.f32 %v5327_v25, %v9799_v0   ;;  %v10564_v54 = vld [vmem:[#allocation65_spill] sm:$0xff]  ;;  %v10567_v50 = vld [vmem:[#allocation70_spill] sm:$0xff] }
 0x4ef   : >> { %v5037_v0 = vmul.f32 %v9734_v21, %v10564_v54  ;;  %v5138_v54 = vmul.f32 %v9745_v58, %v10572_v28 }
 0x4f0   : >> { %v10563_v9 = vmov %v9864_v62  ;;  %v5055_v46 = vadd.f32 %v5039_v10, %v4957_v23  ;;  %v5238_v23 = vmul.f32 %v9748_v19, %v9718_v38  ;;  %v10573_v38 = vld [vmem:[#allocation77_spill] sm:$0xff] }
 0x4f2   : >> { %v5153_v17 = vadd.f32 %v5137_v15, %v5055_v46 }
 0x4f3   : >> { %v5285_v56 = vpop.permute.xlu1 %5284  ;;  %v4899_v20 = vpop.permute.xlu0 %4898 }
 0x4f4   : >> { %v5328_v35 = vmul.f32 %v9815_v33, %v5285_v56  ;;  %v4939_v51 = vmul.f32 %v9728_v13, %v4899_v20  ;;  %v9876_v62 = vadd.f32 %v5235_v48, %v5153_v17 }
 0x4f6   : >> { %v9880_v37 = vadd.f32 %v5328_v35, %v5246_v22   ;;  %v4955_v52 = vadd.f32 %v4939_v51, %v9633_v49  ;;  %v5136_v49 = vmul.f32 %v9745_v58, %v9430_v42  ;;  %v10570_v35 = vld [vmem:[#allocation68_spill] sm:$0xff] }
 0x4f8   : >> { %v10565_v3 = vmov %v9880_v37  ;;  %v5053_v5 = vadd.f32 %v5037_v0, %v4955_v52  ;;  %v5236_v52 = vmul.f32 %v9748_v19, %v10573_v38  ;;  %v10585_v38 = vld [vmem:[#allocation75_spill] sm:$0xff] }
 0x4fa   : >> { %v5151_v34 = vadd.f32 %v5135_v60, %v5053_v5 }
 0x4fb   : >> { %v4901_v18 = vpop.permute.xlu1 %4900  ;;  %v5293_v16 = vpop.permute.xlu2 %5292 }
 0x4fc   : >> { %v4940_v63 = vmul.f32 %v9728_v13, %v4901_v18  ;;  %v5249_v1 = vadd.f32 %v5233_v26, %v5151_v34  ;;  %v5332_v14 = vmul.f32 %v9815_v33, %v5293_v16  ;;  %v10574_v16 = vld [vmem:[#allocation66_spill] sm:$0xff] }
 0x4fe   : >> { %v4956_v22 = vadd.f32 %v4940_v63, %v9676_v30  ;;  %v5042_v30 = vmul.f32 %v9734_v21, %v10567_v50  ;;  %v5041_v63 = vmul.f32 %v9734_v21, %v10574_v16 }
 0x500   : >> { %v5054_v39 = vadd.f32 %v5038_v53, %v4956_v22  ;;  %v10576_v53 = vld [vmem:[#allocation58_spill] sm:$0xff] }
 0x502   : >> { %v5152_v11 = vadd.f32 %v5136_v49, %v5054_v39  ;;  %v10577_v49 = vld [vmem:[#allocation78_spill] sm:$0xff] }
 0x503   : >> { %v4909_v8 = vpop.permute.xlu2 %4908  ;;  %v5289_v31 = vpop.permute.xlu0 %5288  ;;  %v5237_v39 = vmul.f32 %v9748_v19, %v10577_v49 }
 0x504   : >> { %v5250_v27 = vadd.f32 %v5234_v41, %v5152_v11  ;;  %v4944_v44 = vmul.f32 %v9728_v13, %v4909_v8  ;;  %v5330_v61 = vmul.f32 %v9815_v33, %v5289_v31 }
 0x506   : >> { %v9900_v37 = vadd.f32 %v5332_v14, %v5250_v27   ;;  %v4960_v42 = vadd.f32 %v4944_v44, %v9722_v2  ;;  %v9904_v36 = vadd.f32 %v5330_v61, %v9840_v36   ;;  %v5040_v2 = vmul.f32 %v9734_v21, %v10570_v35 }
 0x508   : >> { %v10568_v25 = vmov %v9900_v37  ;;  %v10569_v55 = vmov %v9904_v36  ;;  %v5058_v10 = vadd.f32 %v5042_v30, %v4960_v42  ;;  %v10581_v42 = vld [vmem:[#allocation57_spill] sm:$0xff] }
 0x50a   : >> { %v5156_v15 = vadd.f32 %v5140_v40, %v5058_v10  ;;  %v5143_v10 = vmul.f32 %v9745_v58, %v10581_v42  ;;  %v10608_v42 = vmov %v9831_v59 }
 0x50b   : >> { %v5291_v46 = vpop.permute.xlu1 %5290  ;;  %v4905_v48 = vpop.permute.xlu0 %4904  ;;  %v10612_v42 = vld [vmem:[#allocation17_spill] sm:$0xff] (%p9976_p4) }
 0x50c   : >> { %v5331_v17 = vmul.f32 %v9815_v33, %v5291_v46  ;;  %v4942_v56 = vmul.f32 %v9728_v13, %v4905_v48  ;;  %v5254_v20 = vadd.f32 %v5238_v23, %v5156_v15  ;;  %v5241_v15 = vmul.f32 %v9748_v19, %v9773_v45 }
 0x50d   : >> { %v5239_v45 = vmul.f32 %v9748_v19, %v9783_v12 }
 0x50e   : >> { %v9914_v61 = vadd.f32 %v5331_v17, %v5249_v1   ;;  %v4958_v36 = vadd.f32 %v4942_v56, %v9666_v57  ;;  %v10575_v1 = vld [vmem:[#allocation76_spill] sm:$0xff]  ;;  %v5139_v57 = vmul.f32 %v9745_v58, %v10576_v53 }
 0x510   : >> { %v10571_v51 = vmov %v9914_v61  ;;  %v5056_v0 = vadd.f32 %v5040_v2, %v4958_v36  ;;  %v10578_v61 = vld [vmem:[#allocation73_spill] sm:$0xff]  ;;  %v10582_v36 = vld [vmem:[#allocation71_spill] sm:$0xff] }
 0x511   : >> { %v5045_v50 = vmul.f32 %v9734_v21, %v10578_v61  ;;  %v10601_v61 = vmov %v10571_v51 }
 0x512   : >> { %v5154_v60 = vadd.f32 %v5138_v54, %v5056_v0  ;;  %v10617_v61 = vld [vmem:[#allocation19_spill] sm:$0xff] (%p9976_p4) }
 0x513   : >> { %v4907_v5 = vpop.permute.xlu1 %4906 }
 0x514   : >> { %v5299_v26 = vpop.permute.xlu2 %5298  ;;  %v4943_v34 = vmul.f32 %v9728_v13, %v4907_v5  ;;  %v5252_v18 = vadd.f32 %v5236_v52, %v5154_v60  ;;  %v5141_v52 = vmul.f32 %v9745_v58, %v10585_v38  ;;  %v10605_v38 = vmov %v9868_v24 }
 0x515   : >> { %v5335_v27 = vmul.f32 %v9815_v33, %v5299_v26  ;;  %v10625_v38 = vld [vmem:[#allocation6_spill] sm:$0xff] (%p9976_p4) }
 0x516   : >> { %v4959_v7 = vadd.f32 %v4943_v34, %v10575_v1 }
 0x518   : >> { %v5057_v22 = vadd.f32 %v5041_v63, %v4959_v7  ;;  %v10586_v63 = vld [vmem:[#allocation69_spill] sm:$0xff] }
 0x519   : >> { %v5044_v1 = vmul.f32 %v9734_v21, %v10586_v63  ;;  %v10631_v63 = vld [vmem:[#allocation33_spill] sm:$0xff] (%p9976_p4) }
 0x51a   : >> { %v5155_v41 = vadd.f32 %v5139_v57, %v5057_v22  ;;  %v5240_v22 = vmul.f32 %v9748_v19, %v9796_v6  ;;  %v10606_v19 = vmov %v10558_v29 }
 0x51b   : > { %v10616_v19 = vld [vmem:[#allocation9_spill] sm:$0xff] (%p9976_p4) }
 0x51c   : >> { %v4915_v11 = vpop.permute.xlu2 %4914  ;;  %v5295_v8 = vpop.permute.xlu0 %5294  ;;  %v5253_v31 = vadd.f32 %v5237_v39, %v5155_v41 }
 0x51d   : >> { %v4947_v14 = vmul.f32 %v9728_v13, %v4915_v11  ;;  %v5333_v44 = vmul.f32 %v9815_v33, %v5295_v8 }
 0x51e   : >> { %v9934_v53 = vadd.f32 %v5335_v27, %v5253_v31  }
 0x51f   : >> { %v4963_v37 = vadd.f32 %v4947_v14, %v9778_v43  ;;  %v9938_v57 = vadd.f32 %v5333_v44, %v9876_v62   ;;  %v5043_v43 = vmul.f32 %v9734_v21, %v10582_v36  ;;  %v10584_v62 = vld [vmem:[#allocation56_spill] sm:$0xff]  ;;  %v10602_v36 = vmov %v10569_v55  ;;  %v10611_v14 = vld [vmem:[#allocation20_spill] sm:$0xff] (%p9976_p4) }
 0x520   : >> { %v10579_v30 = vmov %v9934_v53  ;;  %v10623_v36 = vld [vmem:[#allocation39_spill] sm:$0xff] (%p9976_p4) }
 0x521   : >> { %v10580_v40 = vmov %v9938_v57  ;;  %v5061_v23 = vadd.f32 %v5045_v50, %v4963_v37  ;;  %v10604_v37 = vmov %v10565_v3 }
 0x523   : >> { %v5159_v46 = vadd.f32 %v5143_v10, %v5061_v23  ;;  %v10607_v10 = vmov %v10560_v47  ;;  %v10613_v23 = vld [vmem:[#allocation16_spill] sm:$0xff] (%p9976_p4) }
 0x524   : >> { %v5297_v48 = vpop.permute.xlu1 %5296  ;;  %v4911_v17 = vpop.permute.xlu0 %4910  ;;  %v10619_v10 = vld [vmem:[#allocation15_spill] sm:$0xff] (%p9976_p4) }
 0x525   : >> { %v5334_v56 = vmul.f32 %v9815_v33, %v5297_v48  ;;  %v4945_v35 = vmul.f32 %v9728_v13, %v4911_v17  ;;  %v5257_v2 = vadd.f32 %v5241_v15, %v5159_v46  ;;  %v7012_v15 = vpack.i.bf16 (%p9976_p4), %v10613_v23, %v10612_v42  ;;  %v10614_v48 = vld [vmem:[#allocation11_spill] sm:$0xff] (%p9976_p4)  ;;  %v10615_v17 = vld [vmem:[#allocation10_spill] sm:$0xff] (%p9976_p4)  ;;  %v10647_v42 = vld [vmem:[#allocation44_spill] sm:$0xff] (%p9976_p4) }
 0x526   : > { %v5441_v23 = vmax.f32 (%p9976_p4), %v10647_v42, 0.0 }
 0x527   : >> { %v9948_v54 = vadd.f32 %v5334_v56, %v5252_v18   ;;  %v4961_v0 = vadd.f32 %v4945_v35, %v10584_v62  ;;  %v10603_v62 = vmov %v10563_v9  ;;  %7013 = vrot.lane.b32.xlu1 (%p9976_p4), %v7012_v15, %s7200_s30  ;;  %v10621_v35 = vld [vmem:[#allocation8_spill] sm:$0xff] (%p9976_p4)  ;;  %v10648_v15 = vld [vmem:[#allocation46_spill] sm:$0xff] (%p9976_p4) }
 0x528   : > { %v10624_v62 = vld [vmem:[#allocation41_spill] sm:$0xff] (%p9976_p4) }
 0x529   : >> { %v10583_v28 = vmov %v9948_v54  ;;  %v5059_v60 = vadd.f32 %v5043_v43, %v4961_v0  ;;  %v10587_v54 = vld [vmem:[#allocation55_spill] sm:$0xff]  ;;  %v5436_v43 = vmax.f32 (%p9976_p4), %v10623_v36, 0.0  ;;  %v5444_v0 = vmax.f32 (%p9976_p4), %v10624_v62, 0.0  ;;  %v10656_v36 = vld [vmem:[#allocation54_spill] sm:$0xff] (%p9976_p4) }
 0x52a   : >> { %v5142_v7 = vmul.f32 %v9745_v58, %v10587_v54  ;;  %v10598_v54 = vmov %v10583_v28 }
 0x52b   : >> { %v5157_v5 = vadd.f32 %v5141_v52, %v5059_v60  ;;  %v10626_v52 = vld [vmem:[#allocation25_spill] sm:$0xff] (%p9976_p4)  ;;  %v10627_v60 = vld [vmem:[#allocation4_spill] sm:$0xff] (%p9976_p4) }
 0x52c   : >> { %v4913_v26 = vpop.permute.xlu1 %4912  ;;  %v5305_v57 = vpop.permute.xlu2 %5304  ;;  %5356 = vrot.lane.b32.xlu2 (%p9976_p4), %v10626_v52, %s7201_s6 }
 0x52d   : >> { %v4946_v34 = vmul.f32 %v9728_v13, %v4913_v26  ;;  %v5255_v16 = vadd.f32 %v5239_v45, %v5157_v5  ;;  %v5338_v41 = vmul.f32 %v9815_v33, %v5305_v57  ;;  %v10599_v57 = vmov %v10580_v40  ;;  %v10629_v26 = vld [vmem:[#allocation45_spill] sm:$0xff] (%p9976_p4) }
 0x52e   : > { %v10635_v57 = vld [vmem:[#allocation34_spill] sm:$0xff] (%p9976_p4) }
 0x52f   : >> { %v4962_v18 = vadd.f32 %v4946_v34, %v9767_v32  ;;  %v5445_v34 = vmax.f32 (%p9976_p4), %v10629_v26, 0.0 }
 0x531   : >> { %v5060_v53 = vadd.f32 %v5044_v1, %v4962_v18  ;;  %v10632_v1 = vld [vmem:[#allocation29_spill] sm:$0xff] (%p9976_p4)  ;;  %v10633_v18 = vld [vmem:[#allocation47_spill] sm:$0xff] (%p9976_p4) }
 0x532   : > { %v5438_v54 = vmax.f32 (%p9976_p4), %v10633_v18, 0.0 }
 0x533   : >> { %v5158_v49 = vadd.f32 %v5142_v7, %v5060_v53  ;;  %v10597_v53 = vmov %v10579_v30  ;;  %v10634_v7 = vld [vmem:[#allocation49_spill] sm:$0xff] (%p9976_p4) }
 0x534   : >> { %v5301_v12 = vpop.permute.xlu0 %5300  ;;  %5358 = vrot.lane.b32.xlu2 (%p9976_p4), %v10632_v1, %s7201_s6  ;;  %v5446_v53 = vmax.f32 (%p9976_p4), %v10634_v7, 0.0 }
 0x535   : >> { %v5256_v39 = vadd.f32 %v5240_v22, %v5158_v49  ;;  %v5336_v13 = vmul.f32 %v9815_v33, %v5301_v12  ;;  %v10636_v22 = vld [vmem:[#allocation30_spill] sm:$0xff] (%p9976_p4)  ;;  %v10638_v12 = vld [vmem:[#allocation51_spill] sm:$0xff] (%p9976_p4) }
 0x537   : >> { %v9965_v46 = vadd.f32 %v5338_v41, %v5256_v39   ;;  %v9967_v50 = vadd.f32 %v5336_v13, %v5254_v20   ;;  %v10610_v20 = vld [vmem:[#allocation21_spill] sm:$0xff] (%p9976_p4)  ;;  %v5439_v39 = vmax.f32 (%p9976_p4), %v10638_v12, 0.0 }
 0x538   : > { %v7002_v44 = vpack.i.bf16 (%p9976_p4), %v10611_v14, %v10610_v20  ;;  %v10639_v41 = vld [vmem:[#allocation53_spill] sm:$0xff] (%p9976_p4)  ;;  %v10644_v14 = vld [vmem:[#allocation31_spill] sm:$0xff] (%p9976_p4) }
 0x539   : >> { %v10588_v11 = vmov %v9965_v46  ;;  %v10589_v21 = vmov %v9967_v50  ;;  %v5447_v13 = vmax.f32 (%p9976_p4), %v10639_v41, 0.0 }
 0x53a   : >> { %v10594_v46 = vmov %v10588_v11  ;;  %v10596_v50 = vmov %v10589_v21  ;;  %7003 = vrot.lane.b32.xlu0 (%p9976_p4), %v7002_v44, %s7200_s30  ;;  %v10645_v44 = vld [vmem:[#allocation35_spill] sm:$0xff] (%p9976_p4) }
 0x53b   : > { %v10618_v50 = vld [vmem:[#allocation18_spill] sm:$0xff] (%p9976_p4) }
 0x53c   : >> { %v5303_v32 = vpop.permute.xlu1 %5302  ;;  %v7007_v37 = vpack.i.bf16 (%p9976_p4), %v10618_v50, %v10617_v61  ;;  %v10620_v46 = vld [vmem:[#allocation14_spill] sm:$0xff] (%p9976_p4)  ;;  %v10651_v61 = vld [vmem:[#allocation24_spill] sm:$0xff] (%p9976_p4) }
 0x53d   : >> { %v5337_v8 = vmul.f32 %v9815_v33, %v5303_v32  ;;  %v7017_v56 = vpack.i.bf16 (%p9976_p4), %v10620_v46, %v10619_v10  ;;  %v10640_v32 = vld [vmem:[#allocation23_spill] sm:$0xff] (%p9976_p4)  ;;  %v10652_v50 = vld [vmem:[#allocation48_spill] sm:$0xff] (%p9976_p4)  ;;  %v10653_v10 = vld [vmem:[#allocation50_spill] sm:$0xff] (%p9976_p4) }
 0x53e   : > { %v5450_v46 = vmax.f32 (%p9976_p4), %v10653_v10, 0.0 }
 0x53f   : >> { %v9970_v49 = vadd.f32 %v5337_v8, %v5255_v16   ;;  %7018 = vrot.lane.b32.xlu1 (%p9976_p4), %v7017_v56, %s7200_s30  ;;  %v10630_v16 = vld [vmem:[#allocation37_spill] sm:$0xff] (%p9976_p4)  ;;  %v10641_v8 = vld [vmem:[#allocation38_spill] sm:$0xff] (%p9976_p4)  ;;  %v10654_v56 = vld [vmem:[#allocation36_spill] sm:$0xff] (%p9976_p4) }
 0x541   : >> { %v10590_v31 = vmov %v9970_v49 }
 0x542   : >> { %v10595_v49 = vmov %v10590_v31  ;;  %7008 = vrot.lane.b32.xlu0 (%p9976_p4), %v7007_v37, %s7200_s30  ;;  %v5442_v37 = vmax.f32 (%p9976_p4), %v10652_v50, 0.0 }
 0x543   : > { %v10637_v49 = vld [vmem:[#allocation26_spill] sm:$0xff] (%p9976_p4) }
 0x544   : > { %5364 = vrot.lane.b32.xlu2 (%p9976_p4), %v10637_v49, %s7201_s6 }
 0x547   : > { %5362 = vrot.lane.b32.xlu1 (%p9976_p4), %v10630_v16, %s7201_s6 }
 0x54a   : > { %5360 = vrot.lane.b32.xlu0 (%p9976_p4), %v10631_v63, %s7201_s6 }
 0x54c   : >> { %v5307_v58 = vpop.permute.xlu0 %5306  ;;  %5370 = vrot.lane.b32.xlu2 (%p9976_p4), %v10641_v8, %s7201_s6 }
 0x54d   : >> { %v5339_v27 = vmul.f32 %v9815_v33, %v5307_v58  ;;  %v10600_v58 = vmov %v10568_v25  ;;  %v10609_v33 = vld [vmem:[#allocation12_spill] sm:$0xff] (%p9976_p4) }
 0x54e   : > { %388 = sbr.rel (!%p9976_p4) target bundleno = 179 (0xb3), region = 85  ;;  %5510 = vmatpush.msra.mxu0 (%p9976_p4), %v10609_v33  ;;  %6559 = vmatpush.msra.mxu2 (%p9976_p4), %v10609_v33  ;;  %v10642_v58 = vld [vmem:[#allocation40_spill] sm:$0xff] (%p9976_p4)  ;;  %v10643_v33 = vld [vmem:[#allocation42_spill] sm:$0xff] (%p9976_p4) }
 0x54f   : >> { %v9973_v45 = vadd.f32 %v5339_v27, %v5257_v2   ;;  %v10622_v2 = vld [vmem:[#allocation7_spill] sm:$0xff] (%p9976_p4)  ;;  %5368 = vrot.lane.b32.xlu1 (%p9976_p4), %v10635_v57, %s7201_s6  ;;  %v5440_v27 = vmax.f32 (%p9976_p4), %v10642_v58, 0.0  ;;  %v5448_v20 = vmax.f32 (%p9976_p4), %v10643_v33, 0.0 }
 0x550   : > { %5511 = vmatpush.msra.mxu0 (%p9976_p4), %v10614_v48  ;;  %6560 = vmatpush.msra.mxu2 (%p9976_p4), %v10614_v48  ;;  %v5449_v48 = vmax.f32 (%p9976_p4), %v10648_v15, 0.0 }
 0x551   : >> { %v10591_v6 = vmov %v9973_v45 }
 0x552   : >> { %v10593_v45 = vmov %v10591_v6  ;;  %5512 = vmatpush.msra.mxu0 (%p9976_p4), %v10615_v17  ;;  %6561 = vmatpush.msra.mxu2 (%p9976_p4), %v10615_v17  ;;  %v10649_v17 = vld [vmem:[#allocation28_spill] sm:$0xff] (%p9976_p4) }
 0x553   : > { %v10628_v45 = vld [vmem:[#allocation43_spill] sm:$0xff]  ;;  %5366 = vrot.lane.b32.xlu0 %v10636_v22, %s7201_s6 }
 0x554   : > { %5513 = vmatpush.msra.mxu0 %v10616_v19  ;;  %6562 = vmatpush.msra.mxu2 %v10616_v19  ;;  %v5437_v5 = vmax.f32 %v10628_v45, 0.0  ;;  %v10650_v19 = vld [vmem:[#allocation32_spill] sm:$0xff] }
 0x556   : > { %5514 = vmatpush.msra.mxu0 %v10621_v35  ;;  %6563 = vmatpush.msra.mxu2 %v10621_v35  ;;  %v10655_v35 = vld [vmem:[#allocation52_spill] sm:$0xff] }
 0x557   : > { %5617 = vrot.lane.b32.xlu1 %v8266_v4, %s7200_s30  ;;  %v10646_v4 = vld [vmem:[#allocation27_spill] sm:$0xff] }
 0x558   : > { %5515 = vmatpush.msra.mxu0 %v10622_v2  ;;  %6564 = vmatpush.msra.mxu2 %v10622_v2  ;;  %v5443_v2 = vmax.f32 %v10655_v35, 0.0 }
 0x559   : > { %5374 = vrot.lane.b32.xlu2 %v10646_v4, %s7201_s6 }
 0x55a   : > { %5516 = vmatpush.msra.mxu0 %v10625_v38  ;;  %6565 = vmatpush.msra.mxu2 %v10625_v38 }
 0x55b   : > { %5372 = vrot.lane.b32.xlu0 %v10640_v32, %s7201_s6 }
 0x55c   : > { %5517 = vmatpush.msra.mxu0 %v10627_v60  ;;  %6566 = vmatpush.msra.mxu2 %v10627_v60 }
 0x55d   : > { %6506 = vmatmul.msk.f32.vlgmr.msra.gmra.mxu0 %vm555_vm2, %v5436_v43  ;;  %6514 = vmatmul.msk.f32.vlgmr.msra.gmra.mxu2 %vm555_vm2, %v5444_v0  ;;  %v5451_v43 = vmax.f32 %v10656_v36, 0.0 }
 0x55f   : > { %5378 = vrot.lane.b32.xlu1 %v10645_v44, %s7201_s6 }
 0x561   : > { %5380 = vrot.lane.b32.xlu2 %v10651_v61, %s7201_s6 }
 0x563   : > { %5376 = vrot.lane.b32.xlu0 %v10644_v14, %s7201_s6 }
 0x565   : > { %6507 = vmatmul.msk.f32.gmra.mxu0 %vm555_vm2, %v5437_v5  ;;  %6515 = vmatmul.msk.f32.gmra.mxu2 %vm555_vm2, %v5445_v34 }
 0x567   : > { %5384 = vrot.lane.b32.xlu1 %v10650_v19, %s7201_s6 }
 0x569   : > { %5386 = vrot.lane.b32.xlu2 %v10654_v56, %s7201_s6 }
 0x56b   : > { %5382 = vrot.lane.b32.xlu0 %v10649_v17, %s7201_s6 }
 0x56d   : > { %6508 = vmatmul.msk.f32.gmra.mxu0 %vm555_vm2, %v5438_v54  ;;  %6516 = vmatmul.msk.f32.gmra.mxu2 %vm555_vm2, %v5446_v53  ;;  %v10657_v54 = vld [vmem:[#allocation59_spill] sm:$0xff] }
 0x575   : > { %6509 = vmatmul.msk.f32.gmra.mxu0 %vm555_vm2, %v5439_v39  ;;  %6517 = vmatmul.msk.f32.gmra.mxu2 %vm555_vm2, %v5447_v13 }
 0x57d   : > { %6510 = vmatmul.msk.f32.gmra.mxu0 %vm555_vm2, %v5440_v27  ;;  %6518 = vmatmul.msk.f32.gmra.mxu2 %vm555_vm2, %v5448_v20 }
 0x585   : > { %6511 = vmatmul.msk.f32.gmra.mxu0 %vm555_vm2, %v5441_v23  ;;  %6519 = vmatmul.msk.f32.gmra.mxu2 %vm555_vm2, %v5449_v48 }
 0x58d   : > { %6512 = vmatmul.msk.f32.gmra.mxu0 %vm555_vm2, %v5442_v37  ;;  %6520 = vmatmul.msk.f32.gmra.mxu2 %vm555_vm2, %v5450_v46 }
 0x595   : > { %6513 = vmatmul.msk.f32.gmra.mxu0 %vm555_vm2, %v5443_v2  ;;  %6521 = vmatmul.msk.f32.gmra.mxu2 %vm555_vm2, %v5451_v43 }
 0x599   : > { %v7014_v52 = vpop.permute.xlu1 %7013 }
 0x59a   : > { %v7015_v26 = vunpack.i.l.bf16 %v7014_v52  ;;  %v7016_v16 = vunpack.i.h.bf16 %v7014_v52 }
 0x5ac   : > { %v7004_v62 = vpop.permute.xlu0 %7003 }
 0x5ad   : > { %v7005_v0 = vunpack.i.l.bf16 %v7004_v62  ;;  %v7006_v38 = vunpack.i.h.bf16 %v7004_v62 }
 0x5af   : > { %5676 = vmatpush.msra.mxu1 %v7005_v0  ;;  %6567 = vmatpush.msra.mxu3 %v7005_v0 }
 0x5b1   : > { %5677 = vmatpush.msra.mxu1 %v7006_v38  ;;  %6568 = vmatpush.msra.mxu3 %v7006_v38  ;;  %v7019_v34 = vpop.permute.xlu1 %7018 }
 0x5b2   : > { %v7020_v63 = vunpack.i.l.bf16 %v7019_v34  ;;  %v7021_v1 = vunpack.i.h.bf16 %v7019_v34 }
 0x5b4   : > { %v7009_v60 = vpop.permute.xlu0 %7008 }
 0x5b5   : > { %v7010_v45 = vunpack.i.l.bf16 %v7009_v60  ;;  %v7011_v5 = vunpack.i.h.bf16 %v7009_v60 }
 0x5b7   : > { %5678 = vmatpush.msra.mxu1 %v7010_v45  ;;  %6569 = vmatpush.msra.mxu3 %v7010_v45 }
 0x5b9   : > { %5679 = vmatpush.msra.mxu1 %v7011_v5  ;;  %6570 = vmatpush.msra.mxu3 %v7011_v5 }
 0x5bb   : > { %5680 = vmatpush.msra.mxu1 %v7015_v26  ;;  %6571 = vmatpush.msra.mxu3 %v7015_v26 }
 0x5bd   : > { %5681 = vmatpush.msra.mxu1 %v7016_v16  ;;  %6572 = vmatpush.msra.mxu3 %v7016_v16 }
 0x5bf   : > { %5682 = vmatpush.msra.mxu1 %v7020_v63  ;;  %6573 = vmatpush.msra.mxu3 %v7020_v63 }
 0x5c1   : > { %5683 = vmatpush.msra.mxu1 %v7021_v1  ;;  %6574 = vmatpush.msra.mxu3 %v7021_v1 }
 0x5da   : > { %v5519_v18 = vpop.f32.mrf.mxu0 }
 0x5db   : > { %v5520_v7 = vadd.f32 %v5519_v18, %v10657_v54 }
 0x5dd   : > { %v5567_v53 = vmax.f32 %v5520_v7, 0.0  ;;  %v5363_v7 = vpop.permute.xlu1 %5362 }
 0x5df   : > { %6522 = vmatmul.msk.f32.vlgmr.msra.gmra.mxu1 %vm555_vm2, %v5567_v53 }
 0x5e0   : > { %v5543_v57 = vpop.f32.mrf.mxu2 }
 0x5e1   : > { %v5544_v22 = vadd.f32 %v5543_v57, %v10657_v54  ;;  %v10160_v57 = vpop.permute.xlu2 %5356 }
 0x5e2   : > { %v5522_v49 = vpop.f32.mrf.mxu0 }
 0x5e3   : > { %v5575_v12 = vmax.f32 %v5544_v22, 0.0  ;;  %v5523_v39 = vadd.f32 %v5522_v49, %v10657_v54 }
 0x5e5   : > { %v5568_v41 = vmax.f32 %v5523_v39, 0.0  ;;  %6530 = vmatmul.msk.f32.vlgmr.msra.gmra.mxu3 %vm555_vm2, %v5575_v12  ;;  %v10158_v53 = vpop.permute.xlu1 %5368 }
 0x5e7   : > { %6523 = vmatmul.msk.f32.gmra.mxu1 %vm555_vm2, %v5568_v41 }
 0x5e8   : > { %v5546_v13 = vpop.f32.mrf.mxu2 }
 0x5e9   : > { %v5547_v32 = vadd.f32 %v5546_v13, %v10657_v54  ;;  %v10169_v39 = vpop.permute.xlu2 %5358 }
 0x5ea   : > { %v5525_v8 = vpop.f32.mrf.mxu0 }
 0x5eb   : > { %v5576_v58 = vmax.f32 %v5547_v32, 0.0  ;;  %v5526_v27 = vadd.f32 %v5525_v8, %v10657_v54 }
 0x5ed   : > { %v5569_v33 = vmax.f32 %v5526_v27, 0.0  ;;  %6531 = vmatmul.msk.f32.gmra.mxu3 %vm555_vm2, %v5576_v58  ;;  %v10162_v22 = vpop.permute.xlu1 %5617  ;;  %v10181_v58 = vpop.permute.xlu0 %5360 }
 0x5ef   : > { %6524 = vmatmul.msk.f32.gmra.mxu1 %vm555_vm2, %v5569_v33 }
 0x5f0   : > { %v5549_v20 = vpop.f32.mrf.mxu2 }
 0x5f1   : > { %v5550_v14 = vadd.f32 %v5549_v20, %v10657_v54  ;;  %v5365_v27 = vpop.permute.xlu2 %5364 }
 0x5f2   : > { %v5528_v44 = vpop.f32.mrf.mxu0 }
 0x5f3   : > { %v5577_v4 = vmax.f32 %v5550_v14, 0.0  ;;  %v5529_v42 = vadd.f32 %v5528_v44, %v10657_v54 }
 0x5f5   : > { %v5570_v23 = vmax.f32 %v5529_v42, 0.0  ;;  %6532 = vmatmul.msk.f32.gmra.mxu3 %vm555_vm2, %v5577_v4  ;;  %v10194_v42 = vpop.permute.xlu0 %5366 }
 0x5f7   : > { %6525 = vmatmul.msk.f32.gmra.mxu1 %vm555_vm2, %v5570_v23 }
 0x5f8   : > { %v5552_v15 = vpop.f32.mrf.mxu2 }
 0x5f9   : > { %v5553_v48 = vadd.f32 %v5552_v15, %v10657_v54  ;;  %v5371_v23 = vpop.permute.xlu2 %5370 }
 0x5fa   : > { %v5531_v17 = vpop.f32.mrf.mxu0 }
 0x5fb   : > { %v5578_v19 = vmax.f32 %v5553_v48, 0.0  ;;  %v5532_v61 = vadd.f32 %v5531_v17, %v10657_v54 }
 0x5fd   : > { %v5571_v50 = vmax.f32 %v5532_v61, 0.0  ;;  %6533 = vmatmul.msk.f32.gmra.mxu3 %vm555_vm2, %v5578_v19  ;;  %v5407_v19 = vmul.f32 %v5363_v7, %v9868_v24 }
 0x5ff   : > { %6526 = vmatmul.msk.f32.gmra.mxu1 %vm555_vm2, %v5571_v50 }
 0x600   : > { %v5555_v37 = vpop.f32.mrf.mxu2 }
 0x601   : > { %v5556_v10 = vadd.f32 %v5555_v37, %v10657_v54  ;;  %v5423_v37 = vmul.f32 0.5, %v5407_v19 }
 0x602   : > { %v5534_v46 = vpop.f32.mrf.mxu0 }
 0x603   : > { %v5579_v56 = vmax.f32 %v5556_v10, 0.0  ;;  %v5535_v35 = vadd.f32 %v5534_v46, %v10657_v54 }
 0x605   : > { %v5572_v2 = vmax.f32 %v5535_v35, 0.0  ;;  %6534 = vmatmul.msk.f32.gmra.mxu3 %vm555_vm2, %v5579_v56  ;;  %v5408_v56 = vmul.f32 %v5365_v27, %v10565_v3 }
 0x607   : > { %6527 = vmatmul.msk.f32.gmra.mxu1 %vm555_vm2, %v5572_v2 }
 0x608   : > { %v5558_v36 = vpop.f32.mrf.mxu2 }
 0x609   : > { %v5559_v43 = vadd.f32 %v5558_v36, %v10657_v54  ;;  %v10207_v36 = vpop.permute.xlu0 %5372 }
 0x60a   : > { %v5537_v62 = vpop.f32.mrf.mxu0 }
 0x60b   : > { %v5580_v0 = vmax.f32 %v5559_v43, 0.0  ;;  %v5538_v38 = vadd.f32 %v5537_v62, %v10657_v54  ;;  %v10209_v43 = vpop.permute.xlu2 %5374  ;;  %v5424_v62 = vmul.f32 0.5, %v5408_v56 }
 0x60d   : > { %v5573_v52 = vmax.f32 %v5538_v38, 0.0  ;;  %6535 = vmatmul.msk.f32.gmra.mxu3 %vm555_vm2, %v5580_v0 }
 0x60f   : > { %6528 = vmatmul.msk.f32.gmra.mxu1 %vm555_vm2, %v5573_v52 }
 0x610   : > { %v5561_v60 = vpop.f32.mrf.mxu2 }
 0x611   : > { %v5562_v45 = vadd.f32 %v5561_v60, %v10657_v54  ;;  %v10219_v60 = vpop.permute.xlu0 %5376 }
 0x612   : > { %v5540_v5 = vpop.f32.mrf.mxu0 }
 0x613   : > { %v5581_v26 = vmax.f32 %v5562_v45, 0.0  ;;  %v5541_v34 = vadd.f32 %v5540_v5, %v10657_v54 }
 0x615   : > { %v5574_v16 = vmax.f32 %v5541_v34, 0.0  ;;  %6536 = vmatmul.msk.f32.gmra.mxu3 %vm555_vm2, %v5581_v26  ;;  %v5381_v26 = vpop.permute.xlu2 %5380 }
 0x617   : > { %6529 = vmatmul.msk.f32.gmra.mxu1 %vm555_vm2, %v5574_v16 }
 0x618   : > { %v5564_v63 = vpop.f32.mrf.mxu2 }
 0x619   : > { %v5565_v1 = vadd.f32 %v5564_v63, %v10657_v54  ;;  %v5416_v63 = vmul.f32 %v5381_v26, %v10589_v21 }
 0x61b   : > { %v5582_v18 = vmax.f32 %v5565_v1, 0.0  ;;  %v5432_v7 = vmul.f32 0.5, %v5416_v63  ;;  %v5412_v63 = vmul.f32 %v10207_v36, %v10568_v25 }
 0x61d   : > { %6537 = vmatmul.msk.f32.gmra.mxu3 %vm555_vm2, %v5582_v18  ;;  %vm5925_vm2 = vcmask 7168  }
 0x65c   : > { %v5685_v49 = vpop.f32.mrf.mxu1 }
 0x65d   : > { %v10165_v12 = vadd.f32 %v5685_v49, %v10162_v22 }
 0x65f   : > { %5797 = vrot.lane.b32.xlu0 %v10165_v12, %s7201_s6 }
 0x664   : > { %v5688_v54 = vpop.f32.mrf.mxu1 }
 0x665   : > { %v10172_v41 = vadd.f32 %v5688_v54, %v10162_v22 }
 0x667   : > { %5799 = vrot.lane.b32.xlu1 %v10172_v41, %s7201_s6  ;;  %v5735_v36 = vmul.f32 1.442695, %v10172_v41 }
 0x668   : > { %v5709_v13 = vpop.f32.mrf.mxu3 }
 0x669   : > { %v10177_v32 = vadd.f32 %v5709_v13, %v10162_v22  ;;  %v5383_v13 = vpop.permute.xlu0 %5382 }
 0x66b   : > { %5813 = vrot.lane.b32.xlu2 %v10177_v32, %s7201_s6 }
 0x66c   : > { %v5691_v8 = vpop.f32.mrf.mxu1 }
 0x66d   : > { %v10184_v33 = vadd.f32 %v5691_v8, %v10162_v22  ;;  %v5410_v8 = vmul.f32 %v10158_v53, %v10569_v55 }
 0x670   : > { %v5712_v20 = vpop.f32.mrf.mxu3 }
 0x671   : > { %v10187_v14 = vadd.f32 %v5712_v20, %v10162_v22 }
 0x673   : > { %5815 = vrot.lane.b32.xlu0 %v10187_v14, %s7201_s6  ;;  %5801 = vrot.lane.b32.xlu2 %v10184_v33, %s7201_s6 }
 0x674   : > { %v5694_v44 = vpop.f32.mrf.mxu1 }
 0x675   : > { %v5695_v4 = vadd.f32 %v5694_v44, %v10162_v22  ;;  %v5417_v44 = vmul.f32 %v5383_v13, %v10590_v31 }
 0x677   : > { %v5739_v15 = vmul.f32 1.442695, %v5695_v4  ;;  %v5433_v55 = vmul.f32 0.5, %v5417_v44 }
 0x678   : > { %v5715_v48 = vpop.f32.mrf.mxu3 }
 0x679   : > { %7022 = vpow2.f32 %v5739_v15  ;;  %v10197_v17 = vadd.f32 %v5715_v48, %v10162_v22  ;;  %v5426_v48 = vmul.f32 0.5, %v5410_v8 }
 0x67b   : > { %5817 = vrot.lane.b32.xlu1 %v10197_v17, %s7201_s6  ;;  %5803 = vrot.lane.b32.xlu0 %v5695_v4, %s7201_s6 }
 0x67c   : > { %v5697_v61 = vpop.f32.mrf.mxu1 }
 0x67d   : > { %v5698_v50 = vadd.f32 %v5697_v61, %v10162_v22 }
 0x67f   : > { %v7023_v10 = vpop.eup %7022  ;;  %v5741_v46 = vmul.f32 1.442695, %v5698_v50 }
 0x680   : > { %v5718_v35 = vpop.f32.mrf.mxu3  ;;  %v10205_v2 = vmul.f32 %v7023_v10, %v5423_v37 }
 0x681   : > { %7024 = vpow2.f32 %v5741_v46  ;;  %v10212_v24 = vadd.f32 %v5718_v35, %v10162_v22 }
 0x683   : > { %5805 = vrot.lane.b32.xlu1 %v5698_v50, %s7201_s6  ;;  %5819 = vrot.lane.b32.xlu2 %v10212_v24, %s7201_s6  ;;  %v5411_v50 = vmul.f32 %v5371_v23, %v10571_v51 }
 0x684   : > { %v5700_v0 = vpop.f32.mrf.mxu1 }
 0x685   : > { %v10222_v45 = vadd.f32 %v5700_v0, %v10162_v22  ;;  %v5427_v31 = vmul.f32 0.5, %v5411_v50  ;;  %v5387_v0 = vpop.permute.xlu2 %5386  ;;  %v5751_v50 = vmul.f32 1.442695, %v10187_v14 }
 0x687   : > { %v7025_v38 = vpop.eup %7024 }
 0x688   : > { %v5721_v3 = vpop.f32.mrf.mxu3  ;;  %v10217_v52 = vmul.f32 %v7025_v38, %v5424_v62 }
 0x689   : > { %v5722_v5 = vadd.f32 %v5721_v3, %v10162_v22  ;;  %v5419_v3 = vmul.f32 %v5387_v0, %v10591_v6  ;;  %v5406_v6 = vmul.f32 %v10181_v58, %v10558_v29  ;;  %v5755_v29 = vmul.f32 1.442695, %v10212_v24 }
 0x68a   : > { %v5405_v58 = vmul.f32 %v10169_v39, %v10560_v47  ;;  %v5743_v24 = vmul.f32 1.442695, %v10222_v45 }
 0x68b   : > { %v5757_v34 = vmul.f32 1.442695, %v5722_v5  ;;  %5821 = vrot.lane.b32.xlu0 %v5722_v5, %s7201_s6  ;;  %5807 = vrot.lane.b32.xlu2 %v10222_v45, %s7201_s6  ;;  %v5435_v5 = vmul.f32 0.5, %v5419_v3  ;;  %v5422_v8 = vmul.f32 0.5, %v5406_v6  ;;  %v5753_v45 = vmul.f32 1.442695, %v10197_v17 }
 0x68c   : > { %v5703_v16 = vpop.f32.mrf.mxu1 }
 0x68d   : > { %7026 = vpow2.f32 %v5757_v34  ;;  %v5704_v1 = vadd.f32 %v5703_v16, %v10162_v22  ;;  %v5749_v16 = vmul.f32 1.442695, %v10177_v32  ;;  %v5404_v32 = vmul.f32 %v10160_v57, %v9831_v59 }
 0x68f   : > { %v5745_v18 = vmul.f32 1.442695, %v5704_v1 }
 0x690   : > { %v5724_v49 = vpop.f32.mrf.mxu3 }
 0x691   : > { %7028 = vpow2.f32 %v5745_v18  ;;  %v5725_v54 = vadd.f32 %v5724_v49, %v10162_v22 }
 0x693   : > { %v7027_v27 = vpop.eup %7026  ;;  %v5759_v20 = vmul.f32 1.442695, %v5725_v54  ;;  %5823 = vrot.lane.b32.xlu1 %v5725_v54, %s7201_s6  ;;  %5809 = vrot.lane.b32.xlu0 %v5704_v1, %s7201_s6  ;;  %v5737_v1 = vmul.f32 1.442695, %v10184_v33  ;;  %v5379_v33 = vpop.permute.xlu1 %5378 }
 0x694   : > { %v5706_v21 = vpop.f32.mrf.mxu1  ;;  %v10236_v4 = vmul.f32 %v7027_v27, %v5432_v7  ;;  %v5733_v7 = vmul.f32 1.442695, %v10165_v12  ;;  %v5420_v27 = vmul.f32 0.5, %v5404_v32  ;;  %v5415_v41 = vmul.f32 %v5379_v33, %v10579_v30 }
 0x695   : > { %7030 = vpow2.f32 %v5759_v20  ;;  %v5707_v15 = vadd.f32 %v5706_v21, %v10162_v22  ;;  %v5413_v30 = vmul.f32 %v10209_v43, %v10580_v40 }
 0x697   : > { %v7029_v19 = vpop.eup %7028  ;;  %v5747_v61 = vmul.f32 1.442695, %v5707_v15 }
 0x698   : > { %v5727_v53 = vpop.f32.mrf.mxu3  ;;  %v10240_v37 = vmul.f32 %v7029_v19, %v5426_v48  ;;  %v5421_v19 = vmul.f32 0.5, %v5405_v58 }
 0x699   : > { %7032 = vpow2.f32 %v5747_v61  ;;  %v10243_v10 = vadd.f32 %v5727_v53, %v10162_v22 }
 0x69b   : > { %v7031_v46 = vpop.eup %7030  ;;  %5811 = vrot.lane.b32.xlu1 %v5707_v15, %s7201_s6  ;;  %5825 = vrot.lane.b32.xlu2 %v10243_v10, %s7201_s6  ;;  %v5385_v57 = vpop.permute.xlu1 %5384 }
 0x69c   : > { %v10248_v56 = vmul.f32 %v7031_v46, %v5433_v55  ;;  %v5431_v55 = vmul.f32 0.5, %v5415_v41 }
 0x69f   : > { %v7033_v35 = vpop.eup %7032 }
 0x6a0   : > { %v5730_v62 = vpop.f32.mrf.mxu3  ;;  %v10250_v51 = vmul.f32 %v7033_v35, %v5427_v31  ;;  %v5409_v31 = vmul.f32 %v10194_v42, %v10563_v9  ;;  %v5414_v9 = vmul.f32 %v10219_v60, %v10583_v28 }
 0x6a1   : > { %v5731_v23 = vadd.f32 %v5730_v62, %v10162_v22  ;;  %v5428_v22 = vmul.f32 0.5, %v5412_v63  ;;  %v5761_v63 = vmul.f32 1.442695, %v10243_v10 }
 0x6a2   : > { %v5425_v0 = vmul.f32 0.5, %v5409_v31 }
 0x6a3   : > { %v5763_v38 = vmul.f32 1.442695, %v5731_v23  ;;  %5827 = vrot.lane.b32.xlu0 %v5731_v23, %s7201_s6 }
 0x6a5   : > { %7034 = vpow2.f32 %v5763_v38  ;;  %v5429_v38 = vmul.f32 0.5, %v5413_v30 }
 0x6a6   : > { %7036 = vpow2.f32 %v5749_v16 }
 0x6a7   : > { %7038 = vpow2.f32 %v5737_v1  ;;  %v5430_v1 = vmul.f32 0.5, %v5414_v9 }
 0x6a8   : > { %7040 = vpow2.f32 %v5733_v7 }
 0x6a9   : > { %7042 = vpow2.f32 %v5735_v36 }
 0x6aa   : > { %7044 = vpow2.f32 %v5755_v29 }
 0x6ab   : > { %v7035_v26 = vpop.eup %7034  ;;  %7046 = vpow2.f32 %v5751_v50 }
 0x6ac   : > { %v10255_v34 = vmul.f32 %v7035_v26, %v5435_v5  ;;  %v7037_v18 = vpop.eup %7036  ;;  %7048 = vpow2.f32 %v5743_v24 }
 0x6ad   : > { %v5773_v49 = vmul.f32 %v7037_v18, %v5428_v22  ;;  %v7039_v25 = vpop.eup %7038  ;;  %7050 = vpow2.f32 %v5753_v45  ;;  %v5418_v22 = vmul.f32 %v5385_v57, %v10588_v11 }
 0x6ae   : > { %v5767_v12 = vmul.f32 %v7039_v25, %v5422_v8  ;;  %v7041_v20 = vpop.eup %7040  ;;  %7052 = vpow2.f32 %v5761_v63 }
 0x6af   : > { %v5765_v59 = vmul.f32 %v7041_v20, %v5420_v27  ;;  %v7043_v61 = vpop.eup %7042 }
 0x6b0   : > { %v5766_v53 = vmul.f32 %v7043_v61, %v5421_v19  ;;  %v7045_v47 = vpop.eup %7044 }
 0x6b1   : > { %v5776_v35 = vmul.f32 %v7045_v47, %v5431_v55  ;;  %v7047_v23 = vpop.eup %7046 }
 0x6b2   : > { %v7049_v3 = vpop.eup %7048  ;;  %v5774_v42 = vmul.f32 %v7047_v23, %v5429_v38 }
 0x6b3   : > { %v5770_v5 = vmul.f32 %v7049_v3, %v5425_v0  ;;  %v7051_v17 = vpop.eup %7050 }
 0x6b4   : > { %v5775_v18 = vmul.f32 %v7051_v17, %v5430_v1  ;;  %v7053_v10 = vpop.eup %7052 }
 0x6c5   : > { %v5814_v54 = vpop.permute.xlu2 %5813 }
 0x6c6   : > { %v5853_v13 = vadd.f32 %v5814_v54, %v5773_v49  ;;  %v5434_v49 = vmul.f32 0.5, %v5418_v22 }
 0x6c8   : > { %5893 = vrot.lane.b32.xlu0 %v5853_v13, %s7200_s30  ;;  %v5779_v54 = vmul.f32 %v7053_v10, %v5434_v49 }
 0x6cd   : > { %v5802_v21 = vpop.permute.xlu2 %5801 }
 0x6ce   : > { %v5847_v44 = vadd.f32 %v5802_v21, %v5767_v12 }
 0x6d0   : > { %5881 = vrot.lane.b32.xlu0 %v5847_v44, %s7200_s30 }
 0x6d1   : > { %v5798_v15 = vpop.permute.xlu0 %5797 }
 0x6d2   : > { %v5845_v48 = vadd.f32 %v5798_v15, %v5765_v59 }
 0x6d4   : > { %5877 = vrot.lane.b32.xlu1 %v5845_v48, %s7200_s30 }
 0x6d9   : > { %v5800_v39 = vpop.permute.xlu1 %5799 }
 0x6da   : > { %v5846_v46 = vadd.f32 %v5800_v39, %v5766_v53 }
 0x6dc   : > { %5879 = vrot.lane.b32.xlu2 %v5846_v46, %s7200_s30 }
 0x6dd   : > { %v5820_v62 = vpop.permute.xlu2 %5819 }
 0x6de   : > { %v5856_v14 = vadd.f32 %v5820_v62, %v5776_v35 }
 0x6e0   : > { %5899 = vrot.lane.b32.xlu0 %v5856_v14, %s7200_s30 }
 0x6e5   : > { %v5816_v40 = vpop.permute.xlu0 %5815  ;;  %v5808_v43 = vpop.permute.xlu2 %5807 }
 0x6e6   : > { %v5854_v26 = vadd.f32 %v5816_v40, %v5774_v42  ;;  %v5850_v16 = vadd.f32 %v5808_v43, %v5770_v5 }
 0x6e8   : > { %5895 = vrot.lane.b32.xlu1 %v5854_v26, %s7200_s30  ;;  %5887 = vrot.lane.b32.xlu0 %v5850_v16, %s7200_s30 }
 0x6ed   : > { %v5818_v7 = vpop.permute.xlu1 %5817  ;;  %v5804_v28 = vpop.permute.xlu0 %5803 }
 0x6ee   : > { %v5855_v60 = vadd.f32 %v5818_v7, %v5775_v18  ;;  %v5848_v6 = vadd.f32 %v5804_v28, %v10205_v2 }
 0x6f0   : > { %5897 = vrot.lane.b32.xlu2 %v5855_v60, %s7200_s30  ;;  %5883 = vrot.lane.b32.xlu1 %v5848_v6, %s7200_s30 }
 0x6f5   : > { %v5806_v13 = vpop.permute.xlu1 %5805  ;;  %v5826_v32 = vpop.permute.xlu2 %5825 }
 0x6f6   : > { %v5849_v8 = vadd.f32 %v5806_v13, %v10217_v52  ;;  %v5859_v25 = vadd.f32 %v5826_v32, %v5779_v54 }
 0x6f8   : > { %5885 = vrot.lane.b32.xlu2 %v5849_v8, %s7200_s30  ;;  %5905 = vrot.lane.b32.xlu0 %v5859_v25, %s7200_s30 }
 0x6fd   : > { %v5822_v11 = vpop.permute.xlu0 %5821 }
 0x6fe   : > { %v5857_v33 = vadd.f32 %v5822_v11, %v10236_v4 }
 0x700   : > { %5901 = vrot.lane.b32.xlu1 %v5857_v33, %s7200_s30 }
 0x705   : > { %v5824_v2 = vpop.permute.xlu1 %5823  ;;  %v5810_v36 = vpop.permute.xlu0 %5809 }
 0x706   : > { %v5851_v27 = vadd.f32 %v5810_v36, %v10240_v37  ;;  %v5858_v4 = vadd.f32 %v5824_v2, %v10248_v56 }
 0x708   : > { %5889 = vrot.lane.b32.xlu1 %v5851_v27, %s7200_s30 }
 0x70d   : > { %v5812_v52 = vpop.permute.xlu1 %5811 }
 0x70e   : > { %v5852_v12 = vadd.f32 %v5812_v52, %v10250_v51 }
 0x710   : > { %5891 = vrot.lane.b32.xlu2 %v5852_v12, %s7200_s30 }
 0x715   : > { %v5828_v20 = vpop.permute.xlu0 %5827 }
 0x716   : > { %v5860_v21 = vadd.f32 %v5828_v20, %v10255_v34 }
 0x718   : > { %5903 = vrot.lane.b32.xlu2 %v5858_v4, %s7200_s30  ;;  %5907 = vrot.lane.b32.xlu1 %v5860_v21, %s7200_s30 }
 0x736   : > { %v5880_v37 = vpop.permute.xlu2 %5879 }
 0x737   : > { %5927 = vst.msk [vmem:[%s7331_s12 + $0x8] sm:$0xff] %vm5925_vm2, %v5880_v37 }
 0x73a   : > { %v5894_v51 = vpop.permute.xlu0 %5893 }
 0x73b   : > { %5934 = vst.msk [vmem:[%s7331_s12 + $0x40] sm:$0xff] %vm5925_vm2, %v5894_v51 }
 0x742   : > { %v5882_v44 = vpop.permute.xlu0 %5881 }
 0x743   : > { %5928 = vst.msk [vmem:[%s7331_s12 + $0x10] sm:$0xff] %vm5925_vm2, %v5882_v44 }
 0x746   : > { %v5878_v56 = vpop.permute.xlu1 %5877 }
 0x747   : > { %5926 = vst.msk [vmem:[%s7331_s12] sm:$0xff] %vm5925_vm2, %v5878_v56 }
 0x74a   : > { %v5898_v34 = vpop.permute.xlu2 %5897 }
 0x74b   : > { %5936 = vst.msk [vmem:[%s7331_s12 + $0x50] sm:$0xff] %vm5925_vm2, %v5898_v34 }
 0x752   : > { %v5900_v29 = vpop.permute.xlu0 %5899  ;;  %v5886_v58 = vpop.permute.xlu2 %5885 }
 0x753   : > { %5937 = vst.msk [vmem:[%s7331_s12 + $0x58] sm:$0xff] %vm5925_vm2, %v5900_v29 }
 0x754   : > { %5930 = vst.msk [vmem:[%s7331_s12 + $0x20] sm:$0xff] %vm5925_vm2, %v5886_v58 }
 0x75a   : > { %v5896_v59 = vpop.permute.xlu1 %5895  ;;  %v5888_v57 = vpop.permute.xlu0 %5887 }
 0x75b   : > { %5935 = vst.msk [vmem:[%s7331_s12 + $0x48] sm:$0xff] %vm5925_vm2, %v5896_v59 }
 0x75c   : > { %5931 = vst.msk [vmem:[%s7331_s12 + $0x28] sm:$0xff] %vm5925_vm2, %v5888_v57 }
 0x762   : > { %v5884_v15 = vpop.permute.xlu1 %5883 }
 0x763   : > { %5929 = vst.msk [vmem:[%s7331_s12 + $0x18] sm:$0xff] %vm5925_vm2, %v5884_v15 }
 0x76a   : > { %v5906_v48 = vpop.permute.xlu0 %5905  ;;  %v5892_v19 = vpop.permute.xlu2 %5891 }
 0x76b   : > { %5940 = vst.msk [vmem:[%s7331_s12 + $0x70] sm:$0xff] %vm5925_vm2, %v5906_v48 }
 0x76c   : > { %5933 = vst.msk [vmem:[%s7331_s12 + $0x38] sm:$0xff] %vm5925_vm2, %v5892_v19 }
 0x772   : > { %v5902_v41 = vpop.permute.xlu1 %5901  ;;  %v5904_v61 = vpop.permute.xlu2 %5903 }
 0x773   : > { %5938 = vst.msk [vmem:[%s7331_s12 + $0x60] sm:$0xff] %vm5925_vm2, %v5902_v41 }
 0x774   : > { %5939 = vst.msk [vmem:[%s7331_s12 + $0x68] sm:$0xff] %vm5925_vm2, %v5904_v61 }
 0x77a   : > { %v5890_v50 = vpop.permute.xlu1 %5889 }
 0x77b   : > { %5932 = vst.msk [vmem:[%s7331_s12 + $0x30] sm:$0xff] %vm5925_vm2, %v5890_v50 }
 0x78a   : > { %v5908_v24 = vpop.permute.xlu1 %5907 }
 0x78b   : > { %5941 = vst.msk [vmem:[%s7331_s12 + $0x78] sm:$0xff] %vm5925_vm2, %v5908_v24 }
 0x78c PF: > { %s15_s18 = sadd.s32 1, %s7128_s18  }
 0x78d   : > { %p12_p5 = scmp.ge.s32.totalorder %s15_s18, 4  }
 0x78f   :  { %14 = sbr.rel (!%p12_p5) target bundleno = 1 (0x1), region = 96 }

</bundles_post_ra>
